<compile_context>
chip_gen: v7x
topology: tpu7x:2x2x1
jax: 0.10.0
libtpu: 0.0.40
codegen_flags: <defaults>
</compile_context>

<pallas_src>
import functools

import jax
import jax.numpy as jnp
from jax.experimental import pallas as pl
from jax.experimental.pallas import tpu as pltpu


# VMEM budget: above the default scoped limits (16 MiB v5e / 32 MiB v6e, v7x)
# but comfortably below v7x's 64 MiB physical VMEM.
_VMEM_LIMIT_BYTES = 48 * 1024 * 1024

# Single-buffer resident weight blocks (their block index never changes, so a
# second pipeline buffer is wasted VMEM).  main() falls back to the default
# double buffering if this jax build rejects pipeline_mode on pallas_call.
_WEIGHT_PIPELINE_MODE = pl.Buffered(1)


# ----------------------------------------------------------------------------
# Pallas kernels
# ----------------------------------------------------------------------------
def _attention_core(x_q, x_kv, wq, bq, wk, bk, wv, bv, wo, bo, g, beta, o_ref,
                    *, num_heads, eps):
    """Shared MHA + out-projection + residual + LayerNorm body (values in, o_ref out).

    x_q : (Tq, D) f32 query tile (also the residual input)
    x_kv: (Sk, D) f32 key/value source
    wq/wk/wv: (D, H*dk) bf16, bq/bk/bv: (1, H*dk) f32
    wo  : (H*dk, D) bf16, bo: (1, D) f32;  g/beta: (1, D) f32
    """
    xq_b = x_q.astype(jnp.bfloat16)
    xkv_b = x_kv.astype(jnp.bfloat16)

    # Fused Q/K/V projections across ALL heads (one MXU matmul each).
    # NOTE: the 1/sqrt(dk) attention scale is folded into wq/bq at init time.
    q = jnp.dot(xq_b, wq, preferred_element_type=jnp.float32) + bq
    k = jnp.dot(xkv_b, wk, preferred_element_type=jnp.float32) + bk
    v = jnp.dot(xkv_b, wv, preferred_element_type=jnp.float32) + bv

    hd = q.shape[-1]
    dk = hd // num_heads

    q_b = q.astype(jnp.bfloat16)
    k_b = k.astype(jnp.bfloat16)
    v_b = v.astype(jnp.bfloat16)

    # Per-head scaled-dot-product attention.  Per-head contexts are collected
    # and the output projection is done with ONE (Tq, H*dk) @ (H*dk, D) matmul
    # so the MXU contraction dimension stays full (instead of H matmuls with
    # K = dk plus H f32 accumulator adds).
    # TODO(synk): for dk < 128 the per-head column slices are not lane-aligned;
    #             a (H, S, dk)-major Q/K/V layout would remove masked-slice
    #             overhead at large model sizes.
    ctxs = []
    for h in range(num_heads):
        lo, hi = h * dk, (h + 1) * dk
        qh = q_b[:, lo:hi]                 # (Tq, dk)
        kh = k_b[:, lo:hi]                 # (Sk, dk)
        vh = v_b[:, lo:hi]                 # (Sk, dk)

        # scores = qh @ kh^T (contract last dims; no explicit transpose op)
        s = jax.lax.dot_general(qh, kh, (((1,), (1,)), ((), ())),
                                preferred_element_type=jnp.float32)   # (Tq, Sk)
        m = jnp.max(s, axis=-1, keepdims=True)
        p = jnp.exp(s - m)
        denom = jnp.sum(p, axis=-1, keepdims=True)
        p = p * pl.reciprocal(denom, approx=True)                     # EUP recip

        ctxs.append(jnp.dot(p.astype(jnp.bfloat16), vh,
                            preferred_element_type=jnp.float32).astype(jnp.bfloat16))

    ctx = jnp.concatenate(ctxs, axis=-1)                              # (Tq, H*dk)
    attn = jnp.dot(ctx, wo, preferred_element_type=jnp.float32) + bo  # (Tq, D)

    # Residual + LayerNorm (f32 on the VPU).
    y = x_q + attn
    mean = jnp.mean(y, axis=-1, keepdims=True)
    var = jnp.mean((y - mean) ** 2, axis=-1, keepdims=True)
    o_ref[...] = (y - mean) * jax.lax.rsqrt(var + eps) * g + beta


def self_attn_res_ln_kernel(x_ref, wq_ref, bq_ref, wk_ref, bk_ref, wv_ref,
                            bv_ref, wo_ref, bo_ref, g_ref, beta_ref, o_ref,
                            *, num_heads, eps, tq):
    """Self-attention: the single resident (S, D) block is both K/V source and
    the per-step query tile (sliced in VMEM), so HBM traffic for the activation
    is paid once per batch element instead of twice."""
    qi = pl.program_id(1)
    start = pl.multiple_of(qi * tq, tq)
    x_q = x_ref[pl.ds(start, tq), :]
    _attention_core(x_q, x_ref[...],
                    wq_ref[...], bq_ref[...], wk_ref[...], bk_ref[...],
                    wv_ref[...], bv_ref[...], wo_ref[...], bo_ref[...],
                    g_ref[...], beta_ref[...], o_ref,
                    num_heads=num_heads, eps=eps)


def cross_attn_res_ln_kernel(q_ref, kv_ref, wq_ref, bq_ref, wk_ref, bk_ref,
                             wv_ref, bv_ref, wo_ref, bo_ref, g_ref, beta_ref,
                             o_ref, *, num_heads, eps):
    """Cross-attention over a (tq, D) query tile against a resident memory block."""
    _attention_core(q_ref[...], kv_ref[...],
                    wq_ref[...], bq_ref[...], wk_ref[...], bk_ref[...],
                    wv_ref[...], bv_ref[...], wo_ref[...], bo_ref[...],
                    g_ref[...], beta_ref[...], o_ref,
                    num_heads=num_heads, eps=eps)


def ffn_res_ln_kernel(x_ref, w1_ref, b1_ref, w2_ref, b2_ref, g_ref, beta_ref,
                      o_ref, *, eps):
    """LayerNorm(x + Linear2(ReLU(Linear1(x)))) for a (TM, D) tile of rows."""
    x = x_ref[...]                                                    # (TM, D) f32
    h = jnp.dot(x.astype(jnp.bfloat16), w1_ref[...],
                preferred_element_type=jnp.float32) + b1_ref[...]
    h = jnp.maximum(h, 0.0)                                           # ReLU (f32)
    f = jnp.dot(h.astype(jnp.bfloat16), w2_ref[...],
                preferred_element_type=jnp.float32) + b2_ref[...]
    y = x + f
    mean = jnp.mean(y, axis=-1, keepdims=True)
    var = jnp.mean((y - mean) ** 2, axis=-1, keepdims=True)
    o_ref[...] = (y - mean) * jax.lax.rsqrt(var + eps) * g_ref[...] + beta_ref[...]


def linear_kernel(x_ref, w_ref, b_ref, o_ref):
    """y = x @ W + b for a (TM, Din) tile of rows; W is (Din, Dout) bf16."""
    o_ref[...] = (
        jnp.dot(x_ref[...].astype(jnp.bfloat16), w_ref[...],
                preferred_element_type=jnp.float32)
        + b_ref[...]
    )


# ----------------------------------------------------------------------------
# Pallas wrappers
# ----------------------------------------------------------------------------
def _resident(shape):
    """Weight/bias spec: same block every grid step -> resident, single-buffered."""
    kwargs = {}
    if _WEIGHT_PIPELINE_MODE is not None:
        kwargs["pipeline_mode"] = _WEIGHT_PIPELINE_MODE
    return pl.BlockSpec(shape, lambda *_: (0,) * len(shape), **kwargs)


def _pick_tile(n, max_tile):
    """Largest tile that divides n: n itself if small, else a multiple of 8."""
    if n <= max_tile:
        return n
    t = (max_tile // 8) * 8
    while t >= 8:
        if n % t == 0:
            return t
        t -= 8
    return n   # no suitable divisor: fall back to a single full-size tile


def _mha_weight_specs(D, HD):
    return [
        _resident((D, HD)), _resident((1, HD)),
        _resident((D, HD)), _resident((1, HD)),
        _resident((D, HD)), _resident((1, HD)),
        _resident((HD, D)), _resident((1, D)),
        _resident((1, D)), _resident((1, D)),
    ]


def _mha_weight_args(p):
    return (p["wq"], p["bq"], p["wk"], p["bk"], p["wv"], p["bv"],
            p["wo"], p["bo"], p["ln_g"], p["ln_b"])


def self_attn_res_ln(p, x, *, num_heads, eps=1e-5, tq_max=256):
    """LayerNorm(x + MHA(x, x, x)); grid over (batch, query tiles)."""
    B, S, D = x.shape
    HD = p["wq"].shape[1]
    tq = _pick_tile(S, tq_max)

    return pl.pallas_call(
        functools.partial(self_attn_res_ln_kernel,
                          num_heads=num_heads, eps=eps, tq=tq),
        grid=(B, S // tq),
        in_specs=[pl.BlockSpec((None, S, D), lambda b, i: (b, 0, 0))]
                 + _mha_weight_specs(D, HD),
        out_specs=pl.BlockSpec((None, tq, D), lambda b, i: (b, i, 0)),
        out_shape=jax.ShapeDtypeStruct((B, S, D), jnp.float32),
        compiler_params=pltpu.CompilerParams(
            dimension_semantics=("parallel", "parallel"),
            vmem_limit_bytes=_VMEM_LIMIT_BYTES),
    )(x, *_mha_weight_args(p))


def cross_attn_res_ln(p, query, memory, *, num_heads, eps=1e-5, tq_max=256):
    """LayerNorm(query + MHA(query, memory, memory)); grid over (batch, query tiles)."""
    B, Sq, D = query.shape
    Sk = memory.shape[1]
    HD = p["wq"].shape[1]
    tq = _pick_tile(Sq, tq_max)

    return pl.pallas_call(
        functools.partial(cross_attn_res_ln_kernel, num_heads=num_heads, eps=eps),
        grid=(B, Sq // tq),
        in_specs=[pl.BlockSpec((None, tq, D), lambda b, i: (b, i, 0)),
                  pl.BlockSpec((None, Sk, D), lambda b, i: (b, 0, 0))]
                 + _mha_weight_specs(D, HD),
        out_specs=pl.BlockSpec((None, tq, D), lambda b, i: (b, i, 0)),
        out_shape=jax.ShapeDtypeStruct((B, Sq, D), jnp.float32),
        compiler_params=pltpu.CompilerParams(
            dimension_semantics=("parallel", "parallel"),
            vmem_limit_bytes=_VMEM_LIMIT_BYTES),
    )(query, memory, *_mha_weight_args(p))


def ffn_res_ln(p, x, *, eps=1e-5, tm_max=512):
    """LayerNorm(x + FFN(x)); tiled over rows M = B*S with resident weights."""
    B, S, D = x.shape
    M = B * S
    F = p["w1"].shape[1]
    tm = _pick_tile(M, tm_max)

    y = pl.pallas_call(
        functools.partial(ffn_res_ln_kernel, eps=eps),
        grid=(M // tm,),
        in_specs=[
            pl.BlockSpec((tm, D), lambda i: (i, 0)),
            _resident((D, F)), _resident((1, F)),
            _resident((F, D)), _resident((1, D)),
            _resident((1, D)), _resident((1, D)),
        ],
        out_specs=pl.BlockSpec((tm, D), lambda i: (i, 0)),
        out_shape=jax.ShapeDtypeStruct((M, D), jnp.float32),
        compiler_params=pltpu.CompilerParams(
            dimension_semantics=("parallel",),
            vmem_limit_bytes=_VMEM_LIMIT_BYTES),
    )(x.reshape(M, D), p["w1"], p["b1"], p["w2"], p["b2"], p["ln_g"], p["ln_b"])
    return y.reshape(B, S, D)


def linear3d(x, w, b, *, tm_max=512):
    """x: (B, S, Din); w: (Din, Dout) bf16; b: (1, Dout) f32."""
    B, S, Din = x.shape
    Dout = w.shape[1]
    M = B * S
    tm = _pick_tile(M, tm_max)

    y = pl.pallas_call(
        linear_kernel,
        grid=(M // tm,),
        in_specs=[
            pl.BlockSpec((tm, Din), lambda i: (i, 0)),
            _resident((Din, Dout)), _resident((1, Dout)),
        ],
        out_specs=pl.BlockSpec((tm, Dout), lambda i: (i, 0)),
        out_shape=jax.ShapeDtypeStruct((M, Dout), jnp.float32),
        compiler_params=pltpu.CompilerParams(
            dimension_semantics=("parallel",),
            vmem_limit_bytes=_VMEM_LIMIT_BYTES),
    )(x.reshape(M, Din), w, b)
    return y.reshape(B, S, Dout)


# ----------------------------------------------------------------------------
# Model glue (plain JAX): position encoding, layer stacking, parameter init
# ----------------------------------------------------------------------------
def position_encoding(seq_len, dim_model):
    # Matches the reference: sin on even dims, cos on odd dims (same raw index).
    pos = jnp.arange(seq_len, dtype=jnp.float32).reshape(1, -1, 1)
    dim = jnp.arange(dim_model, dtype=jnp.float32).reshape(1, 1, -1)
    phase = pos / jnp.power(10000.0, dim / dim_model)
    return jnp.where(dim.astype(jnp.int32) % 2 == 0, jnp.sin(phase), jnp.cos(phase))


def init_mha(key, num_heads, dim_model, dk, scale=0.05):
    ks = jax.random.split(key, 4)
    hd = num_heads * dk
    # Fold the 1/sqrt(dim_q) attention scale into Wq/bq (host-side, free).
    inv_sqrt_dk = 1.0 / (float(dk) ** 0.5)

    def w(k, din, dout, s):
        return (jax.random.normal(k, (din, dout), jnp.float32) * s).astype(jnp.bfloat16)

    return {
        "wq": w(ks[0], dim_model, hd, scale * inv_sqrt_dk),
        "bq": jnp.zeros((1, hd), jnp.float32),        # zero bias (scale is a no-op here)
        "wk": w(ks[1], dim_model, hd, scale), "bk": jnp.zeros((1, hd), jnp.float32),
        "wv": w(ks[2], dim_model, hd, scale), "bv": jnp.zeros((1, hd), jnp.float32),
        "wo": w(ks[3], hd, dim_model, scale), "bo": jnp.zeros((1, dim_model), jnp.float32),
        "ln_g": jnp.ones((1, dim_model), jnp.float32),
        "ln_b": jnp.zeros((1, dim_model), jnp.float32),
    }


def init_ffn(key, dim_model, dim_ff, scale=0.05):
    k1, k2 = jax.random.split(key)
    w1 = (jax.random.normal(k1, (dim_model, dim_ff), jnp.float32) * scale).astype(jnp.bfloat16)
    w2 = (jax.random.normal(k2, (dim_ff, dim_model), jnp.float32) * scale).astype(jnp.bfloat16)
    return {
        "w1": w1, "b1": jnp.zeros((1, dim_ff), jnp.float32),
        "w2": w2, "b2": jnp.zeros((1, dim_model), jnp.float32),
        "ln_g": jnp.ones((1, dim_model), jnp.float32),
        "ln_b": jnp.zeros((1, dim_model), jnp.float32),
    }


def init_decoder_layer(key, dim_model, num_heads, dim_ff):
    dk = max(dim_model // num_heads, 1)
    k1, k2, k3 = jax.random.split(key, 3)
    return {
        "attn1": init_mha(k1, num_heads, dim_model, dk),
        "attn2": init_mha(k2, num_heads, dim_model, dk),
        "ffn": init_ffn(k3, dim_model, dim_ff),
    }


def init_transformer_decoder(key, num_layers, dim_model, num_heads, dim_ff, scale=0.05):
    keys = jax.random.split(key, num_layers + 1)
    layers = [init_decoder_layer(keys[i], dim_model, num_heads, dim_ff)
              for i in range(num_layers)]
    w_out = (jax.random.normal(keys[-1], (dim_model, dim_model), jnp.float32)
             * scale).astype(jnp.bfloat16)
    b_out = jnp.zeros((1, dim_model), jnp.float32)
    return {"layers": layers, "w_out": w_out, "b_out": b_out}


def decoder_layer_fwd(p, tgt, memory, *, num_heads):
    tgt = self_attn_res_ln(p["attn1"], tgt, num_heads=num_heads)            # self-attn
    tgt = cross_attn_res_ln(p["attn2"], tgt, memory, num_heads=num_heads)   # cross-attn
    return ffn_res_ln(p["ffn"], tgt)                                        # FFN


def transformer_decoder_fwd(params, tgt, memory, *, num_heads):
    T, D = tgt.shape[1], tgt.shape[2]
    tgt = tgt + position_encoding(T, D)
    for lp in params["layers"]:
        tgt = decoder_layer_fwd(lp, tgt, memory, num_heads=num_heads)
    return linear3d(tgt, params["w_out"], params["b_out"])


# ----------------------------------------------------------------------------
if __name__ == "__main__":
    # Small, deterministic configuration.
    B = 2          # batch
    S_TGT = 8      # decoder (tgt) sequence length
    S_MEM = 8      # memory sequence length
    DIM = 32       # dim_model
    HEADS = 4      # num_heads  -> dim_q = dim_k = 8
    FF = 64        # dim_feedforward
    N_LAYERS = 2   # decoder layers

    key = jax.random.PRNGKey(0)
    k_tgt, k_mem, k_params = jax.random.split(key, 3)

    tgt = jax.random.normal(k_tgt, (B, S_TGT, DIM), jnp.float32)
    memory = jax.random.normal(k_mem, (B, S_MEM, DIM), jnp.float32)

    params = init_transformer_decoder(k_params, N_LAYERS, DIM, HEADS, FF)

    def _run():
        fwd = jax.jit(functools.partial(transformer_decoder_fwd, num_heads=HEADS))
        return jax.block_until_ready(fwd(params, tgt, memory))

    try:
        out = _run()
    except Exception:
        # Fallback: this jax build does not accept single-buffered resident
        # blocks (pipeline_mode=pl.Buffered(1)); retry with default buffering.
        _WEIGHT_PIPELINE_MODE = None
        out = _run()

    assert out.shape == (B, S_TGT, DIM), out.shape
    assert bool(jnp.all(jnp.isfinite(out)))
    print("KERNEL_OK")
</pallas_src>

<mosaic_0001>
module attributes {stable_mosaic.version = 11 : i64} {
  func.func @cross_attn_res_ln_kernel(%arg0: i32, %arg1: i32, %arg2: memref<1x8x32xf32, #tpu.memory_space<vmem>>, %arg3: memref<1x8x32xf32, #tpu.memory_space<vmem>>, %arg4: memref<32x32xbf16, #tpu.memory_space<vmem>>, %arg5: memref<1x32xf32, #tpu.memory_space<vmem>>, %arg6: memref<32x32xbf16, #tpu.memory_space<vmem>>, %arg7: memref<1x32xf32, #tpu.memory_space<vmem>>, %arg8: memref<32x32xbf16, #tpu.memory_space<vmem>>, %arg9: memref<1x32xf32, #tpu.memory_space<vmem>>, %arg10: memref<32x32xbf16, #tpu.memory_space<vmem>>, %arg11: memref<1x32xf32, #tpu.memory_space<vmem>>, %arg12: memref<1x32xf32, #tpu.memory_space<vmem>>, %arg13: memref<1x32xf32, #tpu.memory_space<vmem>>, %arg14: memref<1x8x32xf32, #tpu.memory_space<vmem>>) attributes {dimension_semantics = [#tpu.dimension_semantics<parallel>, #tpu.dimension_semantics<parallel>], iteration_bounds = array<i64: 2, 1>, scalar_prefetch = 0 : i64, scratch_operands = 0 : i64, tpu.core_type = #tpu.core_type<tc>, window_params = [{transform_indices = @transform_0, window_bounds = array<i64: 1, 8, 32>}, {transform_indices = @transform_1, window_bounds = array<i64: 1, 8, 32>}, {pipeline_mode = #tpu.pipeline_mode<synchronous>, transform_indices = @transform_2, window_bounds = array<i64: 32, 32>}, {pipeline_mode = #tpu.pipeline_mode<synchronous>, transform_indices = @transform_3, window_bounds = array<i64: 1, 32>}, {pipeline_mode = #tpu.pipeline_mode<synchronous>, transform_indices = @transform_4, window_bounds = array<i64: 32, 32>}, {pipeline_mode = #tpu.pipeline_mode<synchronous>, transform_indices = @transform_5, window_bounds = array<i64: 1, 32>}, {pipeline_mode = #tpu.pipeline_mode<synchronous>, transform_indices = @transform_6, window_bounds = array<i64: 32, 32>}, {pipeline_mode = #tpu.pipeline_mode<synchronous>, transform_indices = @transform_7, window_bounds = array<i64: 1, 32>}, {pipeline_mode = #tpu.pipeline_mode<synchronous>, transform_indices = @transform_8, window_bounds = array<i64: 32, 32>}, {pipeline_mode = #tpu.pipeline_mode<synchronous>, transform_indices = @transform_9, window_bounds = array<i64: 1, 32>}, {pipeline_mode = #tpu.pipeline_mode<synchronous>, transform_indices = @transform_10, window_bounds = array<i64: 1, 32>}, {pipeline_mode = #tpu.pipeline_mode<synchronous>, transform_indices = @transform_11, window_bounds = array<i64: 1, 32>}, {transform_indices = @transform_12, window_bounds = array<i64: 1, 8, 32>}]} {
    %c0 = arith.constant 0 : index
    %c0_0 = arith.constant 0 : index
    %c0_1 = arith.constant 0 : index
    %0 = vector.load %arg2[%c0, %c0_0, %c0_1] : memref<1x8x32xf32, #tpu.memory_space<vmem>>, vector<1x8x32xf32>
    %1 = vector.shape_cast %0 : vector<1x8x32xf32> to vector<8x32xf32>
    %c0_2 = arith.constant 0 : index
    %c0_3 = arith.constant 0 : index
    %c0_4 = arith.constant 0 : index
    %2 = vector.load %arg3[%c0_2, %c0_3, %c0_4] : memref<1x8x32xf32, #tpu.memory_space<vmem>>, vector<1x8x32xf32>
    %3 = vector.shape_cast %2 : vector<1x8x32xf32> to vector<8x32xf32>
    %c0_5 = arith.constant 0 : index
    %c0_6 = arith.constant 0 : index
    %4 = vector.load %arg4[%c0_5, %c0_6] : memref<32x32xbf16, #tpu.memory_space<vmem>>, vector<32x32xbf16>
    %c0_7 = arith.constant 0 : index
    %c0_8 = arith.constant 0 : index
    %5 = vector.load %arg5[%c0_7, %c0_8] : memref<1x32xf32, #tpu.memory_space<vmem>>, vector<1x32xf32>
    %c0_9 = arith.constant 0 : index
    %c0_10 = arith.constant 0 : index
    %6 = vector.load %arg6[%c0_9, %c0_10] : memref<32x32xbf16, #tpu.memory_space<vmem>>, vector<32x32xbf16>
    %c0_11 = arith.constant 0 : index
    %c0_12 = arith.constant 0 : index
    %7 = vector.load %arg7[%c0_11, %c0_12] : memref<1x32xf32, #tpu.memory_space<vmem>>, vector<1x32xf32>
    %c0_13 = arith.constant 0 : index
    %c0_14 = arith.constant 0 : index
    %8 = vector.load %arg8[%c0_13, %c0_14] : memref<32x32xbf16, #tpu.memory_space<vmem>>, vector<32x32xbf16>
    %c0_15 = arith.constant 0 : index
    %c0_16 = arith.constant 0 : index
    %9 = vector.load %arg9[%c0_15, %c0_16] : memref<1x32xf32, #tpu.memory_space<vmem>>, vector<1x32xf32>
    %c0_17 = arith.constant 0 : index
    %c0_18 = arith.constant 0 : index
    %10 = vector.load %arg10[%c0_17, %c0_18] : memref<32x32xbf16, #tpu.memory_space<vmem>>, vector<32x32xbf16>
    %c0_19 = arith.constant 0 : index
    %c0_20 = arith.constant 0 : index
    %11 = vector.load %arg11[%c0_19, %c0_20] : memref<1x32xf32, #tpu.memory_space<vmem>>, vector<1x32xf32>
    %c0_21 = arith.constant 0 : index
    %c0_22 = arith.constant 0 : index
    %12 = vector.load %arg12[%c0_21, %c0_22] : memref<1x32xf32, #tpu.memory_space<vmem>>, vector<1x32xf32>
    %c0_23 = arith.constant 0 : index
    %c0_24 = arith.constant 0 : index
    %13 = vector.load %arg13[%c0_23, %c0_24] : memref<1x32xf32, #tpu.memory_space<vmem>>, vector<1x32xf32>
    %14 = arith.truncf %1 : vector<8x32xf32> to vector<8x32xbf16>
    %15 = arith.truncf %3 : vector<8x32xf32> to vector<8x32xbf16>
    %cst = arith.constant dense<0.000000e+00> : vector<8x32xf32>
    %16 = tpu.matmul %14, %4, %cst {dimension_numbers = #tpu.dot_dimension_numbers<[1], [0], [0], [1], [0, 0, 1, 1], [], []>} : vector<8x32xbf16>, vector<32x32xbf16>, vector<8x32xf32> -> vector<8x32xf32>
    %17 = vector.broadcast %5 : vector<1x32xf32> to vector<8x32xf32>
    %18 = arith.addf %16, %17 : vector<8x32xf32>
    %cst_25 = arith.constant dense<0.000000e+00> : vector<8x32xf32>
    %19 = tpu.matmul %15, %6, %cst_25 {dimension_numbers = #tpu.dot_dimension_numbers<[1], [0], [0], [1], [0, 0, 1, 1], [], []>} : vector<8x32xbf16>, vector<32x32xbf16>, vector<8x32xf32> -> vector<8x32xf32>
    %20 = vector.broadcast %7 : vector<1x32xf32> to vector<8x32xf32>
    %21 = arith.addf %19, %20 : vector<8x32xf32>
    %cst_26 = arith.constant dense<0.000000e+00> : vector<8x32xf32>
    %22 = tpu.matmul %15, %8, %cst_26 {dimension_numbers = #tpu.dot_dimension_numbers<[1], [0], [0], [1], [0, 0, 1, 1], [], []>} : vector<8x32xbf16>, vector<32x32xbf16>, vector<8x32xf32> -> vector<8x32xf32>
    %23 = vector.broadcast %9 : vector<1x32xf32> to vector<8x32xf32>
    %24 = arith.addf %22, %23 : vector<8x32xf32>
    %25 = arith.truncf %18 : vector<8x32xf32> to vector<8x32xbf16>
    %26 = arith.truncf %21 : vector<8x32xf32> to vector<8x32xbf16>
    %27 = arith.truncf %24 : vector<8x32xf32> to vector<8x32xbf16>
    %28 = vector.extract_strided_slice %25 {offsets = [0, 0], sizes = [8, 8], strides = [1, 1]} : vector<8x32xbf16> to vector<8x8xbf16>
    %29 = vector.extract_strided_slice %26 {offsets = [0, 0], sizes = [8, 8], strides = [1, 1]} : vector<8x32xbf16> to vector<8x8xbf16>
    %30 = vector.extract_strided_slice %27 {offsets = [0, 0], sizes = [8, 8], strides = [1, 1]} : vector<8x32xbf16> to vector<8x8xbf16>
    %cst_27 = arith.constant dense<0.000000e+00> : vector<8x8xf32>
    %31 = tpu.matmul %28, %29, %cst_27 {dimension_numbers = #tpu.dot_dimension_numbers<[1], [1], [0], [0], [0, 0, 1, 0], [], []>} : vector<8x8xbf16>, vector<8x8xbf16>, vector<8x8xf32> -> vector<8x8xf32>
    %cst_28 = arith.constant dense<0xFF800000> : vector<8xf32>
    %32 = vector.multi_reduction <maximumf>, %31, %cst_28 [1] : vector<8x8xf32> to vector<8xf32>
    %33 = vector.shape_cast %32 : vector<8xf32> to vector<8x1xf32>
    %34 = vector.broadcast %33 : vector<8x1xf32> to vector<8x8xf32>
    %35 = arith.subf %31, %34 : vector<8x8xf32>
    %36 = math.exp %35 : vector<8x8xf32>
    %cst_29 = arith.constant dense<0.000000e+00> : vector<8xf32>
    %37 = vector.multi_reduction <add>, %36, %cst_29 [1] : vector<8x8xf32> to vector<8xf32>
    %38 = vector.shape_cast %37 : vector<8xf32> to vector<8x1xf32>
    %39 = tpu.reciprocal %38 {approx = true} : vector<8x1xf32> -> vector<8x1xf32>
    %40 = vector.broadcast %39 : vector<8x1xf32> to vector<8x8xf32>
    %41 = arith.mulf %36, %40 : vector<8x8xf32>
    %42 = arith.truncf %41 : vector<8x8xf32> to vector<8x8xbf16>
    %cst_30 = arith.constant dense<0.000000e+00> : vector<8x8xf32>
    %43 = tpu.matmul %42, %30, %cst_30 {dimension_numbers = #tpu.dot_dimension_numbers<[1], [0], [0], [1], [0, 0, 1, 1], [], []>} : vector<8x8xbf16>, vector<8x8xbf16>, vector<8x8xf32> -> vector<8x8xf32>
    %44 = arith.truncf %43 : vector<8x8xf32> to vector<8x8xbf16>
    %45 = vector.extract_strided_slice %25 {offsets = [0, 8], sizes = [8, 8], strides = [1, 1]} : vector<8x32xbf16> to vector<8x8xbf16>
    %46 = vector.extract_strided_slice %26 {offsets = [0, 8], sizes = [8, 8], strides = [1, 1]} : vector<8x32xbf16> to vector<8x8xbf16>
    %47 = vector.extract_strided_slice %27 {offsets = [0, 8], sizes = [8, 8], strides = [1, 1]} : vector<8x32xbf16> to vector<8x8xbf16>
    %cst_31 = arith.constant dense<0.000000e+00> : vector<8x8xf32>
    %48 = tpu.matmul %45, %46, %cst_31 {dimension_numbers = #tpu.dot_dimension_numbers<[1], [1], [0], [0], [0, 0, 1, 0], [], []>} : vector<8x8xbf16>, vector<8x8xbf16>, vector<8x8xf32> -> vector<8x8xf32>
    %cst_32 = arith.constant dense<0xFF800000> : vector<8xf32>
    %49 = vector.multi_reduction <maximumf>, %48, %cst_32 [1] : vector<8x8xf32> to vector<8xf32>
    %50 = vector.shape_cast %49 : vector<8xf32> to vector<8x1xf32>
    %51 = vector.broadcast %50 : vector<8x1xf32> to vector<8x8xf32>
    %52 = arith.subf %48, %51 : vector<8x8xf32>
    %53 = math.exp %52 : vector<8x8xf32>
    %cst_33 = arith.constant dense<0.000000e+00> : vector<8xf32>
    %54 = vector.multi_reduction <add>, %53, %cst_33 [1] : vector<8x8xf32> to vector<8xf32>
    %55 = vector.shape_cast %54 : vector<8xf32> to vector<8x1xf32>
    %56 = tpu.reciprocal %55 {approx = true} : vector<8x1xf32> -> vector<8x1xf32>
    %57 = vector.broadcast %56 : vector<8x1xf32> to vector<8x8xf32>
    %58 = arith.mulf %53, %57 : vector<8x8xf32>
    %59 = arith.truncf %58 : vector<8x8xf32> to vector<8x8xbf16>
    %cst_34 = arith.constant dense<0.000000e+00> : vector<8x8xf32>
    %60 = tpu.matmul %59, %47, %cst_34 {dimension_numbers = #tpu.dot_dimension_numbers<[1], [0], [0], [1], [0, 0, 1, 1], [], []>} : vector<8x8xbf16>, vector<8x8xbf16>, vector<8x8xf32> -> vector<8x8xf32>
    %61 = arith.truncf %60 : vector<8x8xf32> to vector<8x8xbf16>
    %62 = vector.extract_strided_slice %25 {offsets = [0, 16], sizes = [8, 8], strides = [1, 1]} : vector<8x32xbf16> to vector<8x8xbf16>
    %63 = vector.extract_strided_slice %26 {offsets = [0, 16], sizes = [8, 8], strides = [1, 1]} : vector<8x32xbf16> to vector<8x8xbf16>
    %64 = vector.extract_strided_slice %27 {offsets = [0, 16], sizes = [8, 8], strides = [1, 1]} : vector<8x32xbf16> to vector<8x8xbf16>
    %cst_35 = arith.constant dense<0.000000e+00> : vector<8x8xf32>
    %65 = tpu.matmul %62, %63, %cst_35 {dimension_numbers = #tpu.dot_dimension_numbers<[1], [1], [0], [0], [0, 0, 1, 0], [], []>} : vector<8x8xbf16>, vector<8x8xbf16>, vector<8x8xf32> -> vector<8x8xf32>
    %cst_36 = arith.constant dense<0xFF800000> : vector<8xf32>
    %66 = vector.multi_reduction <maximumf>, %65, %cst_36 [1] : vector<8x8xf32> to vector<8xf32>
    %67 = vector.shape_cast %66 : vector<8xf32> to vector<8x1xf32>
    %68 = vector.broadcast %67 : vector<8x1xf32> to vector<8x8xf32>
    %69 = arith.subf %65, %68 : vector<8x8xf32>
    %70 = math.exp %69 : vector<8x8xf32>
    %cst_37 = arith.constant dense<0.000000e+00> : vector<8xf32>
    %71 = vector.multi_reduction <add>, %70, %cst_37 [1] : vector<8x8xf32> to vector<8xf32>
    %72 = vector.shape_cast %71 : vector<8xf32> to vector<8x1xf32>
    %73 = tpu.reciprocal %72 {approx = true} : vector<8x1xf32> -> vector<8x1xf32>
    %74 = vector.broadcast %73 : vector<8x1xf32> to vector<8x8xf32>
    %75 = arith.mulf %70, %74 : vector<8x8xf32>
    %76 = arith.truncf %75 : vector<8x8xf32> to vector<8x8xbf16>
    %cst_38 = arith.constant dense<0.000000e+00> : vector<8x8xf32>
    %77 = tpu.matmul %76, %64, %cst_38 {dimension_numbers = #tpu.dot_dimension_numbers<[1], [0], [0], [1], [0, 0, 1, 1], [], []>} : vector<8x8xbf16>, vector<8x8xbf16>, vector<8x8xf32> -> vector<8x8xf32>
    %78 = arith.truncf %77 : vector<8x8xf32> to vector<8x8xbf16>
    %79 = vector.extract_strided_slice %25 {offsets = [0, 24], sizes = [8, 8], strides = [1, 1]} : vector<8x32xbf16> to vector<8x8xbf16>
    %80 = vector.extract_strided_slice %26 {offsets = [0, 24], sizes = [8, 8], strides = [1, 1]} : vector<8x32xbf16> to vector<8x8xbf16>
    %81 = vector.extract_strided_slice %27 {offsets = [0, 24], sizes = [8, 8], strides = [1, 1]} : vector<8x32xbf16> to vector<8x8xbf16>
    %cst_39 = arith.constant dense<0.000000e+00> : vector<8x8xf32>
    %82 = tpu.matmul %79, %80, %cst_39 {dimension_numbers = #tpu.dot_dimension_numbers<[1], [1], [0], [0], [0, 0, 1, 0], [], []>} : vector<8x8xbf16>, vector<8x8xbf16>, vector<8x8xf32> -> vector<8x8xf32>
    %cst_40 = arith.constant dense<0xFF800000> : vector<8xf32>
    %83 = vector.multi_reduction <maximumf>, %82, %cst_40 [1] : vector<8x8xf32> to vector<8xf32>
    %84 = vector.shape_cast %83 : vector<8xf32> to vector<8x1xf32>
    %85 = vector.broadcast %84 : vector<8x1xf32> to vector<8x8xf32>
    %86 = arith.subf %82, %85 : vector<8x8xf32>
    %87 = math.exp %86 : vector<8x8xf32>
    %cst_41 = arith.constant dense<0.000000e+00> : vector<8xf32>
    %88 = vector.multi_reduction <add>, %87, %cst_41 [1] : vector<8x8xf32> to vector<8xf32>
    %89 = vector.shape_cast %88 : vector<8xf32> to vector<8x1xf32>
    %90 = tpu.reciprocal %89 {approx = true} : vector<8x1xf32> -> vector<8x1xf32>
    %91 = vector.broadcast %90 : vector<8x1xf32> to vector<8x8xf32>
    %92 = arith.mulf %87, %91 : vector<8x8xf32>
    %93 = arith.truncf %92 : vector<8x8xf32> to vector<8x8xbf16>
    %cst_42 = arith.constant dense<0.000000e+00> : vector<8x8xf32>
    %94 = tpu.matmul %93, %81, %cst_42 {dimension_numbers = #tpu.dot_dimension_numbers<[1], [0], [0], [1], [0, 0, 1, 1], [], []>} : vector<8x8xbf16>, vector<8x8xbf16>, vector<8x8xf32> -> vector<8x8xf32>
    %95 = arith.truncf %94 : vector<8x8xf32> to vector<8x8xbf16>
    %96 = tpu.concatenate %44, %61, %78, %95 in 1 : vector<8x8xbf16>, vector<8x8xbf16>, vector<8x8xbf16>, vector<8x8xbf16> -> vector<8x32xbf16>
    %cst_43 = arith.constant dense<0.000000e+00> : vector<8x32xf32>
    %97 = tpu.matmul %96, %10, %cst_43 {dimension_numbers = #tpu.dot_dimension_numbers<[1], [0], [0], [1], [0, 0, 1, 1], [], []>} : vector<8x32xbf16>, vector<32x32xbf16>, vector<8x32xf32> -> vector<8x32xf32>
    %98 = vector.broadcast %11 : vector<1x32xf32> to vector<8x32xf32>
    %99 = arith.addf %97, %98 : vector<8x32xf32>
    %100 = arith.addf %1, %99 : vector<8x32xf32>
    %cst_44 = arith.constant dense<0.000000e+00> : vector<8xf32>
    %101 = vector.multi_reduction <add>, %100, %cst_44 [1] : vector<8x32xf32> to vector<8xf32>
    %102 = vector.shape_cast %101 : vector<8xf32> to vector<8x1xf32>
    %cst_45 = arith.constant 3.200000e+01 : f32
    %103 = vector.broadcast %cst_45 : f32 to vector<8x1xf32>
    %104 = arith.divf %102, %103 : vector<8x1xf32>
    %105 = vector.broadcast %104 : vector<8x1xf32> to vector<8x32xf32>
    %106 = arith.subf %100, %105 : vector<8x32xf32>
    %107 = arith.mulf %106, %106 : vector<8x32xf32>
    %cst_46 = arith.constant dense<0.000000e+00> : vector<8xf32>
    %108 = vector.multi_reduction <add>, %107, %cst_46 [1] : vector<8x32xf32> to vector<8xf32>
    %109 = vector.shape_cast %108 : vector<8xf32> to vector<8x1xf32>
    %cst_47 = arith.constant 3.200000e+01 : f32
    %110 = vector.broadcast %cst_47 : f32 to vector<8x1xf32>
    %111 = arith.divf %109, %110 : vector<8x1xf32>
    %112 = vector.broadcast %104 : vector<8x1xf32> to vector<8x32xf32>
    %113 = arith.subf %100, %112 : vector<8x32xf32>
    %cst_48 = arith.constant 9.99999974E-6 : f32
    %114 = vector.broadcast %cst_48 : f32 to vector<8x1xf32>
    %115 = arith.addf %111, %114 : vector<8x1xf32>
    %116 = math.rsqrt %115 : vector<8x1xf32>
    %117 = vector.broadcast %116 : vector<8x1xf32> to vector<8x32xf32>
    %118 = arith.mulf %113, %117 : vector<8x32xf32>
    %119 = vector.broadcast %12 : vector<1x32xf32> to vector<8x32xf32>
    %120 = arith.mulf %118, %119 : vector<8x32xf32>
    %121 = vector.broadcast %13 : vector<1x32xf32> to vector<8x32xf32>
    %122 = arith.addf %120, %121 : vector<8x32xf32>
    %c0_49 = arith.constant 0 : index
    %c0_50 = arith.constant 0 : index
    %c0_51 = arith.constant 0 : index
    %123 = vector.load %arg14[%c0_49, %c0_50, %c0_51] : memref<1x8x32xf32, #tpu.memory_space<vmem>>, vector<1x8x32xf32>
    %124 = vector.shape_cast %123 : vector<1x8x32xf32> to vector<8x32xf32>
    %125 = vector.shape_cast %122 : vector<8x32xf32> to vector<1x8x32xf32>
    tpu.vector_store %arg14[%c0_49, %c0_50, %c0_51], %125 {strides = array<i32>} : memref<1x8x32xf32, #tpu.memory_space<vmem>>, vector<1x8x32xf32>,
    return
  }
  func.func @transform_0(%arg0: i32, %arg1: i32) -> (i32, i32, i32) {
    %c0_i32 = arith.constant 0 : i32
    %c0_i32_0 = arith.constant 0 : i32
    return %arg0, %arg1, %c0_i32 : i32, i32, i32
  }
  func.func @transform_1(%arg0: i32, %arg1: i32) -> (i32, i32, i32) {
    %c0_i32 = arith.constant 0 : i32
    %c0_i32_0 = arith.constant 0 : i32
    %c0_i32_1 = arith.constant 0 : i32
    return %arg0, %c0_i32, %c0_i32_0 : i32, i32, i32
  }
  func.func @transform_2(%arg0: i32, %arg1: i32) -> (i32, i32) {
    %c0_i32 = arith.constant 0 : i32
    %c0_i32_0 = arith.constant 0 : i32
    %c0_i32_1 = arith.constant 0 : i32
    return %c0_i32, %c0_i32_0 : i32, i32
  }
  func.func @transform_3(%arg0: i32, %arg1: i32) -> (i32, i32) {
    %c0_i32 = arith.constant 0 : i32
    %c0_i32_0 = arith.constant 0 : i32
    %c0_i32_1 = arith.constant 0 : i32
    return %c0_i32, %c0_i32_0 : i32, i32
  }
  func.func @transform_4(%arg0: i32, %arg1: i32) -> (i32, i32) {
    %c0_i32 = arith.constant 0 : i32
    %c0_i32_0 = arith.constant 0 : i32
    %c0_i32_1 = arith.constant 0 : i32
    return %c0_i32, %c0_i32_0 : i32, i32
  }
  func.func @transform_5(%arg0: i32, %arg1: i32) -> (i32, i32) {
    %c0_i32 = arith.constant 0 : i32
    %c0_i32_0 = arith.constant 0 : i32
    %c0_i32_1 = arith.constant 0 : i32
    return %c0_i32, %c0_i32_0 : i32, i32
  }
  func.func @transform_6(%arg0: i32, %arg1: i32) -> (i32, i32) {
    %c0_i32 = arith.constant 0 : i32
    %c0_i32_0 = arith.constant 0 : i32
    %c0_i32_1 = arith.constant 0 : i32
    return %c0_i32, %c0_i32_0 : i32, i32
  }
  func.func @transform_7(%arg0: i32, %arg1: i32) -> (i32, i32) {
    %c0_i32 = arith.constant 0 : i32
    %c0_i32_0 = arith.constant 0 : i32
    %c0_i32_1 = arith.constant 0 : i32
    return %c0_i32, %c0_i32_0 : i32, i32
  }
  func.func @transform_8(%arg0: i32, %arg1: i32) -> (i32, i32) {
    %c0_i32 = arith.constant 0 : i32
    %c0_i32_0 = arith.constant 0 : i32
    %c0_i32_1 = arith.constant 0 : i32
    return %c0_i32, %c0_i32_0 : i32, i32
  }
  func.func @transform_9(%arg0: i32, %arg1: i32) -> (i32, i32) {
    %c0_i32 = arith.constant 0 : i32
    %c0_i32_0 = arith.constant 0 : i32
    %c0_i32_1 = arith.constant 0 : i32
    return %c0_i32, %c0_i32_0 : i32, i32
  }
  func.func @transform_10(%arg0: i32, %arg1: i32) -> (i32, i32) {
    %c0_i32 = arith.constant 0 : i32
    %c0_i32_0 = arith.constant 0 : i32
    %c0_i32_1 = arith.constant 0 : i32
    return %c0_i32, %c0_i32_0 : i32, i32
  }
  func.func @transform_11(%arg0: i32, %arg1: i32) -> (i32, i32) {
    %c0_i32 = arith.constant 0 : i32
    %c0_i32_0 = arith.constant 0 : i32
    %c0_i32_1 = arith.constant 0 : i32
    return %c0_i32, %c0_i32_0 : i32, i32
  }
  func.func @transform_12(%arg0: i32, %arg1: i32) -> (i32, i32, i32) {
    %c0_i32 = arith.constant 0 : i32
    %c0_i32_0 = arith.constant 0 : i32
    return %arg0, %arg1, %c0_i32 : i32, i32, i32
  }
}

module attributes {stable_mosaic.version = 11 : i64} {
  func.func @ffn_res_ln_kernel(%arg0: i32, %arg1: memref<16x32xf32, #tpu.memory_space<vmem>>, %arg2: memref<32x64xbf16, #tpu.memory_space<vmem>>, %arg3: memref<1x64xf32, #tpu.memory_space<vmem>>, %arg4: memref<64x32xbf16, #tpu.memory_space<vmem>>, %arg5: memref<1x32xf32, #tpu.memory_space<vmem>>, %arg6: memref<1x32xf32, #tpu.memory_space<vmem>>, %arg7: memref<1x32xf32, #tpu.memory_space<vmem>>, %arg8: memref<16x32xf32, #tpu.memory_space<vmem>>) attributes {dimension_semantics = [#tpu.dimension_semantics<parallel>], iteration_bounds = array<i64: 1>, scalar_prefetch = 0 : i64, scratch_operands = 0 : i64, tpu.core_type = #tpu.core_type<tc>, window_params = [{transform_indices = @transform_0, window_bounds = array<i64: 16, 32>}, {pipeline_mode = #tpu.pipeline_mode<synchronous>, transform_indices = @transform_1, window_bounds = array<i64: 32, 64>}, {pipeline_mode = #tpu.pipeline_mode<synchronous>, transform_indices = @transform_2, window_bounds = array<i64: 1, 64>}, {pipeline_mode = #tpu.pipeline_mode<synchronous>, transform_indices = @transform_3, window_bounds = array<i64: 64, 32>}, {pipeline_mode = #tpu.pipeline_mode<synchronous>, transform_indices = @transform_4, window_bounds = array<i64: 1, 32>}, {pipeline_mode = #tpu.pipeline_mode<synchronous>, transform_indices = @transform_5, window_bounds = array<i64: 1, 32>}, {pipeline_mode = #tpu.pipeline_mode<synchronous>, transform_indices = @transform_6, window_bounds = array<i64: 1, 32>}, {transform_indices = @transform_7, window_bounds = array<i64: 16, 32>}]} {
    %c0 = arith.constant 0 : index
    %c0_0 = arith.constant 0 : index
    %0 = vector.load %arg1[%c0, %c0_0] : memref<16x32xf32, #tpu.memory_space<vmem>>, vector<16x32xf32>
    %1 = arith.truncf %0 : vector<16x32xf32> to vector<16x32xbf16>
    %c0_1 = arith.constant 0 : index
    %c0_2 = arith.constant 0 : index
    %2 = vector.load %arg2[%c0_1, %c0_2] : memref<32x64xbf16, #tpu.memory_space<vmem>>, vector<32x64xbf16>
    %cst = arith.constant dense<0.000000e+00> : vector<16x64xf32>
    %3 = tpu.matmul %1, %2, %cst {dimension_numbers = #tpu.dot_dimension_numbers<[1], [0], [0], [1], [0, 0, 1, 1], [], []>} : vector<16x32xbf16>, vector<32x64xbf16>, vector<16x64xf32> -> vector<16x64xf32>
    %c0_3 = arith.constant 0 : index
    %c0_4 = arith.constant 0 : index
    %4 = vector.load %arg3[%c0_3, %c0_4] : memref<1x64xf32, #tpu.memory_space<vmem>>, vector<1x64xf32>
    %5 = vector.broadcast %4 : vector<1x64xf32> to vector<16x64xf32>
    %6 = arith.addf %3, %5 : vector<16x64xf32>
    %cst_5 = arith.constant 0.000000e+00 : f32
    %7 = vector.broadcast %cst_5 : f32 to vector<16x64xf32>
    %8 = arith.maximumf %6, %7 : vector<16x64xf32>
    %9 = arith.truncf %8 : vector<16x64xf32> to vector<16x64xbf16>
    %c0_6 = arith.constant 0 : index
    %c0_7 = arith.constant 0 : index
    %10 = vector.load %arg4[%c0_6, %c0_7] : memref<64x32xbf16, #tpu.memory_space<vmem>>, vector<64x32xbf16>
    %cst_8 = arith.constant dense<0.000000e+00> : vector<16x32xf32>
    %11 = tpu.matmul %9, %10, %cst_8 {dimension_numbers = #tpu.dot_dimension_numbers<[1], [0], [0], [1], [0, 0, 1, 1], [], []>} : vector<16x64xbf16>, vector<64x32xbf16>, vector<16x32xf32> -> vector<16x32xf32>
    %c0_9 = arith.constant 0 : index
    %c0_10 = arith.constant 0 : index
    %12 = vector.load %arg5[%c0_9, %c0_10] : memref<1x32xf32, #tpu.memory_space<vmem>>, vector<1x32xf32>
    %13 = vector.broadcast %12 : vector<1x32xf32> to vector<16x32xf32>
    %14 = arith.addf %11, %13 : vector<16x32xf32>
    %15 = arith.addf %0, %14 : vector<16x32xf32>
    %cst_11 = arith.constant dense<0.000000e+00> : vector<16xf32>
    %16 = vector.multi_reduction <add>, %15, %cst_11 [1] : vector<16x32xf32> to vector<16xf32>
    %17 = vector.shape_cast %16 : vector<16xf32> to vector<16x1xf32>
    %cst_12 = arith.constant 3.200000e+01 : f32
    %18 = vector.broadcast %cst_12 : f32 to vector<16x1xf32>
    %19 = arith.divf %17, %18 : vector<16x1xf32>
    %20 = vector.broadcast %19 : vector<16x1xf32> to vector<16x32xf32>
    %21 = arith.subf %15, %20 : vector<16x32xf32>
    %22 = arith.mulf %21, %21 : vector<16x32xf32>
    %cst_13 = arith.constant dense<0.000000e+00> : vector<16xf32>
    %23 = vector.multi_reduction <add>, %22, %cst_13 [1] : vector<16x32xf32> to vector<16xf32>
    %24 = vector.shape_cast %23 : vector<16xf32> to vector<16x1xf32>
    %cst_14 = arith.constant 3.200000e+01 : f32
    %25 = vector.broadcast %cst_14 : f32 to vector<16x1xf32>
    %26 = arith.divf %24, %25 : vector<16x1xf32>
    %27 = vector.broadcast %19 : vector<16x1xf32> to vector<16x32xf32>
    %28 = arith.subf %15, %27 : vector<16x32xf32>
    %cst_15 = arith.constant 9.99999974E-6 : f32
    %29 = vector.broadcast %cst_15 : f32 to vector<16x1xf32>
    %30 = arith.addf %26, %29 : vector<16x1xf32>
    %31 = math.rsqrt %30 : vector<16x1xf32>
    %32 = vector.broadcast %31 : vector<16x1xf32> to vector<16x32xf32>
    %33 = arith.mulf %28, %32 : vector<16x32xf32>
    %c0_16 = arith.constant 0 : index
    %c0_17 = arith.constant 0 : index
    %34 = vector.load %arg6[%c0_16, %c0_17] : memref<1x32xf32, #tpu.memory_space<vmem>>, vector<1x32xf32>
    %35 = vector.broadcast %34 : vector<1x32xf32> to vector<16x32xf32>
    %36 = arith.mulf %33, %35 : vector<16x32xf32>
    %c0_18 = arith.constant 0 : index
    %c0_19 = arith.constant 0 : index
    %37 = vector.load %arg7[%c0_18, %c0_19] : memref<1x32xf32, #tpu.memory_space<vmem>>, vector<1x32xf32>
    %38 = vector.broadcast %37 : vector<1x32xf32> to vector<16x32xf32>
    %39 = arith.addf %36, %38 : vector<16x32xf32>
    %c0_20 = arith.constant 0 : index
    %c0_21 = arith.constant 0 : index
    %40 = vector.load %arg8[%c0_20, %c0_21] : memref<16x32xf32, #tpu.memory_space<vmem>>, vector<16x32xf32>
    tpu.vector_store %arg8[%c0_20, %c0_21], %39 {strides = array<i32>} : memref<16x32xf32, #tpu.memory_space<vmem>>, vector<16x32xf32>,
    return
  }
  func.func @transform_0(%arg0: i32) -> (i32, i32) {
    %c0_i32 = arith.constant 0 : i32
    %c0_i32_0 = arith.constant 0 : i32
    return %arg0, %c0_i32 : i32, i32
  }
  func.func @transform_1(%arg0: i32) -> (i32, i32) {
    %c0_i32 = arith.constant 0 : i32
    %c0_i32_0 = arith.constant 0 : i32
    %c0_i32_1 = arith.constant 0 : i32
    return %c0_i32, %c0_i32_0 : i32, i32
  }
  func.func @transform_2(%arg0: i32) -> (i32, i32) {
    %c0_i32 = arith.constant 0 : i32
    %c0_i32_0 = arith.constant 0 : i32
    %c0_i32_1 = arith.constant 0 : i32
    return %c0_i32, %c0_i32_0 : i32, i32
  }
  func.func @transform_3(%arg0: i32) -> (i32, i32) {
    %c0_i32 = arith.constant 0 : i32
    %c0_i32_0 = arith.constant 0 : i32
    %c0_i32_1 = arith.constant 0 : i32
    return %c0_i32, %c0_i32_0 : i32, i32
  }
  func.func @transform_4(%arg0: i32) -> (i32, i32) {
    %c0_i32 = arith.constant 0 : i32
    %c0_i32_0 = arith.constant 0 : i32
    %c0_i32_1 = arith.constant 0 : i32
    return %c0_i32, %c0_i32_0 : i32, i32
  }
  func.func @transform_5(%arg0: i32) -> (i32, i32) {
    %c0_i32 = arith.constant 0 : i32
    %c0_i32_0 = arith.constant 0 : i32
    %c0_i32_1 = arith.constant 0 : i32
    return %c0_i32, %c0_i32_0 : i32, i32
  }
  func.func @transform_6(%arg0: i32) -> (i32, i32) {
    %c0_i32 = arith.constant 0 : i32
    %c0_i32_0 = arith.constant 0 : i32
    %c0_i32_1 = arith.constant 0 : i32
    return %c0_i32, %c0_i32_0 : i32, i32
  }
  func.func @transform_7(%arg0: i32) -> (i32, i32) {
    %c0_i32 = arith.constant 0 : i32
    %c0_i32_0 = arith.constant 0 : i32
    return %arg0, %c0_i32 : i32, i32
  }
}

module attributes {stable_mosaic.version = 11 : i64} {
  func.func @self_attn_res_ln_kernel(%arg0: i32, %arg1: i32, %arg2: memref<1x8x32xf32, #tpu.memory_space<vmem>>, %arg3: memref<32x32xbf16, #tpu.memory_space<vmem>>, %arg4: memref<1x32xf32, #tpu.memory_space<vmem>>, %arg5: memref<32x32xbf16, #tpu.memory_space<vmem>>, %arg6: memref<1x32xf32, #tpu.memory_space<vmem>>, %arg7: memref<32x32xbf16, #tpu.memory_space<vmem>>, %arg8: memref<1x32xf32, #tpu.memory_space<vmem>>, %arg9: memref<32x32xbf16, #tpu.memory_space<vmem>>, %arg10: memref<1x32xf32, #tpu.memory_space<vmem>>, %arg11: memref<1x32xf32, #tpu.memory_space<vmem>>, %arg12: memref<1x32xf32, #tpu.memory_space<vmem>>, %arg13: memref<1x8x32xf32, #tpu.memory_space<vmem>>) attributes {dimension_semantics = [#tpu.dimension_semantics<parallel>, #tpu.dimension_semantics<parallel>], iteration_bounds = array<i64: 2, 1>, scalar_prefetch = 0 : i64, scratch_operands = 0 : i64, tpu.core_type = #tpu.core_type<tc>, window_params = [{transform_indices = @transform_0, window_bounds = array<i64: 1, 8, 32>}, {pipeline_mode = #tpu.pipeline_mode<synchronous>, transform_indices = @transform_1, window_bounds = array<i64: 32, 32>}, {pipeline_mode = #tpu.pipeline_mode<synchronous>, transform_indices = @transform_2, window_bounds = array<i64: 1, 32>}, {pipeline_mode = #tpu.pipeline_mode<synchronous>, transform_indices = @transform_3, window_bounds = array<i64: 32, 32>}, {pipeline_mode = #tpu.pipeline_mode<synchronous>, transform_indices = @transform_4, window_bounds = array<i64: 1, 32>}, {pipeline_mode = #tpu.pipeline_mode<synchronous>, transform_indices = @transform_5, window_bounds = array<i64: 32, 32>}, {pipeline_mode = #tpu.pipeline_mode<synchronous>, transform_indices = @transform_6, window_bounds = array<i64: 1, 32>}, {pipeline_mode = #tpu.pipeline_mode<synchronous>, transform_indices = @transform_7, window_bounds = array<i64: 32, 32>}, {pipeline_mode = #tpu.pipeline_mode<synchronous>, transform_indices = @transform_8, window_bounds = array<i64: 1, 32>}, {pipeline_mode = #tpu.pipeline_mode<synchronous>, transform_indices = @transform_9, window_bounds = array<i64: 1, 32>}, {pipeline_mode = #tpu.pipeline_mode<synchronous>, transform_indices = @transform_10, window_bounds = array<i64: 1, 32>}, {transform_indices = @transform_11, window_bounds = array<i64: 1, 8, 32>}]} {
    %c8_i32 = arith.constant 8 : i32
    %0 = arith.muli %arg1, %c8_i32 : i32
    %1 = tpu.assume_multiple %0, 8 : i32
    %c0 = arith.constant 0 : index
    %2 = arith.index_cast %1 : i32 to index
    %c0_0 = arith.constant 0 : index
    %3 = vector.load %arg2[%c0, %2, %c0_0] : memref<1x8x32xf32, #tpu.memory_space<vmem>>, vector<1x8x32xf32>
    %4 = vector.shape_cast %3 : vector<1x8x32xf32> to vector<8x32xf32>
    %c0_1 = arith.constant 0 : index
    %c0_2 = arith.constant 0 : index
    %c0_3 = arith.constant 0 : index
    %5 = vector.load %arg2[%c0_1, %c0_2, %c0_3] : memref<1x8x32xf32, #tpu.memory_space<vmem>>, vector<1x8x32xf32>
    %6 = vector.shape_cast %5 : vector<1x8x32xf32> to vector<8x32xf32>
    %c0_4 = arith.constant 0 : index
    %c0_5 = arith.constant 0 : index
    %7 = vector.load %arg3[%c0_4, %c0_5] : memref<32x32xbf16, #tpu.memory_space<vmem>>, vector<32x32xbf16>
    %c0_6 = arith.constant 0 : index
    %c0_7 = arith.constant 0 : index
    %8 = vector.load %arg4[%c0_6, %c0_7] : memref<1x32xf32, #tpu.memory_space<vmem>>, vector<1x32xf32>
    %c0_8 = arith.constant 0 : index
    %c0_9 = arith.constant 0 : index
    %9 = vector.load %arg5[%c0_8, %c0_9] : memref<32x32xbf16, #tpu.memory_space<vmem>>, vector<32x32xbf16>
    %c0_10 = arith.constant 0 : index
    %c0_11 = arith.constant 0 : index
    %10 = vector.load %arg6[%c0_10, %c0_11] : memref<1x32xf32, #tpu.memory_space<vmem>>, vector<1x32xf32>
    %c0_12 = arith.constant 0 : index
    %c0_13 = arith.constant 0 : index
    %11 = vector.load %arg7[%c0_12, %c0_13] : memref<32x32xbf16, #tpu.memory_space<vmem>>, vector<32x32xbf16>
    %c0_14 = arith.constant 0 : index
    %c0_15 = arith.constant 0 : index
    %12 = vector.load %arg8[%c0_14, %c0_15] : memref<1x32xf32, #tpu.memory_space<vmem>>, vector<1x32xf32>
    %c0_16 = arith.constant 0 : index
    %c0_17 = arith.constant 0 : index
    %13 = vector.load %arg9[%c0_16, %c0_17] : memref<32x32xbf16, #tpu.memory_space<vmem>>, vector<32x32xbf16>
    %c0_18 = arith.constant 0 : index
    %c0_19 = arith.constant 0 : index
    %14 = vector.load %arg10[%c0_18, %c0_19] : memref<1x32xf32, #tpu.memory_space<vmem>>, vector<1x32xf32>
    %c0_20 = arith.constant 0 : index
    %c0_21 = arith.constant 0 : index
    %15 = vector.load %arg11[%c0_20, %c0_21] : memref<1x32xf32, #tpu.memory_space<vmem>>, vector<1x32xf32>
    %c0_22 = arith.constant 0 : index
    %c0_23 = arith.constant 0 : index
    %16 = vector.load %arg12[%c0_22, %c0_23] : memref<1x32xf32, #tpu.memory_space<vmem>>, vector<1x32xf32>
    %17 = arith.truncf %4 : vector<8x32xf32> to vector<8x32xbf16>
    %18 = arith.truncf %6 : vector<8x32xf32> to vector<8x32xbf16>
    %cst = arith.constant dense<0.000000e+00> : vector<8x32xf32>
    %19 = tpu.matmul %17, %7, %cst {dimension_numbers = #tpu.dot_dimension_numbers<[1], [0], [0], [1], [0, 0, 1, 1], [], []>} : vector<8x32xbf16>, vector<32x32xbf16>, vector<8x32xf32> -> vector<8x32xf32>
    %20 = vector.broadcast %8 : vector<1x32xf32> to vector<8x32xf32>
    %21 = arith.addf %19, %20 : vector<8x32xf32>
    %cst_24 = arith.constant dense<0.000000e+00> : vector<8x32xf32>
    %22 = tpu.matmul %18, %9, %cst_24 {dimension_numbers = #tpu.dot_dimension_numbers<[1], [0], [0], [1], [0, 0, 1, 1], [], []>} : vector<8x32xbf16>, vector<32x32xbf16>, vector<8x32xf32> -> vector<8x32xf32>
    %23 = vector.broadcast %10 : vector<1x32xf32> to vector<8x32xf32>
    %24 = arith.addf %22, %23 : vector<8x32xf32>
    %cst_25 = arith.constant dense<0.000000e+00> : vector<8x32xf32>
    %25 = tpu.matmul %18, %11, %cst_25 {dimension_numbers = #tpu.dot_dimension_numbers<[1], [0], [0], [1], [0, 0, 1, 1], [], []>} : vector<8x32xbf16>, vector<32x32xbf16>, vector<8x32xf32> -> vector<8x32xf32>
    %26 = vector.broadcast %12 : vector<1x32xf32> to vector<8x32xf32>
    %27 = arith.addf %25, %26 : vector<8x32xf32>
    %28 = arith.truncf %21 : vector<8x32xf32> to vector<8x32xbf16>
    %29 = arith.truncf %24 : vector<8x32xf32> to vector<8x32xbf16>
    %30 = arith.truncf %27 : vector<8x32xf32> to vector<8x32xbf16>
    %31 = vector.extract_strided_slice %28 {offsets = [0, 0], sizes = [8, 8], strides = [1, 1]} : vector<8x32xbf16> to vector<8x8xbf16>
    %32 = vector.extract_strided_slice %29 {offsets = [0, 0], sizes = [8, 8], strides = [1, 1]} : vector<8x32xbf16> to vector<8x8xbf16>
    %33 = vector.extract_strided_slice %30 {offsets = [0, 0], sizes = [8, 8], strides = [1, 1]} : vector<8x32xbf16> to vector<8x8xbf16>
    %cst_26 = arith.constant dense<0.000000e+00> : vector<8x8xf32>
    %34 = tpu.matmul %31, %32, %cst_26 {dimension_numbers = #tpu.dot_dimension_numbers<[1], [1], [0], [0], [0, 0, 1, 0], [], []>} : vector<8x8xbf16>, vector<8x8xbf16>, vector<8x8xf32> -> vector<8x8xf32>
    %cst_27 = arith.constant dense<0xFF800000> : vector<8xf32>
    %35 = vector.multi_reduction <maximumf>, %34, %cst_27 [1] : vector<8x8xf32> to vector<8xf32>
    %36 = vector.shape_cast %35 : vector<8xf32> to vector<8x1xf32>
    %37 = vector.broadcast %36 : vector<8x1xf32> to vector<8x8xf32>
    %38 = arith.subf %34, %37 : vector<8x8xf32>
    %39 = math.exp %38 : vector<8x8xf32>
    %cst_28 = arith.constant dense<0.000000e+00> : vector<8xf32>
    %40 = vector.multi_reduction <add>, %39, %cst_28 [1] : vector<8x8xf32> to vector<8xf32>
    %41 = vector.shape_cast %40 : vector<8xf32> to vector<8x1xf32>
    %42 = tpu.reciprocal %41 {approx = true} : vector<8x1xf32> -> vector<8x1xf32>
    %43 = vector.broadcast %42 : vector<8x1xf32> to vector<8x8xf32>
    %44 = arith.mulf %39, %43 : vector<8x8xf32>
    %45 = arith.truncf %44 : vector<8x8xf32> to vector<8x8xbf16>
    %cst_29 = arith.constant dense<0.000000e+00> : vector<8x8xf32>
    %46 = tpu.matmul %45, %33, %cst_29 {dimension_numbers = #tpu.dot_dimension_numbers<[1], [0], [0], [1], [0, 0, 1, 1], [], []>} : vector<8x8xbf16>, vector<8x8xbf16>, vector<8x8xf32> -> vector<8x8xf32>
    %47 = arith.truncf %46 : vector<8x8xf32> to vector<8x8xbf16>
    %48 = vector.extract_strided_slice %28 {offsets = [0, 8], sizes = [8, 8], strides = [1, 1]} : vector<8x32xbf16> to vector<8x8xbf16>
    %49 = vector.extract_strided_slice %29 {offsets = [0, 8], sizes = [8, 8], strides = [1, 1]} : vector<8x32xbf16> to vector<8x8xbf16>
    %50 = vector.extract_strided_slice %30 {offsets = [0, 8], sizes = [8, 8], strides = [1, 1]} : vector<8x32xbf16> to vector<8x8xbf16>
    %cst_30 = arith.constant dense<0.000000e+00> : vector<8x8xf32>
    %51 = tpu.matmul %48, %49, %cst_30 {dimension_numbers = #tpu.dot_dimension_numbers<[1], [1], [0], [0], [0, 0, 1, 0], [], []>} : vector<8x8xbf16>, vector<8x8xbf16>, vector<8x8xf32> -> vector<8x8xf32>
    %cst_31 = arith.constant dense<0xFF800000> : vector<8xf32>
    %52 = vector.multi_reduction <maximumf>, %51, %cst_31 [1] : vector<8x8xf32> to vector<8xf32>
    %53 = vector.shape_cast %52 : vector<8xf32> to vector<8x1xf32>
    %54 = vector.broadcast %53 : vector<8x1xf32> to vector<8x8xf32>
    %55 = arith.subf %51, %54 : vector<8x8xf32>
    %56 = math.exp %55 : vector<8x8xf32>
    %cst_32 = arith.constant dense<0.000000e+00> : vector<8xf32>
    %57 = vector.multi_reduction <add>, %56, %cst_32 [1] : vector<8x8xf32> to vector<8xf32>
    %58 = vector.shape_cast %57 : vector<8xf32> to vector<8x1xf32>
    %59 = tpu.reciprocal %58 {approx = true} : vector<8x1xf32> -> vector<8x1xf32>
    %60 = vector.broadcast %59 : vector<8x1xf32> to vector<8x8xf32>
    %61 = arith.mulf %56, %60 : vector<8x8xf32>
    %62 = arith.truncf %61 : vector<8x8xf32> to vector<8x8xbf16>
    %cst_33 = arith.constant dense<0.000000e+00> : vector<8x8xf32>
    %63 = tpu.matmul %62, %50, %cst_33 {dimension_numbers = #tpu.dot_dimension_numbers<[1], [0], [0], [1], [0, 0, 1, 1], [], []>} : vector<8x8xbf16>, vector<8x8xbf16>, vector<8x8xf32> -> vector<8x8xf32>
    %64 = arith.truncf %63 : vector<8x8xf32> to vector<8x8xbf16>
    %65 = vector.extract_strided_slice %28 {offsets = [0, 16], sizes = [8, 8], strides = [1, 1]} : vector<8x32xbf16> to vector<8x8xbf16>
    %66 = vector.extract_strided_slice %29 {offsets = [0, 16], sizes = [8, 8], strides = [1, 1]} : vector<8x32xbf16> to vector<8x8xbf16>
    %67 = vector.extract_strided_slice %30 {offsets = [0, 16], sizes = [8, 8], strides = [1, 1]} : vector<8x32xbf16> to vector<8x8xbf16>
    %cst_34 = arith.constant dense<0.000000e+00> : vector<8x8xf32>
    %68 = tpu.matmul %65, %66, %cst_34 {dimension_numbers = #tpu.dot_dimension_numbers<[1], [1], [0], [0], [0, 0, 1, 0], [], []>} : vector<8x8xbf16>, vector<8x8xbf16>, vector<8x8xf32> -> vector<8x8xf32>
    %cst_35 = arith.constant dense<0xFF800000> : vector<8xf32>
    %69 = vector.multi_reduction <maximumf>, %68, %cst_35 [1] : vector<8x8xf32> to vector<8xf32>
    %70 = vector.shape_cast %69 : vector<8xf32> to vector<8x1xf32>
    %71 = vector.broadcast %70 : vector<8x1xf32> to vector<8x8xf32>
    %72 = arith.subf %68, %71 : vector<8x8xf32>
    %73 = math.exp %72 : vector<8x8xf32>
    %cst_36 = arith.constant dense<0.000000e+00> : vector<8xf32>
    %74 = vector.multi_reduction <add>, %73, %cst_36 [1] : vector<8x8xf32> to vector<8xf32>
    %75 = vector.shape_cast %74 : vector<8xf32> to vector<8x1xf32>
    %76 = tpu.reciprocal %75 {approx = true} : vector<8x1xf32> -> vector<8x1xf32>
    %77 = vector.broadcast %76 : vector<8x1xf32> to vector<8x8xf32>
    %78 = arith.mulf %73, %77 : vector<8x8xf32>
    %79 = arith.truncf %78 : vector<8x8xf32> to vector<8x8xbf16>
    %cst_37 = arith.constant dense<0.000000e+00> : vector<8x8xf32>
    %80 = tpu.matmul %79, %67, %cst_37 {dimension_numbers = #tpu.dot_dimension_numbers<[1], [0], [0], [1], [0, 0, 1, 1], [], []>} : vector<8x8xbf16>, vector<8x8xbf16>, vector<8x8xf32> -> vector<8x8xf32>
    %81 = arith.truncf %80 : vector<8x8xf32> to vector<8x8xbf16>
    %82 = vector.extract_strided_slice %28 {offsets = [0, 24], sizes = [8, 8], strides = [1, 1]} : vector<8x32xbf16> to vector<8x8xbf16>
    %83 = vector.extract_strided_slice %29 {offsets = [0, 24], sizes = [8, 8], strides = [1, 1]} : vector<8x32xbf16> to vector<8x8xbf16>
    %84 = vector.extract_strided_slice %30 {offsets = [0, 24], sizes = [8, 8], strides = [1, 1]} : vector<8x32xbf16> to vector<8x8xbf16>
    %cst_38 = arith.constant dense<0.000000e+00> : vector<8x8xf32>
    %85 = tpu.matmul %82, %83, %cst_38 {dimension_numbers = #tpu.dot_dimension_numbers<[1], [1], [0], [0], [0, 0, 1, 0], [], []>} : vector<8x8xbf16>, vector<8x8xbf16>, vector<8x8xf32> -> vector<8x8xf32>
    %cst_39 = arith.constant dense<0xFF800000> : vector<8xf32>
    %86 = vector.multi_reduction <maximumf>, %85, %cst_39 [1] : vector<8x8xf32> to vector<8xf32>
    %87 = vector.shape_cast %86 : vector<8xf32> to vector<8x1xf32>
    %88 = vector.broadcast %87 : vector<8x1xf32> to vector<8x8xf32>
    %89 = arith.subf %85, %88 : vector<8x8xf32>
    %90 = math.exp %89 : vector<8x8xf32>
    %cst_40 = arith.constant dense<0.000000e+00> : vector<8xf32>
    %91 = vector.multi_reduction <add>, %90, %cst_40 [1] : vector<8x8xf32> to vector<8xf32>
    %92 = vector.shape_cast %91 : vector<8xf32> to vector<8x1xf32>
    %93 = tpu.reciprocal %92 {approx = true} : vector<8x1xf32> -> vector<8x1xf32>
    %94 = vector.broadcast %93 : vector<8x1xf32> to vector<8x8xf32>
    %95 = arith.mulf %90, %94 : vector<8x8xf32>
    %96 = arith.truncf %95 : vector<8x8xf32> to vector<8x8xbf16>
    %cst_41 = arith.constant dense<0.000000e+00> : vector<8x8xf32>
    %97 = tpu.matmul %96, %84, %cst_41 {dimension_numbers = #tpu.dot_dimension_numbers<[1], [0], [0], [1], [0, 0, 1, 1], [], []>} : vector<8x8xbf16>, vector<8x8xbf16>, vector<8x8xf32> -> vector<8x8xf32>
    %98 = arith.truncf %97 : vector<8x8xf32> to vector<8x8xbf16>
    %99 = tpu.concatenate %47, %64, %81, %98 in 1 : vector<8x8xbf16>, vector<8x8xbf16>, vector<8x8xbf16>, vector<8x8xbf16> -> vector<8x32xbf16>
    %cst_42 = arith.constant dense<0.000000e+00> : vector<8x32xf32>
    %100 = tpu.matmul %99, %13, %cst_42 {dimension_numbers = #tpu.dot_dimension_numbers<[1], [0], [0], [1], [0, 0, 1, 1], [], []>} : vector<8x32xbf16>, vector<32x32xbf16>, vector<8x32xf32> -> vector<8x32xf32>
    %101 = vector.broadcast %14 : vector<1x32xf32> to vector<8x32xf32>
    %102 = arith.addf %100, %101 : vector<8x32xf32>
    %103 = arith.addf %4, %102 : vector<8x32xf32>
    %cst_43 = arith.constant dense<0.000000e+00> : vector<8xf32>
    %104 = vector.multi_reduction <add>, %103, %cst_43 [1] : vector<8x32xf32> to vector<8xf32>
    %105 = vector.shape_cast %104 : vector<8xf32> to vector<8x1xf32>
    %cst_44 = arith.constant 3.200000e+01 : f32
    %106 = vector.broadcast %cst_44 : f32 to vector<8x1xf32>
    %107 = arith.divf %105, %106 : vector<8x1xf32>
    %108 = vector.broadcast %107 : vector<8x1xf32> to vector<8x32xf32>
    %109 = arith.subf %103, %108 : vector<8x32xf32>
    %110 = arith.mulf %109, %109 : vector<8x32xf32>
    %cst_45 = arith.constant dense<0.000000e+00> : vector<8xf32>
    %111 = vector.multi_reduction <add>, %110, %cst_45 [1] : vector<8x32xf32> to vector<8xf32>
    %112 = vector.shape_cast %111 : vector<8xf32> to vector<8x1xf32>
    %cst_46 = arith.constant 3.200000e+01 : f32
    %113 = vector.broadcast %cst_46 : f32 to vector<8x1xf32>
    %114 = arith.divf %112, %113 : vector<8x1xf32>
    %115 = vector.broadcast %107 : vector<8x1xf32> to vector<8x32xf32>
    %116 = arith.subf %103, %115 : vector<8x32xf32>
    %cst_47 = arith.constant 9.99999974E-6 : f32
    %117 = vector.broadcast %cst_47 : f32 to vector<8x1xf32>
    %118 = arith.addf %114, %117 : vector<8x1xf32>
    %119 = math.rsqrt %118 : vector<8x1xf32>
    %120 = vector.broadcast %119 : vector<8x1xf32> to vector<8x32xf32>
    %121 = arith.mulf %116, %120 : vector<8x32xf32>
    %122 = vector.broadcast %15 : vector<1x32xf32> to vector<8x32xf32>
    %123 = arith.mulf %121, %122 : vector<8x32xf32>
    %124 = vector.broadcast %16 : vector<1x32xf32> to vector<8x32xf32>
    %125 = arith.addf %123, %124 : vector<8x32xf32>
    %c0_48 = arith.constant 0 : index
    %c0_49 = arith.constant 0 : index
    %c0_50 = arith.constant 0 : index
    %126 = vector.load %arg13[%c0_48, %c0_49, %c0_50] : memref<1x8x32xf32, #tpu.memory_space<vmem>>, vector<1x8x32xf32>
    %127 = vector.shape_cast %126 : vector<1x8x32xf32> to vector<8x32xf32>
    %128 = vector.shape_cast %125 : vector<8x32xf32> to vector<1x8x32xf32>
    tpu.vector_store %arg13[%c0_48, %c0_49, %c0_50], %128 {strides = array<i32>} : memref<1x8x32xf32, #tpu.memory_space<vmem>>, vector<1x8x32xf32>,
    return
  }
  func.func @transform_0(%arg0: i32, %arg1: i32) -> (i32, i32, i32) {
    %c0_i32 = arith.constant 0 : i32
    %c0_i32_0 = arith.constant 0 : i32
    %c0_i32_1 = arith.constant 0 : i32
    return %arg0, %c0_i32, %c0_i32_0 : i32, i32, i32
  }
  func.func @transform_1(%arg0: i32, %arg1: i32) -> (i32, i32) {
    %c0_i32 = arith.constant 0 : i32
    %c0_i32_0 = arith.constant 0 : i32
    %c0_i32_1 = arith.constant 0 : i32
    return %c0_i32, %c0_i32_0 : i32, i32
  }
  func.func @transform_2(%arg0: i32, %arg1: i32) -> (i32, i32) {
    %c0_i32 = arith.constant 0 : i32
    %c0_i32_0 = arith.constant 0 : i32
    %c0_i32_1 = arith.constant 0 : i32
    return %c0_i32, %c0_i32_0 : i32, i32
  }
  func.func @transform_3(%arg0: i32, %arg1: i32) -> (i32, i32) {
    %c0_i32 = arith.constant 0 : i32
    %c0_i32_0 = arith.constant 0 : i32
    %c0_i32_1 = arith.constant 0 : i32
    return %c0_i32, %c0_i32_0 : i32, i32
  }
  func.func @transform_4(%arg0: i32, %arg1: i32) -> (i32, i32) {
    %c0_i32 = arith.constant 0 : i32
    %c0_i32_0 = arith.constant 0 : i32
    %c0_i32_1 = arith.constant 0 : i32
    return %c0_i32, %c0_i32_0 : i32, i32
  }
  func.func @transform_5(%arg0: i32, %arg1: i32) -> (i32, i32) {
    %c0_i32 = arith.constant 0 : i32
    %c0_i32_0 = arith.constant 0 : i32
    %c0_i32_1 = arith.constant 0 : i32
    return %c0_i32, %c0_i32_0 : i32, i32
  }
  func.func @transform_6(%arg0: i32, %arg1: i32) -> (i32, i32) {
    %c0_i32 = arith.constant 0 : i32
    %c0_i32_0 = arith.constant 0 : i32
    %c0_i32_1 = arith.constant 0 : i32
    return %c0_i32, %c0_i32_0 : i32, i32
  }
  func.func @transform_7(%arg0: i32, %arg1: i32) -> (i32, i32) {
    %c0_i32 = arith.constant 0 : i32
    %c0_i32_0 = arith.constant 0 : i32
    %c0_i32_1 = arith.constant 0 : i32
    return %c0_i32, %c0_i32_0 : i32, i32
  }
  func.func @transform_8(%arg0: i32, %arg1: i32) -> (i32, i32) {
    %c0_i32 = arith.constant 0 : i32
    %c0_i32_0 = arith.constant 0 : i32
    %c0_i32_1 = arith.constant 0 : i32
    return %c0_i32, %c0_i32_0 : i32, i32
  }
  func.func @transform_9(%arg0: i32, %arg1: i32) -> (i32, i32) {
    %c0_i32 = arith.constant 0 : i32
    %c0_i32_0 = arith.constant 0 : i32
    %c0_i32_1 = arith.constant 0 : i32
    return %c0_i32, %c0_i32_0 : i32, i32
  }
  func.func @transform_10(%arg0: i32, %arg1: i32) -> (i32, i32) {
    %c0_i32 = arith.constant 0 : i32
    %c0_i32_0 = arith.constant 0 : i32
    %c0_i32_1 = arith.constant 0 : i32
    return %c0_i32, %c0_i32_0 : i32, i32
  }
  func.func @transform_11(%arg0: i32, %arg1: i32) -> (i32, i32, i32) {
    %c0_i32 = arith.constant 0 : i32
    %c0_i32_0 = arith.constant 0 : i32
    return %arg0, %arg1, %c0_i32 : i32, i32, i32
  }
}

module attributes {stable_mosaic.version = 11 : i64} {
  func.func @self_attn_res_ln_kernel(%arg0: i32, %arg1: i32, %arg2: memref<1x8x32xf32, #tpu.memory_space<vmem>>, %arg3: memref<32x32xbf16, #tpu.memory_space<vmem>>, %arg4: memref<1x32xf32, #tpu.memory_space<vmem>>, %arg5: memref<32x32xbf16, #tpu.memory_space<vmem>>, %arg6: memref<1x32xf32, #tpu.memory_space<vmem>>, %arg7: memref<32x32xbf16, #tpu.memory_space<vmem>>, %arg8: memref<1x32xf32, #tpu.memory_space<vmem>>, %arg9: memref<32x32xbf16, #tpu.memory_space<vmem>>, %arg10: memref<1x32xf32, #tpu.memory_space<vmem>>, %arg11: memref<1x32xf32, #tpu.memory_space<vmem>>, %arg12: memref<1x32xf32, #tpu.memory_space<vmem>>, %arg13: memref<1x8x32xf32, #tpu.memory_space<vmem>>) attributes {dimension_semantics = [#tpu.dimension_semantics<parallel>, #tpu.dimension_semantics<parallel>], iteration_bounds = array<i64: 2, 1>, scalar_prefetch = 0 : i64, scratch_operands = 0 : i64, tpu.core_type = #tpu.core_type<tc>, window_params = [{transform_indices = @transform_0, window_bounds = array<i64: 1, 8, 32>}, {pipeline_mode = #tpu.pipeline_mode<synchronous>, transform_indices = @transform_1, window_bounds = array<i64: 32, 32>}, {pipeline_mode = #tpu.pipeline_mode<synchronous>, transform_indices = @transform_2, window_bounds = array<i64: 1, 32>}, {pipeline_mode = #tpu.pipeline_mode<synchronous>, transform_indices = @transform_3, window_bounds = array<i64: 32, 32>}, {pipeline_mode = #tpu.pipeline_mode<synchronous>, transform_indices = @transform_4, window_bounds = array<i64: 1, 32>}, {pipeline_mode = #tpu.pipeline_mode<synchronous>, transform_indices = @transform_5, window_bounds = array<i64: 32, 32>}, {pipeline_mode = #tpu.pipeline_mode<synchronous>, transform_indices = @transform_6, window_bounds = array<i64: 1, 32>}, {pipeline_mode = #tpu.pipeline_mode<synchronous>, transform_indices = @transform_7, window_bounds = array<i64: 32, 32>}, {pipeline_mode = #tpu.pipeline_mode<synchronous>, transform_indices = @transform_8, window_bounds = array<i64: 1, 32>}, {pipeline_mode = #tpu.pipeline_mode<synchronous>, transform_indices = @transform_9, window_bounds = array<i64: 1, 32>}, {pipeline_mode = #tpu.pipeline_mode<synchronous>, transform_indices = @transform_10, window_bounds = array<i64: 1, 32>}, {transform_indices = @transform_11, window_bounds = array<i64: 1, 8, 32>}]} {
    %c8_i32 = arith.constant 8 : i32
    %0 = arith.muli %arg1, %c8_i32 : i32
    %1 = tpu.assume_multiple %0, 8 : i32
    %c0 = arith.constant 0 : index
    %2 = arith.index_cast %1 : i32 to index
    %c0_0 = arith.constant 0 : index
    %3 = vector.load %arg2[%c0, %2, %c0_0] : memref<1x8x32xf32, #tpu.memory_space<vmem>>, vector<1x8x32xf32>
    %4 = vector.shape_cast %3 : vector<1x8x32xf32> to vector<8x32xf32>
    %c0_1 = arith.constant 0 : index
    %c0_2 = arith.constant 0 : index
    %c0_3 = arith.constant 0 : index
    %5 = vector.load %arg2[%c0_1, %c0_2, %c0_3] : memref<1x8x32xf32, #tpu.memory_space<vmem>>, vector<1x8x32xf32>
    %6 = vector.shape_cast %5 : vector<1x8x32xf32> to vector<8x32xf32>
    %c0_4 = arith.constant 0 : index
    %c0_5 = arith.constant 0 : index
    %7 = vector.load %arg3[%c0_4, %c0_5] : memref<32x32xbf16, #tpu.memory_space<vmem>>, vector<32x32xbf16>
    %c0_6 = arith.constant 0 : index
    %c0_7 = arith.constant 0 : index
    %8 = vector.load %arg4[%c0_6, %c0_7] : memref<1x32xf32, #tpu.memory_space<vmem>>, vector<1x32xf32>
    %c0_8 = arith.constant 0 : index
    %c0_9 = arith.constant 0 : index
    %9 = vector.load %arg5[%c0_8, %c0_9] : memref<32x32xbf16, #tpu.memory_space<vmem>>, vector<32x32xbf16>
    %c0_10 = arith.constant 0 : index
    %c0_11 = arith.constant 0 : index
    %10 = vector.load %arg6[%c0_10, %c0_11] : memref<1x32xf32, #tpu.memory_space<vmem>>, vector<1x32xf32>
    %c0_12 = arith.constant 0 : index
    %c0_13 = arith.constant 0 : index
    %11 = vector.load %arg7[%c0_12, %c0_13] : memref<32x32xbf16, #tpu.memory_space<vmem>>, vector<32x32xbf16>
    %c0_14 = arith.constant 0 : index
    %c0_15 = arith.constant 0 : index
    %12 = vector.load %arg8[%c0_14, %c0_15] : memref<1x32xf32, #tpu.memory_space<vmem>>, vector<1x32xf32>
    %c0_16 = arith.constant 0 : index
    %c0_17 = arith.constant 0 : index
    %13 = vector.load %arg9[%c0_16, %c0_17] : memref<32x32xbf16, #tpu.memory_space<vmem>>, vector<32x32xbf16>
    %c0_18 = arith.constant 0 : index
    %c0_19 = arith.constant 0 : index
    %14 = vector.load %arg10[%c0_18, %c0_19] : memref<1x32xf32, #tpu.memory_space<vmem>>, vector<1x32xf32>
    %c0_20 = arith.constant 0 : index
    %c0_21 = arith.constant 0 : index
    %15 = vector.load %arg11[%c0_20, %c0_21] : memref<1x32xf32, #tpu.memory_space<vmem>>, vector<1x32xf32>
    %c0_22 = arith.constant 0 : index
    %c0_23 = arith.constant 0 : index
    %16 = vector.load %arg12[%c0_22, %c0_23] : memref<1x32xf32, #tpu.memory_space<vmem>>, vector<1x32xf32>
    %17 = arith.truncf %4 : vector<8x32xf32> to vector<8x32xbf16>
    %18 = arith.truncf %6 : vector<8x32xf32> to vector<8x32xbf16>
    %cst = arith.constant dense<0.000000e+00> : vector<8x32xf32>
    %19 = tpu.matmul %17, %7, %cst {dimension_numbers = #tpu.dot_dimension_numbers<[1], [0], [0], [1], [0, 0, 1, 1], [], []>} : vector<8x32xbf16>, vector<32x32xbf16>, vector<8x32xf32> -> vector<8x32xf32>
    %20 = vector.broadcast %8 : vector<1x32xf32> to vector<8x32xf32>
    %21 = arith.addf %19, %20 : vector<8x32xf32>
    %cst_24 = arith.constant dense<0.000000e+00> : vector<8x32xf32>
    %22 = tpu.matmul %18, %9, %cst_24 {dimension_numbers = #tpu.dot_dimension_numbers<[1], [0], [0], [1], [0, 0, 1, 1], [], []>} : vector<8x32xbf16>, vector<32x32xbf16>, vector<8x32xf32> -> vector<8x32xf32>
    %23 = vector.broadcast %10 : vector<1x32xf32> to vector<8x32xf32>
    %24 = arith.addf %22, %23 : vector<8x32xf32>
    %cst_25 = arith.constant dense<0.000000e+00> : vector<8x32xf32>
    %25 = tpu.matmul %18, %11, %cst_25 {dimension_numbers = #tpu.dot_dimension_numbers<[1], [0], [0], [1], [0, 0, 1, 1], [], []>} : vector<8x32xbf16>, vector<32x32xbf16>, vector<8x32xf32> -> vector<8x32xf32>
    %26 = vector.broadcast %12 : vector<1x32xf32> to vector<8x32xf32>
    %27 = arith.addf %25, %26 : vector<8x32xf32>
    %28 = arith.truncf %21 : vector<8x32xf32> to vector<8x32xbf16>
    %29 = arith.truncf %24 : vector<8x32xf32> to vector<8x32xbf16>
    %30 = arith.truncf %27 : vector<8x32xf32> to vector<8x32xbf16>
    %31 = vector.extract_strided_slice %28 {offsets = [0, 0], sizes = [8, 8], strides = [1, 1]} : vector<8x32xbf16> to vector<8x8xbf16>
    %32 = vector.extract_strided_slice %29 {offsets = [0, 0], sizes = [8, 8], strides = [1, 1]} : vector<8x32xbf16> to vector<8x8xbf16>
    %33 = vector.extract_strided_slice %30 {offsets = [0, 0], sizes = [8, 8], strides = [1, 1]} : vector<8x32xbf16> to vector<8x8xbf16>
    %cst_26 = arith.constant dense<0.000000e+00> : vector<8x8xf32>
    %34 = tpu.matmul %31, %32, %cst_26 {dimension_numbers = #tpu.dot_dimension_numbers<[1], [1], [0], [0], [0, 0, 1, 0], [], []>} : vector<8x8xbf16>, vector<8x8xbf16>, vector<8x8xf32> -> vector<8x8xf32>
    %cst_27 = arith.constant dense<0xFF800000> : vector<8xf32>
    %35 = vector.multi_reduction <maximumf>, %34, %cst_27 [1] : vector<8x8xf32> to vector<8xf32>
    %36 = vector.shape_cast %35 : vector<8xf32> to vector<8x1xf32>
    %37 = vector.broadcast %36 : vector<8x1xf32> to vector<8x8xf32>
    %38 = arith.subf %34, %37 : vector<8x8xf32>
    %39 = math.exp %38 : vector<8x8xf32>
    %cst_28 = arith.constant dense<0.000000e+00> : vector<8xf32>
    %40 = vector.multi_reduction <add>, %39, %cst_28 [1] : vector<8x8xf32> to vector<8xf32>
    %41 = vector.shape_cast %40 : vector<8xf32> to vector<8x1xf32>
    %42 = tpu.reciprocal %41 {approx = true} : vector<8x1xf32> -> vector<8x1xf32>
    %43 = vector.broadcast %42 : vector<8x1xf32> to vector<8x8xf32>
    %44 = arith.mulf %39, %43 : vector<8x8xf32>
    %45 = arith.truncf %44 : vector<8x8xf32> to vector<8x8xbf16>
    %cst_29 = arith.constant dense<0.000000e+00> : vector<8x8xf32>
    %46 = tpu.matmul %45, %33, %cst_29 {dimension_numbers = #tpu.dot_dimension_numbers<[1], [0], [0], [1], [0, 0, 1, 1], [], []>} : vector<8x8xbf16>, vector<8x8xbf16>, vector<8x8xf32> -> vector<8x8xf32>
    %47 = arith.truncf %46 : vector<8x8xf32> to vector<8x8xbf16>
    %48 = vector.extract_strided_slice %28 {offsets = [0, 8], sizes = [8, 8], strides = [1, 1]} : vector<8x32xbf16> to vector<8x8xbf16>
    %49 = vector.extract_strided_slice %29 {offsets = [0, 8], sizes = [8, 8], strides = [1, 1]} : vector<8x32xbf16> to vector<8x8xbf16>
    %50 = vector.extract_strided_slice %30 {offsets = [0, 8], sizes = [8, 8], strides = [1, 1]} : vector<8x32xbf16> to vector<8x8xbf16>
    %cst_30 = arith.constant dense<0.000000e+00> : vector<8x8xf32>
    %51 = tpu.matmul %48, %49, %cst_30 {dimension_numbers = #tpu.dot_dimension_numbers<[1], [1], [0], [0], [0, 0, 1, 0], [], []>} : vector<8x8xbf16>, vector<8x8xbf16>, vector<8x8xf32> -> vector<8x8xf32>
    %cst_31 = arith.constant dense<0xFF800000> : vector<8xf32>
    %52 = vector.multi_reduction <maximumf>, %51, %cst_31 [1] : vector<8x8xf32> to vector<8xf32>
    %53 = vector.shape_cast %52 : vector<8xf32> to vector<8x1xf32>
    %54 = vector.broadcast %53 : vector<8x1xf32> to vector<8x8xf32>
    %55 = arith.subf %51, %54 : vector<8x8xf32>
    %56 = math.exp %55 : vector<8x8xf32>
    %cst_32 = arith.constant dense<0.000000e+00> : vector<8xf32>
    %57 = vector.multi_reduction <add>, %56, %cst_32 [1] : vector<8x8xf32> to vector<8xf32>
    %58 = vector.shape_cast %57 : vector<8xf32> to vector<8x1xf32>
    %59 = tpu.reciprocal %58 {approx = true} : vector<8x1xf32> -> vector<8x1xf32>
    %60 = vector.broadcast %59 : vector<8x1xf32> to vector<8x8xf32>
    %61 = arith.mulf %56, %60 : vector<8x8xf32>
    %62 = arith.truncf %61 : vector<8x8xf32> to vector<8x8xbf16>
    %cst_33 = arith.constant dense<0.000000e+00> : vector<8x8xf32>
    %63 = tpu.matmul %62, %50, %cst_33 {dimension_numbers = #tpu.dot_dimension_numbers<[1], [0], [0], [1], [0, 0, 1, 1], [], []>} : vector<8x8xbf16>, vector<8x8xbf16>, vector<8x8xf32> -> vector<8x8xf32>
    %64 = arith.truncf %63 : vector<8x8xf32> to vector<8x8xbf16>
    %65 = vector.extract_strided_slice %28 {offsets = [0, 16], sizes = [8, 8], strides = [1, 1]} : vector<8x32xbf16> to vector<8x8xbf16>
    %66 = vector.extract_strided_slice %29 {offsets = [0, 16], sizes = [8, 8], strides = [1, 1]} : vector<8x32xbf16> to vector<8x8xbf16>
    %67 = vector.extract_strided_slice %30 {offsets = [0, 16], sizes = [8, 8], strides = [1, 1]} : vector<8x32xbf16> to vector<8x8xbf16>
    %cst_34 = arith.constant dense<0.000000e+00> : vector<8x8xf32>
    %68 = tpu.matmul %65, %66, %cst_34 {dimension_numbers = #tpu.dot_dimension_numbers<[1], [1], [0], [0], [0, 0, 1, 0], [], []>} : vector<8x8xbf16>, vector<8x8xbf16>, vector<8x8xf32> -> vector<8x8xf32>
    %cst_35 = arith.constant dense<0xFF800000> : vector<8xf32>
    %69 = vector.multi_reduction <maximumf>, %68, %cst_35 [1] : vector<8x8xf32> to vector<8xf32>
    %70 = vector.shape_cast %69 : vector<8xf32> to vector<8x1xf32>
    %71 = vector.broadcast %70 : vector<8x1xf32> to vector<8x8xf32>
    %72 = arith.subf %68, %71 : vector<8x8xf32>
    %73 = math.exp %72 : vector<8x8xf32>
    %cst_36 = arith.constant dense<0.000000e+00> : vector<8xf32>
    %74 = vector.multi_reduction <add>, %73, %cst_36 [1] : vector<8x8xf32> to vector<8xf32>
    %75 = vector.shape_cast %74 : vector<8xf32> to vector<8x1xf32>
    %76 = tpu.reciprocal %75 {approx = true} : vector<8x1xf32> -> vector<8x1xf32>
    %77 = vector.broadcast %76 : vector<8x1xf32> to vector<8x8xf32>
    %78 = arith.mulf %73, %77 : vector<8x8xf32>
    %79 = arith.truncf %78 : vector<8x8xf32> to vector<8x8xbf16>
    %cst_37 = arith.constant dense<0.000000e+00> : vector<8x8xf32>
    %80 = tpu.matmul %79, %67, %cst_37 {dimension_numbers = #tpu.dot_dimension_numbers<[1], [0], [0], [1], [0, 0, 1, 1], [], []>} : vector<8x8xbf16>, vector<8x8xbf16>, vector<8x8xf32> -> vector<8x8xf32>
    %81 = arith.truncf %80 : vector<8x8xf32> to vector<8x8xbf16>
    %82 = vector.extract_strided_slice %28 {offsets = [0, 24], sizes = [8, 8], strides = [1, 1]} : vector<8x32xbf16> to vector<8x8xbf16>
    %83 = vector.extract_strided_slice %29 {offsets = [0, 24], sizes = [8, 8], strides = [1, 1]} : vector<8x32xbf16> to vector<8x8xbf16>
    %84 = vector.extract_strided_slice %30 {offsets = [0, 24], sizes = [8, 8], strides = [1, 1]} : vector<8x32xbf16> to vector<8x8xbf16>
    %cst_38 = arith.constant dense<0.000000e+00> : vector<8x8xf32>
    %85 = tpu.matmul %82, %83, %cst_38 {dimension_numbers = #tpu.dot_dimension_numbers<[1], [1], [0], [0], [0, 0, 1, 0], [], []>} : vector<8x8xbf16>, vector<8x8xbf16>, vector<8x8xf32> -> vector<8x8xf32>
    %cst_39 = arith.constant dense<0xFF800000> : vector<8xf32>
    %86 = vector.multi_reduction <maximumf>, %85, %cst_39 [1] : vector<8x8xf32> to vector<8xf32>
    %87 = vector.shape_cast %86 : vector<8xf32> to vector<8x1xf32>
    %88 = vector.broadcast %87 : vector<8x1xf32> to vector<8x8xf32>
    %89 = arith.subf %85, %88 : vector<8x8xf32>
    %90 = math.exp %89 : vector<8x8xf32>
    %cst_40 = arith.constant dense<0.000000e+00> : vector<8xf32>
    %91 = vector.multi_reduction <add>, %90, %cst_40 [1] : vector<8x8xf32> to vector<8xf32>
    %92 = vector.shape_cast %91 : vector<8xf32> to vector<8x1xf32>
    %93 = tpu.reciprocal %92 {approx = true} : vector<8x1xf32> -> vector<8x1xf32>
    %94 = vector.broadcast %93 : vector<8x1xf32> to vector<8x8xf32>
    %95 = arith.mulf %90, %94 : vector<8x8xf32>
    %96 = arith.truncf %95 : vector<8x8xf32> to vector<8x8xbf16>
    %cst_41 = arith.constant dense<0.000000e+00> : vector<8x8xf32>
    %97 = tpu.matmul %96, %84, %cst_41 {dimension_numbers = #tpu.dot_dimension_numbers<[1], [0], [0], [1], [0, 0, 1, 1], [], []>} : vector<8x8xbf16>, vector<8x8xbf16>, vector<8x8xf32> -> vector<8x8xf32>
    %98 = arith.truncf %97 : vector<8x8xf32> to vector<8x8xbf16>
    %99 = tpu.concatenate %47, %64, %81, %98 in 1 : vector<8x8xbf16>, vector<8x8xbf16>, vector<8x8xbf16>, vector<8x8xbf16> -> vector<8x32xbf16>
    %cst_42 = arith.constant dense<0.000000e+00> : vector<8x32xf32>
    %100 = tpu.matmul %99, %13, %cst_42 {dimension_numbers = #tpu.dot_dimension_numbers<[1], [0], [0], [1], [0, 0, 1, 1], [], []>} : vector<8x32xbf16>, vector<32x32xbf16>, vector<8x32xf32> -> vector<8x32xf32>
    %101 = vector.broadcast %14 : vector<1x32xf32> to vector<8x32xf32>
    %102 = arith.addf %100, %101 : vector<8x32xf32>
    %103 = arith.addf %4, %102 : vector<8x32xf32>
    %cst_43 = arith.constant dense<0.000000e+00> : vector<8xf32>
    %104 = vector.multi_reduction <add>, %103, %cst_43 [1] : vector<8x32xf32> to vector<8xf32>
    %105 = vector.shape_cast %104 : vector<8xf32> to vector<8x1xf32>
    %cst_44 = arith.constant 3.200000e+01 : f32
    %106 = vector.broadcast %cst_44 : f32 to vector<8x1xf32>
    %107 = arith.divf %105, %106 : vector<8x1xf32>
    %108 = vector.broadcast %107 : vector<8x1xf32> to vector<8x32xf32>
    %109 = arith.subf %103, %108 : vector<8x32xf32>
    %110 = arith.mulf %109, %109 : vector<8x32xf32>
    %cst_45 = arith.constant dense<0.000000e+00> : vector<8xf32>
    %111 = vector.multi_reduction <add>, %110, %cst_45 [1] : vector<8x32xf32> to vector<8xf32>
    %112 = vector.shape_cast %111 : vector<8xf32> to vector<8x1xf32>
    %cst_46 = arith.constant 3.200000e+01 : f32
    %113 = vector.broadcast %cst_46 : f32 to vector<8x1xf32>
    %114 = arith.divf %112, %113 : vector<8x1xf32>
    %115 = vector.broadcast %107 : vector<8x1xf32> to vector<8x32xf32>
    %116 = arith.subf %103, %115 : vector<8x32xf32>
    %cst_47 = arith.constant 9.99999974E-6 : f32
    %117 = vector.broadcast %cst_47 : f32 to vector<8x1xf32>
    %118 = arith.addf %114, %117 : vector<8x1xf32>
    %119 = math.rsqrt %118 : vector<8x1xf32>
    %120 = vector.broadcast %119 : vector<8x1xf32> to vector<8x32xf32>
    %121 = arith.mulf %116, %120 : vector<8x32xf32>
    %122 = vector.broadcast %15 : vector<1x32xf32> to vector<8x32xf32>
    %123 = arith.mulf %121, %122 : vector<8x32xf32>
    %124 = vector.broadcast %16 : vector<1x32xf32> to vector<8x32xf32>
    %125 = arith.addf %123, %124 : vector<8x32xf32>
    %c0_48 = arith.constant 0 : index
    %c0_49 = arith.constant 0 : index
    %c0_50 = arith.constant 0 : index
    %126 = vector.load %arg13[%c0_48, %c0_49, %c0_50] : memref<1x8x32xf32, #tpu.memory_space<vmem>>, vector<1x8x32xf32>
    %127 = vector.shape_cast %126 : vector<1x8x32xf32> to vector<8x32xf32>
    %128 = vector.shape_cast %125 : vector<8x32xf32> to vector<1x8x32xf32>
    tpu.vector_store %arg13[%c0_48, %c0_49, %c0_50], %128 {strides = array<i32>} : memref<1x8x32xf32, #tpu.memory_space<vmem>>, vector<1x8x32xf32>,
    return
  }
  func.func @transform_0(%arg0: i32, %arg1: i32) -> (i32, i32, i32) {
    %c0_i32 = arith.constant 0 : i32
    %c0_i32_0 = arith.constant 0 : i32
    %c0_i32_1 = arith.constant 0 : i32
    return %arg0, %c0_i32, %c0_i32_0 : i32, i32, i32
  }
  func.func @transform_1(%arg0: i32, %arg1: i32) -> (i32, i32) {
    %c0_i32 = arith.constant 0 : i32
    %c0_i32_0 = arith.constant 0 : i32
    %c0_i32_1 = arith.constant 0 : i32
    return %c0_i32, %c0_i32_0 : i32, i32
  }
  func.func @transform_2(%arg0: i32, %arg1: i32) -> (i32, i32) {
    %c0_i32 = arith.constant 0 : i32
    %c0_i32_0 = arith.constant 0 : i32
    %c0_i32_1 = arith.constant 0 : i32
    return %c0_i32, %c0_i32_0 : i32, i32
  }
  func.func @transform_3(%arg0: i32, %arg1: i32) -> (i32, i32) {
    %c0_i32 = arith.constant 0 : i32
    %c0_i32_0 = arith.constant 0 : i32
    %c0_i32_1 = arith.constant 0 : i32
    return %c0_i32, %c0_i32_0 : i32, i32
  }
  func.func @transform_4(%arg0: i32, %arg1: i32) -> (i32, i32) {
    %c0_i32 = arith.constant 0 : i32
    %c0_i32_0 = arith.constant 0 : i32
    %c0_i32_1 = arith.constant 0 : i32
    return %c0_i32, %c0_i32_0 : i32, i32
  }
  func.func @transform_5(%arg0: i32, %arg1: i32) -> (i32, i32) {
    %c0_i32 = arith.constant 0 : i32
    %c0_i32_0 = arith.constant 0 : i32
    %c0_i32_1 = arith.constant 0 : i32
    return %c0_i32, %c0_i32_0 : i32, i32
  }
  func.func @transform_6(%arg0: i32, %arg1: i32) -> (i32, i32) {
    %c0_i32 = arith.constant 0 : i32
    %c0_i32_0 = arith.constant 0 : i32
    %c0_i32_1 = arith.constant 0 : i32
    return %c0_i32, %c0_i32_0 : i32, i32
  }
  func.func @transform_7(%arg0: i32, %arg1: i32) -> (i32, i32) {
    %c0_i32 = arith.constant 0 : i32
    %c0_i32_0 = arith.constant 0 : i32
    %c0_i32_1 = arith.constant 0 : i32
    return %c0_i32, %c0_i32_0 : i32, i32
  }
  func.func @transform_8(%arg0: i32, %arg1: i32) -> (i32, i32) {
    %c0_i32 = arith.constant 0 : i32
    %c0_i32_0 = arith.constant 0 : i32
    %c0_i32_1 = arith.constant 0 : i32
    return %c0_i32, %c0_i32_0 : i32, i32
  }
  func.func @transform_9(%arg0: i32, %arg1: i32) -> (i32, i32) {
    %c0_i32 = arith.constant 0 : i32
    %c0_i32_0 = arith.constant 0 : i32
    %c0_i32_1 = arith.constant 0 : i32
    return %c0_i32, %c0_i32_0 : i32, i32
  }
  func.func @transform_10(%arg0: i32, %arg1: i32) -> (i32, i32) {
    %c0_i32 = arith.constant 0 : i32
    %c0_i32_0 = arith.constant 0 : i32
    %c0_i32_1 = arith.constant 0 : i32
    return %c0_i32, %c0_i32_0 : i32, i32
  }
  func.func @transform_11(%arg0: i32, %arg1: i32) -> (i32, i32, i32) {
    %c0_i32 = arith.constant 0 : i32
    %c0_i32_0 = arith.constant 0 : i32
    return %arg0, %arg1, %c0_i32 : i32, i32, i32
  }
}

module attributes {stable_mosaic.version = 11 : i64} {
  func.func @linear_kernel(%arg0: i32, %arg1: memref<16x32xf32, #tpu.memory_space<vmem>>, %arg2: memref<32x32xbf16, #tpu.memory_space<vmem>>, %arg3: memref<1x32xf32, #tpu.memory_space<vmem>>, %arg4: memref<16x32xf32, #tpu.memory_space<vmem>>) attributes {dimension_semantics = [#tpu.dimension_semantics<parallel>], iteration_bounds = array<i64: 1>, scalar_prefetch = 0 : i64, scratch_operands = 0 : i64, tpu.core_type = #tpu.core_type<tc>, window_params = [{transform_indices = @transform_0, window_bounds = array<i64: 16, 32>}, {pipeline_mode = #tpu.pipeline_mode<synchronous>, transform_indices = @transform_1, window_bounds = array<i64: 32, 32>}, {pipeline_mode = #tpu.pipeline_mode<synchronous>, transform_indices = @transform_2, window_bounds = array<i64: 1, 32>}, {transform_indices = @transform_3, window_bounds = array<i64: 16, 32>}]} {
    %c0 = arith.constant 0 : index
    %c0_0 = arith.constant 0 : index
    %0 = vector.load %arg1[%c0, %c0_0] : memref<16x32xf32, #tpu.memory_space<vmem>>, vector<16x32xf32>
    %1 = arith.truncf %0 : vector<16x32xf32> to vector<16x32xbf16>
    %c0_1 = arith.constant 0 : index
    %c0_2 = arith.constant 0 : index
    %2 = vector.load %arg2[%c0_1, %c0_2] : memref<32x32xbf16, #tpu.memory_space<vmem>>, vector<32x32xbf16>
    %cst = arith.constant dense<0.000000e+00> : vector<16x32xf32>
    %3 = tpu.matmul %1, %2, %cst {dimension_numbers = #tpu.dot_dimension_numbers<[1], [0], [0], [1], [0, 0, 1, 1], [], []>} : vector<16x32xbf16>, vector<32x32xbf16>, vector<16x32xf32> -> vector<16x32xf32>
    %c0_3 = arith.constant 0 : index
    %c0_4 = arith.constant 0 : index
    %4 = vector.load %arg3[%c0_3, %c0_4] : memref<1x32xf32, #tpu.memory_space<vmem>>, vector<1x32xf32>
    %5 = vector.broadcast %4 : vector<1x32xf32> to vector<16x32xf32>
    %6 = arith.addf %3, %5 : vector<16x32xf32>
    %c0_5 = arith.constant 0 : index
    %c0_6 = arith.constant 0 : index
    %7 = vector.load %arg4[%c0_5, %c0_6] : memref<16x32xf32, #tpu.memory_space<vmem>>, vector<16x32xf32>
    tpu.vector_store %arg4[%c0_5, %c0_6], %6 {strides = array<i32>} : memref<16x32xf32, #tpu.memory_space<vmem>>, vector<16x32xf32>,
    return
  }
  func.func @transform_0(%arg0: i32) -> (i32, i32) {
    %c0_i32 = arith.constant 0 : i32
    %c0_i32_0 = arith.constant 0 : i32
    return %arg0, %c0_i32 : i32, i32
  }
  func.func @transform_1(%arg0: i32) -> (i32, i32) {
    %c0_i32 = arith.constant 0 : i32
    %c0_i32_0 = arith.constant 0 : i32
    %c0_i32_1 = arith.constant 0 : i32
    return %c0_i32, %c0_i32_0 : i32, i32
  }
  func.func @transform_2(%arg0: i32) -> (i32, i32) {
    %c0_i32 = arith.constant 0 : i32
    %c0_i32_0 = arith.constant 0 : i32
    %c0_i32_1 = arith.constant 0 : i32
    return %c0_i32, %c0_i32_0 : i32, i32
  }
  func.func @transform_3(%arg0: i32) -> (i32, i32) {
    %c0_i32 = arith.constant 0 : i32
    %c0_i32_0 = arith.constant 0 : i32
    return %arg0, %c0_i32 : i32, i32
  }
}

module attributes {stable_mosaic.version = 11 : i64} {
  func.func @cross_attn_res_ln_kernel(%arg0: i32, %arg1: i32, %arg2: memref<1x8x32xf32, #tpu.memory_space<vmem>>, %arg3: memref<1x8x32xf32, #tpu.memory_space<vmem>>, %arg4: memref<32x32xbf16, #tpu.memory_space<vmem>>, %arg5: memref<1x32xf32, #tpu.memory_space<vmem>>, %arg6: memref<32x32xbf16, #tpu.memory_space<vmem>>, %arg7: memref<1x32xf32, #tpu.memory_space<vmem>>, %arg8: memref<32x32xbf16, #tpu.memory_space<vmem>>, %arg9: memref<1x32xf32, #tpu.memory_space<vmem>>, %arg10: memref<32x32xbf16, #tpu.memory_space<vmem>>, %arg11: memref<1x32xf32, #tpu.memory_space<vmem>>, %arg12: memref<1x32xf32, #tpu.memory_space<vmem>>, %arg13: memref<1x32xf32, #tpu.memory_space<vmem>>, %arg14: memref<1x8x32xf32, #tpu.memory_space<vmem>>) attributes {dimension_semantics = [#tpu.dimension_semantics<parallel>, #tpu.dimension_semantics<parallel>], iteration_bounds = array<i64: 2, 1>, scalar_prefetch = 0 : i64, scratch_operands = 0 : i64, tpu.core_type = #tpu.core_type<tc>, window_params = [{transform_indices = @transform_0, window_bounds = array<i64: 1, 8, 32>}, {transform_indices = @transform_1, window_bounds = array<i64: 1, 8, 32>}, {pipeline_mode = #tpu.pipeline_mode<synchronous>, transform_indices = @transform_2, window_bounds = array<i64: 32, 32>}, {pipeline_mode = #tpu.pipeline_mode<synchronous>, transform_indices = @transform_3, window_bounds = array<i64: 1, 32>}, {pipeline_mode = #tpu.pipeline_mode<synchronous>, transform_indices = @transform_4, window_bounds = array<i64: 32, 32>}, {pipeline_mode = #tpu.pipeline_mode<synchronous>, transform_indices = @transform_5, window_bounds = array<i64: 1, 32>}, {pipeline_mode = #tpu.pipeline_mode<synchronous>, transform_indices = @transform_6, window_bounds = array<i64: 32, 32>}, {pipeline_mode = #tpu.pipeline_mode<synchronous>, transform_indices = @transform_7, window_bounds = array<i64: 1, 32>}, {pipeline_mode = #tpu.pipeline_mode<synchronous>, transform_indices = @transform_8, window_bounds = array<i64: 32, 32>}, {pipeline_mode = #tpu.pipeline_mode<synchronous>, transform_indices = @transform_9, window_bounds = array<i64: 1, 32>}, {pipeline_mode = #tpu.pipeline_mode<synchronous>, transform_indices = @transform_10, window_bounds = array<i64: 1, 32>}, {pipeline_mode = #tpu.pipeline_mode<synchronous>, transform_indices = @transform_11, window_bounds = array<i64: 1, 32>}, {transform_indices = @transform_12, window_bounds = array<i64: 1, 8, 32>}]} {
    %c0 = arith.constant 0 : index
    %c0_0 = arith.constant 0 : index
    %c0_1 = arith.constant 0 : index
    %0 = vector.load %arg2[%c0, %c0_0, %c0_1] : memref<1x8x32xf32, #tpu.memory_space<vmem>>, vector<1x8x32xf32>
    %1 = vector.shape_cast %0 : vector<1x8x32xf32> to vector<8x32xf32>
    %c0_2 = arith.constant 0 : index
    %c0_3 = arith.constant 0 : index
    %c0_4 = arith.constant 0 : index
    %2 = vector.load %arg3[%c0_2, %c0_3, %c0_4] : memref<1x8x32xf32, #tpu.memory_space<vmem>>, vector<1x8x32xf32>
    %3 = vector.shape_cast %2 : vector<1x8x32xf32> to vector<8x32xf32>
    %c0_5 = arith.constant 0 : index
    %c0_6 = arith.constant 0 : index
    %4 = vector.load %arg4[%c0_5, %c0_6] : memref<32x32xbf16, #tpu.memory_space<vmem>>, vector<32x32xbf16>
    %c0_7 = arith.constant 0 : index
    %c0_8 = arith.constant 0 : index
    %5 = vector.load %arg5[%c0_7, %c0_8] : memref<1x32xf32, #tpu.memory_space<vmem>>, vector<1x32xf32>
    %c0_9 = arith.constant 0 : index
    %c0_10 = arith.constant 0 : index
    %6 = vector.load %arg6[%c0_9, %c0_10] : memref<32x32xbf16, #tpu.memory_space<vmem>>, vector<32x32xbf16>
    %c0_11 = arith.constant 0 : index
    %c0_12 = arith.constant 0 : index
    %7 = vector.load %arg7[%c0_11, %c0_12] : memref<1x32xf32, #tpu.memory_space<vmem>>, vector<1x32xf32>
    %c0_13 = arith.constant 0 : index
    %c0_14 = arith.constant 0 : index
    %8 = vector.load %arg8[%c0_13, %c0_14] : memref<32x32xbf16, #tpu.memory_space<vmem>>, vector<32x32xbf16>
    %c0_15 = arith.constant 0 : index
    %c0_16 = arith.constant 0 : index
    %9 = vector.load %arg9[%c0_15, %c0_16] : memref<1x32xf32, #tpu.memory_space<vmem>>, vector<1x32xf32>
    %c0_17 = arith.constant 0 : index
    %c0_18 = arith.constant 0 : index
    %10 = vector.load %arg10[%c0_17, %c0_18] : memref<32x32xbf16, #tpu.memory_space<vmem>>, vector<32x32xbf16>
    %c0_19 = arith.constant 0 : index
    %c0_20 = arith.constant 0 : index
    %11 = vector.load %arg11[%c0_19, %c0_20] : memref<1x32xf32, #tpu.memory_space<vmem>>, vector<1x32xf32>
    %c0_21 = arith.constant 0 : index
    %c0_22 = arith.constant 0 : index
    %12 = vector.load %arg12[%c0_21, %c0_22] : memref<1x32xf32, #tpu.memory_space<vmem>>, vector<1x32xf32>
    %c0_23 = arith.constant 0 : index
    %c0_24 = arith.constant 0 : index
    %13 = vector.load %arg13[%c0_23, %c0_24] : memref<1x32xf32, #tpu.memory_space<vmem>>, vector<1x32xf32>
    %14 = arith.truncf %1 : vector<8x32xf32> to vector<8x32xbf16>
    %15 = arith.truncf %3 : vector<8x32xf32> to vector<8x32xbf16>
    %cst = arith.constant dense<0.000000e+00> : vector<8x32xf32>
    %16 = tpu.matmul %14, %4, %cst {dimension_numbers = #tpu.dot_dimension_numbers<[1], [0], [0], [1], [0, 0, 1, 1], [], []>} : vector<8x32xbf16>, vector<32x32xbf16>, vector<8x32xf32> -> vector<8x32xf32>
    %17 = vector.broadcast %5 : vector<1x32xf32> to vector<8x32xf32>
    %18 = arith.addf %16, %17 : vector<8x32xf32>
    %cst_25 = arith.constant dense<0.000000e+00> : vector<8x32xf32>
    %19 = tpu.matmul %15, %6, %cst_25 {dimension_numbers = #tpu.dot_dimension_numbers<[1], [0], [0], [1], [0, 0, 1, 1], [], []>} : vector<8x32xbf16>, vector<32x32xbf16>, vector<8x32xf32> -> vector<8x32xf32>
    %20 = vector.broadcast %7 : vector<1x32xf32> to vector<8x32xf32>
    %21 = arith.addf %19, %20 : vector<8x32xf32>
    %cst_26 = arith.constant dense<0.000000e+00> : vector<8x32xf32>
    %22 = tpu.matmul %15, %8, %cst_26 {dimension_numbers = #tpu.dot_dimension_numbers<[1], [0], [0], [1], [0, 0, 1, 1], [], []>} : vector<8x32xbf16>, vector<32x32xbf16>, vector<8x32xf32> -> vector<8x32xf32>
    %23 = vector.broadcast %9 : vector<1x32xf32> to vector<8x32xf32>
    %24 = arith.addf %22, %23 : vector<8x32xf32>
    %25 = arith.truncf %18 : vector<8x32xf32> to vector<8x32xbf16>
    %26 = arith.truncf %21 : vector<8x32xf32> to vector<8x32xbf16>
    %27 = arith.truncf %24 : vector<8x32xf32> to vector<8x32xbf16>
    %28 = vector.extract_strided_slice %25 {offsets = [0, 0], sizes = [8, 8], strides = [1, 1]} : vector<8x32xbf16> to vector<8x8xbf16>
    %29 = vector.extract_strided_slice %26 {offsets = [0, 0], sizes = [8, 8], strides = [1, 1]} : vector<8x32xbf16> to vector<8x8xbf16>
    %30 = vector.extract_strided_slice %27 {offsets = [0, 0], sizes = [8, 8], strides = [1, 1]} : vector<8x32xbf16> to vector<8x8xbf16>
    %cst_27 = arith.constant dense<0.000000e+00> : vector<8x8xf32>
    %31 = tpu.matmul %28, %29, %cst_27 {dimension_numbers = #tpu.dot_dimension_numbers<[1], [1], [0], [0], [0, 0, 1, 0], [], []>} : vector<8x8xbf16>, vector<8x8xbf16>, vector<8x8xf32> -> vector<8x8xf32>
    %cst_28 = arith.constant dense<0xFF800000> : vector<8xf32>
    %32 = vector.multi_reduction <maximumf>, %31, %cst_28 [1] : vector<8x8xf32> to vector<8xf32>
    %33 = vector.shape_cast %32 : vector<8xf32> to vector<8x1xf32>
    %34 = vector.broadcast %33 : vector<8x1xf32> to vector<8x8xf32>
    %35 = arith.subf %31, %34 : vector<8x8xf32>
    %36 = math.exp %35 : vector<8x8xf32>
    %cst_29 = arith.constant dense<0.000000e+00> : vector<8xf32>
    %37 = vector.multi_reduction <add>, %36, %cst_29 [1] : vector<8x8xf32> to vector<8xf32>
    %38 = vector.shape_cast %37 : vector<8xf32> to vector<8x1xf32>
    %39 = tpu.reciprocal %38 {approx = true} : vector<8x1xf32> -> vector<8x1xf32>
    %40 = vector.broadcast %39 : vector<8x1xf32> to vector<8x8xf32>
    %41 = arith.mulf %36, %40 : vector<8x8xf32>
    %42 = arith.truncf %41 : vector<8x8xf32> to vector<8x8xbf16>
    %cst_30 = arith.constant dense<0.000000e+00> : vector<8x8xf32>
    %43 = tpu.matmul %42, %30, %cst_30 {dimension_numbers = #tpu.dot_dimension_numbers<[1], [0], [0], [1], [0, 0, 1, 1], [], []>} : vector<8x8xbf16>, vector<8x8xbf16>, vector<8x8xf32> -> vector<8x8xf32>
    %44 = arith.truncf %43 : vector<8x8xf32> to vector<8x8xbf16>
    %45 = vector.extract_strided_slice %25 {offsets = [0, 8], sizes = [8, 8], strides = [1, 1]} : vector<8x32xbf16> to vector<8x8xbf16>
    %46 = vector.extract_strided_slice %26 {offsets = [0, 8], sizes = [8, 8], strides = [1, 1]} : vector<8x32xbf16> to vector<8x8xbf16>
    %47 = vector.extract_strided_slice %27 {offsets = [0, 8], sizes = [8, 8], strides = [1, 1]} : vector<8x32xbf16> to vector<8x8xbf16>
    %cst_31 = arith.constant dense<0.000000e+00> : vector<8x8xf32>
    %48 = tpu.matmul %45, %46, %cst_31 {dimension_numbers = #tpu.dot_dimension_numbers<[1], [1], [0], [0], [0, 0, 1, 0], [], []>} : vector<8x8xbf16>, vector<8x8xbf16>, vector<8x8xf32> -> vector<8x8xf32>
    %cst_32 = arith.constant dense<0xFF800000> : vector<8xf32>
    %49 = vector.multi_reduction <maximumf>, %48, %cst_32 [1] : vector<8x8xf32> to vector<8xf32>
    %50 = vector.shape_cast %49 : vector<8xf32> to vector<8x1xf32>
    %51 = vector.broadcast %50 : vector<8x1xf32> to vector<8x8xf32>
    %52 = arith.subf %48, %51 : vector<8x8xf32>
    %53 = math.exp %52 : vector<8x8xf32>
    %cst_33 = arith.constant dense<0.000000e+00> : vector<8xf32>
    %54 = vector.multi_reduction <add>, %53, %cst_33 [1] : vector<8x8xf32> to vector<8xf32>
    %55 = vector.shape_cast %54 : vector<8xf32> to vector<8x1xf32>
    %56 = tpu.reciprocal %55 {approx = true} : vector<8x1xf32> -> vector<8x1xf32>
    %57 = vector.broadcast %56 : vector<8x1xf32> to vector<8x8xf32>
    %58 = arith.mulf %53, %57 : vector<8x8xf32>
    %59 = arith.truncf %58 : vector<8x8xf32> to vector<8x8xbf16>
    %cst_34 = arith.constant dense<0.000000e+00> : vector<8x8xf32>
    %60 = tpu.matmul %59, %47, %cst_34 {dimension_numbers = #tpu.dot_dimension_numbers<[1], [0], [0], [1], [0, 0, 1, 1], [], []>} : vector<8x8xbf16>, vector<8x8xbf16>, vector<8x8xf32> -> vector<8x8xf32>
    %61 = arith.truncf %60 : vector<8x8xf32> to vector<8x8xbf16>
    %62 = vector.extract_strided_slice %25 {offsets = [0, 16], sizes = [8, 8], strides = [1, 1]} : vector<8x32xbf16> to vector<8x8xbf16>
    %63 = vector.extract_strided_slice %26 {offsets = [0, 16], sizes = [8, 8], strides = [1, 1]} : vector<8x32xbf16> to vector<8x8xbf16>
    %64 = vector.extract_strided_slice %27 {offsets = [0, 16], sizes = [8, 8], strides = [1, 1]} : vector<8x32xbf16> to vector<8x8xbf16>
    %cst_35 = arith.constant dense<0.000000e+00> : vector<8x8xf32>
    %65 = tpu.matmul %62, %63, %cst_35 {dimension_numbers = #tpu.dot_dimension_numbers<[1], [1], [0], [0], [0, 0, 1, 0], [], []>} : vector<8x8xbf16>, vector<8x8xbf16>, vector<8x8xf32> -> vector<8x8xf32>
    %cst_36 = arith.constant dense<0xFF800000> : vector<8xf32>
    %66 = vector.multi_reduction <maximumf>, %65, %cst_36 [1] : vector<8x8xf32> to vector<8xf32>
    %67 = vector.shape_cast %66 : vector<8xf32> to vector<8x1xf32>
    %68 = vector.broadcast %67 : vector<8x1xf32> to vector<8x8xf32>
    %69 = arith.subf %65, %68 : vector<8x8xf32>
    %70 = math.exp %69 : vector<8x8xf32>
    %cst_37 = arith.constant dense<0.000000e+00> : vector<8xf32>
    %71 = vector.multi_reduction <add>, %70, %cst_37 [1] : vector<8x8xf32> to vector<8xf32>
    %72 = vector.shape_cast %71 : vector<8xf32> to vector<8x1xf32>
    %73 = tpu.reciprocal %72 {approx = true} : vector<8x1xf32> -> vector<8x1xf32>
    %74 = vector.broadcast %73 : vector<8x1xf32> to vector<8x8xf32>
    %75 = arith.mulf %70, %74 : vector<8x8xf32>
    %76 = arith.truncf %75 : vector<8x8xf32> to vector<8x8xbf16>
    %cst_38 = arith.constant dense<0.000000e+00> : vector<8x8xf32>
    %77 = tpu.matmul %76, %64, %cst_38 {dimension_numbers = #tpu.dot_dimension_numbers<[1], [0], [0], [1], [0, 0, 1, 1], [], []>} : vector<8x8xbf16>, vector<8x8xbf16>, vector<8x8xf32> -> vector<8x8xf32>
    %78 = arith.truncf %77 : vector<8x8xf32> to vector<8x8xbf16>
    %79 = vector.extract_strided_slice %25 {offsets = [0, 24], sizes = [8, 8], strides = [1, 1]} : vector<8x32xbf16> to vector<8x8xbf16>
    %80 = vector.extract_strided_slice %26 {offsets = [0, 24], sizes = [8, 8], strides = [1, 1]} : vector<8x32xbf16> to vector<8x8xbf16>
    %81 = vector.extract_strided_slice %27 {offsets = [0, 24], sizes = [8, 8], strides = [1, 1]} : vector<8x32xbf16> to vector<8x8xbf16>
    %cst_39 = arith.constant dense<0.000000e+00> : vector<8x8xf32>
    %82 = tpu.matmul %79, %80, %cst_39 {dimension_numbers = #tpu.dot_dimension_numbers<[1], [1], [0], [0], [0, 0, 1, 0], [], []>} : vector<8x8xbf16>, vector<8x8xbf16>, vector<8x8xf32> -> vector<8x8xf32>
    %cst_40 = arith.constant dense<0xFF800000> : vector<8xf32>
    %83 = vector.multi_reduction <maximumf>, %82, %cst_40 [1] : vector<8x8xf32> to vector<8xf32>
    %84 = vector.shape_cast %83 : vector<8xf32> to vector<8x1xf32>
    %85 = vector.broadcast %84 : vector<8x1xf32> to vector<8x8xf32>
    %86 = arith.subf %82, %85 : vector<8x8xf32>
    %87 = math.exp %86 : vector<8x8xf32>
    %cst_41 = arith.constant dense<0.000000e+00> : vector<8xf32>
    %88 = vector.multi_reduction <add>, %87, %cst_41 [1] : vector<8x8xf32> to vector<8xf32>
    %89 = vector.shape_cast %88 : vector<8xf32> to vector<8x1xf32>
    %90 = tpu.reciprocal %89 {approx = true} : vector<8x1xf32> -> vector<8x1xf32>
    %91 = vector.broadcast %90 : vector<8x1xf32> to vector<8x8xf32>
    %92 = arith.mulf %87, %91 : vector<8x8xf32>
    %93 = arith.truncf %92 : vector<8x8xf32> to vector<8x8xbf16>
    %cst_42 = arith.constant dense<0.000000e+00> : vector<8x8xf32>
    %94 = tpu.matmul %93, %81, %cst_42 {dimension_numbers = #tpu.dot_dimension_numbers<[1], [0], [0], [1], [0, 0, 1, 1], [], []>} : vector<8x8xbf16>, vector<8x8xbf16>, vector<8x8xf32> -> vector<8x8xf32>
    %95 = arith.truncf %94 : vector<8x8xf32> to vector<8x8xbf16>
    %96 = tpu.concatenate %44, %61, %78, %95 in 1 : vector<8x8xbf16>, vector<8x8xbf16>, vector<8x8xbf16>, vector<8x8xbf16> -> vector<8x32xbf16>
    %cst_43 = arith.constant dense<0.000000e+00> : vector<8x32xf32>
    %97 = tpu.matmul %96, %10, %cst_43 {dimension_numbers = #tpu.dot_dimension_numbers<[1], [0], [0], [1], [0, 0, 1, 1], [], []>} : vector<8x32xbf16>, vector<32x32xbf16>, vector<8x32xf32> -> vector<8x32xf32>
    %98 = vector.broadcast %11 : vector<1x32xf32> to vector<8x32xf32>
    %99 = arith.addf %97, %98 : vector<8x32xf32>
    %100 = arith.addf %1, %99 : vector<8x32xf32>
    %cst_44 = arith.constant dense<0.000000e+00> : vector<8xf32>
    %101 = vector.multi_reduction <add>, %100, %cst_44 [1] : vector<8x32xf32> to vector<8xf32>
    %102 = vector.shape_cast %101 : vector<8xf32> to vector<8x1xf32>
    %cst_45 = arith.constant 3.200000e+01 : f32
    %103 = vector.broadcast %cst_45 : f32 to vector<8x1xf32>
    %104 = arith.divf %102, %103 : vector<8x1xf32>
    %105 = vector.broadcast %104 : vector<8x1xf32> to vector<8x32xf32>
    %106 = arith.subf %100, %105 : vector<8x32xf32>
    %107 = arith.mulf %106, %106 : vector<8x32xf32>
    %cst_46 = arith.constant dense<0.000000e+00> : vector<8xf32>
    %108 = vector.multi_reduction <add>, %107, %cst_46 [1] : vector<8x32xf32> to vector<8xf32>
    %109 = vector.shape_cast %108 : vector<8xf32> to vector<8x1xf32>
    %cst_47 = arith.constant 3.200000e+01 : f32
    %110 = vector.broadcast %cst_47 : f32 to vector<8x1xf32>
    %111 = arith.divf %109, %110 : vector<8x1xf32>
    %112 = vector.broadcast %104 : vector<8x1xf32> to vector<8x32xf32>
    %113 = arith.subf %100, %112 : vector<8x32xf32>
    %cst_48 = arith.constant 9.99999974E-6 : f32
    %114 = vector.broadcast %cst_48 : f32 to vector<8x1xf32>
    %115 = arith.addf %111, %114 : vector<8x1xf32>
    %116 = math.rsqrt %115 : vector<8x1xf32>
    %117 = vector.broadcast %116 : vector<8x1xf32> to vector<8x32xf32>
    %118 = arith.mulf %113, %117 : vector<8x32xf32>
    %119 = vector.broadcast %12 : vector<1x32xf32> to vector<8x32xf32>
    %120 = arith.mulf %118, %119 : vector<8x32xf32>
    %121 = vector.broadcast %13 : vector<1x32xf32> to vector<8x32xf32>
    %122 = arith.addf %120, %121 : vector<8x32xf32>
    %c0_49 = arith.constant 0 : index
    %c0_50 = arith.constant 0 : index
    %c0_51 = arith.constant 0 : index
    %123 = vector.load %arg14[%c0_49, %c0_50, %c0_51] : memref<1x8x32xf32, #tpu.memory_space<vmem>>, vector<1x8x32xf32>
    %124 = vector.shape_cast %123 : vector<1x8x32xf32> to vector<8x32xf32>
    %125 = vector.shape_cast %122 : vector<8x32xf32> to vector<1x8x32xf32>
    tpu.vector_store %arg14[%c0_49, %c0_50, %c0_51], %125 {strides = array<i32>} : memref<1x8x32xf32, #tpu.memory_space<vmem>>, vector<1x8x32xf32>,
    return
  }
  func.func @transform_0(%arg0: i32, %arg1: i32) -> (i32, i32, i32) {
    %c0_i32 = arith.constant 0 : i32
    %c0_i32_0 = arith.constant 0 : i32
    return %arg0, %arg1, %c0_i32 : i32, i32, i32
  }
  func.func @transform_1(%arg0: i32, %arg1: i32) -> (i32, i32, i32) {
    %c0_i32 = arith.constant 0 : i32
    %c0_i32_0 = arith.constant 0 : i32
    %c0_i32_1 = arith.constant 0 : i32
    return %arg0, %c0_i32, %c0_i32_0 : i32, i32, i32
  }
  func.func @transform_2(%arg0: i32, %arg1: i32) -> (i32, i32) {
    %c0_i32 = arith.constant 0 : i32
    %c0_i32_0 = arith.constant 0 : i32
    %c0_i32_1 = arith.constant 0 : i32
    return %c0_i32, %c0_i32_0 : i32, i32
  }
  func.func @transform_3(%arg0: i32, %arg1: i32) -> (i32, i32) {
    %c0_i32 = arith.constant 0 : i32
    %c0_i32_0 = arith.constant 0 : i32
    %c0_i32_1 = arith.constant 0 : i32
    return %c0_i32, %c0_i32_0 : i32, i32
  }
  func.func @transform_4(%arg0: i32, %arg1: i32) -> (i32, i32) {
    %c0_i32 = arith.constant 0 : i32
    %c0_i32_0 = arith.constant 0 : i32
    %c0_i32_1 = arith.constant 0 : i32
    return %c0_i32, %c0_i32_0 : i32, i32
  }
  func.func @transform_5(%arg0: i32, %arg1: i32) -> (i32, i32) {
    %c0_i32 = arith.constant 0 : i32
    %c0_i32_0 = arith.constant 0 : i32
    %c0_i32_1 = arith.constant 0 : i32
    return %c0_i32, %c0_i32_0 : i32, i32
  }
  func.func @transform_6(%arg0: i32, %arg1: i32) -> (i32, i32) {
    %c0_i32 = arith.constant 0 : i32
    %c0_i32_0 = arith.constant 0 : i32
    %c0_i32_1 = arith.constant 0 : i32
    return %c0_i32, %c0_i32_0 : i32, i32
  }
  func.func @transform_7(%arg0: i32, %arg1: i32) -> (i32, i32) {
    %c0_i32 = arith.constant 0 : i32
    %c0_i32_0 = arith.constant 0 : i32
    %c0_i32_1 = arith.constant 0 : i32
    return %c0_i32, %c0_i32_0 : i32, i32
  }
  func.func @transform_8(%arg0: i32, %arg1: i32) -> (i32, i32) {
    %c0_i32 = arith.constant 0 : i32
    %c0_i32_0 = arith.constant 0 : i32
    %c0_i32_1 = arith.constant 0 : i32
    return %c0_i32, %c0_i32_0 : i32, i32
  }
  func.func @transform_9(%arg0: i32, %arg1: i32) -> (i32, i32) {
    %c0_i32 = arith.constant 0 : i32
    %c0_i32_0 = arith.constant 0 : i32
    %c0_i32_1 = arith.constant 0 : i32
    return %c0_i32, %c0_i32_0 : i32, i32
  }
  func.func @transform_10(%arg0: i32, %arg1: i32) -> (i32, i32) {
    %c0_i32 = arith.constant 0 : i32
    %c0_i32_0 = arith.constant 0 : i32
    %c0_i32_1 = arith.constant 0 : i32
    return %c0_i32, %c0_i32_0 : i32, i32
  }
  func.func @transform_11(%arg0: i32, %arg1: i32) -> (i32, i32) {
    %c0_i32 = arith.constant 0 : i32
    %c0_i32_0 = arith.constant 0 : i32
    %c0_i32_1 = arith.constant 0 : i32
    return %c0_i32, %c0_i32_0 : i32, i32
  }
  func.func @transform_12(%arg0: i32, %arg1: i32) -> (i32, i32, i32) {
    %c0_i32 = arith.constant 0 : i32
    %c0_i32_0 = arith.constant 0 : i32
    return %arg0, %arg1, %c0_i32 : i32, i32, i32
  }
}

module attributes {stable_mosaic.version = 11 : i64} {
  func.func @ffn_res_ln_kernel(%arg0: i32, %arg1: memref<16x32xf32, #tpu.memory_space<vmem>>, %arg2: memref<32x64xbf16, #tpu.memory_space<vmem>>, %arg3: memref<1x64xf32, #tpu.memory_space<vmem>>, %arg4: memref<64x32xbf16, #tpu.memory_space<vmem>>, %arg5: memref<1x32xf32, #tpu.memory_space<vmem>>, %arg6: memref<1x32xf32, #tpu.memory_space<vmem>>, %arg7: memref<1x32xf32, #tpu.memory_space<vmem>>, %arg8: memref<16x32xf32, #tpu.memory_space<vmem>>) attributes {dimension_semantics = [#tpu.dimension_semantics<parallel>], iteration_bounds = array<i64: 1>, scalar_prefetch = 0 : i64, scratch_operands = 0 : i64, tpu.core_type = #tpu.core_type<tc>, window_params = [{transform_indices = @transform_0, window_bounds = array<i64: 16, 32>}, {pipeline_mode = #tpu.pipeline_mode<synchronous>, transform_indices = @transform_1, window_bounds = array<i64: 32, 64>}, {pipeline_mode = #tpu.pipeline_mode<synchronous>, transform_indices = @transform_2, window_bounds = array<i64: 1, 64>}, {pipeline_mode = #tpu.pipeline_mode<synchronous>, transform_indices = @transform_3, window_bounds = array<i64: 64, 32>}, {pipeline_mode = #tpu.pipeline_mode<synchronous>, transform_indices = @transform_4, window_bounds = array<i64: 1, 32>}, {pipeline_mode = #tpu.pipeline_mode<synchronous>, transform_indices = @transform_5, window_bounds = array<i64: 1, 32>}, {pipeline_mode = #tpu.pipeline_mode<synchronous>, transform_indices = @transform_6, window_bounds = array<i64: 1, 32>}, {transform_indices = @transform_7, window_bounds = array<i64: 16, 32>}]} {
    %c0 = arith.constant 0 : index
    %c0_0 = arith.constant 0 : index
    %0 = vector.load %arg1[%c0, %c0_0] : memref<16x32xf32, #tpu.memory_space<vmem>>, vector<16x32xf32>
    %1 = arith.truncf %0 : vector<16x32xf32> to vector<16x32xbf16>
    %c0_1 = arith.constant 0 : index
    %c0_2 = arith.constant 0 : index
    %2 = vector.load %arg2[%c0_1, %c0_2] : memref<32x64xbf16, #tpu.memory_space<vmem>>, vector<32x64xbf16>
    %cst = arith.constant dense<0.000000e+00> : vector<16x64xf32>
    %3 = tpu.matmul %1, %2, %cst {dimension_numbers = #tpu.dot_dimension_numbers<[1], [0], [0], [1], [0, 0, 1, 1], [], []>} : vector<16x32xbf16>, vector<32x64xbf16>, vector<16x64xf32> -> vector<16x64xf32>
    %c0_3 = arith.constant 0 : index
    %c0_4 = arith.constant 0 : index
    %4 = vector.load %arg3[%c0_3, %c0_4] : memref<1x64xf32, #tpu.memory_space<vmem>>, vector<1x64xf32>
    %5 = vector.broadcast %4 : vector<1x64xf32> to vector<16x64xf32>
    %6 = arith.addf %3, %5 : vector<16x64xf32>
    %cst_5 = arith.constant 0.000000e+00 : f32
    %7 = vector.broadcast %cst_5 : f32 to vector<16x64xf32>
    %8 = arith.maximumf %6, %7 : vector<16x64xf32>
    %9 = arith.truncf %8 : vector<16x64xf32> to vector<16x64xbf16>
    %c0_6 = arith.constant 0 : index
    %c0_7 = arith.constant 0 : index
    %10 = vector.load %arg4[%c0_6, %c0_7] : memref<64x32xbf16, #tpu.memory_space<vmem>>, vector<64x32xbf16>
    %cst_8 = arith.constant dense<0.000000e+00> : vector<16x32xf32>
    %11 = tpu.matmul %9, %10, %cst_8 {dimension_numbers = #tpu.dot_dimension_numbers<[1], [0], [0], [1], [0, 0, 1, 1], [], []>} : vector<16x64xbf16>, vector<64x32xbf16>, vector<16x32xf32> -> vector<16x32xf32>
    %c0_9 = arith.constant 0 : index
    %c0_10 = arith.constant 0 : index
    %12 = vector.load %arg5[%c0_9, %c0_10] : memref<1x32xf32, #tpu.memory_space<vmem>>, vector<1x32xf32>
    %13 = vector.broadcast %12 : vector<1x32xf32> to vector<16x32xf32>
    %14 = arith.addf %11, %13 : vector<16x32xf32>
    %15 = arith.addf %0, %14 : vector<16x32xf32>
    %cst_11 = arith.constant dense<0.000000e+00> : vector<16xf32>
    %16 = vector.multi_reduction <add>, %15, %cst_11 [1] : vector<16x32xf32> to vector<16xf32>
    %17 = vector.shape_cast %16 : vector<16xf32> to vector<16x1xf32>
    %cst_12 = arith.constant 3.200000e+01 : f32
    %18 = vector.broadcast %cst_12 : f32 to vector<16x1xf32>
    %19 = arith.divf %17, %18 : vector<16x1xf32>
    %20 = vector.broadcast %19 : vector<16x1xf32> to vector<16x32xf32>
    %21 = arith.subf %15, %20 : vector<16x32xf32>
    %22 = arith.mulf %21, %21 : vector<16x32xf32>
    %cst_13 = arith.constant dense<0.000000e+00> : vector<16xf32>
    %23 = vector.multi_reduction <add>, %22, %cst_13 [1] : vector<16x32xf32> to vector<16xf32>
    %24 = vector.shape_cast %23 : vector<16xf32> to vector<16x1xf32>
    %cst_14 = arith.constant 3.200000e+01 : f32
    %25 = vector.broadcast %cst_14 : f32 to vector<16x1xf32>
    %26 = arith.divf %24, %25 : vector<16x1xf32>
    %27 = vector.broadcast %19 : vector<16x1xf32> to vector<16x32xf32>
    %28 = arith.subf %15, %27 : vector<16x32xf32>
    %cst_15 = arith.constant 9.99999974E-6 : f32
    %29 = vector.broadcast %cst_15 : f32 to vector<16x1xf32>
    %30 = arith.addf %26, %29 : vector<16x1xf32>
    %31 = math.rsqrt %30 : vector<16x1xf32>
    %32 = vector.broadcast %31 : vector<16x1xf32> to vector<16x32xf32>
    %33 = arith.mulf %28, %32 : vector<16x32xf32>
    %c0_16 = arith.constant 0 : index
    %c0_17 = arith.constant 0 : index
    %34 = vector.load %arg6[%c0_16, %c0_17] : memref<1x32xf32, #tpu.memory_space<vmem>>, vector<1x32xf32>
    %35 = vector.broadcast %34 : vector<1x32xf32> to vector<16x32xf32>
    %36 = arith.mulf %33, %35 : vector<16x32xf32>
    %c0_18 = arith.constant 0 : index
    %c0_19 = arith.constant 0 : index
    %37 = vector.load %arg7[%c0_18, %c0_19] : memref<1x32xf32, #tpu.memory_space<vmem>>, vector<1x32xf32>
    %38 = vector.broadcast %37 : vector<1x32xf32> to vector<16x32xf32>
    %39 = arith.addf %36, %38 : vector<16x32xf32>
    %c0_20 = arith.constant 0 : index
    %c0_21 = arith.constant 0 : index
    %40 = vector.load %arg8[%c0_20, %c0_21] : memref<16x32xf32, #tpu.memory_space<vmem>>, vector<16x32xf32>
    tpu.vector_store %arg8[%c0_20, %c0_21], %39 {strides = array<i32>} : memref<16x32xf32, #tpu.memory_space<vmem>>, vector<16x32xf32>,
    return
  }
  func.func @transform_0(%arg0: i32) -> (i32, i32) {
    %c0_i32 = arith.constant 0 : i32
    %c0_i32_0 = arith.constant 0 : i32
    return %arg0, %c0_i32 : i32, i32
  }
  func.func @transform_1(%arg0: i32) -> (i32, i32) {
    %c0_i32 = arith.constant 0 : i32
    %c0_i32_0 = arith.constant 0 : i32
    %c0_i32_1 = arith.constant 0 : i32
    return %c0_i32, %c0_i32_0 : i32, i32
  }
  func.func @transform_2(%arg0: i32) -> (i32, i32) {
    %c0_i32 = arith.constant 0 : i32
    %c0_i32_0 = arith.constant 0 : i32
    %c0_i32_1 = arith.constant 0 : i32
    return %c0_i32, %c0_i32_0 : i32, i32
  }
  func.func @transform_3(%arg0: i32) -> (i32, i32) {
    %c0_i32 = arith.constant 0 : i32
    %c0_i32_0 = arith.constant 0 : i32
    %c0_i32_1 = arith.constant 0 : i32
    return %c0_i32, %c0_i32_0 : i32, i32
  }
  func.func @transform_4(%arg0: i32) -> (i32, i32) {
    %c0_i32 = arith.constant 0 : i32
    %c0_i32_0 = arith.constant 0 : i32
    %c0_i32_1 = arith.constant 0 : i32
    return %c0_i32, %c0_i32_0 : i32, i32
  }
  func.func @transform_5(%arg0: i32) -> (i32, i32) {
    %c0_i32 = arith.constant 0 : i32
    %c0_i32_0 = arith.constant 0 : i32
    %c0_i32_1 = arith.constant 0 : i32
    return %c0_i32, %c0_i32_0 : i32, i32
  }
  func.func @transform_6(%arg0: i32) -> (i32, i32) {
    %c0_i32 = arith.constant 0 : i32
    %c0_i32_0 = arith.constant 0 : i32
    %c0_i32_1 = arith.constant 0 : i32
    return %c0_i32, %c0_i32_0 : i32, i32
  }
  func.func @transform_7(%arg0: i32) -> (i32, i32) {
    %c0_i32 = arith.constant 0 : i32
    %c0_i32_0 = arith.constant 0 : i32
    return %arg0, %c0_i32 : i32, i32
  }
}

module attributes {stable_mosaic.version = 11 : i64} {
  func.func @self_attn_res_ln_kernel(%arg0: i32, %arg1: i32, %arg2: memref<1x8x32xf32, #tpu.memory_space<vmem>>, %arg3: memref<32x32xbf16, #tpu.memory_space<vmem>>, %arg4: memref<1x32xf32, #tpu.memory_space<vmem>>, %arg5: memref<32x32xbf16, #tpu.memory_space<vmem>>, %arg6: memref<1x32xf32, #tpu.memory_space<vmem>>, %arg7: memref<32x32xbf16, #tpu.memory_space<vmem>>, %arg8: memref<1x32xf32, #tpu.memory_space<vmem>>, %arg9: memref<32x32xbf16, #tpu.memory_space<vmem>>, %arg10: memref<1x32xf32, #tpu.memory_space<vmem>>, %arg11: memref<1x32xf32, #tpu.memory_space<vmem>>, %arg12: memref<1x32xf32, #tpu.memory_space<vmem>>, %arg13: memref<1x8x32xf32, #tpu.memory_space<vmem>>) attributes {dimension_semantics = [#tpu.dimension_semantics<parallel>, #tpu.dimension_semantics<parallel>], iteration_bounds = array<i64: 2, 1>, scalar_prefetch = 0 : i64, scratch_operands = 0 : i64, tpu.core_type = #tpu.core_type<tc>, window_params = [{transform_indices = @transform_0, window_bounds = array<i64: 1, 8, 32>}, {pipeline_mode = #tpu.pipeline_mode<synchronous>, transform_indices = @transform_1, window_bounds = array<i64: 32, 32>}, {pipeline_mode = #tpu.pipeline_mode<synchronous>, transform_indices = @transform_2, window_bounds = array<i64: 1, 32>}, {pipeline_mode = #tpu.pipeline_mode<synchronous>, transform_indices = @transform_3, window_bounds = array<i64: 32, 32>}, {pipeline_mode = #tpu.pipeline_mode<synchronous>, transform_indices = @transform_4, window_bounds = array<i64: 1, 32>}, {pipeline_mode = #tpu.pipeline_mode<synchronous>, transform_indices = @transform_5, window_bounds = array<i64: 32, 32>}, {pipeline_mode = #tpu.pipeline_mode<synchronous>, transform_indices = @transform_6, window_bounds = array<i64: 1, 32>}, {pipeline_mode = #tpu.pipeline_mode<synchronous>, transform_indices = @transform_7, window_bounds = array<i64: 32, 32>}, {pipeline_mode = #tpu.pipeline_mode<synchronous>, transform_indices = @transform_8, window_bounds = array<i64: 1, 32>}, {pipeline_mode = #tpu.pipeline_mode<synchronous>, transform_indices = @transform_9, window_bounds = array<i64: 1, 32>}, {pipeline_mode = #tpu.pipeline_mode<synchronous>, transform_indices = @transform_10, window_bounds = array<i64: 1, 32>}, {transform_indices = @transform_11, window_bounds = array<i64: 1, 8, 32>}]} {
    %c8_i32 = arith.constant 8 : i32
    %0 = arith.muli %arg1, %c8_i32 : i32
    %1 = tpu.assume_multiple %0, 8 : i32
    %c0 = arith.constant 0 : index
    %2 = arith.index_cast %1 : i32 to index
    %c0_0 = arith.constant 0 : index
    %3 = vector.load %arg2[%c0, %2, %c0_0] : memref<1x8x32xf32, #tpu.memory_space<vmem>>, vector<1x8x32xf32>
    %4 = vector.shape_cast %3 : vector<1x8x32xf32> to vector<8x32xf32>
    %c0_1 = arith.constant 0 : index
    %c0_2 = arith.constant 0 : index
    %c0_3 = arith.constant 0 : index
    %5 = vector.load %arg2[%c0_1, %c0_2, %c0_3] : memref<1x8x32xf32, #tpu.memory_space<vmem>>, vector<1x8x32xf32>
    %6 = vector.shape_cast %5 : vector<1x8x32xf32> to vector<8x32xf32>
    %c0_4 = arith.constant 0 : index
    %c0_5 = arith.constant 0 : index
    %7 = vector.load %arg3[%c0_4, %c0_5] : memref<32x32xbf16, #tpu.memory_space<vmem>>, vector<32x32xbf16>
    %c0_6 = arith.constant 0 : index
    %c0_7 = arith.constant 0 : index
    %8 = vector.load %arg4[%c0_6, %c0_7] : memref<1x32xf32, #tpu.memory_space<vmem>>, vector<1x32xf32>
    %c0_8 = arith.constant 0 : index
    %c0_9 = arith.constant 0 : index
    %9 = vector.load %arg5[%c0_8, %c0_9] : memref<32x32xbf16, #tpu.memory_space<vmem>>, vector<32x32xbf16>
    %c0_10 = arith.constant 0 : index
    %c0_11 = arith.constant 0 : index
    %10 = vector.load %arg6[%c0_10, %c0_11] : memref<1x32xf32, #tpu.memory_space<vmem>>, vector<1x32xf32>
    %c0_12 = arith.constant 0 : index
    %c0_13 = arith.constant 0 : index
    %11 = vector.load %arg7[%c0_12, %c0_13] : memref<32x32xbf16, #tpu.memory_space<vmem>>, vector<32x32xbf16>
    %c0_14 = arith.constant 0 : index
    %c0_15 = arith.constant 0 : index
    %12 = vector.load %arg8[%c0_14, %c0_15] : memref<1x32xf32, #tpu.memory_space<vmem>>, vector<1x32xf32>
    %c0_16 = arith.constant 0 : index
    %c0_17 = arith.constant 0 : index
    %13 = vector.load %arg9[%c0_16, %c0_17] : memref<32x32xbf16, #tpu.memory_space<vmem>>, vector<32x32xbf16>
    %c0_18 = arith.constant 0 : index
    %c0_19 = arith.constant 0 : index
    %14 = vector.load %arg10[%c0_18, %c0_19] : memref<1x32xf32, #tpu.memory_space<vmem>>, vector<1x32xf32>
    %c0_20 = arith.constant 0 : index
    %c0_21 = arith.constant 0 : index
    %15 = vector.load %arg11[%c0_20, %c0_21] : memref<1x32xf32, #tpu.memory_space<vmem>>, vector<1x32xf32>
    %c0_22 = arith.constant 0 : index
    %c0_23 = arith.constant 0 : index
    %16 = vector.load %arg12[%c0_22, %c0_23] : memref<1x32xf32, #tpu.memory_space<vmem>>, vector<1x32xf32>
    %17 = arith.truncf %4 : vector<8x32xf32> to vector<8x32xbf16>
    %18 = arith.truncf %6 : vector<8x32xf32> to vector<8x32xbf16>
    %cst = arith.constant dense<0.000000e+00> : vector<8x32xf32>
    %19 = tpu.matmul %17, %7, %cst {dimension_numbers = #tpu.dot_dimension_numbers<[1], [0], [0], [1], [0, 0, 1, 1], [], []>} : vector<8x32xbf16>, vector<32x32xbf16>, vector<8x32xf32> -> vector<8x32xf32>
    %20 = vector.broadcast %8 : vector<1x32xf32> to vector<8x32xf32>
    %21 = arith.addf %19, %20 : vector<8x32xf32>
    %cst_24 = arith.constant dense<0.000000e+00> : vector<8x32xf32>
    %22 = tpu.matmul %18, %9, %cst_24 {dimension_numbers = #tpu.dot_dimension_numbers<[1], [0], [0], [1], [0, 0, 1, 1], [], []>} : vector<8x32xbf16>, vector<32x32xbf16>, vector<8x32xf32> -> vector<8x32xf32>
    %23 = vector.broadcast %10 : vector<1x32xf32> to vector<8x32xf32>
    %24 = arith.addf %22, %23 : vector<8x32xf32>
    %cst_25 = arith.constant dense<0.000000e+00> : vector<8x32xf32>
    %25 = tpu.matmul %18, %11, %cst_25 {dimension_numbers = #tpu.dot_dimension_numbers<[1], [0], [0], [1], [0, 0, 1, 1], [], []>} : vector<8x32xbf16>, vector<32x32xbf16>, vector<8x32xf32> -> vector<8x32xf32>
    %26 = vector.broadcast %12 : vector<1x32xf32> to vector<8x32xf32>
    %27 = arith.addf %25, %26 : vector<8x32xf32>
    %28 = arith.truncf %21 : vector<8x32xf32> to vector<8x32xbf16>
    %29 = arith.truncf %24 : vector<8x32xf32> to vector<8x32xbf16>
    %30 = arith.truncf %27 : vector<8x32xf32> to vector<8x32xbf16>
    %31 = vector.extract_strided_slice %28 {offsets = [0, 0], sizes = [8, 8], strides = [1, 1]} : vector<8x32xbf16> to vector<8x8xbf16>
    %32 = vector.extract_strided_slice %29 {offsets = [0, 0], sizes = [8, 8], strides = [1, 1]} : vector<8x32xbf16> to vector<8x8xbf16>
    %33 = vector.extract_strided_slice %30 {offsets = [0, 0], sizes = [8, 8], strides = [1, 1]} : vector<8x32xbf16> to vector<8x8xbf16>
    %cst_26 = arith.constant dense<0.000000e+00> : vector<8x8xf32>
    %34 = tpu.matmul %31, %32, %cst_26 {dimension_numbers = #tpu.dot_dimension_numbers<[1], [1], [0], [0], [0, 0, 1, 0], [], []>} : vector<8x8xbf16>, vector<8x8xbf16>, vector<8x8xf32> -> vector<8x8xf32>
    %cst_27 = arith.constant dense<0xFF800000> : vector<8xf32>
    %35 = vector.multi_reduction <maximumf>, %34, %cst_27 [1] : vector<8x8xf32> to vector<8xf32>
    %36 = vector.shape_cast %35 : vector<8xf32> to vector<8x1xf32>
    %37 = vector.broadcast %36 : vector<8x1xf32> to vector<8x8xf32>
    %38 = arith.subf %34, %37 : vector<8x8xf32>
    %39 = math.exp %38 : vector<8x8xf32>
    %cst_28 = arith.constant dense<0.000000e+00> : vector<8xf32>
    %40 = vector.multi_reduction <add>, %39, %cst_28 [1] : vector<8x8xf32> to vector<8xf32>
    %41 = vector.shape_cast %40 : vector<8xf32> to vector<8x1xf32>
    %42 = tpu.reciprocal %41 {approx = true} : vector<8x1xf32> -> vector<8x1xf32>
    %43 = vector.broadcast %42 : vector<8x1xf32> to vector<8x8xf32>
    %44 = arith.mulf %39, %43 : vector<8x8xf32>
    %45 = arith.truncf %44 : vector<8x8xf32> to vector<8x8xbf16>
    %cst_29 = arith.constant dense<0.000000e+00> : vector<8x8xf32>
    %46 = tpu.matmul %45, %33, %cst_29 {dimension_numbers = #tpu.dot_dimension_numbers<[1], [0], [0], [1], [0, 0, 1, 1], [], []>} : vector<8x8xbf16>, vector<8x8xbf16>, vector<8x8xf32> -> vector<8x8xf32>
    %47 = arith.truncf %46 : vector<8x8xf32> to vector<8x8xbf16>
    %48 = vector.extract_strided_slice %28 {offsets = [0, 8], sizes = [8, 8], strides = [1, 1]} : vector<8x32xbf16> to vector<8x8xbf16>
    %49 = vector.extract_strided_slice %29 {offsets = [0, 8], sizes = [8, 8], strides = [1, 1]} : vector<8x32xbf16> to vector<8x8xbf16>
    %50 = vector.extract_strided_slice %30 {offsets = [0, 8], sizes = [8, 8], strides = [1, 1]} : vector<8x32xbf16> to vector<8x8xbf16>
    %cst_30 = arith.constant dense<0.000000e+00> : vector<8x8xf32>
    %51 = tpu.matmul %48, %49, %cst_30 {dimension_numbers = #tpu.dot_dimension_numbers<[1], [1], [0], [0], [0, 0, 1, 0], [], []>} : vector<8x8xbf16>, vector<8x8xbf16>, vector<8x8xf32> -> vector<8x8xf32>
    %cst_31 = arith.constant dense<0xFF800000> : vector<8xf32>
    %52 = vector.multi_reduction <maximumf>, %51, %cst_31 [1] : vector<8x8xf32> to vector<8xf32>
    %53 = vector.shape_cast %52 : vector<8xf32> to vector<8x1xf32>
    %54 = vector.broadcast %53 : vector<8x1xf32> to vector<8x8xf32>
    %55 = arith.subf %51, %54 : vector<8x8xf32>
    %56 = math.exp %55 : vector<8x8xf32>
    %cst_32 = arith.constant dense<0.000000e+00> : vector<8xf32>
    %57 = vector.multi_reduction <add>, %56, %cst_32 [1] : vector<8x8xf32> to vector<8xf32>
    %58 = vector.shape_cast %57 : vector<8xf32> to vector<8x1xf32>
    %59 = tpu.reciprocal %58 {approx = true} : vector<8x1xf32> -> vector<8x1xf32>
    %60 = vector.broadcast %59 : vector<8x1xf32> to vector<8x8xf32>
    %61 = arith.mulf %56, %60 : vector<8x8xf32>
    %62 = arith.truncf %61 : vector<8x8xf32> to vector<8x8xbf16>
    %cst_33 = arith.constant dense<0.000000e+00> : vector<8x8xf32>
    %63 = tpu.matmul %62, %50, %cst_33 {dimension_numbers = #tpu.dot_dimension_numbers<[1], [0], [0], [1], [0, 0, 1, 1], [], []>} : vector<8x8xbf16>, vector<8x8xbf16>, vector<8x8xf32> -> vector<8x8xf32>
    %64 = arith.truncf %63 : vector<8x8xf32> to vector<8x8xbf16>
    %65 = vector.extract_strided_slice %28 {offsets = [0, 16], sizes = [8, 8], strides = [1, 1]} : vector<8x32xbf16> to vector<8x8xbf16>
    %66 = vector.extract_strided_slice %29 {offsets = [0, 16], sizes = [8, 8], strides = [1, 1]} : vector<8x32xbf16> to vector<8x8xbf16>
    %67 = vector.extract_strided_slice %30 {offsets = [0, 16], sizes = [8, 8], strides = [1, 1]} : vector<8x32xbf16> to vector<8x8xbf16>
    %cst_34 = arith.constant dense<0.000000e+00> : vector<8x8xf32>
    %68 = tpu.matmul %65, %66, %cst_34 {dimension_numbers = #tpu.dot_dimension_numbers<[1], [1], [0], [0], [0, 0, 1, 0], [], []>} : vector<8x8xbf16>, vector<8x8xbf16>, vector<8x8xf32> -> vector<8x8xf32>
    %cst_35 = arith.constant dense<0xFF800000> : vector<8xf32>
    %69 = vector.multi_reduction <maximumf>, %68, %cst_35 [1] : vector<8x8xf32> to vector<8xf32>
    %70 = vector.shape_cast %69 : vector<8xf32> to vector<8x1xf32>
    %71 = vector.broadcast %70 : vector<8x1xf32> to vector<8x8xf32>
    %72 = arith.subf %68, %71 : vector<8x8xf32>
    %73 = math.exp %72 : vector<8x8xf32>
    %cst_36 = arith.constant dense<0.000000e+00> : vector<8xf32>
    %74 = vector.multi_reduction <add>, %73, %cst_36 [1] : vector<8x8xf32> to vector<8xf32>
    %75 = vector.shape_cast %74 : vector<8xf32> to vector<8x1xf32>
    %76 = tpu.reciprocal %75 {approx = true} : vector<8x1xf32> -> vector<8x1xf32>
    %77 = vector.broadcast %76 : vector<8x1xf32> to vector<8x8xf32>
    %78 = arith.mulf %73, %77 : vector<8x8xf32>
    %79 = arith.truncf %78 : vector<8x8xf32> to vector<8x8xbf16>
    %cst_37 = arith.constant dense<0.000000e+00> : vector<8x8xf32>
    %80 = tpu.matmul %79, %67, %cst_37 {dimension_numbers = #tpu.dot_dimension_numbers<[1], [0], [0], [1], [0, 0, 1, 1], [], []>} : vector<8x8xbf16>, vector<8x8xbf16>, vector<8x8xf32> -> vector<8x8xf32>
    %81 = arith.truncf %80 : vector<8x8xf32> to vector<8x8xbf16>
    %82 = vector.extract_strided_slice %28 {offsets = [0, 24], sizes = [8, 8], strides = [1, 1]} : vector<8x32xbf16> to vector<8x8xbf16>
    %83 = vector.extract_strided_slice %29 {offsets = [0, 24], sizes = [8, 8], strides = [1, 1]} : vector<8x32xbf16> to vector<8x8xbf16>
    %84 = vector.extract_strided_slice %30 {offsets = [0, 24], sizes = [8, 8], strides = [1, 1]} : vector<8x32xbf16> to vector<8x8xbf16>
    %cst_38 = arith.constant dense<0.000000e+00> : vector<8x8xf32>
    %85 = tpu.matmul %82, %83, %cst_38 {dimension_numbers = #tpu.dot_dimension_numbers<[1], [1], [0], [0], [0, 0, 1, 0], [], []>} : vector<8x8xbf16>, vector<8x8xbf16>, vector<8x8xf32> -> vector<8x8xf32>
    %cst_39 = arith.constant dense<0xFF800000> : vector<8xf32>
    %86 = vector.multi_reduction <maximumf>, %85, %cst_39 [1] : vector<8x8xf32> to vector<8xf32>
    %87 = vector.shape_cast %86 : vector<8xf32> to vector<8x1xf32>
    %88 = vector.broadcast %87 : vector<8x1xf32> to vector<8x8xf32>
    %89 = arith.subf %85, %88 : vector<8x8xf32>
    %90 = math.exp %89 : vector<8x8xf32>
    %cst_40 = arith.constant dense<0.000000e+00> : vector<8xf32>
    %91 = vector.multi_reduction <add>, %90, %cst_40 [1] : vector<8x8xf32> to vector<8xf32>
    %92 = vector.shape_cast %91 : vector<8xf32> to vector<8x1xf32>
    %93 = tpu.reciprocal %92 {approx = true} : vector<8x1xf32> -> vector<8x1xf32>
    %94 = vector.broadcast %93 : vector<8x1xf32> to vector<8x8xf32>
    %95 = arith.mulf %90, %94 : vector<8x8xf32>
    %96 = arith.truncf %95 : vector<8x8xf32> to vector<8x8xbf16>
    %cst_41 = arith.constant dense<0.000000e+00> : vector<8x8xf32>
    %97 = tpu.matmul %96, %84, %cst_41 {dimension_numbers = #tpu.dot_dimension_numbers<[1], [0], [0], [1], [0, 0, 1, 1], [], []>} : vector<8x8xbf16>, vector<8x8xbf16>, vector<8x8xf32> -> vector<8x8xf32>
    %98 = arith.truncf %97 : vector<8x8xf32> to vector<8x8xbf16>
    %99 = tpu.concatenate %47, %64, %81, %98 in 1 : vector<8x8xbf16>, vector<8x8xbf16>, vector<8x8xbf16>, vector<8x8xbf16> -> vector<8x32xbf16>
    %cst_42 = arith.constant dense<0.000000e+00> : vector<8x32xf32>
    %100 = tpu.matmul %99, %13, %cst_42 {dimension_numbers = #tpu.dot_dimension_numbers<[1], [0], [0], [1], [0, 0, 1, 1], [], []>} : vector<8x32xbf16>, vector<32x32xbf16>, vector<8x32xf32> -> vector<8x32xf32>
    %101 = vector.broadcast %14 : vector<1x32xf32> to vector<8x32xf32>
    %102 = arith.addf %100, %101 : vector<8x32xf32>
    %103 = arith.addf %4, %102 : vector<8x32xf32>
    %cst_43 = arith.constant dense<0.000000e+00> : vector<8xf32>
    %104 = vector.multi_reduction <add>, %103, %cst_43 [1] : vector<8x32xf32> to vector<8xf32>
    %105 = vector.shape_cast %104 : vector<8xf32> to vector<8x1xf32>
    %cst_44 = arith.constant 3.200000e+01 : f32
    %106 = vector.broadcast %cst_44 : f32 to vector<8x1xf32>
    %107 = arith.divf %105, %106 : vector<8x1xf32>
    %108 = vector.broadcast %107 : vector<8x1xf32> to vector<8x32xf32>
    %109 = arith.subf %103, %108 : vector<8x32xf32>
    %110 = arith.mulf %109, %109 : vector<8x32xf32>
    %cst_45 = arith.constant dense<0.000000e+00> : vector<8xf32>
    %111 = vector.multi_reduction <add>, %110, %cst_45 [1] : vector<8x32xf32> to vector<8xf32>
    %112 = vector.shape_cast %111 : vector<8xf32> to vector<8x1xf32>
    %cst_46 = arith.constant 3.200000e+01 : f32
    %113 = vector.broadcast %cst_46 : f32 to vector<8x1xf32>
    %114 = arith.divf %112, %113 : vector<8x1xf32>
    %115 = vector.broadcast %107 : vector<8x1xf32> to vector<8x32xf32>
    %116 = arith.subf %103, %115 : vector<8x32xf32>
    %cst_47 = arith.constant 9.99999974E-6 : f32
    %117 = vector.broadcast %cst_47 : f32 to vector<8x1xf32>
    %118 = arith.addf %114, %117 : vector<8x1xf32>
    %119 = math.rsqrt %118 : vector<8x1xf32>
    %120 = vector.broadcast %119 : vector<8x1xf32> to vector<8x32xf32>
    %121 = arith.mulf %116, %120 : vector<8x32xf32>
    %122 = vector.broadcast %15 : vector<1x32xf32> to vector<8x32xf32>
    %123 = arith.mulf %121, %122 : vector<8x32xf32>
    %124 = vector.broadcast %16 : vector<1x32xf32> to vector<8x32xf32>
    %125 = arith.addf %123, %124 : vector<8x32xf32>
    %c0_48 = arith.constant 0 : index
    %c0_49 = arith.constant 0 : index
    %c0_50 = arith.constant 0 : index
    %126 = vector.load %arg13[%c0_48, %c0_49, %c0_50] : memref<1x8x32xf32, #tpu.memory_space<vmem>>, vector<1x8x32xf32>
    %127 = vector.shape_cast %126 : vector<1x8x32xf32> to vector<8x32xf32>
    %128 = vector.shape_cast %125 : vector<8x32xf32> to vector<1x8x32xf32>
    tpu.vector_store %arg13[%c0_48, %c0_49, %c0_50], %128 {strides = array<i32>} : memref<1x8x32xf32, #tpu.memory_space<vmem>>, vector<1x8x32xf32>,
    return
  }
  func.func @transform_0(%arg0: i32, %arg1: i32) -> (i32, i32, i32) {
    %c0_i32 = arith.constant 0 : i32
    %c0_i32_0 = arith.constant 0 : i32
    %c0_i32_1 = arith.constant 0 : i32
    return %arg0, %c0_i32, %c0_i32_0 : i32, i32, i32
  }
  func.func @transform_1(%arg0: i32, %arg1: i32) -> (i32, i32) {
    %c0_i32 = arith.constant 0 : i32
    %c0_i32_0 = arith.constant 0 : i32
    %c0_i32_1 = arith.constant 0 : i32
    return %c0_i32, %c0_i32_0 : i32, i32
  }
  func.func @transform_2(%arg0: i32, %arg1: i32) -> (i32, i32) {
    %c0_i32 = arith.constant 0 : i32
    %c0_i32_0 = arith.constant 0 : i32
    %c0_i32_1 = arith.constant 0 : i32
    return %c0_i32, %c0_i32_0 : i32, i32
  }
  func.func @transform_3(%arg0: i32, %arg1: i32) -> (i32, i32) {
    %c0_i32 = arith.constant 0 : i32
    %c0_i32_0 = arith.constant 0 : i32
    %c0_i32_1 = arith.constant 0 : i32
    return %c0_i32, %c0_i32_0 : i32, i32
  }
  func.func @transform_4(%arg0: i32, %arg1: i32) -> (i32, i32) {
    %c0_i32 = arith.constant 0 : i32
    %c0_i32_0 = arith.constant 0 : i32
    %c0_i32_1 = arith.constant 0 : i32
    return %c0_i32, %c0_i32_0 : i32, i32
  }
  func.func @transform_5(%arg0: i32, %arg1: i32) -> (i32, i32) {
    %c0_i32 = arith.constant 0 : i32
    %c0_i32_0 = arith.constant 0 : i32
    %c0_i32_1 = arith.constant 0 : i32
    return %c0_i32, %c0_i32_0 : i32, i32
  }
  func.func @transform_6(%arg0: i32, %arg1: i32) -> (i32, i32) {
    %c0_i32 = arith.constant 0 : i32
    %c0_i32_0 = arith.constant 0 : i32
    %c0_i32_1 = arith.constant 0 : i32
    return %c0_i32, %c0_i32_0 : i32, i32
  }
  func.func @transform_7(%arg0: i32, %arg1: i32) -> (i32, i32) {
    %c0_i32 = arith.constant 0 : i32
    %c0_i32_0 = arith.constant 0 : i32
    %c0_i32_1 = arith.constant 0 : i32
    return %c0_i32, %c0_i32_0 : i32, i32
  }
  func.func @transform_8(%arg0: i32, %arg1: i32) -> (i32, i32) {
    %c0_i32 = arith.constant 0 : i32
    %c0_i32_0 = arith.constant 0 : i32
    %c0_i32_1 = arith.constant 0 : i32
    return %c0_i32, %c0_i32_0 : i32, i32
  }
  func.func @transform_9(%arg0: i32, %arg1: i32) -> (i32, i32) {
    %c0_i32 = arith.constant 0 : i32
    %c0_i32_0 = arith.constant 0 : i32
    %c0_i32_1 = arith.constant 0 : i32
    return %c0_i32, %c0_i32_0 : i32, i32
  }
  func.func @transform_10(%arg0: i32, %arg1: i32) -> (i32, i32) {
    %c0_i32 = arith.constant 0 : i32
    %c0_i32_0 = arith.constant 0 : i32
    %c0_i32_1 = arith.constant 0 : i32
    return %c0_i32, %c0_i32_0 : i32, i32
  }
  func.func @transform_11(%arg0: i32, %arg1: i32) -> (i32, i32, i32) {
    %c0_i32 = arith.constant 0 : i32
    %c0_i32_0 = arith.constant 0 : i32
    return %arg0, %arg1, %c0_i32 : i32, i32, i32
  }
}

module attributes {stable_mosaic.version = 11 : i64} {
  func.func @self_attn_res_ln_kernel(%arg0: i32, %arg1: i32, %arg2: memref<1x8x32xf32, #tpu.memory_space<vmem>>, %arg3: memref<32x32xbf16, #tpu.memory_space<vmem>>, %arg4: memref<1x32xf32, #tpu.memory_space<vmem>>, %arg5: memref<32x32xbf16, #tpu.memory_space<vmem>>, %arg6: memref<1x32xf32, #tpu.memory_space<vmem>>, %arg7: memref<32x32xbf16, #tpu.memory_space<vmem>>, %arg8: memref<1x32xf32, #tpu.memory_space<vmem>>, %arg9: memref<32x32xbf16, #tpu.memory_space<vmem>>, %arg10: memref<1x32xf32, #tpu.memory_space<vmem>>, %arg11: memref<1x32xf32, #tpu.memory_space<vmem>>, %arg12: memref<1x32xf32, #tpu.memory_space<vmem>>, %arg13: memref<1x8x32xf32, #tpu.memory_space<vmem>>) attributes {dimension_semantics = [#tpu.dimension_semantics<parallel>, #tpu.dimension_semantics<parallel>], iteration_bounds = array<i64: 2, 1>, scalar_prefetch = 0 : i64, scratch_operands = 0 : i64, tpu.core_type = #tpu.core_type<tc>, window_params = [{transform_indices = @transform_0, window_bounds = array<i64: 1, 8, 32>}, {pipeline_mode = #tpu.pipeline_mode<synchronous>, transform_indices = @transform_1, window_bounds = array<i64: 32, 32>}, {pipeline_mode = #tpu.pipeline_mode<synchronous>, transform_indices = @transform_2, window_bounds = array<i64: 1, 32>}, {pipeline_mode = #tpu.pipeline_mode<synchronous>, transform_indices = @transform_3, window_bounds = array<i64: 32, 32>}, {pipeline_mode = #tpu.pipeline_mode<synchronous>, transform_indices = @transform_4, window_bounds = array<i64: 1, 32>}, {pipeline_mode = #tpu.pipeline_mode<synchronous>, transform_indices = @transform_5, window_bounds = array<i64: 32, 32>}, {pipeline_mode = #tpu.pipeline_mode<synchronous>, transform_indices = @transform_6, window_bounds = array<i64: 1, 32>}, {pipeline_mode = #tpu.pipeline_mode<synchronous>, transform_indices = @transform_7, window_bounds = array<i64: 32, 32>}, {pipeline_mode = #tpu.pipeline_mode<synchronous>, transform_indices = @transform_8, window_bounds = array<i64: 1, 32>}, {pipeline_mode = #tpu.pipeline_mode<synchronous>, transform_indices = @transform_9, window_bounds = array<i64: 1, 32>}, {pipeline_mode = #tpu.pipeline_mode<synchronous>, transform_indices = @transform_10, window_bounds = array<i64: 1, 32>}, {transform_indices = @transform_11, window_bounds = array<i64: 1, 8, 32>}]} {
    %c8_i32 = arith.constant 8 : i32
    %0 = arith.muli %arg1, %c8_i32 : i32
    %1 = tpu.assume_multiple %0, 8 : i32
    %c0 = arith.constant 0 : index
    %2 = arith.index_cast %1 : i32 to index
    %c0_0 = arith.constant 0 : index
    %3 = vector.load %arg2[%c0, %2, %c0_0] : memref<1x8x32xf32, #tpu.memory_space<vmem>>, vector<1x8x32xf32>
    %4 = vector.shape_cast %3 : vector<1x8x32xf32> to vector<8x32xf32>
    %c0_1 = arith.constant 0 : index
    %c0_2 = arith.constant 0 : index
    %c0_3 = arith.constant 0 : index
    %5 = vector.load %arg2[%c0_1, %c0_2, %c0_3] : memref<1x8x32xf32, #tpu.memory_space<vmem>>, vector<1x8x32xf32>
    %6 = vector.shape_cast %5 : vector<1x8x32xf32> to vector<8x32xf32>
    %c0_4 = arith.constant 0 : index
    %c0_5 = arith.constant 0 : index
    %7 = vector.load %arg3[%c0_4, %c0_5] : memref<32x32xbf16, #tpu.memory_space<vmem>>, vector<32x32xbf16>
    %c0_6 = arith.constant 0 : index
    %c0_7 = arith.constant 0 : index
    %8 = vector.load %arg4[%c0_6, %c0_7] : memref<1x32xf32, #tpu.memory_space<vmem>>, vector<1x32xf32>
    %c0_8 = arith.constant 0 : index
    %c0_9 = arith.constant 0 : index
    %9 = vector.load %arg5[%c0_8, %c0_9] : memref<32x32xbf16, #tpu.memory_space<vmem>>, vector<32x32xbf16>
    %c0_10 = arith.constant 0 : index
    %c0_11 = arith.constant 0 : index
    %10 = vector.load %arg6[%c0_10, %c0_11] : memref<1x32xf32, #tpu.memory_space<vmem>>, vector<1x32xf32>
    %c0_12 = arith.constant 0 : index
    %c0_13 = arith.constant 0 : index
    %11 = vector.load %arg7[%c0_12, %c0_13] : memref<32x32xbf16, #tpu.memory_space<vmem>>, vector<32x32xbf16>
    %c0_14 = arith.constant 0 : index
    %c0_15 = arith.constant 0 : index
    %12 = vector.load %arg8[%c0_14, %c0_15] : memref<1x32xf32, #tpu.memory_space<vmem>>, vector<1x32xf32>
    %c0_16 = arith.constant 0 : index
    %c0_17 = arith.constant 0 : index
    %13 = vector.load %arg9[%c0_16, %c0_17] : memref<32x32xbf16, #tpu.memory_space<vmem>>, vector<32x32xbf16>
    %c0_18 = arith.constant 0 : index
    %c0_19 = arith.constant 0 : index
    %14 = vector.load %arg10[%c0_18, %c0_19] : memref<1x32xf32, #tpu.memory_space<vmem>>, vector<1x32xf32>
    %c0_20 = arith.constant 0 : index
    %c0_21 = arith.constant 0 : index
    %15 = vector.load %arg11[%c0_20, %c0_21] : memref<1x32xf32, #tpu.memory_space<vmem>>, vector<1x32xf32>
    %c0_22 = arith.constant 0 : index
    %c0_23 = arith.constant 0 : index
    %16 = vector.load %arg12[%c0_22, %c0_23] : memref<1x32xf32, #tpu.memory_space<vmem>>, vector<1x32xf32>
    %17 = arith.truncf %4 : vector<8x32xf32> to vector<8x32xbf16>
    %18 = arith.truncf %6 : vector<8x32xf32> to vector<8x32xbf16>
    %cst = arith.constant dense<0.000000e+00> : vector<8x32xf32>
    %19 = tpu.matmul %17, %7, %cst {dimension_numbers = #tpu.dot_dimension_numbers<[1], [0], [0], [1], [0, 0, 1, 1], [], []>} : vector<8x32xbf16>, vector<32x32xbf16>, vector<8x32xf32> -> vector<8x32xf32>
    %20 = vector.broadcast %8 : vector<1x32xf32> to vector<8x32xf32>
    %21 = arith.addf %19, %20 : vector<8x32xf32>
    %cst_24 = arith.constant dense<0.000000e+00> : vector<8x32xf32>
    %22 = tpu.matmul %18, %9, %cst_24 {dimension_numbers = #tpu.dot_dimension_numbers<[1], [0], [0], [1], [0, 0, 1, 1], [], []>} : vector<8x32xbf16>, vector<32x32xbf16>, vector<8x32xf32> -> vector<8x32xf32>
    %23 = vector.broadcast %10 : vector<1x32xf32> to vector<8x32xf32>
    %24 = arith.addf %22, %23 : vector<8x32xf32>
    %cst_25 = arith.constant dense<0.000000e+00> : vector<8x32xf32>
    %25 = tpu.matmul %18, %11, %cst_25 {dimension_numbers = #tpu.dot_dimension_numbers<[1], [0], [0], [1], [0, 0, 1, 1], [], []>} : vector<8x32xbf16>, vector<32x32xbf16>, vector<8x32xf32> -> vector<8x32xf32>
    %26 = vector.broadcast %12 : vector<1x32xf32> to vector<8x32xf32>
    %27 = arith.addf %25, %26 : vector<8x32xf32>
    %28 = arith.truncf %21 : vector<8x32xf32> to vector<8x32xbf16>
    %29 = arith.truncf %24 : vector<8x32xf32> to vector<8x32xbf16>
    %30 = arith.truncf %27 : vector<8x32xf32> to vector<8x32xbf16>
    %31 = vector.extract_strided_slice %28 {offsets = [0, 0], sizes = [8, 8], strides = [1, 1]} : vector<8x32xbf16> to vector<8x8xbf16>
    %32 = vector.extract_strided_slice %29 {offsets = [0, 0], sizes = [8, 8], strides = [1, 1]} : vector<8x32xbf16> to vector<8x8xbf16>
    %33 = vector.extract_strided_slice %30 {offsets = [0, 0], sizes = [8, 8], strides = [1, 1]} : vector<8x32xbf16> to vector<8x8xbf16>
    %cst_26 = arith.constant dense<0.000000e+00> : vector<8x8xf32>
    %34 = tpu.matmul %31, %32, %cst_26 {dimension_numbers = #tpu.dot_dimension_numbers<[1], [1], [0], [0], [0, 0, 1, 0], [], []>} : vector<8x8xbf16>, vector<8x8xbf16>, vector<8x8xf32> -> vector<8x8xf32>
    %cst_27 = arith.constant dense<0xFF800000> : vector<8xf32>
    %35 = vector.multi_reduction <maximumf>, %34, %cst_27 [1] : vector<8x8xf32> to vector<8xf32>
    %36 = vector.shape_cast %35 : vector<8xf32> to vector<8x1xf32>
    %37 = vector.broadcast %36 : vector<8x1xf32> to vector<8x8xf32>
    %38 = arith.subf %34, %37 : vector<8x8xf32>
    %39 = math.exp %38 : vector<8x8xf32>
    %cst_28 = arith.constant dense<0.000000e+00> : vector<8xf32>
    %40 = vector.multi_reduction <add>, %39, %cst_28 [1] : vector<8x8xf32> to vector<8xf32>
    %41 = vector.shape_cast %40 : vector<8xf32> to vector<8x1xf32>
    %42 = tpu.reciprocal %41 {approx = true} : vector<8x1xf32> -> vector<8x1xf32>
    %43 = vector.broadcast %42 : vector<8x1xf32> to vector<8x8xf32>
    %44 = arith.mulf %39, %43 : vector<8x8xf32>
    %45 = arith.truncf %44 : vector<8x8xf32> to vector<8x8xbf16>
    %cst_29 = arith.constant dense<0.000000e+00> : vector<8x8xf32>
    %46 = tpu.matmul %45, %33, %cst_29 {dimension_numbers = #tpu.dot_dimension_numbers<[1], [0], [0], [1], [0, 0, 1, 1], [], []>} : vector<8x8xbf16>, vector<8x8xbf16>, vector<8x8xf32> -> vector<8x8xf32>
    %47 = arith.truncf %46 : vector<8x8xf32> to vector<8x8xbf16>
    %48 = vector.extract_strided_slice %28 {offsets = [0, 8], sizes = [8, 8], strides = [1, 1]} : vector<8x32xbf16> to vector<8x8xbf16>
    %49 = vector.extract_strided_slice %29 {offsets = [0, 8], sizes = [8, 8], strides = [1, 1]} : vector<8x32xbf16> to vector<8x8xbf16>
    %50 = vector.extract_strided_slice %30 {offsets = [0, 8], sizes = [8, 8], strides = [1, 1]} : vector<8x32xbf16> to vector<8x8xbf16>
    %cst_30 = arith.constant dense<0.000000e+00> : vector<8x8xf32>
    %51 = tpu.matmul %48, %49, %cst_30 {dimension_numbers = #tpu.dot_dimension_numbers<[1], [1], [0], [0], [0, 0, 1, 0], [], []>} : vector<8x8xbf16>, vector<8x8xbf16>, vector<8x8xf32> -> vector<8x8xf32>
    %cst_31 = arith.constant dense<0xFF800000> : vector<8xf32>
    %52 = vector.multi_reduction <maximumf>, %51, %cst_31 [1] : vector<8x8xf32> to vector<8xf32>
    %53 = vector.shape_cast %52 : vector<8xf32> to vector<8x1xf32>
    %54 = vector.broadcast %53 : vector<8x1xf32> to vector<8x8xf32>
    %55 = arith.subf %51, %54 : vector<8x8xf32>
    %56 = math.exp %55 : vector<8x8xf32>
    %cst_32 = arith.constant dense<0.000000e+00> : vector<8xf32>
    %57 = vector.multi_reduction <add>, %56, %cst_32 [1] : vector<8x8xf32> to vector<8xf32>
    %58 = vector.shape_cast %57 : vector<8xf32> to vector<8x1xf32>
    %59 = tpu.reciprocal %58 {approx = true} : vector<8x1xf32> -> vector<8x1xf32>
    %60 = vector.broadcast %59 : vector<8x1xf32> to vector<8x8xf32>
    %61 = arith.mulf %56, %60 : vector<8x8xf32>
    %62 = arith.truncf %61 : vector<8x8xf32> to vector<8x8xbf16>
    %cst_33 = arith.constant dense<0.000000e+00> : vector<8x8xf32>
    %63 = tpu.matmul %62, %50, %cst_33 {dimension_numbers = #tpu.dot_dimension_numbers<[1], [0], [0], [1], [0, 0, 1, 1], [], []>} : vector<8x8xbf16>, vector<8x8xbf16>, vector<8x8xf32> -> vector<8x8xf32>
    %64 = arith.truncf %63 : vector<8x8xf32> to vector<8x8xbf16>
    %65 = vector.extract_strided_slice %28 {offsets = [0, 16], sizes = [8, 8], strides = [1, 1]} : vector<8x32xbf16> to vector<8x8xbf16>
    %66 = vector.extract_strided_slice %29 {offsets = [0, 16], sizes = [8, 8], strides = [1, 1]} : vector<8x32xbf16> to vector<8x8xbf16>
    %67 = vector.extract_strided_slice %30 {offsets = [0, 16], sizes = [8, 8], strides = [1, 1]} : vector<8x32xbf16> to vector<8x8xbf16>
    %cst_34 = arith.constant dense<0.000000e+00> : vector<8x8xf32>
    %68 = tpu.matmul %65, %66, %cst_34 {dimension_numbers = #tpu.dot_dimension_numbers<[1], [1], [0], [0], [0, 0, 1, 0], [], []>} : vector<8x8xbf16>, vector<8x8xbf16>, vector<8x8xf32> -> vector<8x8xf32>
    %cst_35 = arith.constant dense<0xFF800000> : vector<8xf32>
    %69 = vector.multi_reduction <maximumf>, %68, %cst_35 [1] : vector<8x8xf32> to vector<8xf32>
    %70 = vector.shape_cast %69 : vector<8xf32> to vector<8x1xf32>
    %71 = vector.broadcast %70 : vector<8x1xf32> to vector<8x8xf32>
    %72 = arith.subf %68, %71 : vector<8x8xf32>
    %73 = math.exp %72 : vector<8x8xf32>
    %cst_36 = arith.constant dense<0.000000e+00> : vector<8xf32>
    %74 = vector.multi_reduction <add>, %73, %cst_36 [1] : vector<8x8xf32> to vector<8xf32>
    %75 = vector.shape_cast %74 : vector<8xf32> to vector<8x1xf32>
    %76 = tpu.reciprocal %75 {approx = true} : vector<8x1xf32> -> vector<8x1xf32>
    %77 = vector.broadcast %76 : vector<8x1xf32> to vector<8x8xf32>
    %78 = arith.mulf %73, %77 : vector<8x8xf32>
    %79 = arith.truncf %78 : vector<8x8xf32> to vector<8x8xbf16>
    %cst_37 = arith.constant dense<0.000000e+00> : vector<8x8xf32>
    %80 = tpu.matmul %79, %67, %cst_37 {dimension_numbers = #tpu.dot_dimension_numbers<[1], [0], [0], [1], [0, 0, 1, 1], [], []>} : vector<8x8xbf16>, vector<8x8xbf16>, vector<8x8xf32> -> vector<8x8xf32>
    %81 = arith.truncf %80 : vector<8x8xf32> to vector<8x8xbf16>
    %82 = vector.extract_strided_slice %28 {offsets = [0, 24], sizes = [8, 8], strides = [1, 1]} : vector<8x32xbf16> to vector<8x8xbf16>
    %83 = vector.extract_strided_slice %29 {offsets = [0, 24], sizes = [8, 8], strides = [1, 1]} : vector<8x32xbf16> to vector<8x8xbf16>
    %84 = vector.extract_strided_slice %30 {offsets = [0, 24], sizes = [8, 8], strides = [1, 1]} : vector<8x32xbf16> to vector<8x8xbf16>
    %cst_38 = arith.constant dense<0.000000e+00> : vector<8x8xf32>
    %85 = tpu.matmul %82, %83, %cst_38 {dimension_numbers = #tpu.dot_dimension_numbers<[1], [1], [0], [0], [0, 0, 1, 0], [], []>} : vector<8x8xbf16>, vector<8x8xbf16>, vector<8x8xf32> -> vector<8x8xf32>
    %cst_39 = arith.constant dense<0xFF800000> : vector<8xf32>
    %86 = vector.multi_reduction <maximumf>, %85, %cst_39 [1] : vector<8x8xf32> to vector<8xf32>
    %87 = vector.shape_cast %86 : vector<8xf32> to vector<8x1xf32>
    %88 = vector.broadcast %87 : vector<8x1xf32> to vector<8x8xf32>
    %89 = arith.subf %85, %88 : vector<8x8xf32>
    %90 = math.exp %89 : vector<8x8xf32>
    %cst_40 = arith.constant dense<0.000000e+00> : vector<8xf32>
    %91 = vector.multi_reduction <add>, %90, %cst_40 [1] : vector<8x8xf32> to vector<8xf32>
    %92 = vector.shape_cast %91 : vector<8xf32> to vector<8x1xf32>
    %93 = tpu.reciprocal %92 {approx = true} : vector<8x1xf32> -> vector<8x1xf32>
    %94 = vector.broadcast %93 : vector<8x1xf32> to vector<8x8xf32>
    %95 = arith.mulf %90, %94 : vector<8x8xf32>
    %96 = arith.truncf %95 : vector<8x8xf32> to vector<8x8xbf16>
    %cst_41 = arith.constant dense<0.000000e+00> : vector<8x8xf32>
    %97 = tpu.matmul %96, %84, %cst_41 {dimension_numbers = #tpu.dot_dimension_numbers<[1], [0], [0], [1], [0, 0, 1, 1], [], []>} : vector<8x8xbf16>, vector<8x8xbf16>, vector<8x8xf32> -> vector<8x8xf32>
    %98 = arith.truncf %97 : vector<8x8xf32> to vector<8x8xbf16>
    %99 = tpu.concatenate %47, %64, %81, %98 in 1 : vector<8x8xbf16>, vector<8x8xbf16>, vector<8x8xbf16>, vector<8x8xbf16> -> vector<8x32xbf16>
    %cst_42 = arith.constant dense<0.000000e+00> : vector<8x32xf32>
    %100 = tpu.matmul %99, %13, %cst_42 {dimension_numbers = #tpu.dot_dimension_numbers<[1], [0], [0], [1], [0, 0, 1, 1], [], []>} : vector<8x32xbf16>, vector<32x32xbf16>, vector<8x32xf32> -> vector<8x32xf32>
    %101 = vector.broadcast %14 : vector<1x32xf32> to vector<8x32xf32>
    %102 = arith.addf %100, %101 : vector<8x32xf32>
    %103 = arith.addf %4, %102 : vector<8x32xf32>
    %cst_43 = arith.constant dense<0.000000e+00> : vector<8xf32>
    %104 = vector.multi_reduction <add>, %103, %cst_43 [1] : vector<8x32xf32> to vector<8xf32>
    %105 = vector.shape_cast %104 : vector<8xf32> to vector<8x1xf32>
    %cst_44 = arith.constant 3.200000e+01 : f32
    %106 = vector.broadcast %cst_44 : f32 to vector<8x1xf32>
    %107 = arith.divf %105, %106 : vector<8x1xf32>
    %108 = vector.broadcast %107 : vector<8x1xf32> to vector<8x32xf32>
    %109 = arith.subf %103, %108 : vector<8x32xf32>
    %110 = arith.mulf %109, %109 : vector<8x32xf32>
    %cst_45 = arith.constant dense<0.000000e+00> : vector<8xf32>
    %111 = vector.multi_reduction <add>, %110, %cst_45 [1] : vector<8x32xf32> to vector<8xf32>
    %112 = vector.shape_cast %111 : vector<8xf32> to vector<8x1xf32>
    %cst_46 = arith.constant 3.200000e+01 : f32
    %113 = vector.broadcast %cst_46 : f32 to vector<8x1xf32>
    %114 = arith.divf %112, %113 : vector<8x1xf32>
    %115 = vector.broadcast %107 : vector<8x1xf32> to vector<8x32xf32>
    %116 = arith.subf %103, %115 : vector<8x32xf32>
    %cst_47 = arith.constant 9.99999974E-6 : f32
    %117 = vector.broadcast %cst_47 : f32 to vector<8x1xf32>
    %118 = arith.addf %114, %117 : vector<8x1xf32>
    %119 = math.rsqrt %118 : vector<8x1xf32>
    %120 = vector.broadcast %119 : vector<8x1xf32> to vector<8x32xf32>
    %121 = arith.mulf %116, %120 : vector<8x32xf32>
    %122 = vector.broadcast %15 : vector<1x32xf32> to vector<8x32xf32>
    %123 = arith.mulf %121, %122 : vector<8x32xf32>
    %124 = vector.broadcast %16 : vector<1x32xf32> to vector<8x32xf32>
    %125 = arith.addf %123, %124 : vector<8x32xf32>
    %c0_48 = arith.constant 0 : index
    %c0_49 = arith.constant 0 : index
    %c0_50 = arith.constant 0 : index
    %126 = vector.load %arg13[%c0_48, %c0_49, %c0_50] : memref<1x8x32xf32, #tpu.memory_space<vmem>>, vector<1x8x32xf32>
    %127 = vector.shape_cast %126 : vector<1x8x32xf32> to vector<8x32xf32>
    %128 = vector.shape_cast %125 : vector<8x32xf32> to vector<1x8x32xf32>
    tpu.vector_store %arg13[%c0_48, %c0_49, %c0_50], %128 {strides = array<i32>} : memref<1x8x32xf32, #tpu.memory_space<vmem>>, vector<1x8x32xf32>,
    return
  }
  func.func @transform_0(%arg0: i32, %arg1: i32) -> (i32, i32, i32) {
    %c0_i32 = arith.constant 0 : i32
    %c0_i32_0 = arith.constant 0 : i32
    %c0_i32_1 = arith.constant 0 : i32
    return %arg0, %c0_i32, %c0_i32_0 : i32, i32, i32
  }
  func.func @transform_1(%arg0: i32, %arg1: i32) -> (i32, i32) {
    %c0_i32 = arith.constant 0 : i32
    %c0_i32_0 = arith.constant 0 : i32
    %c0_i32_1 = arith.constant 0 : i32
    return %c0_i32, %c0_i32_0 : i32, i32
  }
  func.func @transform_2(%arg0: i32, %arg1: i32) -> (i32, i32) {
    %c0_i32 = arith.constant 0 : i32
    %c0_i32_0 = arith.constant 0 : i32
    %c0_i32_1 = arith.constant 0 : i32
    return %c0_i32, %c0_i32_0 : i32, i32
  }
  func.func @transform_3(%arg0: i32, %arg1: i32) -> (i32, i32) {
    %c0_i32 = arith.constant 0 : i32
    %c0_i32_0 = arith.constant 0 : i32
    %c0_i32_1 = arith.constant 0 : i32
    return %c0_i32, %c0_i32_0 : i32, i32
  }
  func.func @transform_4(%arg0: i32, %arg1: i32) -> (i32, i32) {
    %c0_i32 = arith.constant 0 : i32
    %c0_i32_0 = arith.constant 0 : i32
    %c0_i32_1 = arith.constant 0 : i32
    return %c0_i32, %c0_i32_0 : i32, i32
  }
  func.func @transform_5(%arg0: i32, %arg1: i32) -> (i32, i32) {
    %c0_i32 = arith.constant 0 : i32
    %c0_i32_0 = arith.constant 0 : i32
    %c0_i32_1 = arith.constant 0 : i32
    return %c0_i32, %c0_i32_0 : i32, i32
  }
  func.func @transform_6(%arg0: i32, %arg1: i32) -> (i32, i32) {
    %c0_i32 = arith.constant 0 : i32
    %c0_i32_0 = arith.constant 0 : i32
    %c0_i32_1 = arith.constant 0 : i32
    return %c0_i32, %c0_i32_0 : i32, i32
  }
  func.func @transform_7(%arg0: i32, %arg1: i32) -> (i32, i32) {
    %c0_i32 = arith.constant 0 : i32
    %c0_i32_0 = arith.constant 0 : i32
    %c0_i32_1 = arith.constant 0 : i32
    return %c0_i32, %c0_i32_0 : i32, i32
  }
  func.func @transform_8(%arg0: i32, %arg1: i32) -> (i32, i32) {
    %c0_i32 = arith.constant 0 : i32
    %c0_i32_0 = arith.constant 0 : i32
    %c0_i32_1 = arith.constant 0 : i32
    return %c0_i32, %c0_i32_0 : i32, i32
  }
  func.func @transform_9(%arg0: i32, %arg1: i32) -> (i32, i32) {
    %c0_i32 = arith.constant 0 : i32
    %c0_i32_0 = arith.constant 0 : i32
    %c0_i32_1 = arith.constant 0 : i32
    return %c0_i32, %c0_i32_0 : i32, i32
  }
  func.func @transform_10(%arg0: i32, %arg1: i32) -> (i32, i32) {
    %c0_i32 = arith.constant 0 : i32
    %c0_i32_0 = arith.constant 0 : i32
    %c0_i32_1 = arith.constant 0 : i32
    return %c0_i32, %c0_i32_0 : i32, i32
  }
  func.func @transform_11(%arg0: i32, %arg1: i32) -> (i32, i32, i32) {
    %c0_i32 = arith.constant 0 : i32
    %c0_i32_0 = arith.constant 0 : i32
    return %arg0, %arg1, %c0_i32 : i32, i32, i32
  }
}

module attributes {stable_mosaic.version = 11 : i64} {
  func.func @linear_kernel(%arg0: i32, %arg1: memref<16x32xf32, #tpu.memory_space<vmem>>, %arg2: memref<32x32xbf16, #tpu.memory_space<vmem>>, %arg3: memref<1x32xf32, #tpu.memory_space<vmem>>, %arg4: memref<16x32xf32, #tpu.memory_space<vmem>>) attributes {dimension_semantics = [#tpu.dimension_semantics<parallel>], iteration_bounds = array<i64: 1>, scalar_prefetch = 0 : i64, scratch_operands = 0 : i64, tpu.core_type = #tpu.core_type<tc>, window_params = [{transform_indices = @transform_0, window_bounds = array<i64: 16, 32>}, {pipeline_mode = #tpu.pipeline_mode<synchronous>, transform_indices = @transform_1, window_bounds = array<i64: 32, 32>}, {pipeline_mode = #tpu.pipeline_mode<synchronous>, transform_indices = @transform_2, window_bounds = array<i64: 1, 32>}, {transform_indices = @transform_3, window_bounds = array<i64: 16, 32>}]} {
    %c0 = arith.constant 0 : index
    %c0_0 = arith.constant 0 : index
    %0 = vector.load %arg1[%c0, %c0_0] : memref<16x32xf32, #tpu.memory_space<vmem>>, vector<16x32xf32>
    %1 = arith.truncf %0 : vector<16x32xf32> to vector<16x32xbf16>
    %c0_1 = arith.constant 0 : index
    %c0_2 = arith.constant 0 : index
    %2 = vector.load %arg2[%c0_1, %c0_2] : memref<32x32xbf16, #tpu.memory_space<vmem>>, vector<32x32xbf16>
    %cst = arith.constant dense<0.000000e+00> : vector<16x32xf32>
    %3 = tpu.matmul %1, %2, %cst {dimension_numbers = #tpu.dot_dimension_numbers<[1], [0], [0], [1], [0, 0, 1, 1], [], []>} : vector<16x32xbf16>, vector<32x32xbf16>, vector<16x32xf32> -> vector<16x32xf32>
    %c0_3 = arith.constant 0 : index
    %c0_4 = arith.constant 0 : index
    %4 = vector.load %arg3[%c0_3, %c0_4] : memref<1x32xf32, #tpu.memory_space<vmem>>, vector<1x32xf32>
    %5 = vector.broadcast %4 : vector<1x32xf32> to vector<16x32xf32>
    %6 = arith.addf %3, %5 : vector<16x32xf32>
    %c0_5 = arith.constant 0 : index
    %c0_6 = arith.constant 0 : index
    %7 = vector.load %arg4[%c0_5, %c0_6] : memref<16x32xf32, #tpu.memory_space<vmem>>, vector<16x32xf32>
    tpu.vector_store %arg4[%c0_5, %c0_6], %6 {strides = array<i32>} : memref<16x32xf32, #tpu.memory_space<vmem>>, vector<16x32xf32>,
    return
  }
  func.func @transform_0(%arg0: i32) -> (i32, i32) {
    %c0_i32 = arith.constant 0 : i32
    %c0_i32_0 = arith.constant 0 : i32
    return %arg0, %c0_i32 : i32, i32
  }
  func.func @transform_1(%arg0: i32) -> (i32, i32) {
    %c0_i32 = arith.constant 0 : i32
    %c0_i32_0 = arith.constant 0 : i32
    %c0_i32_1 = arith.constant 0 : i32
    return %c0_i32, %c0_i32_0 : i32, i32
  }
  func.func @transform_2(%arg0: i32) -> (i32, i32) {
    %c0_i32 = arith.constant 0 : i32
    %c0_i32_0 = arith.constant 0 : i32
    %c0_i32_1 = arith.constant 0 : i32
    return %c0_i32, %c0_i32_0 : i32, i32
  }
  func.func @transform_3(%arg0: i32) -> (i32, i32) {
    %c0_i32 = arith.constant 0 : i32
    %c0_i32_0 = arith.constant 0 : i32
    return %arg0, %c0_i32 : i32, i32
  }
}

</mosaic_0001>

<bundles_post_ra>
// kernel: transformer_decoder_fwd.9
= control target key start
LH: loop header
LB: loop body
LE: loop exit
PB: predicated region body
PF: predicated region fallthrough
CT: control target
= control target key end

     0   :  { %v290_v0 = vmov 0.0   ;;  %vm291_vm0 = vmmov 0   ;;  %vm53_vm1 = vcmask 261120   ;;  %vm140_vm2 = vcmask 523264   ;;  %s381_s1 = inlined_call_operand.vmem [shape: bf16[32,64], index: 1, kind: input, shape index: {}]   ;;  %s382_s0 = inlined_call_operand.vmem [shape: f32[16,32], index: 0, kind: input, shape index: {}]   ;;  %s383_s3 = inlined_call_operand.vmem [shape: bf16[64,32], index: 3, kind: input, shape index: {}]   ;;  %s384_s2 = inlined_call_operand.vmem [shape: f32[1,64], index: 2, kind: input, shape index: {}]   ;;  %s385_s4 = inlined_call_operand.vmem [shape: f32[1,32], index: 4, kind: input, shape index: {}]   ;;  %s386_s5 = inlined_call_operand.vmem [shape: f32[1,32], index: 5, kind: input, shape index: {}]   ;;  %s387_s6 = inlined_call_operand.vmem [shape: f32[1,32], index: 6, kind: input, shape index: {}]   ;;  %s388_s7 = inlined_call_operand.vmem [shape: f32[16,32], index: 7, kind: output, shape index: {}]  }
   0x1   :  { %258 = vmatprep.subr.bf16.mxu0 %v290_v0  ;;  %v280_v1 = vld [vmem:[%s381_s1] sm:$0xff]   ;;  %262 = vmatprep.mubr.msk.bf16.mxu0 %vm291_vm0, %v290_v0  ;;  %v281_v2 = vld [vmem:[%s381_s1 + $0x8] sm:$0xff]   ;;  %v284_v8 = vld [vmem:[%s383_s3 + $0x10] sm:$0xff]  }
   0x2   :  { %266 = vmatprep.subr.bf16.mxu1 %v290_v0  ;;  %274 = vmatprep.mubr.msk.bf16.mxu1 %vm291_vm0, %v290_v0  ;;  %v27_v3 = vld [vmem:[%s382_s0] sm:$0xff]  ;;  %v28_v4 = vld [vmem:[%s382_s0 + $0x8] sm:$0xff]  ;;  %v285_v9 = vld [vmem:[%s383_s3 + $0x18] sm:$0xff]  }
   0x3   :  { %259 = vmatpush3.bf16.msra.mxu0 %v280_v1  ;;  %v282_v5 = vld [vmem:[%s383_s3] sm:$0xff]   ;;  %v283_v6 = vld [vmem:[%s383_s3 + $0x8] sm:$0xff]   ;;  %v29_v7 = vpack.c.bf16 %v28_v4, %v27_v3 }
   0x4   :  { %260 = vmatprep.subr.bf16.mxu0 %v290_v0  ;;  %267 = vmatpush3.bf16.msra.mxu1 %v282_v5  ;;  %v238_v10 = vld [vmem:[%s384_s2] ss:$0 sm:$0xff] }
   0x5   :  { %268 = vmatprep.subr.bf16.mxu1 %v290_v0  ;;  %v242_v20 = vld [vmem:[%s385_s4] ss:$0 sm:$0xff] }
   0x6   :  { %v248_v48 = vld [vmem:[%s386_s5] ss:$0 sm:$0xff] }
   0x7   :  { %261 = vmatpush3.bf16.msra.mxu0 %v281_v2  ;;  %v249_v50 = vld [vmem:[%s387_s6] ss:$0 sm:$0xff] }
   0x8   :  { %269 = vmatpush3.bf16.msra.mxu1 %v283_v6 }
   0x9   :  { %270 = vmatprep.subr.bf16.mxu1 %v290_v0 }
   0xa   :  { %263 = vmatmul.mubr.msk.bf16.vlgmr.msra.gmra.mrb[0].mxu0 %vm53_vm1, %v29_v7 }
   0xc   :  { %271 = vmatpush3.bf16.msra.mxu1 %v284_v8 }
   0xd   :  { %272 = vmatprep.subr.bf16.mxu1 %v290_v0 }
  0x10   :  { %273 = vmatpush3.bf16.msra.mxu1 %v285_v9 }
  0xdd   :  { %v91_v11 = vpop.f32.mrb[0].mxu0 }
  0xde   :  { %v92_v12 = vadd.f32 %v238_v10, %v91_v11  ;;  %v264_v13 = vpop.f32.mrb[1].mxu0 }
  0xdf   :  { %v94_v14 = vpop.f32.mrb[2].mxu0 }
  0xe0   :  { %v95_v15 = vadd.f32 %v238_v10, %v94_v14  ;;  %v265_v16 = vpop.f32.mrb[3].mxu0  ;;  %v98_v17 = vmax.f32 %v92_v12, 0.0 }
  0xe2   :  { %v99_v18 = vmax.f32 %v95_v15, 0.0 }
  0xe4   :  { %v100_v19 = vpack.c.bf16 %v99_v18, %v98_v17 }
  0xe6   :  { %275 = vmatmul.mubr.msk.bf16.vlgmr.msra.gmra.mrb[0].mxu1 %vm140_vm2, %v100_v19 }
 0x1b9   :  { %v178_v21 = vpop.f32.mrb[0].mxu1 }
 0x1ba   :  { %v179_v22 = vadd.f32 %v242_v20, %v178_v21  ;;  %v276_v23 = vpop.f32.mrb[1].mxu1 }
 0x1bb   :  { %v181_v24 = vpop.f32.mrb[2].mxu1 }
 0x1bc   :  { %v182_v25 = vadd.f32 %v242_v20, %v181_v24  ;;  %v277_v26 = vpop.f32.mrb[3].mxu1  ;;  %v185_v27 = vadd.f32 %v179_v22, %v27_v3 }
 0x1be   :  { %v187_v28 = vsel %vm53_vm1, %v185_v27, 0.0  ;;  %v186_v29 = vadd.f32 %v182_v25, %v28_v4 }
 0x1bf   :  { %188 = vadd.xlane.f32.xlu0 %v187_v28 }
 0x1c0   :  { %v190_v30 = vsel %vm53_vm1, %v186_v29, 0.0 }
 0x1c3   :  { %191 = vadd.xlane.f32.xlu0 %v190_v30 }
 0x24c   :  { %v189_v31 = vpop.xlane.xlu0 %188 }
 0x24d   :  { %v194_v32 = vmul.f32 0.03125, %v189_v31 }
 0x24f   :  { %v196_v33 = vsub.f32 %v185_v27, %v194_v32 }
 0x250   :  { %v192_v34 = vpop.xlane.xlu0 %191 }
 0x251   :  { %v195_v35 = vmul.f32 0.03125, %v192_v34  ;;  %v198_v36 = vmul.f32 %v196_v33, %v196_v33 }
 0x253   :  { %v197_v37 = vsub.f32 %v186_v29, %v195_v35  ;;  %v200_v38 = vsel %vm53_vm1, %v198_v36, 0.0 }
 0x254   :  { %201 = vadd.xlane.f32.xlu1 %v200_v38 }
 0x255   :  { %v199_v39 = vmul.f32 %v197_v37, %v197_v37 }
 0x257   :  { %v203_v40 = vsel %vm53_vm1, %v199_v39, 0.0 }
 0x258   :  { %204 = vadd.xlane.f32.xlu1 %v203_v40 }
 0x2e1   :  { %v202_v41 = vpop.xlane.xlu1 %201 }
 0x2e2   :  { %v206_v42 = vmul.f32 0.03125, %v202_v41 }
 0x2e4   :  { %v208_v43 = vadd.f32 1e-05, %v206_v42 }
 0x2e5   :  { %v205_v44 = vpop.xlane.xlu1 %204 }
 0x2e6   :  { %286 = vrsqrt.f32 %v208_v43  ;;  %v207_v45 = vmul.f32 0.03125, %v205_v44 }
 0x2e8   :  { %v209_v46 = vadd.f32 1e-05, %v207_v45 }
 0x2ea   :  { %288 = vrsqrt.f32 %v209_v46 }
 0x2f0   :  { %v287_v47 = vpop.eup %286 }
 0x2f1   :  { %v212_v49 = vmul.f32 %v287_v47, %v196_v33 }
 0x2f3   :  { %v221_v51 = vmul.f32 %v248_v48, %v212_v49 }
 0x2f4   :  { %v289_v52 = vpop.eup %288 }
 0x2f5   :  { %v230_v53 = vadd.f32 %v249_v50, %v221_v51  ;;  %v213_v54 = vmul.f32 %v289_v52, %v197_v37 }
 0x2f7   :  { %232 = vst.msk [vmem:[%s388_s7] sm:$0xff] %vm53_vm1, %v230_v53  ;;  %v222_v55 = vmul.f32 %v248_v48, %v213_v54 }
 0x2f9   :  { %v231_v56 = vadd.f32 %v249_v50, %v222_v55 }
 0x2fb   :  { %233 = vst.msk [vmem:[%s388_s7 + $0x8] sm:$0xff] %vm53_vm1, %v231_v56 }

// kernel: transformer_decoder_fwd.8
= control target key start
LH: loop header
LB: loop body
LE: loop exit
PB: predicated region body
PF: predicated region fallthrough
CT: control target
= control target key end

     0   :  { %s1604_s21 = smov 0   ;;  %s1606_s22 = smov 0   ;;  %s1773_s0 = inlined_call_operand.vmem [shape: f32[2,8,32], index: 0, kind: input, shape index: {}]   ;;  %s1774_s1 = inlined_call_operand.vmem [shape: f32[2,8,32], index: 1, kind: input, shape index: {}]   ;;  %s1775_s2 = inlined_call_operand.vmem [shape: bf16[32,32], index: 2, kind: input, shape index: {}]   ;;  %s1776_s3 = inlined_call_operand.vmem [shape: f32[1,32], index: 3, kind: input, shape index: {}]   ;;  %s1777_s4 = inlined_call_operand.vmem [shape: bf16[32,32], index: 4, kind: input, shape index: {}]   ;;  %s1778_s5 = inlined_call_operand.vmem [shape: f32[1,32], index: 5, kind: input, shape index: {}]   ;;  %s1779_s6 = inlined_call_operand.vmem [shape: bf16[32,32], index: 6, kind: input, shape index: {}]   ;;  %s1780_s7 = inlined_call_operand.vmem [shape: f32[1,32], index: 7, kind: input, shape index: {}]   ;;  %s1781_s8 = inlined_call_operand.vmem [shape: bf16[32,32], index: 8, kind: input, shape index: {}]   ;;  %s1782_s9 = inlined_call_operand.vmem [shape: f32[1,32], index: 9, kind: input, shape index: {}]   ;;  %s1783_s10 = inlined_call_operand.vmem [shape: f32[1,32], index: 10, kind: input, shape index: {}]   ;;  %s1784_s11 = inlined_call_operand.vmem [shape: f32[1,32], index: 11, kind: input, shape index: {}]   ;;  %s1785_s12 = inlined_call_operand.vmem [shape: f32[2,8,32], index: 12, kind: output, shape index: {}]  }
   0x1   :  { %s1608_s23 = smov 0  }
   0x2 LB: > { %s34_s24 = sadd.s32 1, %s1525_s22  ;;  %p1309_p0 = scmp.ge.s32.totalorder %s1529_s23, 1  ;;  %s1529_s23 = sphi %s1608_s23, %s22_s23   ;;  %s1525_s22 = sphi %s1606_s22, %s1787_s22   ;;  %s1521_s21 = sphi %s1604_s21, %s1786_s21  }
   0x3   : > { %p36_p1 = scmp.ge.s32.totalorder %s34_s24, 2  ;;  %p389_p2 = scmp.lt.s32.totalorder %s1529_s23, 3 }
   0x5   : > { %s1789_s24 = smov (%p36_p1, %s34_s24), 0  ;;  %p390_p3 = pnand %p1309_p0, %p389_p2 }
   0x6   : > { %v1481_v0 = vld [vmem:[%s1777_s4] sm:$0xff] (!%p390_p3)   ;;  %v1531_v1 = vmov (!%p390_p3), 0.0   ;;  %v1483_v3 = vld [vmem:[%s1777_s4 + $0x8] sm:$0xff] (!%p390_p3)   ;;  %vm1532_vm0 = vmmov (!%p390_p3), 0   ;;  %p439_p4 = scmp.lt.s32.totalorder (!%p390_p3), %s1521_s21, 1  ;;  %vm502_vm1 = vcmask (!%p390_p3), 261120  }
   0x7   : > { %393 = sbr.rel (%p390_p3) target bundleno = 1764 (0x6e4), region = 68  ;;  %1377 = vmatprep.subr.bf16.mxu1 (!%p390_p3), %v1531_v1  ;;  %1369 = vmatprep.subr.bf16.mxu0 (!%p390_p3), %v1531_v1  ;;  %v1482_v2 = vld [vmem:[%s1775_s2] sm:$0xff] (!%p390_p3)   ;;  %v1484_v4 = vld [vmem:[%s1775_s2 + $0x8] sm:$0xff] (!%p390_p3)   ;;  %vm668_vm2 = vcmask (!%p390_p3), 64512   ;;  %s1533_s29 = smov (!%p390_p3), 112   ;;  %vm730_vm3 = vcmask (!%p390_p3), 1043456  }
   0x8   : > { %1378 = vmatpush3.bf16.msra.mxu1 (!%p390_p3), %v1481_v0  ;;  %1381 = vmatprep.mubr.msk.bf16.mxu1 (!%p390_p3), %vm1532_vm0, %v1531_v1  ;;  %v1317_v9 = vld [vmem:[%s1778_s5] ss:$0 sm:$0xff] (!%p390_p3)  ;;  %s1534_s30 = smov (!%p390_p3), 120   ;;  %s1535_s13 = smov (!%p390_p3), 104   ;;  %v1486_v25 = vld [vmem:[%s1779_s6 + $0x8] sm:$0xff] (!%p390_p3)   ;;  %vm1123_vm4 = vcmask (!%p390_p3), 130048  }
   0x9   : > { %1379 = vmatprep.subr.bf16.mxu1 (!%p390_p3), %v1531_v1  ;;  %1370 = vmatpush3.bf16.msra.mxu0 (!%p390_p3), %v1482_v2  ;;  %v1313_v10 = vld [vmem:[%s1776_s3] ss:$0 sm:$0xff] (!%p390_p3)  ;;  %s1536_s28 = smov (!%p390_p3), 8   ;;  %vm1126_vm5 = vcmask (!%p390_p3), 195584  }
   0xa   : > { %1371 = vmatprep.subr.bf16.mxu0 (!%p390_p3), %v1531_v1  ;;  %1373 = vmatprep.mubr.msk.bf16.mxu0 (!%p390_p3), %vm1532_vm0, %v1531_v1  ;;  %v1485_v24 = vld [vmem:[%s1779_s6] sm:$0xff] (!%p390_p3)  }
   0xb   : > { %v1321_v40 = vld [vmem:[%s1780_s7] ss:$0 sm:$0xff] (!%p390_p3) }
   0xc   : > { %1380 = vmatpush3.bf16.msra.mxu1 (!%p390_p3), %v1483_v3 }
   0xd   : > { %1372 = vmatpush3.bf16.msra.mxu0 (!%p390_p3), %v1484_v4  ;;  %1393 = vmatprep.subr.bf16.mxu1 (!%p390_p3), %v1531_v1 }
   0xe   : > { %s1791_s21 = smov (!%p439_p4, %s1521_s21), 1  ;;  %1385 = vmatprep.subr.bf16.mxu0 %v1531_v1 }
   0xf   : > { %s1642_s15 = sshll.u32 %s1791_s21, 3 }
  0x10   : > { %s449_s18 = scalar_lea.vmem %s1774_s1, %s1642_s15  ;;  %s445_s25 = scalar_lea.vmem %s1773_s0, %s1642_s15 }
  0x11   : > { %v459_v5 = vld [vmem:[%s449_s18] sm:$0xff]  ;;  %s456_s21 = scalar_lea.vmem %s1785_s12, %s1642_s15 }
  0x12   : > { %v483_v6 = vpack.c.bf16 %v459_v5, %v459_v5  ;;  %v1654_v7 = vld [vmem:[%s445_s25] sm:$0xff] }
  0x13   : > { %v482_v8 = vpack.c.bf16 %v1654_v7, %v1654_v7 }
  0x14   : > { %1382 = vmatmul.mubr.msk.bf16.vlgmr.msra.gmra.mrb[0].mxu1 %vm502_vm1, %v483_v6 }
  0x15   : > { %1374 = vmatmul.mubr.msk.bf16.vlgmr.msra.gmra.mrb[0].mxu0 %vm502_vm1, %v482_v8  ;;  %1395 = vmatprep.mubr.msk.bf16.mxu1 %vm1532_vm0, %v1531_v1 }
  0x16   : > { %1389 = vmatprep.mubr.msk.bf16.mxu0 %vm1532_vm0, %v1531_v1  ;;  %1386 = vmatpush3.bf16.msra.mxu0 %v1485_v24 }
  0x17   : > { %1387 = vmatprep.subr.bf16.mxu0 %v1531_v1 }
  0x1a   : > { %1388 = vmatpush3.bf16.msra.mxu0 %v1486_v25 }
  0x1b   : > { %1399 = vmatprep.subr.bf16.mxu0 %v1531_v1 }
  0x1d   : > { %1390 = vmatmul.mubr.msk.bf16.vlgmr.msra.gmra.mrb[4].mxu0 %vm502_vm1, %v483_v6 }
  0x1e   : > { %1401 = vmatprep.mubr.msk.bf16.mxu0 %vm1532_vm0, %v1531_v1 }
  0xe7   : > { %v601_v11 = vpop.f32.mrb[0].mxu1 }
  0xe8   : > { %v602_v12 = vadd.f32 %v1317_v9, %v601_v11  ;;  %v1383_v13 = vpop.f32.mrb[1].mxu1  ;;  %v540_v14 = vpop.f32.mrb[0].mxu0 }
  0xe9   : > { %v604_v15 = vpop.f32.mrb[2].mxu1  ;;  %v541_v16 = vadd.f32 %v1313_v10, %v540_v14  ;;  %v1375_v17 = vpop.f32.mrb[1].mxu0 }
  0xea   : > { %v666_v18 = vpack.c.bf16 %v602_v12, %v602_v12  ;;  %v1384_v19 = vpop.f32.mrb[3].mxu1  ;;  %v543_v20 = vpop.f32.mrb[2].mxu0 }
  0xeb   : > { %v1376_v21 = vpop.f32.mrb[3].mxu0  ;;  %v665_v22 = vpack.c.bf16 %v541_v16, %v541_v16 }
  0xec   : > { %891 = vrot.lane.b32.xlu1 %v666_v18, %s1533_s29  ;;  %779 = vrot.lane.b32.xlu0 %v666_v18, %s1534_s30  ;;  %v673_v23 = vsel %vm668_vm2, %v666_v18, 0 }
  0xed   : > { %1394 = vmatpush3.bf16.xpose.msra.mxu1 %v673_v23 }
  0xee   : > { %1405 = vmatprep.subr.bf16.mxu1 %v1531_v1 }
  0xf0   : > { %889 = vrot.lane.b32.xlu1 %v665_v22, %s1533_s29  ;;  %776 = vrot.lane.b32.xlu0 %v665_v22, %s1534_s30  ;;  %v659_v41 = vpop.f32.mrb[4].mxu0 }
  0xf1   : > { %v660_v42 = vadd.f32 %v1321_v40, %v659_v41  ;;  %v1391_v43 = vpop.f32.mrb[5].mxu0 }
  0xf2   : > { %v662_v44 = vpop.f32.mrb[6].mxu0 }
  0xf3   : > { %v667_v45 = vpack.c.bf16 %v660_v42, %v660_v42  ;;  %v1392_v46 = vpop.f32.mrb[7].mxu0 }
  0xf4   : > { %1000 = vrot.lane.b32.xlu1 %v665_v22, %s1535_s13  ;;  %1002 = vrot.lane.b32.xlu0 %v666_v18, %s1535_s13 }
  0xf5   : > { %1396 = vmatmul.mubr.msk.bf16.vlgmr.msra.gmra.mrb[4].mxu1 %vm668_vm2, %v665_v22  ;;  %v732_v47 = vsel %vm730_vm3, %v667_v45, 0 }
  0xf6   : > { %1407 = vmatprep.mubr.msk.bf16.mxu1 %vm1532_vm0, %v1531_v1  ;;  %1400 = vmatpush3.bf16.msra.mxu0 %v732_v47  ;;  %v1487_v47 = vld [vmem:[%s1781_s8] sm:$0xff]  }
  0xf7   : > { %1411 = vmatprep.subr.bf16.mxu0 %v1531_v1 }
 0x15e   : > { %v780_v26 = vpop.permute.xlu0 %779  ;;  %v892_v28 = vpop.permute.xlu1 %891 }
 0x15f   : > { %v785_v27 = vsel %vm668_vm2, %v780_v26, 0  ;;  %v897_v30 = vsel %vm668_vm2, %v892_v28, 0 }
 0x160   : > { %1406 = vmatpush3.bf16.xpose.msra.mxu1 %v785_v27 }
 0x161   : > { %1417 = vmatprep.subr.bf16.mxu1 %v1531_v1 }
 0x162   : > { %v777_v29 = vpop.permute.xlu0 %776  ;;  %v890_v32 = vpop.permute.xlu1 %889 }
 0x166   : > { %v1003_v31 = vpop.permute.xlu0 %1002  ;;  %v1001_v34 = vpop.permute.xlu1 %1000 }
 0x167   : > { %1408 = vmatmul.mubr.msk.bf16.vlgmr.msra.gmra.mrb[8].mxu1 %vm668_vm2, %v777_v29  ;;  %v1008_v33 = vsel %vm668_vm2, %v1003_v31, 0 }
 0x168   : > { %1418 = vmatpush3.bf16.xpose.msra.mxu1 %v897_v30  ;;  %1419 = vmatprep.mubr.msk.bf16.mxu1 %vm1532_vm0, %v1531_v1 }
 0x169   : > { %1429 = vmatprep.subr.bf16.mxu1 %v1531_v1 }
 0x16f   : > { %1420 = vmatmul.mubr.msk.bf16.vlgmr.msra.gmra.mrb[12].mxu1 %vm668_vm2, %v890_v32 }
 0x170   : > { %1430 = vmatpush3.bf16.xpose.msra.mxu1 %v1008_v33  ;;  %1431 = vmatprep.mubr.msk.bf16.mxu1 %vm1532_vm0, %v1531_v1 }
 0x171   : > { %1441 = vmatprep.subr.bf16.mxu1 %v1531_v1 }
 0x177   : > { %1432 = vmatmul.mubr.msk.bf16.vlgmr.msra.gmra.mrb[16].mxu1 %vm668_vm2, %v1001_v34 }
 0x178   : > { %1445 = vmatprep.mubr.msk.bf16.mxu1 %vm1532_vm0, %v1531_v1  ;;  %1442 = vmatpush3.bf16.msra.mxu1 %v1487_v47 }
 0x179   : > { %1443 = vmatprep.subr.bf16.mxu1 %v1531_v1 }
 0x1c8   : > { %v709_v35 = vpop.f32.mrb[4].mxu1 }
 0x1c9   : > { %v1397_v36 = vpop.f32.mrb[5].mxu1  ;;  %v715_v37 = vsel %vm668_vm2, %v709_v35, -inf }
 0x1ca   : > { %716 = vmax.xlane.f32.xlu0 %v715_v37  ;;  %v712_v38 = vpop.f32.mrb[6].mxu1 }
 0x1cb   : > { %v1398_v39 = vpop.f32.mrb[7].mxu1 }
 0x23a   : > { %v821_v48 = vpop.f32.mrb[8].mxu1 }
 0x23b   : > { %v1409_v49 = vpop.f32.mrb[9].mxu1  ;;  %v827_v50 = vsel %vm668_vm2, %v821_v48, -inf }
 0x23c   : > { %828 = vmax.xlane.f32.xlu1 %v827_v50  ;;  %v824_v51 = vpop.f32.mrb[10].mxu1 }
 0x23d   : > { %v1410_v52 = vpop.f32.mrb[11].mxu1  ;;  %v1488_v51 = vld [vmem:[%s1781_s8 + $0x8] sm:$0xff]  }
 0x23e   : > { %1444 = vmatpush3.bf16.msra.mxu1 %v1488_v51 }
 0x242   : > { %v933_v53 = vpop.f32.mrb[12].mxu1 }
 0x243   : > { %v1421_v54 = vpop.f32.mrb[13].mxu1  ;;  %v939_v55 = vsel %vm668_vm2, %v933_v53, -inf }
 0x244   : > { %940 = vmax.xlane.f32.xlu0 %v939_v55  ;;  %v936_v56 = vpop.f32.mrb[14].mxu1 }
 0x245   : > { %v1422_v57 = vpop.f32.mrb[15].mxu1 }
 0x24a   : > { %v1044_v58 = vpop.f32.mrb[16].mxu1 }
 0x24b   : > { %v1433_v59 = vpop.f32.mrb[17].mxu1  ;;  %v1050_v60 = vsel %vm668_vm2, %v1044_v58, -inf }
 0x24c   : > { %1051 = vmax.xlane.f32.xlu0 %v1050_v60  ;;  %v1047_v61 = vpop.f32.mrb[18].mxu1 }
 0x24d   : > { %v1434_v62 = vpop.f32.mrb[19].mxu1 }
 0x257   : > { %v717_v63 = vpop.xlane.xlu0 %716 }
 0x258   : > { %v718_v0 = vsub.f32 %v709_v35, %v717_v63 }
 0x25a   : > { %v719_v2 = vmul.f32 1.442695, %v718_v0 }
 0x25c   : > { %1489 = vpow2.f32 %v719_v2 }
 0x266   : > { %v1490_v3 = vpop.eup %1489 }
 0x267   : > { %v721_v4 = vsel %vm668_vm2, %v1490_v3, 0.0 }
 0x268   : > { %722 = vadd.xlane.f32.xlu1 %v721_v4 }
 0x279   : > { %840 = vrot.lane.b32.xlu1 %v667_v45, %s1534_s30  ;;  %s1538_s30 = smov 24  }
 0x2c9   : > { %v829_v5 = vpop.xlane.xlu1 %828 }
 0x2ca   : > { %v830_v6 = vsub.f32 %v821_v48, %v829_v5 }
 0x2cc   : > { %v831_v8 = vmul.f32 1.442695, %v830_v6 }
 0x2ce   : > { %1491 = vpow2.f32 %v831_v8  ;;  %v1333_v8 = vld [vmem:[%s1782_s9] ss:$0 sm:$0xff] }
 0x2d1   : > { %v941_v9 = vpop.xlane.xlu0 %940 }
 0x2d2   : > { %v942_v10 = vsub.f32 %v933_v53, %v941_v9 }
 0x2d4   : > { %v943_v11 = vmul.f32 1.442695, %v942_v10 }
 0x2d6   : > { %1493 = vpow2.f32 %v943_v11 }
 0x2d8   : > { %v1492_v12 = vpop.eup %1491 }
 0x2d9   : > { %v1052_v13 = vpop.xlane.xlu0 %1051  ;;  %v833_v14 = vsel %vm668_vm2, %v1492_v12, 0.0 }
 0x2da   : > { %v1053_v15 = vsub.f32 %v1044_v58, %v1052_v13  ;;  %834 = vadd.xlane.f32.xlu0 %v833_v14 }
 0x2dc   : > { %v1054_v16 = vmul.f32 1.442695, %v1053_v15 }
 0x2de   : > { %1495 = vpow2.f32 %v1054_v16 }
 0x2e0   : > { %v1494_v17 = vpop.eup %1493 }
 0x2e1   : > { %v945_v18 = vsel %vm668_vm2, %v1494_v17, 0.0 }
 0x2e2   : > { %946 = vadd.xlane.f32.xlu1 %v945_v18 }
 0x2e8   : > { %v1496_v19 = vpop.eup %1495 }
 0x2e9   : > { %v1056_v20 = vsel %vm668_vm2, %v1496_v19, 0.0 }
 0x2ea   : > { %1057 = vadd.xlane.f32.xlu0 %v1056_v20 }
 0x2f3   : > { %1062 = vrot.lane.b32.xlu1 %v667_v45, %s1535_s13 }
 0x2f5   : > { %v723_v21 = vpop.xlane.xlu1 %722 }
 0x2f6   : > { %1497 = vrcp.f32 %v723_v21 }
 0x2f9   : > { %v841_v23 = vpop.permute.xlu1 %840 }
 0x2fa   : > { %v846_v26 = vsel %vm730_vm3, %v841_v23, 0 }
 0x300   : > { %v1498_v22 = vpop.eup %1497  ;;  %951 = vrot.lane.b32.xlu0 %v667_v45, %s1533_s29  ;;  %s1537_s29 = smov 16  }
 0x301   : > { %v725_v24 = vmul.f32 %v1498_v22, %v1490_v3 }
 0x303   : > { %v726_v25 = vpack.c.bf16 %v725_v24, %v725_v24 }
 0x305   : > { %1402 = vmatmul.mubr.msk.bf16.vlgmr.msra.gmra.mrb[8].mxu0 %vm668_vm2, %v726_v25 }
 0x306   : > { %1412 = vmatpush3.bf16.msra.mxu0 %v846_v26  ;;  %1413 = vmatprep.mubr.msk.bf16.mxu0 %vm1532_vm0, %v1531_v1  ;;  %v1338_v26 = vld [vmem:[%s1784_s11] ss:$0 sm:$0xff] }
 0x307   : > { %1423 = vmatprep.subr.bf16.mxu0 %v1531_v1 }
 0x367   : > { %v835_v27 = vpop.xlane.xlu0 %834 }
 0x368   : > { %1499 = vrcp.f32 %v835_v27 }
 0x36f   : > { %v947_v28 = vpop.xlane.xlu1 %946 }
 0x370   : > { %1501 = vrcp.f32 %v947_v28 }
 0x372   : > { %v1500_v29 = vpop.eup %1499 }
 0x373   : > { %v837_v30 = vmul.f32 %v1500_v29, %v1492_v12  ;;  %v1063_v37 = vpop.permute.xlu1 %1062 }
 0x374   : > { %v1068_v39 = vsel %vm730_vm3, %v1063_v37, 0 }
 0x375   : > { %v838_v31 = vpack.c.bf16 %v837_v30, %v837_v30 }
 0x377   : > { %v1058_v32 = vpop.xlane.xlu0 %1057  ;;  %1414 = vmatmul.mubr.msk.bf16.vlgmr.msra.gmra.mrb[12].mxu0 %vm668_vm2, %v838_v31 }
 0x378   : > { %1503 = vrcp.f32 %v1058_v32  ;;  %1425 = vmatprep.mubr.msk.bf16.mxu0 %vm1532_vm0, %v1531_v1 }
 0x37a   : > { %v1502_v33 = vpop.eup %1501 }
 0x37b   : > { %v949_v34 = vmul.f32 %v1502_v33, %v1494_v17  ;;  %v952_v35 = vpop.permute.xlu0 %951 }
 0x37c   : > { %v957_v36 = vsel %vm730_vm3, %v952_v35, 0 }
 0x37d   : > { %1424 = vmatpush3.bf16.msra.mxu0 %v957_v36  ;;  %v950_v38 = vpack.c.bf16 %v949_v34, %v949_v34 }
 0x37e   : > { %1435 = vmatprep.subr.bf16.mxu0 %v1531_v1 }
 0x380   : > { %1426 = vmatmul.mubr.msk.bf16.vlgmr.msra.gmra.mrb[16].mxu0 %vm668_vm2, %v950_v38 }
 0x381   : > { %1436 = vmatpush3.bf16.msra.mxu0 %v1068_v39  ;;  %1437 = vmatprep.mubr.msk.bf16.mxu0 %vm1532_vm0, %v1531_v1 }
 0x382   : > { %v1504_v40 = vpop.eup %1503 }
 0x383   : > { %v1060_v41 = vmul.f32 %v1504_v40, %v1496_v19 }
 0x385   : > { %v1061_v42 = vpack.c.bf16 %v1060_v41, %v1060_v41 }
 0x388   : > { %1438 = vmatmul.mubr.msk.bf16.vlgmr.msra.gmra.mrb[20].mxu0 %vm668_vm2, %v1061_v42 }
 0x3d8   : > { %v768_v43 = vpop.f32.mrb[8].mxu0 }
 0x3d9   : > { %v1403_v44 = vpop.f32.mrb[9].mxu0  ;;  %v774_v1 = vpack.c.bf16 %v768_v43, %v768_v43 }
 0x3da   : > { %v771_v45 = vpop.f32.mrb[10].mxu0 }
 0x3db   : > { %v1404_v46 = vpop.f32.mrb[11].mxu0 }
 0x44a   : > { %v882_v48 = vpop.f32.mrb[12].mxu0 }
 0x44b   : > { %v888_v49 = vpack.c.bf16 %v882_v48, %v882_v48  ;;  %v1415_v50 = vpop.f32.mrb[13].mxu0 }
 0x44c   : > { %v885_v52 = vpop.f32.mrb[14].mxu0 }
 0x44d   : > { %1112 = vrot.lane.b32.xlu1 %v888_v49, %s1536_s28  ;;  %v1416_v53 = vpop.f32.mrb[15].mxu0 }
 0x453   : > { %v993_v54 = vpop.f32.mrb[16].mxu0 }
 0x454   : > { %v999_v55 = vpack.c.bf16 %v993_v54, %v993_v54  ;;  %v1427_v56 = vpop.f32.mrb[17].mxu0 }
 0x455   : > { %v996_v57 = vpop.f32.mrb[18].mxu0 }
 0x456   : > { %1115 = vrot.lane.b32.xlu0 %v999_v55, %s1537_s29  ;;  %v1428_v58 = vpop.f32.mrb[19].mxu0 }
 0x45b   : > { %v1104_v59 = vpop.f32.mrb[20].mxu0 }
 0x45c   : > { %v1110_v60 = vpack.c.bf16 %v1104_v59, %v1104_v59  ;;  %v1439_v61 = vpop.f32.mrb[21].mxu0 }
 0x45d   : > { %v1107_v62 = vpop.f32.mrb[22].mxu0 }
 0x45e   : > { %1118 = vrot.lane.b32.xlu1 %v1110_v60, %s1538_s30  ;;  %v1440_v63 = vpop.f32.mrb[23].mxu0 }
 0x4bf   : > { %v1113_v0 = vpop.permute.xlu1 %1112 }
 0x4c0   : > { %v1122_v3 = vsel %vm668_vm2, %v774_v1, %v1113_v0 }
 0x4c8   : > { %v1116_v2 = vpop.permute.xlu0 %1115 }
 0x4c9   : > { %v1125_v4 = vsel %vm1123_vm4, %v1122_v3, %v1116_v2 }
 0x4d0   : > { %v1119_v5 = vpop.permute.xlu1 %1118 }
 0x4d1   : > { %v1128_v6 = vsel %vm1126_vm5, %v1125_v4, %v1119_v5 }
 0x4d2   : > { %1446 = vmatmul.mubr.msk.bf16.vlgmr.msra.gmra.mrb[20].mxu1 %vm502_vm1, %v1128_v6 }
 0x5a5   : > { %v1183_v9 = vpop.f32.mrb[20].mxu1 }
 0x5a6   : > { %v1184_v10 = vadd.f32 %v1333_v8, %v1183_v9  ;;  %v1447_v11 = vpop.f32.mrb[21].mxu1 }
 0x5a7   : > { %v1186_v12 = vpop.f32.mrb[22].mxu1 }
 0x5a8   : > { %v1448_v13 = vpop.f32.mrb[23].mxu1  ;;  %v1189_v14 = vadd.f32 %v1184_v10, %v1654_v7  ;;  %v1337_v7 = vld [vmem:[%s1783_s10] ss:$0 sm:$0xff] }
 0x5aa   : > { %v1190_v15 = vsel %vm502_vm1, %v1189_v14, 0.0 }
 0x5ab   : > { %1191 = vadd.xlane.f32.xlu0 %v1190_v15 }
 0x638   : > { %v1192_v16 = vpop.xlane.xlu0 %1191 }
 0x639   : > { %v1194_v17 = vmul.f32 0.03125, %v1192_v16 }
 0x63b   : > { %v1195_v18 = vsub.f32 %v1189_v14, %v1194_v17 }
 0x63d   : > { %v1196_v19 = vmul.f32 %v1195_v18, %v1195_v18 }
 0x63f   : > { %v1197_v20 = vsel %vm502_vm1, %v1196_v19, 0.0 }
 0x640   : > { %1198 = vadd.xlane.f32.xlu1 %v1197_v20 }
 0x6cd   : > { %v1199_v21 = vpop.xlane.xlu1 %1198 }
 0x6ce   : > { %v1200_v22 = vmul.f32 0.03125, %v1199_v21 }
 0x6d0   : > { %v1201_v23 = vadd.f32 1e-05, %v1200_v22 }
 0x6d2   : > { %1505 = vrsqrt.f32 %v1201_v23 }
 0x6dc   : > { %v1506_v24 = vpop.eup %1505 }
 0x6dd   : > { %v1203_v25 = vmul.f32 %v1506_v24, %v1195_v18 }
 0x6df   : > { %v1210_v27 = vmul.f32 %v1337_v7, %v1203_v25 }
 0x6e1   : > { %v1217_v28 = vadd.f32 %v1338_v26, %v1210_v27 }
 0x6e3   : > { %1218 = vst.msk [vmem:[%s456_s21] sm:$0xff] %vm502_vm1, %v1217_v28 }
 0x6e4 PF: > { %s22_s23 = sadd.s32 1, %s1529_s23   ;;  %s1786_s21 = smov %s1525_s22 }
 0x6e5   : > { %p19_p5 = scmp.ge.s32.totalorder %s22_s23, 4   ;;  %s1787_s22 = smov %s1789_s24 }
 0x6e7   :  { %21 = sbr.rel (!%p19_p5) target bundleno = 2 (0x2), region = 101 }

// kernel: transformer_decoder_fwd.7
= control target key start
LH: loop header
LB: loop body
LE: loop exit
PB: predicated region body
PF: predicated region fallthrough
CT: control target
= control target key end

     0   :  { %s2253_s0 = inlined_call_operand.vmem [shape: f32[2,8,32], index: 0, kind: input, shape index: {}]   ;;  %s2254_s1 = inlined_call_operand.vmem [shape: bf16[32,32], index: 1, kind: input, shape index: {}]   ;;  %s2255_s2 = inlined_call_operand.hbm [shape: f32[1,32], index: 2, kind: input, shape index: {}]   ;;  %s2256_s3 = inlined_call_operand.vmem [shape: bf16[32,32], index: 3, kind: input, shape index: {}]   ;;  %s2257_s4 = inlined_call_operand.hbm [shape: f32[1,32], index: 4, kind: input, shape index: {}]   ;;  %s2258_s5 = inlined_call_operand.vmem [shape: bf16[32,32], index: 5, kind: input, shape index: {}]   ;;  %s2259_s6 = inlined_call_operand.hbm [shape: f32[1,32], index: 6, kind: input, shape index: {}]   ;;  %s2260_s7 = inlined_call_operand.vmem [shape: bf16[32,32], index: 7, kind: input, shape index: {}]   ;;  %s2261_s8 = inlined_call_operand.hbm [shape: f32[1,32], index: 8, kind: input, shape index: {}]   ;;  %s2262_s9 = inlined_call_operand.hbm [shape: f32[1,32], index: 9, kind: input, shape index: {}]   ;;  %s2263_s10 = inlined_call_operand.hbm [shape: f32[1,32], index: 10, kind: input, shape index: {}]   ;;  %s2264_s11 = inlined_call_operand.vmem [shape: f32[2,8,32], index: 11, kind: output, shape index: {}]  }
   0x1   :  { %2270 = sst [smem:[#allocation17_spill]] %s2257_s4 }
   0x2   :  { %16 = vsyncpa [#allocation3], 0 }
   0x3   :  { %17 = vsyncpa [#allocation5], 0 }
   0x4   :  { %18 = vsyncpa [#allocation8], 0 }
   0x5   :  { %19 = vsyncpa [#allocation11], 0  ;;  %s1932_s17 = smov 0   ;;  %s1934_s18 = smov 0  }
   0x6   :  { %s1936_s19 = smov 0  }
   0x7 LB: > { %2271 = sst [smem:[#allocation16_spill]] %s1856_s19  ;;  %s1858_s20 = smov [#allocation4]   ;;  %s1856_s19 = sphi %s1936_s19, %s25_s19   ;;  %s1852_s18 = sphi %s1934_s18, %s2284_s18   ;;  %s1848_s17 = sphi %s1932_s17, %s2283_s17  }
   0x8   : > { %s336_s21 = sshll.u32 %s1858_s20, 4  ;;  %s1376_s22 = sadd.s32 4294967295, %s1856_s19   ;;  %s337_s21 = int_to_ptr.vmem [resolvable:$true] %s336_s21 }
   0x9   : > { %p1378_p0 = scmp.ge.s32.totalorder %s1856_s19, 1  ;;  %p306_p1 = scmp.lt.s32.totalorder %s1856_s19, 3 }
   0xa   : > { %p1950_p2 = scmp.eq.s32.totalorder %s1376_s22, 0  ;;  %s1859_s25 = smov [#allocation7]  }
   0xb   : > { %p1954_p3 = pnand %p1378_p0, %p306_p1  ;;  %s364_s26 = sshll.u32 %s1859_s25, 4  ;;  %s1960_s26 = int_to_ptr.vmem [resolvable:$true] %s364_s26 }
   0xc   : > { %s2272_s23 = scalar_select %p1950_p2, 1, 0 }
   0xd   : > { %s2273_s24 = scalar_select %p1954_p3, 1, 0 }
   0xe   : > { %p1555_p4 = pneg %p1954_p3  ;;  %s2268_s28 = sadd.s32 1, %s1852_s18 }
   0xf   : > { %p1971_p6 = scmp.ge.s32.totalorder %s2268_s28, 2  ;;  %s2276_s4 = sld [smem:[#allocation17_spill]] }
  0x10   : > { %p1964_p5 = pnand %p1950_p2, %p1555_p4 }
  0x11   : > { %s2275_s29 = scalar_select %p1971_p6, 1, 0 }
  0x12   : > { %p1983_p8 = pneg %p1964_p5 }
  0x15   : > { %s1650_s13 = scalar_lea.hbm %s2276_s4, 16 }
  0x16   : > { %p1651_p7 = scmp.ne.s32.totalorder %s2276_s4, %s1650_s13  ;;  %p1657_p11 = scmp.lt.u32.totalorder %s1650_s13, %s2276_s4 }
  0x18   : > { %p1653_p9 = pnand %p1983_p8, %p1651_p7 }
  0x1a   : > { %p1654_p10 = pneg %p1653_p9 }
  0x1c   : > { %p1659_p12 = pnand %p1657_p11, %p1654_p10 }
  0x1e   : > { %1662 = shalt.err (!%p1659_p12)
}
  0x1f   : > { %s1663_s25 = scalar_lea.vmem %s337_s21, 16  ;;  %s1670_s30 = scalar_lea.vmem %s337_s21, 32 }
  0x20   : > { %p1664_p13 = scmp.ne.s32.totalorder %s337_s21, %s1663_s25  ;;  %p1671_p4 = scmp.lt.s32.totalorder %s337_s21, %s337_s21 }
  0x21   : > { %p1672_p2 = scmp.lt.s32.totalorder %s1670_s30, %s1663_s25 }
  0x22   : > { %p1666_p0 = pnand %p1664_p13, %p1983_p8 }
  0x23   : > { %p1673_p3 = por %p1672_p2, %p1671_p4 }
  0x24   : > { %p1667_p1 = pneg %p1666_p0 }
  0x26   : > { %p1674_p6 = pnand %p1673_p3, %p1667_p1 }
  0x28   : > { %1677 = shalt.err (!%p1674_p6)
}
  0x29   : > { %1561 = dma.hbm_to_vmem [thread:$0]  (!%p1964_p5), %s2276_s4, 16, %s337_s21, [#allocation5]  }
  0x2a   : > { %s1678_s20 = scalar_lea.hbm %s2261_s8, 16 }
  0x2b   : > { %p1679_p7 = scmp.ne.s32.totalorder %s2261_s8, %s1678_s20  ;;  %p1685_p3 = scmp.lt.u32.totalorder %s1678_s20, %s2261_s8 }
  0x2d   : > { %p1681_p9 = pnand %p1679_p7, %p1983_p8 }
  0x2f   : > { %p1682_p2 = pneg %p1681_p9 }
  0x31   : > { %p1687_p6 = pnand %p1685_p3, %p1682_p2 }
  0x33   : > { %1690 = shalt.err (!%p1687_p6)
}
  0x34   : > { %s1691_s21 = scalar_lea.vmem %s1960_s26, 16  ;;  %s1698_s28 = scalar_lea.vmem %s1960_s26, 32 }
  0x35   : > { %p1692_p10 = scmp.ne.s32.totalorder %s1960_s26, %s1691_s21  ;;  %p1699_p13 = scmp.lt.s32.totalorder %s1960_s26, %s1960_s26 }
  0x36   : > { %p1700_p0 = scmp.lt.s32.totalorder %s1698_s28, %s1691_s21 }
  0x37   : > { %p1694_p11 = pnand %p1692_p10, %p1983_p8 }
  0x38   : > { %p1701_p1 = por %p1700_p0, %p1699_p13 }
  0x39   : > { %p1695_p12 = pneg %p1694_p11 }
  0x3b   : > { %p1702_p4 = pnand %p1701_p1, %p1695_p12 }
  0x3d   : > { %1705 = shalt.err (!%p1702_p4)
}
  0x3e   : > { %1567 = dma.hbm_to_vmem [thread:$0]  (!%p1964_p5), %s2261_s8, 16, %s1960_s26, [#allocation8]  }
  0x3f   : > { %s2278_s13 = sadd.s32 1, %s1852_s18  ;;  %p2279_p7 = scmp.ne.s32.totalorder %s2275_s29, 0 }
  0x40   : > { %s1860_s15 = smov [#allocation2]   ;;  %s1861_s22 = smov [#allocation6]  }
  0x41   : > { %s2286_s13 = smov (%p2279_p7, %s2278_s13), 0  ;;  %s322_s20 = sshll.u32 %s1860_s15, 4  ;;  %s323_s20 = int_to_ptr.vmem [resolvable:$true] %s322_s20 }
  0x42   : > { %s350_s25 = sshll.u32 %s1861_s22, 4  ;;  %s1706_s28 = scalar_lea.hbm %s2255_s2, 16  ;;  %s351_s25 = int_to_ptr.vmem [resolvable:$true] %s350_s25 }
  0x43   : > { %p1707_p9 = scmp.ne.s32.totalorder %s2255_s2, %s1706_s28  ;;  %p1713_p6 = scmp.lt.u32.totalorder %s1706_s28, %s2255_s2 }
  0x45   : > { %p1709_p2 = pnand %p1707_p9, %p1983_p8 }
  0x47   : > { %p1710_p3 = pneg %p1709_p2 }
  0x49   : > { %p1715_p10 = pnand %p1713_p6, %p1710_p3 }
  0x4b   : > { %1718 = shalt.err (!%p1715_p10)
}
  0x4c   : > { %s1719_s12 = scalar_lea.vmem %s323_s20, 16  ;;  %s1726_s14 = scalar_lea.vmem %s323_s20, 32 }
  0x4d   : > { %p1720_p11 = scmp.ne.s32.totalorder %s323_s20, %s1719_s12  ;;  %p1727_p0 = scmp.lt.s32.totalorder %s323_s20, %s323_s20 }
  0x4e   : > { %p1728_p1 = scmp.lt.s32.totalorder %s1726_s14, %s1719_s12 }
  0x4f   : > { %p1722_p12 = pnand %p1720_p11, %p1983_p8 }
  0x50   : > { %p1729_p4 = por %p1728_p1, %p1727_p0 }
  0x51   : > { %p1723_p13 = pneg %p1722_p12 }
  0x53   : > { %p1730_p7 = pnand %p1729_p4, %p1723_p13 }
  0x55   : > { %1733 = shalt.err (!%p1730_p7)
}
  0x56   : > { %1558 = dma.hbm_to_vmem [thread:$0]  (!%p1964_p5), %s2255_s2, 16, %s323_s20, [#allocation3]  }
  0x57   : > { %s1734_s30 = scalar_lea.hbm %s2259_s6, 16 }
  0x58   : > { %p1735_p9 = scmp.ne.s32.totalorder %s2259_s6, %s1734_s30  ;;  %p1741_p6 = scmp.lt.u32.totalorder %s1734_s30, %s2259_s6 }
  0x5a   : > { %p1737_p2 = pnand %p1735_p9, %p1983_p8 }
  0x5c   : > { %p1738_p3 = pneg %p1737_p2 }
  0x5e   : > { %p1743_p10 = pnand %p1741_p6, %p1738_p3 }
  0x60   : > { %1746 = shalt.err (!%p1743_p10)
}
  0x61   : > { %s1747_s12 = scalar_lea.vmem %s351_s25, 16  ;;  %s1754_s20 = scalar_lea.vmem %s351_s25, 32 }
  0x62   : > { %p1748_p11 = scmp.ne.s32.totalorder %s351_s25, %s1747_s12  ;;  %p1755_p0 = scmp.lt.s32.totalorder %s351_s25, %s351_s25 }
  0x63   : > { %p1756_p1 = scmp.lt.s32.totalorder %s1754_s20, %s1747_s12 }
  0x64   : > { %p1750_p12 = pnand %p1748_p11, %p1983_p8 }
  0x65   : > { %p1757_p4 = por %p1756_p1, %p1755_p0 }
  0x66   : > { %p1751_p13 = pneg %p1750_p12 }
  0x68   : > { %p1758_p7 = pnand %p1757_p4, %p1751_p13 }
  0x6a   : > { %1761 = shalt.err (!%p1758_p7)
}
  0x6b   : > { %1564 = dma.hbm_to_vmem [thread:$0]  (!%p1964_p5), %s2259_s6, 16, %s351_s25, [#allocation5]  }
  0x6c   : > { %s1862_s19 = smov [#allocation9]   ;;  %s1863_s22 = smov [#allocation10]  }
  0x6d   : > { %s375_s15 = sshll.u32 %s1862_s19, 4  ;;  %s386_s30 = sshll.u32 %s1863_s22, 4  ;;  %s376_s15 = int_to_ptr.vmem [resolvable:$true] %s375_s15  ;;  %s387_s30 = int_to_ptr.vmem [resolvable:$true] %s386_s30 }
  0x6e   : > { %s1762_s26 = scalar_lea.hbm %s2262_s9, 16 }
  0x6f   : > { %p1763_p9 = scmp.ne.s32.totalorder %s2262_s9, %s1762_s26  ;;  %p1769_p6 = scmp.lt.u32.totalorder %s1762_s26, %s2262_s9 }
  0x71   : > { %p1765_p2 = pnand %p1763_p9, %p1983_p8 }
  0x73   : > { %p1766_p3 = pneg %p1765_p2 }
  0x75   : > { %p1771_p10 = pnand %p1769_p6, %p1766_p3 }
  0x77   : > { %1774 = shalt.err (!%p1771_p10)
}
  0x78   : > { %s1775_s25 = scalar_lea.vmem %s376_s15, 16  ;;  %s1782_s4 = scalar_lea.vmem %s376_s15, 32 }
  0x79   : > { %p1776_p11 = scmp.ne.s32.totalorder %s376_s15, %s1775_s25  ;;  %p1783_p0 = scmp.lt.s32.totalorder %s376_s15, %s376_s15 }
  0x7a   : > { %p1784_p1 = scmp.lt.s32.totalorder %s1782_s4, %s1775_s25 }
  0x7b   : > { %p1778_p12 = pnand %p1776_p11, %p1983_p8 }
  0x7c   : > { %p1785_p4 = por %p1784_p1, %p1783_p0 }
  0x7d   : > { %p1779_p13 = pneg %p1778_p12 }
  0x7f   : > { %p1786_p7 = pnand %p1785_p4, %p1779_p13 }
  0x81   : > { %1789 = shalt.err (!%p1786_p7)
}
  0x82   : > { %1570 = dma.hbm_to_vmem [thread:$0]  (!%p1964_p5), %s2262_s9, 16, %s376_s15, [#allocation8]  }
  0x83   : > { %s1790_s26 = scalar_lea.hbm %s2263_s10, 16 }
  0x84   : > { %p1791_p9 = scmp.ne.s32.totalorder %s2263_s10, %s1790_s26  ;;  %p1797_p6 = scmp.lt.u32.totalorder %s1790_s26, %s2263_s10 }
  0x86   : > { %p1793_p2 = pnand %p1791_p9, %p1983_p8 }
  0x88   : > { %p1794_p3 = pneg %p1793_p2 }
  0x8a   : > { %p1799_p10 = pnand %p1797_p6, %p1794_p3 }
  0x8c   : > { %1802 = shalt.err (!%p1799_p10)
}
  0x8d   : > { %s1803_s25 = scalar_lea.vmem %s387_s30, 16  ;;  %s1810_s15 = scalar_lea.vmem %s387_s30, 32 }
  0x8e   : > { %p1804_p11 = scmp.ne.s32.totalorder %s387_s30, %s1803_s25  ;;  %p1811_p0 = scmp.lt.s32.totalorder %s387_s30, %s387_s30 }
  0x8f   : > { %p1812_p1 = scmp.lt.s32.totalorder %s1810_s15, %s1803_s25 }
  0x90   : > { %p1806_p12 = pnand %p1804_p11, %p1983_p8 }
  0x91   : > { %p1813_p4 = por %p1812_p1, %p1811_p0 }
  0x92   : > { %p1807_p13 = pneg %p1806_p12 }
  0x94   : > { %p1814_p7 = pnand %p1813_p4, %p1807_p13 }
  0x96   : > { %1817 = shalt.err (!%p1814_p7)
}
  0x97   : > { %1573 = dma.hbm_to_vmem [thread:$0]  (!%p1964_p5), %s2263_s10, 16, %s387_s30, [#allocation11]  }
  0x98   : > { %p2280_p9 = scmp.ne.s32.totalorder %s2273_s24, 0 }
  0x99   : > { %p2281_p2 = scmp.ne.s32.totalorder (!%p2280_p9), %s2272_s23, 0 }
  0x9a   : > { %406 = sbr.rel (%p2280_p9) target bundleno = 1922 (0x782), region = 64 }
  0xa1   : > { %1831 = dma.done.wait (%p2281_p2), [#allocation3], 16  }
  0xa2   : > { %1833 = vsyncadd (%p2281_p2), [#allocation3], 4294967280 }
  0xa3   : > { %1835 = dma.done.wait (%p2281_p2), [#allocation5], 32  }
  0xa4   : > { %1837 = vsyncadd (%p2281_p2), [#allocation5], 4294967264 }
  0xa5   : > { %1839 = dma.done.wait (%p2281_p2), [#allocation8], 32  }
  0xa6   : > { %1841 = vsyncadd (%p2281_p2), [#allocation8], 4294967264 }
  0xa7   : > { %1843 = dma.done.wait (%p2281_p2), [#allocation11], 16  }
  0xa8   : > { %1845 = vsyncadd (%p2281_p2), [#allocation11], 4294967280  ;;  %p467_p5 = scmp.lt.s32.totalorder %s1848_s17, 1  ;;  %v1864_v0 = vmov 0.0   ;;  %vm1865_vm0 = vmmov 0   ;;  %v1624_v1 = vld [vmem:[%s2256_s3] sm:$0xff]  }
  0xa9   : > { %1459 = vmatprep.subr.bf16.mxu1 %v1864_v0  ;;  %1451 = vmatprep.subr.bf16.mxu0 %v1864_v0  ;;  %v1625_v2 = vld [vmem:[%s2254_s1] sm:$0xff]   ;;  %v1626_v3 = vld [vmem:[%s2256_s3 + $0x8] sm:$0xff]   ;;  %vm525_vm1 = vcmask 261120   ;;  %vm691_vm2 = vcmask 64512   ;;  %s1866_s14 = smov 112   ;;  %s1867_s25 = smov 120  }
  0xaa   : > { %1463 = vmatprep.mubr.msk.bf16.mxu1 %vm1865_vm0, %v1864_v0  ;;  %s2288_s17 = smov (!%p467_p5, %s1848_s17), 1  ;;  %1455 = vmatprep.mubr.msk.bf16.mxu0 %vm1865_vm0, %v1864_v0  ;;  %v1627_v5 = vld [vmem:[%s2254_s1 + $0x8] sm:$0xff]   ;;  %v1399_v7 = vld [vmem:[#allocation4] ss:$0 sm:$0xff]  ;;  %v1395_v8 = vld [vmem:[#allocation2] ss:$0 sm:$0xff] }
  0xab   : > { %s1393_s23 = sshll.u32 %s2288_s17, 3  ;;  %1460 = vmatpush3.bf16.msra.mxu1 %v1624_v1  ;;  %1452 = vmatpush3.bf16.msra.mxu0 %v1625_v2  ;;  %s1868_s15 = smov 104   ;;  %v1628_v22 = vld [vmem:[%s2258_s5] sm:$0xff]   ;;  %v1629_v23 = vld [vmem:[%s2258_s5 + $0x8] sm:$0xff]   ;;  %vm753_vm3 = vcmask 1043456   ;;  %vm1146_vm4 = vcmask 130048  }
  0xac   : > { %s470_s22 = scalar_lea.vmem %s2253_s0, %s1393_s23  ;;  %1461 = vmatprep.subr.bf16.mxu1 %v1864_v0  ;;  %1453 = vmatprep.subr.bf16.mxu0 %v1864_v0  ;;  %v1403_v38 = vld [vmem:[#allocation6] ss:$0 sm:$0xff]  ;;  %s1869_s28 = smov 8   ;;  %vm1149_vm5 = vcmask 195584  }
  0xad   : > { %v2145_v4 = vld [vmem:[%s470_s22] sm:$0xff]  ;;  %s1870_s26 = smov 16   ;;  %s1871_s29 = smov 24  }
  0xae   : > { %v506_v6 = vpack.c.bf16 %v2145_v4, %v2145_v4 }
  0xaf   : > { %1462 = vmatpush3.bf16.msra.mxu1 %v1626_v3  ;;  %1454 = vmatpush3.bf16.msra.mxu0 %v1627_v5 }
  0xb0   : > { %1475 = vmatprep.subr.bf16.mxu1 %v1864_v0  ;;  %1467 = vmatprep.subr.bf16.mxu0 %v1864_v0 }
  0xb2   : > { %1464 = vmatmul.mubr.msk.bf16.vlgmr.msra.gmra.mrb[0].mxu1 %vm525_vm1, %v506_v6  ;;  %1456 = vmatmul.mubr.msk.bf16.vlgmr.msra.gmra.mrb[0].mxu0 %vm525_vm1, %v506_v6 }
  0xb3   : > { %1477 = vmatprep.mubr.msk.bf16.mxu1 %vm1865_vm0, %v1864_v0  ;;  %1471 = vmatprep.mubr.msk.bf16.mxu0 %vm1865_vm0, %v1864_v0 }
  0xb4   : > { %1468 = vmatpush3.bf16.msra.mxu0 %v1628_v22 }
  0xb5   : > { %1469 = vmatprep.subr.bf16.mxu0 %v1864_v0 }
  0xb8   : > { %1470 = vmatpush3.bf16.msra.mxu0 %v1629_v23 }
  0xb9   : > { %1481 = vmatprep.subr.bf16.mxu0 %v1864_v0 }
  0xbb   : > { %1472 = vmatmul.mubr.msk.bf16.vlgmr.msra.gmra.mrb[4].mxu0 %vm525_vm1, %v506_v6 }
  0xbc   : > { %1483 = vmatprep.mubr.msk.bf16.mxu0 %vm1865_vm0, %v1864_v0 }
 0x185   : > { %v624_v9 = vpop.f32.mrb[0].mxu1  ;;  %v563_v12 = vpop.f32.mrb[0].mxu0 }
 0x186   : > { %v625_v10 = vadd.f32 %v1399_v7, %v624_v9  ;;  %v1465_v11 = vpop.f32.mrb[1].mxu1  ;;  %v564_v14 = vadd.f32 %v1395_v8, %v563_v12  ;;  %v1457_v15 = vpop.f32.mrb[1].mxu0 }
 0x187   : > { %v627_v13 = vpop.f32.mrb[2].mxu1  ;;  %v566_v18 = vpop.f32.mrb[2].mxu0 }
 0x188   : > { %v689_v16 = vpack.c.bf16 %v625_v10, %v625_v10  ;;  %v1466_v17 = vpop.f32.mrb[3].mxu1  ;;  %v1458_v19 = vpop.f32.mrb[3].mxu0  ;;  %v688_v20 = vpack.c.bf16 %v564_v14, %v564_v14 }
 0x18a   : > { %914 = vrot.lane.b32.xlu1 %v689_v16, %s1866_s14  ;;  %802 = vrot.lane.b32.xlu0 %v689_v16, %s1867_s25  ;;  %v696_v21 = vsel %vm691_vm2, %v689_v16, 0 }
 0x18b   : > { %1476 = vmatpush3.bf16.xpose.msra.mxu1 %v696_v21 }
 0x18c   : > { %1487 = vmatprep.subr.bf16.mxu1 %v1864_v0 }
 0x18e   : > { %912 = vrot.lane.b32.xlu1 %v688_v20, %s1866_s14  ;;  %799 = vrot.lane.b32.xlu0 %v688_v20, %s1867_s25  ;;  %v682_v39 = vpop.f32.mrb[4].mxu0 }
 0x18f   : > { %v683_v40 = vadd.f32 %v1403_v38, %v682_v39  ;;  %v1473_v41 = vpop.f32.mrb[5].mxu0 }
 0x190   : > { %v685_v42 = vpop.f32.mrb[6].mxu0 }
 0x191   : > { %v690_v43 = vpack.c.bf16 %v683_v40, %v683_v40  ;;  %v1474_v44 = vpop.f32.mrb[7].mxu0 }
 0x192   : > { %1023 = vrot.lane.b32.xlu1 %v688_v20, %s1868_s15  ;;  %1025 = vrot.lane.b32.xlu0 %v689_v16, %s1868_s15 }
 0x193   : > { %1478 = vmatmul.mubr.msk.bf16.vlgmr.msra.gmra.mrb[4].mxu1 %vm691_vm2, %v688_v20  ;;  %v755_v45 = vsel %vm753_vm3, %v690_v43, 0 }
 0x194   : > { %1489 = vmatprep.mubr.msk.bf16.mxu1 %vm1865_vm0, %v1864_v0  ;;  %1482 = vmatpush3.bf16.msra.mxu0 %v755_v45  ;;  %v1630_v45 = vld [vmem:[%s2260_s7] sm:$0xff]  }
 0x195   : > { %1493 = vmatprep.subr.bf16.mxu0 %v1864_v0 }
 0x1fc   : > { %v803_v24 = vpop.permute.xlu0 %802  ;;  %v915_v26 = vpop.permute.xlu1 %914 }
 0x1fd   : > { %v808_v25 = vsel %vm691_vm2, %v803_v24, 0  ;;  %v920_v28 = vsel %vm691_vm2, %v915_v26, 0 }
 0x1fe   : > { %1488 = vmatpush3.bf16.xpose.msra.mxu1 %v808_v25 }
 0x1ff   : > { %1499 = vmatprep.subr.bf16.mxu1 %v1864_v0 }
 0x200   : > { %v800_v27 = vpop.permute.xlu0 %799  ;;  %v913_v30 = vpop.permute.xlu1 %912 }
 0x204   : > { %v1026_v29 = vpop.permute.xlu0 %1025  ;;  %v1024_v32 = vpop.permute.xlu1 %1023 }
 0x205   : > { %1490 = vmatmul.mubr.msk.bf16.vlgmr.msra.gmra.mrb[8].mxu1 %vm691_vm2, %v800_v27  ;;  %v1031_v31 = vsel %vm691_vm2, %v1026_v29, 0 }
 0x206   : > { %1500 = vmatpush3.bf16.xpose.msra.mxu1 %v920_v28  ;;  %1501 = vmatprep.mubr.msk.bf16.mxu1 %vm1865_vm0, %v1864_v0 }
 0x207   : > { %1511 = vmatprep.subr.bf16.mxu1 %v1864_v0 }
 0x20d   : > { %1502 = vmatmul.mubr.msk.bf16.vlgmr.msra.gmra.mrb[12].mxu1 %vm691_vm2, %v913_v30 }
 0x20e   : > { %1512 = vmatpush3.bf16.xpose.msra.mxu1 %v1031_v31  ;;  %1513 = vmatprep.mubr.msk.bf16.mxu1 %vm1865_vm0, %v1864_v0 }
 0x20f   : > { %1523 = vmatprep.subr.bf16.mxu1 %v1864_v0 }
 0x215   : > { %1514 = vmatmul.mubr.msk.bf16.vlgmr.msra.gmra.mrb[16].mxu1 %vm691_vm2, %v1024_v32 }
 0x216   : > { %1527 = vmatprep.mubr.msk.bf16.mxu1 %vm1865_vm0, %v1864_v0  ;;  %1524 = vmatpush3.bf16.msra.mxu1 %v1630_v45 }
 0x217   : > { %1525 = vmatprep.subr.bf16.mxu1 %v1864_v0 }
 0x266   : > { %v732_v33 = vpop.f32.mrb[4].mxu1 }
 0x267   : > { %v1479_v34 = vpop.f32.mrb[5].mxu1  ;;  %v738_v35 = vsel %vm691_vm2, %v732_v33, -inf }
 0x268   : > { %739 = vmax.xlane.f32.xlu0 %v738_v35  ;;  %v735_v36 = vpop.f32.mrb[6].mxu1 }
 0x269   : > { %v1480_v37 = vpop.f32.mrb[7].mxu1 }
 0x2d8   : > { %v844_v46 = vpop.f32.mrb[8].mxu1 }
 0x2d9   : > { %v1491_v47 = vpop.f32.mrb[9].mxu1  ;;  %v850_v48 = vsel %vm691_vm2, %v844_v46, -inf }
 0x2da   : > { %851 = vmax.xlane.f32.xlu1 %v850_v48  ;;  %v847_v49 = vpop.f32.mrb[10].mxu1 }
 0x2db   : > { %v1492_v50 = vpop.f32.mrb[11].mxu1  ;;  %v1631_v49 = vld [vmem:[%s2260_s7 + $0x8] sm:$0xff]  }
 0x2dc   : > { %1526 = vmatpush3.bf16.msra.mxu1 %v1631_v49 }
 0x2e0   : > { %v956_v51 = vpop.f32.mrb[12].mxu1 }
 0x2e1   : > { %v1503_v52 = vpop.f32.mrb[13].mxu1  ;;  %v962_v53 = vsel %vm691_vm2, %v956_v51, -inf }
 0x2e2   : > { %963 = vmax.xlane.f32.xlu0 %v962_v53  ;;  %v959_v54 = vpop.f32.mrb[14].mxu1 }
 0x2e3   : > { %v1504_v55 = vpop.f32.mrb[15].mxu1 }
 0x2e8   : > { %v1067_v56 = vpop.f32.mrb[16].mxu1 }
 0x2e9   : > { %v1515_v57 = vpop.f32.mrb[17].mxu1  ;;  %v1073_v58 = vsel %vm691_vm2, %v1067_v56, -inf }
 0x2ea   : > { %1074 = vmax.xlane.f32.xlu0 %v1073_v58  ;;  %v1070_v59 = vpop.f32.mrb[18].mxu1 }
 0x2eb   : > { %v1516_v60 = vpop.f32.mrb[19].mxu1 }
 0x2f5   : > { %v740_v61 = vpop.xlane.xlu0 %739 }
 0x2f6   : > { %v741_v62 = vsub.f32 %v732_v33, %v740_v61 }
 0x2f8   : > { %v742_v63 = vmul.f32 1.442695, %v741_v62 }
 0x2fa   : > { %1632 = vpow2.f32 %v742_v63 }
 0x304   : > { %v1633_v1 = vpop.eup %1632 }
 0x305   : > { %v744_v2 = vsel %vm691_vm2, %v1633_v1, 0.0 }
 0x306   : > { %745 = vadd.xlane.f32.xlu1 %v744_v2 }
 0x317   : > { %863 = vrot.lane.b32.xlu1 %v690_v43, %s1867_s25 }
 0x367   : > { %v852_v3 = vpop.xlane.xlu1 %851 }
 0x368   : > { %v853_v5 = vsub.f32 %v844_v46, %v852_v3 }
 0x36a   : > { %v854_v6 = vmul.f32 1.442695, %v853_v5 }
 0x36c   : > { %1634 = vpow2.f32 %v854_v6  ;;  %v1415_v6 = vld [vmem:[#allocation7] ss:$0 sm:$0xff] }
 0x36f   : > { %v964_v7 = vpop.xlane.xlu0 %963 }
 0x370   : > { %v965_v8 = vsub.f32 %v956_v51, %v964_v7 }
 0x372   : > { %v966_v9 = vmul.f32 1.442695, %v965_v8 }
 0x374   : > { %1636 = vpow2.f32 %v966_v9 }
 0x376   : > { %v1635_v10 = vpop.eup %1634 }
 0x377   : > { %v1075_v11 = vpop.xlane.xlu0 %1074  ;;  %v856_v12 = vsel %vm691_vm2, %v1635_v10, 0.0 }
 0x378   : > { %v1076_v13 = vsub.f32 %v1067_v56, %v1075_v11  ;;  %857 = vadd.xlane.f32.xlu0 %v856_v12 }
 0x37a   : > { %v1077_v14 = vmul.f32 1.442695, %v1076_v13 }
 0x37c   : > { %1638 = vpow2.f32 %v1077_v14 }
 0x37e   : > { %v1637_v15 = vpop.eup %1636 }
 0x37f   : > { %v968_v16 = vsel %vm691_vm2, %v1637_v15, 0.0 }
 0x380   : > { %969 = vadd.xlane.f32.xlu1 %v968_v16 }
 0x386   : > { %v1639_v17 = vpop.eup %1638 }
 0x387   : > { %v1079_v18 = vsel %vm691_vm2, %v1639_v17, 0.0 }
 0x388   : > { %1080 = vadd.xlane.f32.xlu0 %v1079_v18 }
 0x391   : > { %1085 = vrot.lane.b32.xlu1 %v690_v43, %s1868_s15 }
 0x393   : > { %v746_v19 = vpop.xlane.xlu1 %745 }
 0x394   : > { %1640 = vrcp.f32 %v746_v19 }
 0x397   : > { %v864_v21 = vpop.permute.xlu1 %863 }
 0x398   : > { %v869_v24 = vsel %vm753_vm3, %v864_v21, 0 }
 0x39e   : > { %v1641_v20 = vpop.eup %1640  ;;  %974 = vrot.lane.b32.xlu0 %v690_v43, %s1866_s14  ;;  %s477_s14 = scalar_lea.vmem %s2264_s11, %s1393_s23 }
 0x39f   : > { %v748_v22 = vmul.f32 %v1641_v20, %v1633_v1 }
 0x3a1   : > { %v749_v23 = vpack.c.bf16 %v748_v22, %v748_v22 }
 0x3a3   : > { %1484 = vmatmul.mubr.msk.bf16.vlgmr.msra.gmra.mrb[8].mxu0 %vm691_vm2, %v749_v23  ;;  %v1419_v23 = vld [vmem:[#allocation9] ss:$0 sm:$0xff] }
 0x3a4   : > { %1494 = vmatpush3.bf16.msra.mxu0 %v869_v24  ;;  %1495 = vmatprep.mubr.msk.bf16.mxu0 %vm1865_vm0, %v1864_v0 }
 0x3a5   : > { %1505 = vmatprep.subr.bf16.mxu0 %v1864_v0 }
 0x405   : > { %v858_v25 = vpop.xlane.xlu0 %857 }
 0x406   : > { %1642 = vrcp.f32 %v858_v25  ;;  %v1420_v25 = vld [vmem:[#allocation10] ss:$0 sm:$0xff] }
 0x40d   : > { %v970_v26 = vpop.xlane.xlu1 %969 }
 0x40e   : > { %1644 = vrcp.f32 %v970_v26 }
 0x410   : > { %v1643_v27 = vpop.eup %1642 }
 0x411   : > { %v860_v28 = vmul.f32 %v1643_v27, %v1635_v10  ;;  %v1086_v35 = vpop.permute.xlu1 %1085 }
 0x412   : > { %v1091_v37 = vsel %vm753_vm3, %v1086_v35, 0 }
 0x413   : > { %v861_v29 = vpack.c.bf16 %v860_v28, %v860_v28 }
 0x415   : > { %v1081_v30 = vpop.xlane.xlu0 %1080  ;;  %1496 = vmatmul.mubr.msk.bf16.vlgmr.msra.gmra.mrb[12].mxu0 %vm691_vm2, %v861_v29 }
 0x416   : > { %1646 = vrcp.f32 %v1081_v30  ;;  %1507 = vmatprep.mubr.msk.bf16.mxu0 %vm1865_vm0, %v1864_v0 }
 0x418   : > { %v1645_v31 = vpop.eup %1644 }
 0x419   : > { %v972_v32 = vmul.f32 %v1645_v31, %v1637_v15  ;;  %v975_v33 = vpop.permute.xlu0 %974 }
 0x41a   : > { %v980_v34 = vsel %vm753_vm3, %v975_v33, 0 }
 0x41b   : > { %1506 = vmatpush3.bf16.msra.mxu0 %v980_v34  ;;  %v973_v36 = vpack.c.bf16 %v972_v32, %v972_v32 }
 0x41c   : > { %1517 = vmatprep.subr.bf16.mxu0 %v1864_v0 }
 0x41e   : > { %1508 = vmatmul.mubr.msk.bf16.vlgmr.msra.gmra.mrb[16].mxu0 %vm691_vm2, %v973_v36 }
 0x41f   : > { %1518 = vmatpush3.bf16.msra.mxu0 %v1091_v37  ;;  %1519 = vmatprep.mubr.msk.bf16.mxu0 %vm1865_vm0, %v1864_v0 }
 0x420   : > { %v1647_v38 = vpop.eup %1646 }
 0x421   : > { %v1083_v39 = vmul.f32 %v1647_v38, %v1639_v17 }
 0x423   : > { %v1084_v40 = vpack.c.bf16 %v1083_v39, %v1083_v39 }
 0x426   : > { %1520 = vmatmul.mubr.msk.bf16.vlgmr.msra.gmra.mrb[20].mxu0 %vm691_vm2, %v1084_v40 }
 0x476   : > { %v791_v41 = vpop.f32.mrb[8].mxu0 }
 0x477   : > { %v1485_v42 = vpop.f32.mrb[9].mxu0  ;;  %v797_v0 = vpack.c.bf16 %v791_v41, %v791_v41 }
 0x478   : > { %v794_v43 = vpop.f32.mrb[10].mxu0 }
 0x479   : > { %v1486_v44 = vpop.f32.mrb[11].mxu0 }
 0x4e8   : > { %v905_v46 = vpop.f32.mrb[12].mxu0 }
 0x4e9   : > { %v911_v47 = vpack.c.bf16 %v905_v46, %v905_v46  ;;  %v1497_v48 = vpop.f32.mrb[13].mxu0 }
 0x4ea   : > { %v908_v50 = vpop.f32.mrb[14].mxu0 }
 0x4eb   : > { %1135 = vrot.lane.b32.xlu1 %v911_v47, %s1869_s28  ;;  %v1498_v51 = vpop.f32.mrb[15].mxu0 }
 0x4f1   : > { %v1016_v52 = vpop.f32.mrb[16].mxu0 }
 0x4f2   : > { %v1022_v53 = vpack.c.bf16 %v1016_v52, %v1016_v52  ;;  %v1509_v54 = vpop.f32.mrb[17].mxu0 }
 0x4f3   : > { %v1019_v55 = vpop.f32.mrb[18].mxu0 }
 0x4f4   : > { %1138 = vrot.lane.b32.xlu0 %v1022_v53, %s1870_s26  ;;  %v1510_v56 = vpop.f32.mrb[19].mxu0 }
 0x4f9   : > { %v1127_v57 = vpop.f32.mrb[20].mxu0 }
 0x4fa   : > { %v1133_v58 = vpack.c.bf16 %v1127_v57, %v1127_v57  ;;  %v1521_v59 = vpop.f32.mrb[21].mxu0 }
 0x4fb   : > { %v1130_v60 = vpop.f32.mrb[22].mxu0 }
 0x4fc   : > { %1141 = vrot.lane.b32.xlu1 %v1133_v58, %s1871_s29  ;;  %v1522_v61 = vpop.f32.mrb[23].mxu0 }
 0x55d   : > { %v1136_v62 = vpop.permute.xlu1 %1135 }
 0x55e   : > { %v1145_v1 = vsel %vm691_vm2, %v797_v0, %v1136_v62 }
 0x566   : > { %v1139_v63 = vpop.permute.xlu0 %1138 }
 0x567   : > { %v1148_v2 = vsel %vm1146_vm4, %v1145_v1, %v1139_v63 }
 0x56e   : > { %v1142_v3 = vpop.permute.xlu1 %1141 }
 0x56f   : > { %v1151_v5 = vsel %vm1149_vm5, %v1148_v2, %v1142_v3 }
 0x570   : > { %1528 = vmatmul.mubr.msk.bf16.vlgmr.msra.gmra.mrb[20].mxu1 %vm525_vm1, %v1151_v5 }
 0x643   : > { %v1206_v7 = vpop.f32.mrb[20].mxu1 }
 0x644   : > { %v1207_v8 = vadd.f32 %v1415_v6, %v1206_v7  ;;  %v1529_v9 = vpop.f32.mrb[21].mxu1 }
 0x645   : > { %v1209_v10 = vpop.f32.mrb[22].mxu1 }
 0x646   : > { %v1530_v11 = vpop.f32.mrb[23].mxu1  ;;  %v1212_v12 = vadd.f32 %v1207_v8, %v2145_v4 }
 0x648   : > { %v1213_v13 = vsel %vm525_vm1, %v1212_v12, 0.0 }
 0x649   : > { %1214 = vadd.xlane.f32.xlu0 %v1213_v13 }
 0x6d6   : > { %v1215_v14 = vpop.xlane.xlu0 %1214 }
 0x6d7   : > { %v1217_v15 = vmul.f32 0.03125, %v1215_v14 }
 0x6d9   : > { %v1218_v16 = vsub.f32 %v1212_v12, %v1217_v15 }
 0x6db   : > { %v1219_v17 = vmul.f32 %v1218_v16, %v1218_v16 }
 0x6dd   : > { %v1220_v18 = vsel %vm525_vm1, %v1219_v17, 0.0 }
 0x6de   : > { %1221 = vadd.xlane.f32.xlu1 %v1220_v18 }
 0x76b   : > { %v1222_v19 = vpop.xlane.xlu1 %1221 }
 0x76c   : > { %v1223_v20 = vmul.f32 0.03125, %v1222_v19 }
 0x76e   : > { %v1224_v21 = vadd.f32 1e-05, %v1223_v20 }
 0x770   : > { %1648 = vrsqrt.f32 %v1224_v21 }
 0x77a   : > { %v1649_v22 = vpop.eup %1648 }
 0x77b   : > { %v1226_v24 = vmul.f32 %v1649_v22, %v1218_v16 }
 0x77d   : > { %v1233_v4 = vmul.f32 %v1419_v23, %v1226_v24 }
 0x77f   : > { %v1240_v26 = vadd.f32 %v1420_v25, %v1233_v4 }
 0x781   : > { %1241 = vst.msk [vmem:[%s477_s14] sm:$0xff] %vm525_vm1, %v1240_v26 }
 0x782 PF: > { %s2282_s25 = sld [smem:[#allocation16_spill]]  ;;  %s2283_s17 = smov %s1852_s18 }
 0x783   : > { %s2284_s18 = smov %s2286_s13 }
 0x788   : > { %s25_s19 = sadd.s32 1, %s2282_s25  }
 0x789   : > { %p22_p8 = scmp.ge.s32.totalorder %s25_s19, 4  }
 0x78b   :  { %24 = sbr.rel (!%p22_p8) target bundleno = 7 (0x7), region = 120 }
 0x792   :  { %1267 = vsyncpa [#allocation3], 1 }
 0x793   :  { %1269 = vsyncpa [#allocation3 + $0x1], 1 }
 0x794   :  { %1270 = vsyncpa [#allocation5], 1 }
 0x795   :  { %1271 = vsyncpa [#allocation8], 1 }
 0x796   :  { %1272 = vsyncpa [#allocation11], 1 }

// kernel: transformer_decoder_fwd.10
= control target key start
LH: loop header
LB: loop body
LE: loop exit
PB: predicated region body
PF: predicated region fallthrough
CT: control target
= control target key end

     0   :  { %s1532_s17 = smov 0   ;;  %s1534_s18 = smov 0   ;;  %s1700_s0 = inlined_call_operand.vmem [shape: f32[2,8,32], index: 0, kind: input, shape index: {}]   ;;  %s1701_s1 = inlined_call_operand.vmem [shape: bf16[32,32], index: 1, kind: input, shape index: {}]   ;;  %s1702_s2 = inlined_call_operand.vmem [shape: f32[1,32], index: 2, kind: input, shape index: {}]   ;;  %s1703_s3 = inlined_call_operand.vmem [shape: bf16[32,32], index: 3, kind: input, shape index: {}]   ;;  %s1704_s4 = inlined_call_operand.vmem [shape: f32[1,32], index: 4, kind: input, shape index: {}]   ;;  %s1705_s5 = inlined_call_operand.vmem [shape: bf16[32,32], index: 5, kind: input, shape index: {}]   ;;  %s1706_s6 = inlined_call_operand.vmem [shape: f32[1,32], index: 6, kind: input, shape index: {}]   ;;  %s1707_s7 = inlined_call_operand.vmem [shape: bf16[32,32], index: 7, kind: input, shape index: {}]   ;;  %s1708_s8 = inlined_call_operand.vmem [shape: f32[1,32], index: 8, kind: input, shape index: {}]   ;;  %s1709_s9 = inlined_call_operand.vmem [shape: f32[1,32], index: 9, kind: input, shape index: {}]   ;;  %s1710_s10 = inlined_call_operand.vmem [shape: f32[1,32], index: 10, kind: input, shape index: {}]   ;;  %s1711_s11 = inlined_call_operand.vmem [shape: f32[2,8,32], index: 11, kind: output, shape index: {}]  }
   0x1   :  { %s1536_s19 = smov 0  }
   0x2 LB: > { %s33_s20 = sadd.s32 1, %s1458_s18  ;;  %p1243_p0 = scmp.ge.s32.totalorder %s1462_s19, 1  ;;  %s1462_s19 = sphi %s1536_s19, %s21_s19   ;;  %s1458_s18 = sphi %s1534_s18, %s1713_s18   ;;  %s1454_s17 = sphi %s1532_s17, %s1712_s17  }
   0x3   : > { %p35_p1 = scmp.ge.s32.totalorder %s33_s20, 2  ;;  %p350_p2 = scmp.lt.s32.totalorder %s1462_s19, 3 }
   0x5   : > { %s1715_s20 = smov (%p35_p1, %s33_s20), 0  ;;  %p351_p3 = pnand %p1243_p0, %p350_p2 }
   0x6   : > { %v1414_v0 = vld [vmem:[%s1703_s3] sm:$0xff] (!%p351_p3)   ;;  %v1464_v1 = vmov (!%p351_p3), 0.0   ;;  %v1416_v3 = vld [vmem:[%s1703_s3 + $0x8] sm:$0xff] (!%p351_p3)   ;;  %vm1465_vm0 = vmmov (!%p351_p3), 0   ;;  %p391_p4 = scmp.lt.s32.totalorder (!%p351_p3), %s1454_s17, 1  ;;  %vm449_vm1 = vcmask (!%p351_p3), 261120  }
   0x7   : > { %354 = sbr.rel (%p351_p3) target bundleno = 1764 (0x6e4), region = 64  ;;  %1310 = vmatprep.subr.bf16.mxu1 (!%p351_p3), %v1464_v1  ;;  %1302 = vmatprep.subr.bf16.mxu0 (!%p351_p3), %v1464_v1  ;;  %v1415_v2 = vld [vmem:[%s1701_s1] sm:$0xff] (!%p351_p3)   ;;  %v1417_v4 = vld [vmem:[%s1701_s1 + $0x8] sm:$0xff] (!%p351_p3)   ;;  %vm615_vm2 = vcmask (!%p351_p3), 64512   ;;  %s1466_s22 = smov (!%p351_p3), 112   ;;  %vm677_vm3 = vcmask (!%p351_p3), 1043456  }
   0x8   : > { %1311 = vmatpush3.bf16.msra.mxu1 (!%p351_p3), %v1414_v0  ;;  %1314 = vmatprep.mubr.msk.bf16.mxu1 (!%p351_p3), %vm1465_vm0, %v1464_v1  ;;  %v1250_v7 = vld [vmem:[%s1704_s4] ss:$0 sm:$0xff] (!%p351_p3)  ;;  %s1467_s23 = smov (!%p351_p3), 120   ;;  %s1468_s24 = smov (!%p351_p3), 104   ;;  %v1419_v23 = vld [vmem:[%s1705_s5 + $0x8] sm:$0xff] (!%p351_p3)   ;;  %vm1070_vm4 = vcmask (!%p351_p3), 130048  }
   0x9   : > { %1312 = vmatprep.subr.bf16.mxu1 (!%p351_p3), %v1464_v1  ;;  %1303 = vmatpush3.bf16.msra.mxu0 (!%p351_p3), %v1415_v2  ;;  %v1246_v8 = vld [vmem:[%s1702_s2] ss:$0 sm:$0xff] (!%p351_p3)  ;;  %s1469_s21 = smov (!%p351_p3), 8   ;;  %vm1073_vm5 = vcmask (!%p351_p3), 195584  }
   0xa   : > { %1304 = vmatprep.subr.bf16.mxu0 (!%p351_p3), %v1464_v1  ;;  %1306 = vmatprep.mubr.msk.bf16.mxu0 (!%p351_p3), %vm1465_vm0, %v1464_v1  ;;  %v1418_v22 = vld [vmem:[%s1705_s5] sm:$0xff] (!%p351_p3)  }
   0xb   : > { %v1254_v38 = vld [vmem:[%s1706_s6] ss:$0 sm:$0xff] (!%p351_p3) }
   0xc   : > { %1313 = vmatpush3.bf16.msra.mxu1 (!%p351_p3), %v1416_v3 }
   0xd   : > { %1305 = vmatpush3.bf16.msra.mxu0 (!%p351_p3), %v1417_v4  ;;  %1326 = vmatprep.subr.bf16.mxu1 (!%p351_p3), %v1464_v1 }
   0xe   : > { %s1717_s17 = smov (!%p391_p4, %s1454_s17), 1  ;;  %1318 = vmatprep.subr.bf16.mxu0 %v1464_v1 }
   0xf   : > { %s1244_s29 = sshll.u32 %s1717_s17, 3 }
  0x10   : > { %s394_s13 = scalar_lea.vmem %s1700_s0, %s1244_s29  ;;  %s401_s14 = scalar_lea.vmem %s1711_s11, %s1244_s29 }
  0x11   : > { %v1579_v5 = vld [vmem:[%s394_s13] sm:$0xff] }
  0x12   : > { %v430_v6 = vpack.c.bf16 %v1579_v5, %v1579_v5 }
  0x14   : > { %1315 = vmatmul.mubr.msk.bf16.vlgmr.msra.gmra.mrb[0].mxu1 %vm449_vm1, %v430_v6  ;;  %1307 = vmatmul.mubr.msk.bf16.vlgmr.msra.gmra.mrb[0].mxu0 %vm449_vm1, %v430_v6 }
  0x15   : > { %1328 = vmatprep.mubr.msk.bf16.mxu1 %vm1465_vm0, %v1464_v1  ;;  %1322 = vmatprep.mubr.msk.bf16.mxu0 %vm1465_vm0, %v1464_v1 }
  0x16   : > { %1319 = vmatpush3.bf16.msra.mxu0 %v1418_v22 }
  0x17   : > { %1320 = vmatprep.subr.bf16.mxu0 %v1464_v1 }
  0x1a   : > { %1321 = vmatpush3.bf16.msra.mxu0 %v1419_v23 }
  0x1b   : > { %1332 = vmatprep.subr.bf16.mxu0 %v1464_v1 }
  0x1d   : > { %1323 = vmatmul.mubr.msk.bf16.vlgmr.msra.gmra.mrb[4].mxu0 %vm449_vm1, %v430_v6 }
  0x1e   : > { %1334 = vmatprep.mubr.msk.bf16.mxu0 %vm1465_vm0, %v1464_v1 }
  0xe7   : > { %v548_v9 = vpop.f32.mrb[0].mxu1  ;;  %v487_v10 = vpop.f32.mrb[0].mxu0 }
  0xe8   : > { %v549_v11 = vadd.f32 %v1250_v7, %v548_v9  ;;  %v1316_v12 = vpop.f32.mrb[1].mxu1  ;;  %v488_v13 = vadd.f32 %v1246_v8, %v487_v10  ;;  %v1308_v14 = vpop.f32.mrb[1].mxu0 }
  0xe9   : > { %v551_v15 = vpop.f32.mrb[2].mxu1  ;;  %v490_v16 = vpop.f32.mrb[2].mxu0 }
  0xea   : > { %v613_v17 = vpack.c.bf16 %v549_v11, %v549_v11  ;;  %v1317_v18 = vpop.f32.mrb[3].mxu1  ;;  %v1309_v19 = vpop.f32.mrb[3].mxu0  ;;  %v612_v20 = vpack.c.bf16 %v488_v13, %v488_v13 }
  0xec   : > { %838 = vrot.lane.b32.xlu1 %v613_v17, %s1466_s22  ;;  %726 = vrot.lane.b32.xlu0 %v613_v17, %s1467_s23  ;;  %v620_v21 = vsel %vm615_vm2, %v613_v17, 0 }
  0xed   : > { %1327 = vmatpush3.bf16.xpose.msra.mxu1 %v620_v21 }
  0xee   : > { %1338 = vmatprep.subr.bf16.mxu1 %v1464_v1 }
  0xf0   : > { %836 = vrot.lane.b32.xlu1 %v612_v20, %s1466_s22  ;;  %723 = vrot.lane.b32.xlu0 %v612_v20, %s1467_s23  ;;  %v606_v39 = vpop.f32.mrb[4].mxu0 }
  0xf1   : > { %v607_v40 = vadd.f32 %v1254_v38, %v606_v39  ;;  %v1324_v41 = vpop.f32.mrb[5].mxu0 }
  0xf2   : > { %v609_v42 = vpop.f32.mrb[6].mxu0 }
  0xf3   : > { %v614_v43 = vpack.c.bf16 %v607_v40, %v607_v40  ;;  %v1325_v44 = vpop.f32.mrb[7].mxu0 }
  0xf4   : > { %947 = vrot.lane.b32.xlu1 %v612_v20, %s1468_s24  ;;  %949 = vrot.lane.b32.xlu0 %v613_v17, %s1468_s24 }
  0xf5   : > { %1329 = vmatmul.mubr.msk.bf16.vlgmr.msra.gmra.mrb[4].mxu1 %vm615_vm2, %v612_v20  ;;  %v679_v45 = vsel %vm677_vm3, %v614_v43, 0 }
  0xf6   : > { %1340 = vmatprep.mubr.msk.bf16.mxu1 %vm1465_vm0, %v1464_v1  ;;  %1333 = vmatpush3.bf16.msra.mxu0 %v679_v45  ;;  %v1420_v45 = vld [vmem:[%s1707_s7] sm:$0xff]  }
  0xf7   : > { %1344 = vmatprep.subr.bf16.mxu0 %v1464_v1 }
 0x15e   : > { %v727_v24 = vpop.permute.xlu0 %726  ;;  %v839_v26 = vpop.permute.xlu1 %838 }
 0x15f   : > { %v732_v25 = vsel %vm615_vm2, %v727_v24, 0  ;;  %v844_v28 = vsel %vm615_vm2, %v839_v26, 0 }
 0x160   : > { %1339 = vmatpush3.bf16.xpose.msra.mxu1 %v732_v25 }
 0x161   : > { %1350 = vmatprep.subr.bf16.mxu1 %v1464_v1 }
 0x162   : > { %v724_v27 = vpop.permute.xlu0 %723  ;;  %v837_v30 = vpop.permute.xlu1 %836 }
 0x166   : > { %v950_v29 = vpop.permute.xlu0 %949  ;;  %v948_v32 = vpop.permute.xlu1 %947 }
 0x167   : > { %1341 = vmatmul.mubr.msk.bf16.vlgmr.msra.gmra.mrb[8].mxu1 %vm615_vm2, %v724_v27  ;;  %v955_v31 = vsel %vm615_vm2, %v950_v29, 0 }
 0x168   : > { %1351 = vmatpush3.bf16.xpose.msra.mxu1 %v844_v28  ;;  %1352 = vmatprep.mubr.msk.bf16.mxu1 %vm1465_vm0, %v1464_v1 }
 0x169   : > { %1362 = vmatprep.subr.bf16.mxu1 %v1464_v1 }
 0x16f   : > { %1353 = vmatmul.mubr.msk.bf16.vlgmr.msra.gmra.mrb[12].mxu1 %vm615_vm2, %v837_v30 }
 0x170   : > { %1363 = vmatpush3.bf16.xpose.msra.mxu1 %v955_v31  ;;  %1364 = vmatprep.mubr.msk.bf16.mxu1 %vm1465_vm0, %v1464_v1 }
 0x171   : > { %1374 = vmatprep.subr.bf16.mxu1 %v1464_v1 }
 0x177   : > { %1365 = vmatmul.mubr.msk.bf16.vlgmr.msra.gmra.mrb[16].mxu1 %vm615_vm2, %v948_v32 }
 0x178   : > { %1378 = vmatprep.mubr.msk.bf16.mxu1 %vm1465_vm0, %v1464_v1  ;;  %1375 = vmatpush3.bf16.msra.mxu1 %v1420_v45 }
 0x179   : > { %1376 = vmatprep.subr.bf16.mxu1 %v1464_v1 }
 0x1c8   : > { %v656_v33 = vpop.f32.mrb[4].mxu1 }
 0x1c9   : > { %v1330_v34 = vpop.f32.mrb[5].mxu1  ;;  %v662_v35 = vsel %vm615_vm2, %v656_v33, -inf }
 0x1ca   : > { %663 = vmax.xlane.f32.xlu0 %v662_v35  ;;  %v659_v36 = vpop.f32.mrb[6].mxu1 }
 0x1cb   : > { %v1331_v37 = vpop.f32.mrb[7].mxu1 }
 0x23a   : > { %v768_v46 = vpop.f32.mrb[8].mxu1 }
 0x23b   : > { %v1342_v47 = vpop.f32.mrb[9].mxu1  ;;  %v774_v48 = vsel %vm615_vm2, %v768_v46, -inf }
 0x23c   : > { %775 = vmax.xlane.f32.xlu1 %v774_v48  ;;  %v771_v49 = vpop.f32.mrb[10].mxu1 }
 0x23d   : > { %v1343_v50 = vpop.f32.mrb[11].mxu1  ;;  %v1421_v49 = vld [vmem:[%s1707_s7 + $0x8] sm:$0xff]  }
 0x23e   : > { %1377 = vmatpush3.bf16.msra.mxu1 %v1421_v49 }
 0x242   : > { %v880_v51 = vpop.f32.mrb[12].mxu1 }
 0x243   : > { %v1354_v52 = vpop.f32.mrb[13].mxu1  ;;  %v886_v53 = vsel %vm615_vm2, %v880_v51, -inf }
 0x244   : > { %887 = vmax.xlane.f32.xlu0 %v886_v53  ;;  %v883_v54 = vpop.f32.mrb[14].mxu1 }
 0x245   : > { %v1355_v55 = vpop.f32.mrb[15].mxu1 }
 0x24a   : > { %v991_v56 = vpop.f32.mrb[16].mxu1 }
 0x24b   : > { %v1366_v57 = vpop.f32.mrb[17].mxu1  ;;  %v997_v58 = vsel %vm615_vm2, %v991_v56, -inf }
 0x24c   : > { %998 = vmax.xlane.f32.xlu0 %v997_v58  ;;  %v994_v59 = vpop.f32.mrb[18].mxu1 }
 0x24d   : > { %v1367_v60 = vpop.f32.mrb[19].mxu1 }
 0x257   : > { %v664_v61 = vpop.xlane.xlu0 %663 }
 0x258   : > { %v665_v62 = vsub.f32 %v656_v33, %v664_v61 }
 0x25a   : > { %v666_v63 = vmul.f32 1.442695, %v665_v62 }
 0x25c   : > { %1422 = vpow2.f32 %v666_v63 }
 0x266   : > { %v1423_v0 = vpop.eup %1422 }
 0x267   : > { %v668_v2 = vsel %vm615_vm2, %v1423_v0, 0.0 }
 0x268   : > { %669 = vadd.xlane.f32.xlu1 %v668_v2 }
 0x279   : > { %787 = vrot.lane.b32.xlu1 %v614_v43, %s1467_s23  ;;  %s1471_s23 = smov 24  }
 0x2c9   : > { %v776_v3 = vpop.xlane.xlu1 %775 }
 0x2ca   : > { %v777_v4 = vsub.f32 %v768_v46, %v776_v3 }
 0x2cc   : > { %v778_v6 = vmul.f32 1.442695, %v777_v4 }
 0x2ce   : > { %1424 = vpow2.f32 %v778_v6  ;;  %v1266_v6 = vld [vmem:[%s1708_s8] ss:$0 sm:$0xff] }
 0x2d1   : > { %v888_v7 = vpop.xlane.xlu0 %887 }
 0x2d2   : > { %v889_v8 = vsub.f32 %v880_v51, %v888_v7 }
 0x2d4   : > { %v890_v9 = vmul.f32 1.442695, %v889_v8 }
 0x2d6   : > { %1426 = vpow2.f32 %v890_v9 }
 0x2d8   : > { %v1425_v10 = vpop.eup %1424 }
 0x2d9   : > { %v999_v11 = vpop.xlane.xlu0 %998  ;;  %v780_v12 = vsel %vm615_vm2, %v1425_v10, 0.0 }
 0x2da   : > { %v1000_v13 = vsub.f32 %v991_v56, %v999_v11  ;;  %781 = vadd.xlane.f32.xlu0 %v780_v12 }
 0x2dc   : > { %v1001_v14 = vmul.f32 1.442695, %v1000_v13 }
 0x2de   : > { %1428 = vpow2.f32 %v1001_v14 }
 0x2e0   : > { %v1427_v15 = vpop.eup %1426 }
 0x2e1   : > { %v892_v16 = vsel %vm615_vm2, %v1427_v15, 0.0 }
 0x2e2   : > { %893 = vadd.xlane.f32.xlu1 %v892_v16 }
 0x2e8   : > { %v1429_v17 = vpop.eup %1428 }
 0x2e9   : > { %v1003_v18 = vsel %vm615_vm2, %v1429_v17, 0.0 }
 0x2ea   : > { %1004 = vadd.xlane.f32.xlu0 %v1003_v18 }
 0x2f3   : > { %1009 = vrot.lane.b32.xlu1 %v614_v43, %s1468_s24 }
 0x2f5   : > { %v670_v19 = vpop.xlane.xlu1 %669 }
 0x2f6   : > { %1430 = vrcp.f32 %v670_v19 }
 0x2f9   : > { %v788_v21 = vpop.permute.xlu1 %787 }
 0x2fa   : > { %v793_v24 = vsel %vm677_vm3, %v788_v21, 0 }
 0x300   : > { %v1431_v20 = vpop.eup %1430  ;;  %898 = vrot.lane.b32.xlu0 %v614_v43, %s1466_s22  ;;  %s1470_s22 = smov 16  }
 0x301   : > { %v672_v22 = vmul.f32 %v1431_v20, %v1423_v0 }
 0x303   : > { %v673_v23 = vpack.c.bf16 %v672_v22, %v672_v22 }
 0x305   : > { %1335 = vmatmul.mubr.msk.bf16.vlgmr.msra.gmra.mrb[8].mxu0 %vm615_vm2, %v673_v23 }
 0x306   : > { %1345 = vmatpush3.bf16.msra.mxu0 %v793_v24  ;;  %1346 = vmatprep.mubr.msk.bf16.mxu0 %vm1465_vm0, %v1464_v1  ;;  %v1271_v24 = vld [vmem:[%s1710_s10] ss:$0 sm:$0xff] }
 0x307   : > { %1356 = vmatprep.subr.bf16.mxu0 %v1464_v1 }
 0x367   : > { %v782_v25 = vpop.xlane.xlu0 %781 }
 0x368   : > { %1432 = vrcp.f32 %v782_v25 }
 0x36f   : > { %v894_v26 = vpop.xlane.xlu1 %893 }
 0x370   : > { %1434 = vrcp.f32 %v894_v26 }
 0x372   : > { %v1433_v27 = vpop.eup %1432 }
 0x373   : > { %v784_v28 = vmul.f32 %v1433_v27, %v1425_v10  ;;  %v1010_v35 = vpop.permute.xlu1 %1009 }
 0x374   : > { %v1015_v37 = vsel %vm677_vm3, %v1010_v35, 0 }
 0x375   : > { %v785_v29 = vpack.c.bf16 %v784_v28, %v784_v28 }
 0x377   : > { %v1005_v30 = vpop.xlane.xlu0 %1004  ;;  %1347 = vmatmul.mubr.msk.bf16.vlgmr.msra.gmra.mrb[12].mxu0 %vm615_vm2, %v785_v29 }
 0x378   : > { %1436 = vrcp.f32 %v1005_v30  ;;  %1358 = vmatprep.mubr.msk.bf16.mxu0 %vm1465_vm0, %v1464_v1 }
 0x37a   : > { %v1435_v31 = vpop.eup %1434 }
 0x37b   : > { %v896_v32 = vmul.f32 %v1435_v31, %v1427_v15  ;;  %v899_v33 = vpop.permute.xlu0 %898 }
 0x37c   : > { %v904_v34 = vsel %vm677_vm3, %v899_v33, 0 }
 0x37d   : > { %1357 = vmatpush3.bf16.msra.mxu0 %v904_v34  ;;  %v897_v36 = vpack.c.bf16 %v896_v32, %v896_v32 }
 0x37e   : > { %1368 = vmatprep.subr.bf16.mxu0 %v1464_v1 }
 0x380   : > { %1359 = vmatmul.mubr.msk.bf16.vlgmr.msra.gmra.mrb[16].mxu0 %vm615_vm2, %v897_v36 }
 0x381   : > { %1369 = vmatpush3.bf16.msra.mxu0 %v1015_v37  ;;  %1370 = vmatprep.mubr.msk.bf16.mxu0 %vm1465_vm0, %v1464_v1 }
 0x382   : > { %v1437_v38 = vpop.eup %1436 }
 0x383   : > { %v1007_v39 = vmul.f32 %v1437_v38, %v1429_v17 }
 0x385   : > { %v1008_v40 = vpack.c.bf16 %v1007_v39, %v1007_v39 }
 0x388   : > { %1371 = vmatmul.mubr.msk.bf16.vlgmr.msra.gmra.mrb[20].mxu0 %vm615_vm2, %v1008_v40 }
 0x3d8   : > { %v715_v41 = vpop.f32.mrb[8].mxu0 }
 0x3d9   : > { %v1336_v42 = vpop.f32.mrb[9].mxu0  ;;  %v721_v1 = vpack.c.bf16 %v715_v41, %v715_v41 }
 0x3da   : > { %v718_v43 = vpop.f32.mrb[10].mxu0 }
 0x3db   : > { %v1337_v44 = vpop.f32.mrb[11].mxu0 }
 0x44a   : > { %v829_v46 = vpop.f32.mrb[12].mxu0 }
 0x44b   : > { %v835_v47 = vpack.c.bf16 %v829_v46, %v829_v46  ;;  %v1348_v48 = vpop.f32.mrb[13].mxu0 }
 0x44c   : > { %v832_v50 = vpop.f32.mrb[14].mxu0 }
 0x44d   : > { %1059 = vrot.lane.b32.xlu1 %v835_v47, %s1469_s21  ;;  %v1349_v51 = vpop.f32.mrb[15].mxu0 }
 0x453   : > { %v940_v52 = vpop.f32.mrb[16].mxu0 }
 0x454   : > { %v946_v53 = vpack.c.bf16 %v940_v52, %v940_v52  ;;  %v1360_v54 = vpop.f32.mrb[17].mxu0 }
 0x455   : > { %v943_v55 = vpop.f32.mrb[18].mxu0 }
 0x456   : > { %1062 = vrot.lane.b32.xlu0 %v946_v53, %s1470_s22  ;;  %v1361_v56 = vpop.f32.mrb[19].mxu0 }
 0x45b   : > { %v1051_v57 = vpop.f32.mrb[20].mxu0 }
 0x45c   : > { %v1057_v58 = vpack.c.bf16 %v1051_v57, %v1051_v57  ;;  %v1372_v59 = vpop.f32.mrb[21].mxu0 }
 0x45d   : > { %v1054_v60 = vpop.f32.mrb[22].mxu0 }
 0x45e   : > { %1065 = vrot.lane.b32.xlu1 %v1057_v58, %s1471_s23  ;;  %v1373_v61 = vpop.f32.mrb[23].mxu0 }
 0x4bf   : > { %v1060_v62 = vpop.permute.xlu1 %1059 }
 0x4c0   : > { %v1069_v0 = vsel %vm615_vm2, %v721_v1, %v1060_v62 }
 0x4c8   : > { %v1063_v63 = vpop.permute.xlu0 %1062 }
 0x4c9   : > { %v1072_v2 = vsel %vm1070_vm4, %v1069_v0, %v1063_v63 }
 0x4d0   : > { %v1066_v3 = vpop.permute.xlu1 %1065 }
 0x4d1   : > { %v1075_v4 = vsel %vm1073_vm5, %v1072_v2, %v1066_v3 }
 0x4d2   : > { %1379 = vmatmul.mubr.msk.bf16.vlgmr.msra.gmra.mrb[20].mxu1 %vm449_vm1, %v1075_v4 }
 0x5a5   : > { %v1130_v7 = vpop.f32.mrb[20].mxu1 }
 0x5a6   : > { %v1131_v8 = vadd.f32 %v1266_v6, %v1130_v7  ;;  %v1380_v9 = vpop.f32.mrb[21].mxu1 }
 0x5a7   : > { %v1133_v10 = vpop.f32.mrb[22].mxu1 }
 0x5a8   : > { %v1381_v11 = vpop.f32.mrb[23].mxu1  ;;  %v1136_v12 = vadd.f32 %v1131_v8, %v1579_v5  ;;  %v1270_v5 = vld [vmem:[%s1709_s9] ss:$0 sm:$0xff] }
 0x5aa   : > { %v1137_v13 = vsel %vm449_vm1, %v1136_v12, 0.0 }
 0x5ab   : > { %1138 = vadd.xlane.f32.xlu0 %v1137_v13 }
 0x638   : > { %v1139_v14 = vpop.xlane.xlu0 %1138 }
 0x639   : > { %v1141_v15 = vmul.f32 0.03125, %v1139_v14 }
 0x63b   : > { %v1142_v16 = vsub.f32 %v1136_v12, %v1141_v15 }
 0x63d   : > { %v1143_v17 = vmul.f32 %v1142_v16, %v1142_v16 }
 0x63f   : > { %v1144_v18 = vsel %vm449_vm1, %v1143_v17, 0.0 }
 0x640   : > { %1145 = vadd.xlane.f32.xlu1 %v1144_v18 }
 0x6cd   : > { %v1146_v19 = vpop.xlane.xlu1 %1145 }
 0x6ce   : > { %v1147_v20 = vmul.f32 0.03125, %v1146_v19 }
 0x6d0   : > { %v1148_v21 = vadd.f32 1e-05, %v1147_v20 }
 0x6d2   : > { %1438 = vrsqrt.f32 %v1148_v21 }
 0x6dc   : > { %v1439_v22 = vpop.eup %1438 }
 0x6dd   : > { %v1150_v23 = vmul.f32 %v1439_v22, %v1142_v16 }
 0x6df   : > { %v1157_v25 = vmul.f32 %v1270_v5, %v1150_v23 }
 0x6e1   : > { %v1164_v26 = vadd.f32 %v1271_v24, %v1157_v25 }
 0x6e3   : > { %1165 = vst.msk [vmem:[%s401_s14] sm:$0xff] %vm449_vm1, %v1164_v26 }
 0x6e4 PF: > { %s21_s19 = sadd.s32 1, %s1462_s19   ;;  %s1712_s17 = smov %s1458_s18 }
 0x6e5   : > { %p18_p5 = scmp.ge.s32.totalorder %s21_s19, 4   ;;  %s1713_s18 = smov %s1715_s20 }
 0x6e7   :  { %20 = sbr.rel (!%p18_p5) target bundleno = 2 (0x2), region = 95 }

// kernel: transformer_decoder_fwd.13
= control target key start
LH: loop header
LB: loop body
LE: loop exit
PB: predicated region body
PF: predicated region fallthrough
CT: control target
= control target key end

     0   :  { %v151_v1 = vmov 0.0   ;;  %vm152_vm0 = vmmov 0   ;;  %s203_s0 = inlined_call_operand.vmem [shape: f32[16,32], index: 0, kind: input, shape index: {}]   ;;  %s204_s1 = inlined_call_operand.vmem [shape: bf16[32,32], index: 1, kind: input, shape index: {}]   ;;  %s205_s2 = inlined_call_operand.vmem [shape: f32[1,32], index: 2, kind: input, shape index: {}]   ;;  %s206_s3 = inlined_call_operand.hbm [shape: f32[16,32], index: 3, kind: output, shape index: {}]  }
   0x1   :  { %v125_v0 = vld [vmem:[%s204_s1] sm:$0xff]   ;;  %112 = vmatprep.subr.bf16.mxu0 %v151_v1  ;;  %v126_v2 = vld [vmem:[%s204_s1 + $0x8] sm:$0xff]   ;;  %116 = vmatprep.mubr.msk.bf16.mxu0 %vm152_vm0, %v151_v1 }
   0x2   :  { %113 = vmatpush3.bf16.msra.mxu0 %v125_v0  ;;  %v16_v3 = vld [vmem:[%s203_s0] sm:$0xff]  ;;  %v17_v4 = vld [vmem:[%s203_s0 + $0x8] sm:$0xff] }
   0x3   :  { %114 = vmatprep.subr.bf16.mxu0 %v151_v1 }
   0x4   :  { %8 = vsyncpa [#allocation3], 0  ;;  %v18_v5 = vpack.c.bf16 %v17_v4, %v16_v3  ;;  %vm42_vm1 = vcmask 261120   ;;  %v105_v6 = vld [vmem:[%s205_s2] ss:$0 sm:$0xff]  ;;  %s153_s1 = smov [#allocation2]  }
   0x5   :  { %s94_s22 = sshll.u32 %s153_s1, 4  ;;  %s95_s22 = int_to_ptr.vmem [resolvable:$true] %s94_s22 }
   0x6   :  { %115 = vmatpush3.bf16.msra.mxu0 %v126_v2  ;;  %s127_s0 = scalar_lea.vmem %s95_s22, 256  ;;  %p132_p1 = scmp.lt.s32.totalorder %s95_s22, %s95_s22 }
   0x7   :  { %p128_p0 = scmp.ne.s32.totalorder %s95_s22, %s127_s0  ;;  %p133_p2 = scmp.lt.s32.totalorder %s127_s0, %s127_s0 }
   0x9   :  { %117 = vmatmul.mubr.msk.bf16.vlgmr.msra.gmra.mrb[0].mxu0 %vm42_vm1, %v18_v5  ;;  %p134_p3 = por %p133_p2, %p132_p1 }
   0xb   :  { %p135_p4 = pnand %p134_p3, %p128_p0 }
  0xdc   :  { %v80_v7 = vpop.f32.mrb[0].mxu0 }
  0xdd   :  { %v81_v8 = vadd.f32 %v105_v6, %v80_v7  ;;  %v118_v9 = vpop.f32.mrb[1].mxu0 }
  0xde   :  { %v83_v10 = vpop.f32.mrb[2].mxu0 }
  0xdf   :  { %87 = vst.msk [vmem:[#allocation2] sm:$0xff] %vm42_vm1, %v81_v8  ;;  %v84_v11 = vadd.f32 %v105_v6, %v83_v10  ;;  %v119_v12 = vpop.f32.mrb[3].mxu0 }
  0xe1   :  { %88 = vst.msk [vmem:[#allocation2 + $0x8] sm:$0xff] %vm42_vm1, %v84_v11 }
  0xe2   :  { %138 = shalt.err (!%p135_p4)
}
  0xe3   :  { %s139_s24 = scalar_lea.hbm %s206_s3, 256 }
  0xe4   :  { %p140_p5 = scmp.ne.s32.totalorder %s206_s3, %s139_s24  ;;  %p143_p6 = scmp.lt.u32.totalorder %s139_s24, %s206_s3 }
  0xe6   :  { %p145_p7 = pnand %p143_p6, %p140_p5 }
  0xe8   :  { %148 = shalt.err (!%p145_p7)
}
  0xe9   :  { %s154_s29 = smov 128   ;;  %s155_s30 = smov 8  }
  0xea   :  { %100 = dma.vmem_to_hbm [thread:$0]  %s95_s22, 256, %s206_s3, [#allocation3], %s154_s29, %s154_s29, %s155_s30  }
  0xeb   :  { %149 = dma.done.wait [#allocation3], 256  }
  0xec   :  { %150 = vsyncadd [#allocation3], 4294967040 }
  0xed   :  { %104 = vsyncpa [#allocation3], 1 }

// kernel: transformer_decoder_fwd.9
= control target key start
LH: loop header
LB: loop body
LE: loop exit
PB: predicated region body
PF: predicated region fallthrough
CT: control target
= control target key end

     0   :  { %v290_v0 = vmov 0.0   ;;  %vm291_vm0 = vmmov 0   ;;  %vm53_vm1 = vcmask 261120   ;;  %vm140_vm2 = vcmask 523264   ;;  %s381_s1 = inlined_call_operand.vmem [shape: bf16[32,64], index: 1, kind: input, shape index: {}]   ;;  %s382_s0 = inlined_call_operand.vmem [shape: f32[16,32], index: 0, kind: input, shape index: {}]   ;;  %s383_s3 = inlined_call_operand.vmem [shape: bf16[64,32], index: 3, kind: input, shape index: {}]   ;;  %s384_s2 = inlined_call_operand.vmem [shape: f32[1,64], index: 2, kind: input, shape index: {}]   ;;  %s385_s4 = inlined_call_operand.vmem [shape: f32[1,32], index: 4, kind: input, shape index: {}]   ;;  %s386_s5 = inlined_call_operand.vmem [shape: f32[1,32], index: 5, kind: input, shape index: {}]   ;;  %s387_s6 = inlined_call_operand.vmem [shape: f32[1,32], index: 6, kind: input, shape index: {}]   ;;  %s388_s7 = inlined_call_operand.vmem [shape: f32[16,32], index: 7, kind: output, shape index: {}]  }
   0x1   :  { %258 = vmatprep.subr.bf16.mxu0 %v290_v0  ;;  %v280_v1 = vld [vmem:[%s381_s1] sm:$0xff]   ;;  %262 = vmatprep.mubr.msk.bf16.mxu0 %vm291_vm0, %v290_v0  ;;  %v281_v2 = vld [vmem:[%s381_s1 + $0x8] sm:$0xff]   ;;  %v284_v8 = vld [vmem:[%s383_s3 + $0x10] sm:$0xff]  }
   0x2   :  { %266 = vmatprep.subr.bf16.mxu1 %v290_v0  ;;  %274 = vmatprep.mubr.msk.bf16.mxu1 %vm291_vm0, %v290_v0  ;;  %v27_v3 = vld [vmem:[%s382_s0] sm:$0xff]  ;;  %v28_v4 = vld [vmem:[%s382_s0 + $0x8] sm:$0xff]  ;;  %v285_v9 = vld [vmem:[%s383_s3 + $0x18] sm:$0xff]  }
   0x3   :  { %259 = vmatpush3.bf16.msra.mxu0 %v280_v1  ;;  %v282_v5 = vld [vmem:[%s383_s3] sm:$0xff]   ;;  %v283_v6 = vld [vmem:[%s383_s3 + $0x8] sm:$0xff]   ;;  %v29_v7 = vpack.c.bf16 %v28_v4, %v27_v3 }
   0x4   :  { %260 = vmatprep.subr.bf16.mxu0 %v290_v0  ;;  %267 = vmatpush3.bf16.msra.mxu1 %v282_v5  ;;  %v238_v10 = vld [vmem:[%s384_s2] ss:$0 sm:$0xff] }
   0x5   :  { %268 = vmatprep.subr.bf16.mxu1 %v290_v0  ;;  %v242_v20 = vld [vmem:[%s385_s4] ss:$0 sm:$0xff] }
   0x6   :  { %v248_v48 = vld [vmem:[%s386_s5] ss:$0 sm:$0xff] }
   0x7   :  { %261 = vmatpush3.bf16.msra.mxu0 %v281_v2  ;;  %v249_v50 = vld [vmem:[%s387_s6] ss:$0 sm:$0xff] }
   0x8   :  { %269 = vmatpush3.bf16.msra.mxu1 %v283_v6 }
   0x9   :  { %270 = vmatprep.subr.bf16.mxu1 %v290_v0 }
   0xa   :  { %263 = vmatmul.mubr.msk.bf16.vlgmr.msra.gmra.mrb[0].mxu0 %vm53_vm1, %v29_v7 }
   0xc   :  { %271 = vmatpush3.bf16.msra.mxu1 %v284_v8 }
   0xd   :  { %272 = vmatprep.subr.bf16.mxu1 %v290_v0 }
  0x10   :  { %273 = vmatpush3.bf16.msra.mxu1 %v285_v9 }
  0xdd   :  { %v91_v11 = vpop.f32.mrb[0].mxu0 }
  0xde   :  { %v92_v12 = vadd.f32 %v238_v10, %v91_v11  ;;  %v264_v13 = vpop.f32.mrb[1].mxu0 }
  0xdf   :  { %v94_v14 = vpop.f32.mrb[2].mxu0 }
  0xe0   :  { %v95_v15 = vadd.f32 %v238_v10, %v94_v14  ;;  %v265_v16 = vpop.f32.mrb[3].mxu0  ;;  %v98_v17 = vmax.f32 %v92_v12, 0.0 }
  0xe2   :  { %v99_v18 = vmax.f32 %v95_v15, 0.0 }
  0xe4   :  { %v100_v19 = vpack.c.bf16 %v99_v18, %v98_v17 }
  0xe6   :  { %275 = vmatmul.mubr.msk.bf16.vlgmr.msra.gmra.mrb[0].mxu1 %vm140_vm2, %v100_v19 }
 0x1b9   :  { %v178_v21 = vpop.f32.mrb[0].mxu1 }
 0x1ba   :  { %v179_v22 = vadd.f32 %v242_v20, %v178_v21  ;;  %v276_v23 = vpop.f32.mrb[1].mxu1 }
 0x1bb   :  { %v181_v24 = vpop.f32.mrb[2].mxu1 }
 0x1bc   :  { %v182_v25 = vadd.f32 %v242_v20, %v181_v24  ;;  %v277_v26 = vpop.f32.mrb[3].mxu1  ;;  %v185_v27 = vadd.f32 %v179_v22, %v27_v3 }
 0x1be   :  { %v187_v28 = vsel %vm53_vm1, %v185_v27, 0.0  ;;  %v186_v29 = vadd.f32 %v182_v25, %v28_v4 }
 0x1bf   :  { %188 = vadd.xlane.f32.xlu0 %v187_v28 }
 0x1c0   :  { %v190_v30 = vsel %vm53_vm1, %v186_v29, 0.0 }
 0x1c3   :  { %191 = vadd.xlane.f32.xlu0 %v190_v30 }
 0x24c   :  { %v189_v31 = vpop.xlane.xlu0 %188 }
 0x24d   :  { %v194_v32 = vmul.f32 0.03125, %v189_v31 }
 0x24f   :  { %v196_v33 = vsub.f32 %v185_v27, %v194_v32 }
 0x250   :  { %v192_v34 = vpop.xlane.xlu0 %191 }
 0x251   :  { %v195_v35 = vmul.f32 0.03125, %v192_v34  ;;  %v198_v36 = vmul.f32 %v196_v33, %v196_v33 }
 0x253   :  { %v197_v37 = vsub.f32 %v186_v29, %v195_v35  ;;  %v200_v38 = vsel %vm53_vm1, %v198_v36, 0.0 }
 0x254   :  { %201 = vadd.xlane.f32.xlu1 %v200_v38 }
 0x255   :  { %v199_v39 = vmul.f32 %v197_v37, %v197_v37 }
 0x257   :  { %v203_v40 = vsel %vm53_vm1, %v199_v39, 0.0 }
 0x258   :  { %204 = vadd.xlane.f32.xlu1 %v203_v40 }
 0x2e1   :  { %v202_v41 = vpop.xlane.xlu1 %201 }
 0x2e2   :  { %v206_v42 = vmul.f32 0.03125, %v202_v41 }
 0x2e4   :  { %v208_v43 = vadd.f32 1e-05, %v206_v42 }
 0x2e5   :  { %v205_v44 = vpop.xlane.xlu1 %204 }
 0x2e6   :  { %286 = vrsqrt.f32 %v208_v43  ;;  %v207_v45 = vmul.f32 0.03125, %v205_v44 }
 0x2e8   :  { %v209_v46 = vadd.f32 1e-05, %v207_v45 }
 0x2ea   :  { %288 = vrsqrt.f32 %v209_v46 }
 0x2f0   :  { %v287_v47 = vpop.eup %286 }
 0x2f1   :  { %v212_v49 = vmul.f32 %v287_v47, %v196_v33 }
 0x2f3   :  { %v221_v51 = vmul.f32 %v248_v48, %v212_v49 }
 0x2f4   :  { %v289_v52 = vpop.eup %288 }
 0x2f5   :  { %v230_v53 = vadd.f32 %v249_v50, %v221_v51  ;;  %v213_v54 = vmul.f32 %v289_v52, %v197_v37 }
 0x2f7   :  { %232 = vst.msk [vmem:[%s388_s7] sm:$0xff] %vm53_vm1, %v230_v53  ;;  %v222_v55 = vmul.f32 %v248_v48, %v213_v54 }
 0x2f9   :  { %v231_v56 = vadd.f32 %v249_v50, %v222_v55 }
 0x2fb   :  { %233 = vst.msk [vmem:[%s388_s7 + $0x8] sm:$0xff] %vm53_vm1, %v231_v56 }

// kernel: transformer_decoder_fwd.8
= control target key start
LH: loop header
LB: loop body
LE: loop exit
PB: predicated region body
PF: predicated region fallthrough
CT: control target
= control target key end

     0   :  { %s1604_s21 = smov 0   ;;  %s1606_s22 = smov 0   ;;  %s1773_s0 = inlined_call_operand.vmem [shape: f32[2,8,32], index: 0, kind: input, shape index: {}]   ;;  %s1774_s1 = inlined_call_operand.vmem [shape: f32[2,8,32], index: 1, kind: input, shape index: {}]   ;;  %s1775_s2 = inlined_call_operand.vmem [shape: bf16[32,32], index: 2, kind: input, shape index: {}]   ;;  %s1776_s3 = inlined_call_operand.vmem [shape: f32[1,32], index: 3, kind: input, shape index: {}]   ;;  %s1777_s4 = inlined_call_operand.vmem [shape: bf16[32,32], index: 4, kind: input, shape index: {}]   ;;  %s1778_s5 = inlined_call_operand.vmem [shape: f32[1,32], index: 5, kind: input, shape index: {}]   ;;  %s1779_s6 = inlined_call_operand.vmem [shape: bf16[32,32], index: 6, kind: input, shape index: {}]   ;;  %s1780_s7 = inlined_call_operand.vmem [shape: f32[1,32], index: 7, kind: input, shape index: {}]   ;;  %s1781_s8 = inlined_call_operand.vmem [shape: bf16[32,32], index: 8, kind: input, shape index: {}]   ;;  %s1782_s9 = inlined_call_operand.vmem [shape: f32[1,32], index: 9, kind: input, shape index: {}]   ;;  %s1783_s10 = inlined_call_operand.vmem [shape: f32[1,32], index: 10, kind: input, shape index: {}]   ;;  %s1784_s11 = inlined_call_operand.vmem [shape: f32[1,32], index: 11, kind: input, shape index: {}]   ;;  %s1785_s12 = inlined_call_operand.vmem [shape: f32[2,8,32], index: 12, kind: output, shape index: {}]  }
   0x1   :  { %s1608_s23 = smov 0  }
   0x2 LB: > { %s34_s24 = sadd.s32 1, %s1525_s22  ;;  %p1309_p0 = scmp.ge.s32.totalorder %s1529_s23, 1  ;;  %s1529_s23 = sphi %s1608_s23, %s22_s23   ;;  %s1525_s22 = sphi %s1606_s22, %s1787_s22   ;;  %s1521_s21 = sphi %s1604_s21, %s1786_s21  }
   0x3   : > { %p36_p1 = scmp.ge.s32.totalorder %s34_s24, 2  ;;  %p389_p2 = scmp.lt.s32.totalorder %s1529_s23, 3 }
   0x5   : > { %s1789_s24 = smov (%p36_p1, %s34_s24), 0  ;;  %p390_p3 = pnand %p1309_p0, %p389_p2 }
   0x6   : > { %v1481_v0 = vld [vmem:[%s1777_s4] sm:$0xff] (!%p390_p3)   ;;  %v1531_v1 = vmov (!%p390_p3), 0.0   ;;  %v1483_v3 = vld [vmem:[%s1777_s4 + $0x8] sm:$0xff] (!%p390_p3)   ;;  %vm1532_vm0 = vmmov (!%p390_p3), 0   ;;  %p439_p4 = scmp.lt.s32.totalorder (!%p390_p3), %s1521_s21, 1  ;;  %vm502_vm1 = vcmask (!%p390_p3), 261120  }
   0x7   : > { %393 = sbr.rel (%p390_p3) target bundleno = 1764 (0x6e4), region = 68  ;;  %1377 = vmatprep.subr.bf16.mxu1 (!%p390_p3), %v1531_v1  ;;  %1369 = vmatprep.subr.bf16.mxu0 (!%p390_p3), %v1531_v1  ;;  %v1482_v2 = vld [vmem:[%s1775_s2] sm:$0xff] (!%p390_p3)   ;;  %v1484_v4 = vld [vmem:[%s1775_s2 + $0x8] sm:$0xff] (!%p390_p3)   ;;  %vm668_vm2 = vcmask (!%p390_p3), 64512   ;;  %s1533_s29 = smov (!%p390_p3), 112   ;;  %vm730_vm3 = vcmask (!%p390_p3), 1043456  }
   0x8   : > { %1378 = vmatpush3.bf16.msra.mxu1 (!%p390_p3), %v1481_v0  ;;  %1381 = vmatprep.mubr.msk.bf16.mxu1 (!%p390_p3), %vm1532_vm0, %v1531_v1  ;;  %v1317_v9 = vld [vmem:[%s1778_s5] ss:$0 sm:$0xff] (!%p390_p3)  ;;  %s1534_s30 = smov (!%p390_p3), 120   ;;  %s1535_s13 = smov (!%p390_p3), 104   ;;  %v1486_v25 = vld [vmem:[%s1779_s6 + $0x8] sm:$0xff] (!%p390_p3)   ;;  %vm1123_vm4 = vcmask (!%p390_p3), 130048  }
   0x9   : > { %1379 = vmatprep.subr.bf16.mxu1 (!%p390_p3), %v1531_v1  ;;  %1370 = vmatpush3.bf16.msra.mxu0 (!%p390_p3), %v1482_v2  ;;  %v1313_v10 = vld [vmem:[%s1776_s3] ss:$0 sm:$0xff] (!%p390_p3)  ;;  %s1536_s28 = smov (!%p390_p3), 8   ;;  %vm1126_vm5 = vcmask (!%p390_p3), 195584  }
   0xa   : > { %1371 = vmatprep.subr.bf16.mxu0 (!%p390_p3), %v1531_v1  ;;  %1373 = vmatprep.mubr.msk.bf16.mxu0 (!%p390_p3), %vm1532_vm0, %v1531_v1  ;;  %v1485_v24 = vld [vmem:[%s1779_s6] sm:$0xff] (!%p390_p3)  }
   0xb   : > { %v1321_v40 = vld [vmem:[%s1780_s7] ss:$0 sm:$0xff] (!%p390_p3) }
   0xc   : > { %1380 = vmatpush3.bf16.msra.mxu1 (!%p390_p3), %v1483_v3 }
   0xd   : > { %1372 = vmatpush3.bf16.msra.mxu0 (!%p390_p3), %v1484_v4  ;;  %1393 = vmatprep.subr.bf16.mxu1 (!%p390_p3), %v1531_v1 }
   0xe   : > { %s1791_s21 = smov (!%p439_p4, %s1521_s21), 1  ;;  %1385 = vmatprep.subr.bf16.mxu0 %v1531_v1 }
   0xf   : > { %s1642_s15 = sshll.u32 %s1791_s21, 3 }
  0x10   : > { %s449_s18 = scalar_lea.vmem %s1774_s1, %s1642_s15  ;;  %s445_s25 = scalar_lea.vmem %s1773_s0, %s1642_s15 }
  0x11   : > { %v459_v5 = vld [vmem:[%s449_s18] sm:$0xff]  ;;  %s456_s21 = scalar_lea.vmem %s1785_s12, %s1642_s15 }
  0x12   : > { %v483_v6 = vpack.c.bf16 %v459_v5, %v459_v5  ;;  %v1654_v7 = vld [vmem:[%s445_s25] sm:$0xff] }
  0x13   : > { %v482_v8 = vpack.c.bf16 %v1654_v7, %v1654_v7 }
  0x14   : > { %1382 = vmatmul.mubr.msk.bf16.vlgmr.msra.gmra.mrb[0].mxu1 %vm502_vm1, %v483_v6 }
  0x15   : > { %1374 = vmatmul.mubr.msk.bf16.vlgmr.msra.gmra.mrb[0].mxu0 %vm502_vm1, %v482_v8  ;;  %1395 = vmatprep.mubr.msk.bf16.mxu1 %vm1532_vm0, %v1531_v1 }
  0x16   : > { %1389 = vmatprep.mubr.msk.bf16.mxu0 %vm1532_vm0, %v1531_v1  ;;  %1386 = vmatpush3.bf16.msra.mxu0 %v1485_v24 }
  0x17   : > { %1387 = vmatprep.subr.bf16.mxu0 %v1531_v1 }
  0x1a   : > { %1388 = vmatpush3.bf16.msra.mxu0 %v1486_v25 }
  0x1b   : > { %1399 = vmatprep.subr.bf16.mxu0 %v1531_v1 }
  0x1d   : > { %1390 = vmatmul.mubr.msk.bf16.vlgmr.msra.gmra.mrb[4].mxu0 %vm502_vm1, %v483_v6 }
  0x1e   : > { %1401 = vmatprep.mubr.msk.bf16.mxu0 %vm1532_vm0, %v1531_v1 }
  0xe7   : > { %v601_v11 = vpop.f32.mrb[0].mxu1 }
  0xe8   : > { %v602_v12 = vadd.f32 %v1317_v9, %v601_v11  ;;  %v1383_v13 = vpop.f32.mrb[1].mxu1  ;;  %v540_v14 = vpop.f32.mrb[0].mxu0 }
  0xe9   : > { %v604_v15 = vpop.f32.mrb[2].mxu1  ;;  %v541_v16 = vadd.f32 %v1313_v10, %v540_v14  ;;  %v1375_v17 = vpop.f32.mrb[1].mxu0 }
  0xea   : > { %v666_v18 = vpack.c.bf16 %v602_v12, %v602_v12  ;;  %v1384_v19 = vpop.f32.mrb[3].mxu1  ;;  %v543_v20 = vpop.f32.mrb[2].mxu0 }
  0xeb   : > { %v1376_v21 = vpop.f32.mrb[3].mxu0  ;;  %v665_v22 = vpack.c.bf16 %v541_v16, %v541_v16 }
  0xec   : > { %891 = vrot.lane.b32.xlu1 %v666_v18, %s1533_s29  ;;  %779 = vrot.lane.b32.xlu0 %v666_v18, %s1534_s30  ;;  %v673_v23 = vsel %vm668_vm2, %v666_v18, 0 }
  0xed   : > { %1394 = vmatpush3.bf16.xpose.msra.mxu1 %v673_v23 }
  0xee   : > { %1405 = vmatprep.subr.bf16.mxu1 %v1531_v1 }
  0xf0   : > { %889 = vrot.lane.b32.xlu1 %v665_v22, %s1533_s29  ;;  %776 = vrot.lane.b32.xlu0 %v665_v22, %s1534_s30  ;;  %v659_v41 = vpop.f32.mrb[4].mxu0 }
  0xf1   : > { %v660_v42 = vadd.f32 %v1321_v40, %v659_v41  ;;  %v1391_v43 = vpop.f32.mrb[5].mxu0 }
  0xf2   : > { %v662_v44 = vpop.f32.mrb[6].mxu0 }
  0xf3   : > { %v667_v45 = vpack.c.bf16 %v660_v42, %v660_v42  ;;  %v1392_v46 = vpop.f32.mrb[7].mxu0 }
  0xf4   : > { %1000 = vrot.lane.b32.xlu1 %v665_v22, %s1535_s13  ;;  %1002 = vrot.lane.b32.xlu0 %v666_v18, %s1535_s13 }
  0xf5   : > { %1396 = vmatmul.mubr.msk.bf16.vlgmr.msra.gmra.mrb[4].mxu1 %vm668_vm2, %v665_v22  ;;  %v732_v47 = vsel %vm730_vm3, %v667_v45, 0 }
  0xf6   : > { %1407 = vmatprep.mubr.msk.bf16.mxu1 %vm1532_vm0, %v1531_v1  ;;  %1400 = vmatpush3.bf16.msra.mxu0 %v732_v47  ;;  %v1487_v47 = vld [vmem:[%s1781_s8] sm:$0xff]  }
  0xf7   : > { %1411 = vmatprep.subr.bf16.mxu0 %v1531_v1 }
 0x15e   : > { %v780_v26 = vpop.permute.xlu0 %779  ;;  %v892_v28 = vpop.permute.xlu1 %891 }
 0x15f   : > { %v785_v27 = vsel %vm668_vm2, %v780_v26, 0  ;;  %v897_v30 = vsel %vm668_vm2, %v892_v28, 0 }
 0x160   : > { %1406 = vmatpush3.bf16.xpose.msra.mxu1 %v785_v27 }
 0x161   : > { %1417 = vmatprep.subr.bf16.mxu1 %v1531_v1 }
 0x162   : > { %v777_v29 = vpop.permute.xlu0 %776  ;;  %v890_v32 = vpop.permute.xlu1 %889 }
 0x166   : > { %v1003_v31 = vpop.permute.xlu0 %1002  ;;  %v1001_v34 = vpop.permute.xlu1 %1000 }
 0x167   : > { %1408 = vmatmul.mubr.msk.bf16.vlgmr.msra.gmra.mrb[8].mxu1 %vm668_vm2, %v777_v29  ;;  %v1008_v33 = vsel %vm668_vm2, %v1003_v31, 0 }
 0x168   : > { %1418 = vmatpush3.bf16.xpose.msra.mxu1 %v897_v30  ;;  %1419 = vmatprep.mubr.msk.bf16.mxu1 %vm1532_vm0, %v1531_v1 }
 0x169   : > { %1429 = vmatprep.subr.bf16.mxu1 %v1531_v1 }
 0x16f   : > { %1420 = vmatmul.mubr.msk.bf16.vlgmr.msra.gmra.mrb[12].mxu1 %vm668_vm2, %v890_v32 }
 0x170   : > { %1430 = vmatpush3.bf16.xpose.msra.mxu1 %v1008_v33  ;;  %1431 = vmatprep.mubr.msk.bf16.mxu1 %vm1532_vm0, %v1531_v1 }
 0x171   : > { %1441 = vmatprep.subr.bf16.mxu1 %v1531_v1 }
 0x177   : > { %1432 = vmatmul.mubr.msk.bf16.vlgmr.msra.gmra.mrb[16].mxu1 %vm668_vm2, %v1001_v34 }
 0x178   : > { %1445 = vmatprep.mubr.msk.bf16.mxu1 %vm1532_vm0, %v1531_v1  ;;  %1442 = vmatpush3.bf16.msra.mxu1 %v1487_v47 }
 0x179   : > { %1443 = vmatprep.subr.bf16.mxu1 %v1531_v1 }
 0x1c8   : > { %v709_v35 = vpop.f32.mrb[4].mxu1 }
 0x1c9   : > { %v1397_v36 = vpop.f32.mrb[5].mxu1  ;;  %v715_v37 = vsel %vm668_vm2, %v709_v35, -inf }
 0x1ca   : > { %716 = vmax.xlane.f32.xlu0 %v715_v37  ;;  %v712_v38 = vpop.f32.mrb[6].mxu1 }
 0x1cb   : > { %v1398_v39 = vpop.f32.mrb[7].mxu1 }
 0x23a   : > { %v821_v48 = vpop.f32.mrb[8].mxu1 }
 0x23b   : > { %v1409_v49 = vpop.f32.mrb[9].mxu1  ;;  %v827_v50 = vsel %vm668_vm2, %v821_v48, -inf }
 0x23c   : > { %828 = vmax.xlane.f32.xlu1 %v827_v50  ;;  %v824_v51 = vpop.f32.mrb[10].mxu1 }
 0x23d   : > { %v1410_v52 = vpop.f32.mrb[11].mxu1  ;;  %v1488_v51 = vld [vmem:[%s1781_s8 + $0x8] sm:$0xff]  }
 0x23e   : > { %1444 = vmatpush3.bf16.msra.mxu1 %v1488_v51 }
 0x242   : > { %v933_v53 = vpop.f32.mrb[12].mxu1 }
 0x243   : > { %v1421_v54 = vpop.f32.mrb[13].mxu1  ;;  %v939_v55 = vsel %vm668_vm2, %v933_v53, -inf }
 0x244   : > { %940 = vmax.xlane.f32.xlu0 %v939_v55  ;;  %v936_v56 = vpop.f32.mrb[14].mxu1 }
 0x245   : > { %v1422_v57 = vpop.f32.mrb[15].mxu1 }
 0x24a   : > { %v1044_v58 = vpop.f32.mrb[16].mxu1 }
 0x24b   : > { %v1433_v59 = vpop.f32.mrb[17].mxu1  ;;  %v1050_v60 = vsel %vm668_vm2, %v1044_v58, -inf }
 0x24c   : > { %1051 = vmax.xlane.f32.xlu0 %v1050_v60  ;;  %v1047_v61 = vpop.f32.mrb[18].mxu1 }
 0x24d   : > { %v1434_v62 = vpop.f32.mrb[19].mxu1 }
 0x257   : > { %v717_v63 = vpop.xlane.xlu0 %716 }
 0x258   : > { %v718_v0 = vsub.f32 %v709_v35, %v717_v63 }
 0x25a   : > { %v719_v2 = vmul.f32 1.442695, %v718_v0 }
 0x25c   : > { %1489 = vpow2.f32 %v719_v2 }
 0x266   : > { %v1490_v3 = vpop.eup %1489 }
 0x267   : > { %v721_v4 = vsel %vm668_vm2, %v1490_v3, 0.0 }
 0x268   : > { %722 = vadd.xlane.f32.xlu1 %v721_v4 }
 0x279   : > { %840 = vrot.lane.b32.xlu1 %v667_v45, %s1534_s30  ;;  %s1538_s30 = smov 24  }
 0x2c9   : > { %v829_v5 = vpop.xlane.xlu1 %828 }
 0x2ca   : > { %v830_v6 = vsub.f32 %v821_v48, %v829_v5 }
 0x2cc   : > { %v831_v8 = vmul.f32 1.442695, %v830_v6 }
 0x2ce   : > { %1491 = vpow2.f32 %v831_v8  ;;  %v1333_v8 = vld [vmem:[%s1782_s9] ss:$0 sm:$0xff] }
 0x2d1   : > { %v941_v9 = vpop.xlane.xlu0 %940 }
 0x2d2   : > { %v942_v10 = vsub.f32 %v933_v53, %v941_v9 }
 0x2d4   : > { %v943_v11 = vmul.f32 1.442695, %v942_v10 }
 0x2d6   : > { %1493 = vpow2.f32 %v943_v11 }
 0x2d8   : > { %v1492_v12 = vpop.eup %1491 }
 0x2d9   : > { %v1052_v13 = vpop.xlane.xlu0 %1051  ;;  %v833_v14 = vsel %vm668_vm2, %v1492_v12, 0.0 }
 0x2da   : > { %v1053_v15 = vsub.f32 %v1044_v58, %v1052_v13  ;;  %834 = vadd.xlane.f32.xlu0 %v833_v14 }
 0x2dc   : > { %v1054_v16 = vmul.f32 1.442695, %v1053_v15 }
 0x2de   : > { %1495 = vpow2.f32 %v1054_v16 }
 0x2e0   : > { %v1494_v17 = vpop.eup %1493 }
 0x2e1   : > { %v945_v18 = vsel %vm668_vm2, %v1494_v17, 0.0 }
 0x2e2   : > { %946 = vadd.xlane.f32.xlu1 %v945_v18 }
 0x2e8   : > { %v1496_v19 = vpop.eup %1495 }
 0x2e9   : > { %v1056_v20 = vsel %vm668_vm2, %v1496_v19, 0.0 }
 0x2ea   : > { %1057 = vadd.xlane.f32.xlu0 %v1056_v20 }
 0x2f3   : > { %1062 = vrot.lane.b32.xlu1 %v667_v45, %s1535_s13 }
 0x2f5   : > { %v723_v21 = vpop.xlane.xlu1 %722 }
 0x2f6   : > { %1497 = vrcp.f32 %v723_v21 }
 0x2f9   : > { %v841_v23 = vpop.permute.xlu1 %840 }
 0x2fa   : > { %v846_v26 = vsel %vm730_vm3, %v841_v23, 0 }
 0x300   : > { %v1498_v22 = vpop.eup %1497  ;;  %951 = vrot.lane.b32.xlu0 %v667_v45, %s1533_s29  ;;  %s1537_s29 = smov 16  }
 0x301   : > { %v725_v24 = vmul.f32 %v1498_v22, %v1490_v3 }
 0x303   : > { %v726_v25 = vpack.c.bf16 %v725_v24, %v725_v24 }
 0x305   : > { %1402 = vmatmul.mubr.msk.bf16.vlgmr.msra.gmra.mrb[8].mxu0 %vm668_vm2, %v726_v25 }
 0x306   : > { %1412 = vmatpush3.bf16.msra.mxu0 %v846_v26  ;;  %1413 = vmatprep.mubr.msk.bf16.mxu0 %vm1532_vm0, %v1531_v1  ;;  %v1338_v26 = vld [vmem:[%s1784_s11] ss:$0 sm:$0xff] }
 0x307   : > { %1423 = vmatprep.subr.bf16.mxu0 %v1531_v1 }
 0x367   : > { %v835_v27 = vpop.xlane.xlu0 %834 }
 0x368   : > { %1499 = vrcp.f32 %v835_v27 }
 0x36f   : > { %v947_v28 = vpop.xlane.xlu1 %946 }
 0x370   : > { %1501 = vrcp.f32 %v947_v28 }
 0x372   : > { %v1500_v29 = vpop.eup %1499 }
 0x373   : > { %v837_v30 = vmul.f32 %v1500_v29, %v1492_v12  ;;  %v1063_v37 = vpop.permute.xlu1 %1062 }
 0x374   : > { %v1068_v39 = vsel %vm730_vm3, %v1063_v37, 0 }
 0x375   : > { %v838_v31 = vpack.c.bf16 %v837_v30, %v837_v30 }
 0x377   : > { %v1058_v32 = vpop.xlane.xlu0 %1057  ;;  %1414 = vmatmul.mubr.msk.bf16.vlgmr.msra.gmra.mrb[12].mxu0 %vm668_vm2, %v838_v31 }
 0x378   : > { %1503 = vrcp.f32 %v1058_v32  ;;  %1425 = vmatprep.mubr.msk.bf16.mxu0 %vm1532_vm0, %v1531_v1 }
 0x37a   : > { %v1502_v33 = vpop.eup %1501 }
 0x37b   : > { %v949_v34 = vmul.f32 %v1502_v33, %v1494_v17  ;;  %v952_v35 = vpop.permute.xlu0 %951 }
 0x37c   : > { %v957_v36 = vsel %vm730_vm3, %v952_v35, 0 }
 0x37d   : > { %1424 = vmatpush3.bf16.msra.mxu0 %v957_v36  ;;  %v950_v38 = vpack.c.bf16 %v949_v34, %v949_v34 }
 0x37e   : > { %1435 = vmatprep.subr.bf16.mxu0 %v1531_v1 }
 0x380   : > { %1426 = vmatmul.mubr.msk.bf16.vlgmr.msra.gmra.mrb[16].mxu0 %vm668_vm2, %v950_v38 }
 0x381   : > { %1436 = vmatpush3.bf16.msra.mxu0 %v1068_v39  ;;  %1437 = vmatprep.mubr.msk.bf16.mxu0 %vm1532_vm0, %v1531_v1 }
 0x382   : > { %v1504_v40 = vpop.eup %1503 }
 0x383   : > { %v1060_v41 = vmul.f32 %v1504_v40, %v1496_v19 }
 0x385   : > { %v1061_v42 = vpack.c.bf16 %v1060_v41, %v1060_v41 }
 0x388   : > { %1438 = vmatmul.mubr.msk.bf16.vlgmr.msra.gmra.mrb[20].mxu0 %vm668_vm2, %v1061_v42 }
 0x3d8   : > { %v768_v43 = vpop.f32.mrb[8].mxu0 }
 0x3d9   : > { %v1403_v44 = vpop.f32.mrb[9].mxu0  ;;  %v774_v1 = vpack.c.bf16 %v768_v43, %v768_v43 }
 0x3da   : > { %v771_v45 = vpop.f32.mrb[10].mxu0 }
 0x3db   : > { %v1404_v46 = vpop.f32.mrb[11].mxu0 }
 0x44a   : > { %v882_v48 = vpop.f32.mrb[12].mxu0 }
 0x44b   : > { %v888_v49 = vpack.c.bf16 %v882_v48, %v882_v48  ;;  %v1415_v50 = vpop.f32.mrb[13].mxu0 }
 0x44c   : > { %v885_v52 = vpop.f32.mrb[14].mxu0 }
 0x44d   : > { %1112 = vrot.lane.b32.xlu1 %v888_v49, %s1536_s28  ;;  %v1416_v53 = vpop.f32.mrb[15].mxu0 }
 0x453   : > { %v993_v54 = vpop.f32.mrb[16].mxu0 }
 0x454   : > { %v999_v55 = vpack.c.bf16 %v993_v54, %v993_v54  ;;  %v1427_v56 = vpop.f32.mrb[17].mxu0 }
 0x455   : > { %v996_v57 = vpop.f32.mrb[18].mxu0 }
 0x456   : > { %1115 = vrot.lane.b32.xlu0 %v999_v55, %s1537_s29  ;;  %v1428_v58 = vpop.f32.mrb[19].mxu0 }
 0x45b   : > { %v1104_v59 = vpop.f32.mrb[20].mxu0 }
 0x45c   : > { %v1110_v60 = vpack.c.bf16 %v1104_v59, %v1104_v59  ;;  %v1439_v61 = vpop.f32.mrb[21].mxu0 }
 0x45d   : > { %v1107_v62 = vpop.f32.mrb[22].mxu0 }
 0x45e   : > { %1118 = vrot.lane.b32.xlu1 %v1110_v60, %s1538_s30  ;;  %v1440_v63 = vpop.f32.mrb[23].mxu0 }
 0x4bf   : > { %v1113_v0 = vpop.permute.xlu1 %1112 }
 0x4c0   : > { %v1122_v3 = vsel %vm668_vm2, %v774_v1, %v1113_v0 }
 0x4c8   : > { %v1116_v2 = vpop.permute.xlu0 %1115 }
 0x4c9   : > { %v1125_v4 = vsel %vm1123_vm4, %v1122_v3, %v1116_v2 }
 0x4d0   : > { %v1119_v5 = vpop.permute.xlu1 %1118 }
 0x4d1   : > { %v1128_v6 = vsel %vm1126_vm5, %v1125_v4, %v1119_v5 }
 0x4d2   : > { %1446 = vmatmul.mubr.msk.bf16.vlgmr.msra.gmra.mrb[20].mxu1 %vm502_vm1, %v1128_v6 }
 0x5a5   : > { %v1183_v9 = vpop.f32.mrb[20].mxu1 }
 0x5a6   : > { %v1184_v10 = vadd.f32 %v1333_v8, %v1183_v9  ;;  %v1447_v11 = vpop.f32.mrb[21].mxu1 }
 0x5a7   : > { %v1186_v12 = vpop.f32.mrb[22].mxu1 }
 0x5a8   : > { %v1448_v13 = vpop.f32.mrb[23].mxu1  ;;  %v1189_v14 = vadd.f32 %v1184_v10, %v1654_v7  ;;  %v1337_v7 = vld [vmem:[%s1783_s10] ss:$0 sm:$0xff] }
 0x5aa   : > { %v1190_v15 = vsel %vm502_vm1, %v1189_v14, 0.0 }
 0x5ab   : > { %1191 = vadd.xlane.f32.xlu0 %v1190_v15 }
 0x638   : > { %v1192_v16 = vpop.xlane.xlu0 %1191 }
 0x639   : > { %v1194_v17 = vmul.f32 0.03125, %v1192_v16 }
 0x63b   : > { %v1195_v18 = vsub.f32 %v1189_v14, %v1194_v17 }
 0x63d   : > { %v1196_v19 = vmul.f32 %v1195_v18, %v1195_v18 }
 0x63f   : > { %v1197_v20 = vsel %vm502_vm1, %v1196_v19, 0.0 }
 0x640   : > { %1198 = vadd.xlane.f32.xlu1 %v1197_v20 }
 0x6cd   : > { %v1199_v21 = vpop.xlane.xlu1 %1198 }
 0x6ce   : > { %v1200_v22 = vmul.f32 0.03125, %v1199_v21 }
 0x6d0   : > { %v1201_v23 = vadd.f32 1e-05, %v1200_v22 }
 0x6d2   : > { %1505 = vrsqrt.f32 %v1201_v23 }
 0x6dc   : > { %v1506_v24 = vpop.eup %1505 }
 0x6dd   : > { %v1203_v25 = vmul.f32 %v1506_v24, %v1195_v18 }
 0x6df   : > { %v1210_v27 = vmul.f32 %v1337_v7, %v1203_v25 }
 0x6e1   : > { %v1217_v28 = vadd.f32 %v1338_v26, %v1210_v27 }
 0x6e3   : > { %1218 = vst.msk [vmem:[%s456_s21] sm:$0xff] %vm502_vm1, %v1217_v28 }
 0x6e4 PF: > { %s22_s23 = sadd.s32 1, %s1529_s23   ;;  %s1786_s21 = smov %s1525_s22 }
 0x6e5   : > { %p19_p5 = scmp.ge.s32.totalorder %s22_s23, 4   ;;  %s1787_s22 = smov %s1789_s24 }
 0x6e7   :  { %21 = sbr.rel (!%p19_p5) target bundleno = 2 (0x2), region = 101 }

// kernel: transformer_decoder_fwd.7
= control target key start
LH: loop header
LB: loop body
LE: loop exit
PB: predicated region body
PF: predicated region fallthrough
CT: control target
= control target key end

     0   :  { %s2253_s0 = inlined_call_operand.vmem [shape: f32[2,8,32], index: 0, kind: input, shape index: {}]   ;;  %s2254_s1 = inlined_call_operand.vmem [shape: bf16[32,32], index: 1, kind: input, shape index: {}]   ;;  %s2255_s2 = inlined_call_operand.hbm [shape: f32[1,32], index: 2, kind: input, shape index: {}]   ;;  %s2256_s3 = inlined_call_operand.vmem [shape: bf16[32,32], index: 3, kind: input, shape index: {}]   ;;  %s2257_s4 = inlined_call_operand.hbm [shape: f32[1,32], index: 4, kind: input, shape index: {}]   ;;  %s2258_s5 = inlined_call_operand.vmem [shape: bf16[32,32], index: 5, kind: input, shape index: {}]   ;;  %s2259_s6 = inlined_call_operand.hbm [shape: f32[1,32], index: 6, kind: input, shape index: {}]   ;;  %s2260_s7 = inlined_call_operand.vmem [shape: bf16[32,32], index: 7, kind: input, shape index: {}]   ;;  %s2261_s8 = inlined_call_operand.hbm [shape: f32[1,32], index: 8, kind: input, shape index: {}]   ;;  %s2262_s9 = inlined_call_operand.hbm [shape: f32[1,32], index: 9, kind: input, shape index: {}]   ;;  %s2263_s10 = inlined_call_operand.hbm [shape: f32[1,32], index: 10, kind: input, shape index: {}]   ;;  %s2264_s11 = inlined_call_operand.vmem [shape: f32[2,8,32], index: 11, kind: output, shape index: {}]  }
   0x1   :  { %2270 = sst [smem:[#allocation17_spill]] %s2257_s4 }
   0x2   :  { %16 = vsyncpa [#allocation3], 0 }
   0x3   :  { %17 = vsyncpa [#allocation5], 0 }
   0x4   :  { %18 = vsyncpa [#allocation8], 0 }
   0x5   :  { %19 = vsyncpa [#allocation11], 0  ;;  %s1932_s17 = smov 0   ;;  %s1934_s18 = smov 0  }
   0x6   :  { %s1936_s19 = smov 0  }
   0x7 LB: > { %2271 = sst [smem:[#allocation16_spill]] %s1856_s19  ;;  %s1858_s20 = smov [#allocation4]   ;;  %s1856_s19 = sphi %s1936_s19, %s25_s19   ;;  %s1852_s18 = sphi %s1934_s18, %s2284_s18   ;;  %s1848_s17 = sphi %s1932_s17, %s2283_s17  }
   0x8   : > { %s336_s21 = sshll.u32 %s1858_s20, 4  ;;  %s1376_s22 = sadd.s32 4294967295, %s1856_s19   ;;  %s337_s21 = int_to_ptr.vmem [resolvable:$true] %s336_s21 }
   0x9   : > { %p1378_p0 = scmp.ge.s32.totalorder %s1856_s19, 1  ;;  %p306_p1 = scmp.lt.s32.totalorder %s1856_s19, 3 }
   0xa   : > { %p1950_p2 = scmp.eq.s32.totalorder %s1376_s22, 0  ;;  %s1859_s25 = smov [#allocation7]  }
   0xb   : > { %p1954_p3 = pnand %p1378_p0, %p306_p1  ;;  %s364_s26 = sshll.u32 %s1859_s25, 4  ;;  %s1960_s26 = int_to_ptr.vmem [resolvable:$true] %s364_s26 }
   0xc   : > { %s2272_s23 = scalar_select %p1950_p2, 1, 0 }
   0xd   : > { %s2273_s24 = scalar_select %p1954_p3, 1, 0 }
   0xe   : > { %p1555_p4 = pneg %p1954_p3  ;;  %s2268_s28 = sadd.s32 1, %s1852_s18 }
   0xf   : > { %p1971_p6 = scmp.ge.s32.totalorder %s2268_s28, 2  ;;  %s2276_s4 = sld [smem:[#allocation17_spill]] }
  0x10   : > { %p1964_p5 = pnand %p1950_p2, %p1555_p4 }
  0x11   : > { %s2275_s29 = scalar_select %p1971_p6, 1, 0 }
  0x12   : > { %p1983_p8 = pneg %p1964_p5 }
  0x15   : > { %s1650_s13 = scalar_lea.hbm %s2276_s4, 16 }
  0x16   : > { %p1651_p7 = scmp.ne.s32.totalorder %s2276_s4, %s1650_s13  ;;  %p1657_p11 = scmp.lt.u32.totalorder %s1650_s13, %s2276_s4 }
  0x18   : > { %p1653_p9 = pnand %p1983_p8, %p1651_p7 }
  0x1a   : > { %p1654_p10 = pneg %p1653_p9 }
  0x1c   : > { %p1659_p12 = pnand %p1657_p11, %p1654_p10 }
  0x1e   : > { %1662 = shalt.err (!%p1659_p12)
}
  0x1f   : > { %s1663_s25 = scalar_lea.vmem %s337_s21, 16  ;;  %s1670_s30 = scalar_lea.vmem %s337_s21, 32 }
  0x20   : > { %p1664_p13 = scmp.ne.s32.totalorder %s337_s21, %s1663_s25  ;;  %p1671_p4 = scmp.lt.s32.totalorder %s337_s21, %s337_s21 }
  0x21   : > { %p1672_p2 = scmp.lt.s32.totalorder %s1670_s30, %s1663_s25 }
  0x22   : > { %p1666_p0 = pnand %p1664_p13, %p1983_p8 }
  0x23   : > { %p1673_p3 = por %p1672_p2, %p1671_p4 }
  0x24   : > { %p1667_p1 = pneg %p1666_p0 }
  0x26   : > { %p1674_p6 = pnand %p1673_p3, %p1667_p1 }
  0x28   : > { %1677 = shalt.err (!%p1674_p6)
}
  0x29   : > { %1561 = dma.hbm_to_vmem [thread:$0]  (!%p1964_p5), %s2276_s4, 16, %s337_s21, [#allocation5]  }
  0x2a   : > { %s1678_s20 = scalar_lea.hbm %s2261_s8, 16 }
  0x2b   : > { %p1679_p7 = scmp.ne.s32.totalorder %s2261_s8, %s1678_s20  ;;  %p1685_p3 = scmp.lt.u32.totalorder %s1678_s20, %s2261_s8 }
  0x2d   : > { %p1681_p9 = pnand %p1679_p7, %p1983_p8 }
  0x2f   : > { %p1682_p2 = pneg %p1681_p9 }
  0x31   : > { %p1687_p6 = pnand %p1685_p3, %p1682_p2 }
  0x33   : > { %1690 = shalt.err (!%p1687_p6)
}
  0x34   : > { %s1691_s21 = scalar_lea.vmem %s1960_s26, 16  ;;  %s1698_s28 = scalar_lea.vmem %s1960_s26, 32 }
  0x35   : > { %p1692_p10 = scmp.ne.s32.totalorder %s1960_s26, %s1691_s21  ;;  %p1699_p13 = scmp.lt.s32.totalorder %s1960_s26, %s1960_s26 }
  0x36   : > { %p1700_p0 = scmp.lt.s32.totalorder %s1698_s28, %s1691_s21 }
  0x37   : > { %p1694_p11 = pnand %p1692_p10, %p1983_p8 }
  0x38   : > { %p1701_p1 = por %p1700_p0, %p1699_p13 }
  0x39   : > { %p1695_p12 = pneg %p1694_p11 }
  0x3b   : > { %p1702_p4 = pnand %p1701_p1, %p1695_p12 }
  0x3d   : > { %1705 = shalt.err (!%p1702_p4)
}
  0x3e   : > { %1567 = dma.hbm_to_vmem [thread:$0]  (!%p1964_p5), %s2261_s8, 16, %s1960_s26, [#allocation8]  }
  0x3f   : > { %s2278_s13 = sadd.s32 1, %s1852_s18  ;;  %p2279_p7 = scmp.ne.s32.totalorder %s2275_s29, 0 }
  0x40   : > { %s1860_s15 = smov [#allocation2]   ;;  %s1861_s22 = smov [#allocation6]  }
  0x41   : > { %s2286_s13 = smov (%p2279_p7, %s2278_s13), 0  ;;  %s322_s20 = sshll.u32 %s1860_s15, 4  ;;  %s323_s20 = int_to_ptr.vmem [resolvable:$true] %s322_s20 }
  0x42   : > { %s350_s25 = sshll.u32 %s1861_s22, 4  ;;  %s1706_s28 = scalar_lea.hbm %s2255_s2, 16  ;;  %s351_s25 = int_to_ptr.vmem [resolvable:$true] %s350_s25 }
  0x43   : > { %p1707_p9 = scmp.ne.s32.totalorder %s2255_s2, %s1706_s28  ;;  %p1713_p6 = scmp.lt.u32.totalorder %s1706_s28, %s2255_s2 }
  0x45   : > { %p1709_p2 = pnand %p1707_p9, %p1983_p8 }
  0x47   : > { %p1710_p3 = pneg %p1709_p2 }
  0x49   : > { %p1715_p10 = pnand %p1713_p6, %p1710_p3 }
  0x4b   : > { %1718 = shalt.err (!%p1715_p10)
}
  0x4c   : > { %s1719_s12 = scalar_lea.vmem %s323_s20, 16  ;;  %s1726_s14 = scalar_lea.vmem %s323_s20, 32 }
  0x4d   : > { %p1720_p11 = scmp.ne.s32.totalorder %s323_s20, %s1719_s12  ;;  %p1727_p0 = scmp.lt.s32.totalorder %s323_s20, %s323_s20 }
  0x4e   : > { %p1728_p1 = scmp.lt.s32.totalorder %s1726_s14, %s1719_s12 }
  0x4f   : > { %p1722_p12 = pnand %p1720_p11, %p1983_p8 }
  0x50   : > { %p1729_p4 = por %p1728_p1, %p1727_p0 }
  0x51   : > { %p1723_p13 = pneg %p1722_p12 }
  0x53   : > { %p1730_p7 = pnand %p1729_p4, %p1723_p13 }
  0x55   : > { %1733 = shalt.err (!%p1730_p7)
}
  0x56   : > { %1558 = dma.hbm_to_vmem [thread:$0]  (!%p1964_p5), %s2255_s2, 16, %s323_s20, [#allocation3]  }
  0x57   : > { %s1734_s30 = scalar_lea.hbm %s2259_s6, 16 }
  0x58   : > { %p1735_p9 = scmp.ne.s32.totalorder %s2259_s6, %s1734_s30  ;;  %p1741_p6 = scmp.lt.u32.totalorder %s1734_s30, %s2259_s6 }
  0x5a   : > { %p1737_p2 = pnand %p1735_p9, %p1983_p8 }
  0x5c   : > { %p1738_p3 = pneg %p1737_p2 }
  0x5e   : > { %p1743_p10 = pnand %p1741_p6, %p1738_p3 }
  0x60   : > { %1746 = shalt.err (!%p1743_p10)
}
  0x61   : > { %s1747_s12 = scalar_lea.vmem %s351_s25, 16  ;;  %s1754_s20 = scalar_lea.vmem %s351_s25, 32 }
  0x62   : > { %p1748_p11 = scmp.ne.s32.totalorder %s351_s25, %s1747_s12  ;;  %p1755_p0 = scmp.lt.s32.totalorder %s351_s25, %s351_s25 }
  0x63   : > { %p1756_p1 = scmp.lt.s32.totalorder %s1754_s20, %s1747_s12 }
  0x64   : > { %p1750_p12 = pnand %p1748_p11, %p1983_p8 }
  0x65   : > { %p1757_p4 = por %p1756_p1, %p1755_p0 }
  0x66   : > { %p1751_p13 = pneg %p1750_p12 }
  0x68   : > { %p1758_p7 = pnand %p1757_p4, %p1751_p13 }
  0x6a   : > { %1761 = shalt.err (!%p1758_p7)
}
  0x6b   : > { %1564 = dma.hbm_to_vmem [thread:$0]  (!%p1964_p5), %s2259_s6, 16, %s351_s25, [#allocation5]  }
  0x6c   : > { %s1862_s19 = smov [#allocation9]   ;;  %s1863_s22 = smov [#allocation10]  }
  0x6d   : > { %s375_s15 = sshll.u32 %s1862_s19, 4  ;;  %s386_s30 = sshll.u32 %s1863_s22, 4  ;;  %s376_s15 = int_to_ptr.vmem [resolvable:$true] %s375_s15  ;;  %s387_s30 = int_to_ptr.vmem [resolvable:$true] %s386_s30 }
  0x6e   : > { %s1762_s26 = scalar_lea.hbm %s2262_s9, 16 }
  0x6f   : > { %p1763_p9 = scmp.ne.s32.totalorder %s2262_s9, %s1762_s26  ;;  %p1769_p6 = scmp.lt.u32.totalorder %s1762_s26, %s2262_s9 }
  0x71   : > { %p1765_p2 = pnand %p1763_p9, %p1983_p8 }
  0x73   : > { %p1766_p3 = pneg %p1765_p2 }
  0x75   : > { %p1771_p10 = pnand %p1769_p6, %p1766_p3 }
  0x77   : > { %1774 = shalt.err (!%p1771_p10)
}
  0x78   : > { %s1775_s25 = scalar_lea.vmem %s376_s15, 16  ;;  %s1782_s4 = scalar_lea.vmem %s376_s15, 32 }
  0x79   : > { %p1776_p11 = scmp.ne.s32.totalorder %s376_s15, %s1775_s25  ;;  %p1783_p0 = scmp.lt.s32.totalorder %s376_s15, %s376_s15 }
  0x7a   : > { %p1784_p1 = scmp.lt.s32.totalorder %s1782_s4, %s1775_s25 }
  0x7b   : > { %p1778_p12 = pnand %p1776_p11, %p1983_p8 }
  0x7c   : > { %p1785_p4 = por %p1784_p1, %p1783_p0 }
  0x7d   : > { %p1779_p13 = pneg %p1778_p12 }
  0x7f   : > { %p1786_p7 = pnand %p1785_p4, %p1779_p13 }
  0x81   : > { %1789 = shalt.err (!%p1786_p7)
}
  0x82   : > { %1570 = dma.hbm_to_vmem [thread:$0]  (!%p1964_p5), %s2262_s9, 16, %s376_s15, [#allocation8]  }
  0x83   : > { %s1790_s26 = scalar_lea.hbm %s2263_s10, 16 }
  0x84   : > { %p1791_p9 = scmp.ne.s32.totalorder %s2263_s10, %s1790_s26  ;;  %p1797_p6 = scmp.lt.u32.totalorder %s1790_s26, %s2263_s10 }
  0x86   : > { %p1793_p2 = pnand %p1791_p9, %p1983_p8 }
  0x88   : > { %p1794_p3 = pneg %p1793_p2 }
  0x8a   : > { %p1799_p10 = pnand %p1797_p6, %p1794_p3 }
  0x8c   : > { %1802 = shalt.err (!%p1799_p10)
}
  0x8d   : > { %s1803_s25 = scalar_lea.vmem %s387_s30, 16  ;;  %s1810_s15 = scalar_lea.vmem %s387_s30, 32 }
  0x8e   : > { %p1804_p11 = scmp.ne.s32.totalorder %s387_s30, %s1803_s25  ;;  %p1811_p0 = scmp.lt.s32.totalorder %s387_s30, %s387_s30 }
  0x8f   : > { %p1812_p1 = scmp.lt.s32.totalorder %s1810_s15, %s1803_s25 }
  0x90   : > { %p1806_p12 = pnand %p1804_p11, %p1983_p8 }
  0x91   : > { %p1813_p4 = por %p1812_p1, %p1811_p0 }
  0x92   : > { %p1807_p13 = pneg %p1806_p12 }
  0x94   : > { %p1814_p7 = pnand %p1813_p4, %p1807_p13 }
  0x96   : > { %1817 = shalt.err (!%p1814_p7)
}
  0x97   : > { %1573 = dma.hbm_to_vmem [thread:$0]  (!%p1964_p5), %s2263_s10, 16, %s387_s30, [#allocation11]  }
  0x98   : > { %p2280_p9 = scmp.ne.s32.totalorder %s2273_s24, 0 }
  0x99   : > { %p2281_p2 = scmp.ne.s32.totalorder (!%p2280_p9), %s2272_s23, 0 }
  0x9a   : > { %406 = sbr.rel (%p2280_p9) target bundleno = 1922 (0x782), region = 64 }
  0xa1   : > { %1831 = dma.done.wait (%p2281_p2), [#allocation3], 16  }
  0xa2   : > { %1833 = vsyncadd (%p2281_p2), [#allocation3], 4294967280 }
  0xa3   : > { %1835 = dma.done.wait (%p2281_p2), [#allocation5], 32  }
  0xa4   : > { %1837 = vsyncadd (%p2281_p2), [#allocation5], 4294967264 }
  0xa5   : > { %1839 = dma.done.wait (%p2281_p2), [#allocation8], 32  }
  0xa6   : > { %1841 = vsyncadd (%p2281_p2), [#allocation8], 4294967264 }
  0xa7   : > { %1843 = dma.done.wait (%p2281_p2), [#allocation11], 16  }
  0xa8   : > { %1845 = vsyncadd (%p2281_p2), [#allocation11], 4294967280  ;;  %p467_p5 = scmp.lt.s32.totalorder %s1848_s17, 1  ;;  %v1864_v0 = vmov 0.0   ;;  %vm1865_vm0 = vmmov 0   ;;  %v1624_v1 = vld [vmem:[%s2256_s3] sm:$0xff]  }
  0xa9   : > { %1459 = vmatprep.subr.bf16.mxu1 %v1864_v0  ;;  %1451 = vmatprep.subr.bf16.mxu0 %v1864_v0  ;;  %v1625_v2 = vld [vmem:[%s2254_s1] sm:$0xff]   ;;  %v1626_v3 = vld [vmem:[%s2256_s3 + $0x8] sm:$0xff]   ;;  %vm525_vm1 = vcmask 261120   ;;  %vm691_vm2 = vcmask 64512   ;;  %s1866_s14 = smov 112   ;;  %s1867_s25 = smov 120  }
  0xaa   : > { %1463 = vmatprep.mubr.msk.bf16.mxu1 %vm1865_vm0, %v1864_v0  ;;  %s2288_s17 = smov (!%p467_p5, %s1848_s17), 1  ;;  %1455 = vmatprep.mubr.msk.bf16.mxu0 %vm1865_vm0, %v1864_v0  ;;  %v1627_v5 = vld [vmem:[%s2254_s1 + $0x8] sm:$0xff]   ;;  %v1399_v7 = vld [vmem:[#allocation4] ss:$0 sm:$0xff]  ;;  %v1395_v8 = vld [vmem:[#allocation2] ss:$0 sm:$0xff] }
  0xab   : > { %s1393_s23 = sshll.u32 %s2288_s17, 3  ;;  %1460 = vmatpush3.bf16.msra.mxu1 %v1624_v1  ;;  %1452 = vmatpush3.bf16.msra.mxu0 %v1625_v2  ;;  %s1868_s15 = smov 104   ;;  %v1628_v22 = vld [vmem:[%s2258_s5] sm:$0xff]   ;;  %v1629_v23 = vld [vmem:[%s2258_s5 + $0x8] sm:$0xff]   ;;  %vm753_vm3 = vcmask 1043456   ;;  %vm1146_vm4 = vcmask 130048  }
  0xac   : > { %s470_s22 = scalar_lea.vmem %s2253_s0, %s1393_s23  ;;  %1461 = vmatprep.subr.bf16.mxu1 %v1864_v0  ;;  %1453 = vmatprep.subr.bf16.mxu0 %v1864_v0  ;;  %v1403_v38 = vld [vmem:[#allocation6] ss:$0 sm:$0xff]  ;;  %s1869_s28 = smov 8   ;;  %vm1149_vm5 = vcmask 195584  }
  0xad   : > { %v2145_v4 = vld [vmem:[%s470_s22] sm:$0xff]  ;;  %s1870_s26 = smov 16   ;;  %s1871_s29 = smov 24  }
  0xae   : > { %v506_v6 = vpack.c.bf16 %v2145_v4, %v2145_v4 }
  0xaf   : > { %1462 = vmatpush3.bf16.msra.mxu1 %v1626_v3  ;;  %1454 = vmatpush3.bf16.msra.mxu0 %v1627_v5 }
  0xb0   : > { %1475 = vmatprep.subr.bf16.mxu1 %v1864_v0  ;;  %1467 = vmatprep.subr.bf16.mxu0 %v1864_v0 }
  0xb2   : > { %1464 = vmatmul.mubr.msk.bf16.vlgmr.msra.gmra.mrb[0].mxu1 %vm525_vm1, %v506_v6  ;;  %1456 = vmatmul.mubr.msk.bf16.vlgmr.msra.gmra.mrb[0].mxu0 %vm525_vm1, %v506_v6 }
  0xb3   : > { %1477 = vmatprep.mubr.msk.bf16.mxu1 %vm1865_vm0, %v1864_v0  ;;  %1471 = vmatprep.mubr.msk.bf16.mxu0 %vm1865_vm0, %v1864_v0 }
  0xb4   : > { %1468 = vmatpush3.bf16.msra.mxu0 %v1628_v22 }
  0xb5   : > { %1469 = vmatprep.subr.bf16.mxu0 %v1864_v0 }
  0xb8   : > { %1470 = vmatpush3.bf16.msra.mxu0 %v1629_v23 }
  0xb9   : > { %1481 = vmatprep.subr.bf16.mxu0 %v1864_v0 }
  0xbb   : > { %1472 = vmatmul.mubr.msk.bf16.vlgmr.msra.gmra.mrb[4].mxu0 %vm525_vm1, %v506_v6 }
  0xbc   : > { %1483 = vmatprep.mubr.msk.bf16.mxu0 %vm1865_vm0, %v1864_v0 }
 0x185   : > { %v624_v9 = vpop.f32.mrb[0].mxu1  ;;  %v563_v12 = vpop.f32.mrb[0].mxu0 }
 0x186   : > { %v625_v10 = vadd.f32 %v1399_v7, %v624_v9  ;;  %v1465_v11 = vpop.f32.mrb[1].mxu1  ;;  %v564_v14 = vadd.f32 %v1395_v8, %v563_v12  ;;  %v1457_v15 = vpop.f32.mrb[1].mxu0 }
 0x187   : > { %v627_v13 = vpop.f32.mrb[2].mxu1  ;;  %v566_v18 = vpop.f32.mrb[2].mxu0 }
 0x188   : > { %v689_v16 = vpack.c.bf16 %v625_v10, %v625_v10  ;;  %v1466_v17 = vpop.f32.mrb[3].mxu1  ;;  %v1458_v19 = vpop.f32.mrb[3].mxu0  ;;  %v688_v20 = vpack.c.bf16 %v564_v14, %v564_v14 }
 0x18a   : > { %914 = vrot.lane.b32.xlu1 %v689_v16, %s1866_s14  ;;  %802 = vrot.lane.b32.xlu0 %v689_v16, %s1867_s25  ;;  %v696_v21 = vsel %vm691_vm2, %v689_v16, 0 }
 0x18b   : > { %1476 = vmatpush3.bf16.xpose.msra.mxu1 %v696_v21 }
 0x18c   : > { %1487 = vmatprep.subr.bf16.mxu1 %v1864_v0 }
 0x18e   : > { %912 = vrot.lane.b32.xlu1 %v688_v20, %s1866_s14  ;;  %799 = vrot.lane.b32.xlu0 %v688_v20, %s1867_s25  ;;  %v682_v39 = vpop.f32.mrb[4].mxu0 }
 0x18f   : > { %v683_v40 = vadd.f32 %v1403_v38, %v682_v39  ;;  %v1473_v41 = vpop.f32.mrb[5].mxu0 }
 0x190   : > { %v685_v42 = vpop.f32.mrb[6].mxu0 }
 0x191   : > { %v690_v43 = vpack.c.bf16 %v683_v40, %v683_v40  ;;  %v1474_v44 = vpop.f32.mrb[7].mxu0 }
 0x192   : > { %1023 = vrot.lane.b32.xlu1 %v688_v20, %s1868_s15  ;;  %1025 = vrot.lane.b32.xlu0 %v689_v16, %s1868_s15 }
 0x193   : > { %1478 = vmatmul.mubr.msk.bf16.vlgmr.msra.gmra.mrb[4].mxu1 %vm691_vm2, %v688_v20  ;;  %v755_v45 = vsel %vm753_vm3, %v690_v43, 0 }
 0x194   : > { %1489 = vmatprep.mubr.msk.bf16.mxu1 %vm1865_vm0, %v1864_v0  ;;  %1482 = vmatpush3.bf16.msra.mxu0 %v755_v45  ;;  %v1630_v45 = vld [vmem:[%s2260_s7] sm:$0xff]  }
 0x195   : > { %1493 = vmatprep.subr.bf16.mxu0 %v1864_v0 }
 0x1fc   : > { %v803_v24 = vpop.permute.xlu0 %802  ;;  %v915_v26 = vpop.permute.xlu1 %914 }
 0x1fd   : > { %v808_v25 = vsel %vm691_vm2, %v803_v24, 0  ;;  %v920_v28 = vsel %vm691_vm2, %v915_v26, 0 }
 0x1fe   : > { %1488 = vmatpush3.bf16.xpose.msra.mxu1 %v808_v25 }
 0x1ff   : > { %1499 = vmatprep.subr.bf16.mxu1 %v1864_v0 }
 0x200   : > { %v800_v27 = vpop.permute.xlu0 %799  ;;  %v913_v30 = vpop.permute.xlu1 %912 }
 0x204   : > { %v1026_v29 = vpop.permute.xlu0 %1025  ;;  %v1024_v32 = vpop.permute.xlu1 %1023 }
 0x205   : > { %1490 = vmatmul.mubr.msk.bf16.vlgmr.msra.gmra.mrb[8].mxu1 %vm691_vm2, %v800_v27  ;;  %v1031_v31 = vsel %vm691_vm2, %v1026_v29, 0 }
 0x206   : > { %1500 = vmatpush3.bf16.xpose.msra.mxu1 %v920_v28  ;;  %1501 = vmatprep.mubr.msk.bf16.mxu1 %vm1865_vm0, %v1864_v0 }
 0x207   : > { %1511 = vmatprep.subr.bf16.mxu1 %v1864_v0 }
 0x20d   : > { %1502 = vmatmul.mubr.msk.bf16.vlgmr.msra.gmra.mrb[12].mxu1 %vm691_vm2, %v913_v30 }
 0x20e   : > { %1512 = vmatpush3.bf16.xpose.msra.mxu1 %v1031_v31  ;;  %1513 = vmatprep.mubr.msk.bf16.mxu1 %vm1865_vm0, %v1864_v0 }
 0x20f   : > { %1523 = vmatprep.subr.bf16.mxu1 %v1864_v0 }
 0x215   : > { %1514 = vmatmul.mubr.msk.bf16.vlgmr.msra.gmra.mrb[16].mxu1 %vm691_vm2, %v1024_v32 }
 0x216   : > { %1527 = vmatprep.mubr.msk.bf16.mxu1 %vm1865_vm0, %v1864_v0  ;;  %1524 = vmatpush3.bf16.msra.mxu1 %v1630_v45 }
 0x217   : > { %1525 = vmatprep.subr.bf16.mxu1 %v1864_v0 }
 0x266   : > { %v732_v33 = vpop.f32.mrb[4].mxu1 }
 0x267   : > { %v1479_v34 = vpop.f32.mrb[5].mxu1  ;;  %v738_v35 = vsel %vm691_vm2, %v732_v33, -inf }
 0x268   : > { %739 = vmax.xlane.f32.xlu0 %v738_v35  ;;  %v735_v36 = vpop.f32.mrb[6].mxu1 }
 0x269   : > { %v1480_v37 = vpop.f32.mrb[7].mxu1 }
 0x2d8   : > { %v844_v46 = vpop.f32.mrb[8].mxu1 }
 0x2d9   : > { %v1491_v47 = vpop.f32.mrb[9].mxu1  ;;  %v850_v48 = vsel %vm691_vm2, %v844_v46, -inf }
 0x2da   : > { %851 = vmax.xlane.f32.xlu1 %v850_v48  ;;  %v847_v49 = vpop.f32.mrb[10].mxu1 }
 0x2db   : > { %v1492_v50 = vpop.f32.mrb[11].mxu1  ;;  %v1631_v49 = vld [vmem:[%s2260_s7 + $0x8] sm:$0xff]  }
 0x2dc   : > { %1526 = vmatpush3.bf16.msra.mxu1 %v1631_v49 }
 0x2e0   : > { %v956_v51 = vpop.f32.mrb[12].mxu1 }
 0x2e1   : > { %v1503_v52 = vpop.f32.mrb[13].mxu1  ;;  %v962_v53 = vsel %vm691_vm2, %v956_v51, -inf }
 0x2e2   : > { %963 = vmax.xlane.f32.xlu0 %v962_v53  ;;  %v959_v54 = vpop.f32.mrb[14].mxu1 }
 0x2e3   : > { %v1504_v55 = vpop.f32.mrb[15].mxu1 }
 0x2e8   : > { %v1067_v56 = vpop.f32.mrb[16].mxu1 }
 0x2e9   : > { %v1515_v57 = vpop.f32.mrb[17].mxu1  ;;  %v1073_v58 = vsel %vm691_vm2, %v1067_v56, -inf }
 0x2ea   : > { %1074 = vmax.xlane.f32.xlu0 %v1073_v58  ;;  %v1070_v59 = vpop.f32.mrb[18].mxu1 }
 0x2eb   : > { %v1516_v60 = vpop.f32.mrb[19].mxu1 }
 0x2f5   : > { %v740_v61 = vpop.xlane.xlu0 %739 }
 0x2f6   : > { %v741_v62 = vsub.f32 %v732_v33, %v740_v61 }
 0x2f8   : > { %v742_v63 = vmul.f32 1.442695, %v741_v62 }
 0x2fa   : > { %1632 = vpow2.f32 %v742_v63 }
 0x304   : > { %v1633_v1 = vpop.eup %1632 }
 0x305   : > { %v744_v2 = vsel %vm691_vm2, %v1633_v1, 0.0 }
 0x306   : > { %745 = vadd.xlane.f32.xlu1 %v744_v2 }
 0x317   : > { %863 = vrot.lane.b32.xlu1 %v690_v43, %s1867_s25 }
 0x367   : > { %v852_v3 = vpop.xlane.xlu1 %851 }
 0x368   : > { %v853_v5 = vsub.f32 %v844_v46, %v852_v3 }
 0x36a   : > { %v854_v6 = vmul.f32 1.442695, %v853_v5 }
 0x36c   : > { %1634 = vpow2.f32 %v854_v6  ;;  %v1415_v6 = vld [vmem:[#allocation7] ss:$0 sm:$0xff] }
 0x36f   : > { %v964_v7 = vpop.xlane.xlu0 %963 }
 0x370   : > { %v965_v8 = vsub.f32 %v956_v51, %v964_v7 }
 0x372   : > { %v966_v9 = vmul.f32 1.442695, %v965_v8 }
 0x374   : > { %1636 = vpow2.f32 %v966_v9 }
 0x376   : > { %v1635_v10 = vpop.eup %1634 }
 0x377   : > { %v1075_v11 = vpop.xlane.xlu0 %1074  ;;  %v856_v12 = vsel %vm691_vm2, %v1635_v10, 0.0 }
 0x378   : > { %v1076_v13 = vsub.f32 %v1067_v56, %v1075_v11  ;;  %857 = vadd.xlane.f32.xlu0 %v856_v12 }
 0x37a   : > { %v1077_v14 = vmul.f32 1.442695, %v1076_v13 }
 0x37c   : > { %1638 = vpow2.f32 %v1077_v14 }
 0x37e   : > { %v1637_v15 = vpop.eup %1636 }
 0x37f   : > { %v968_v16 = vsel %vm691_vm2, %v1637_v15, 0.0 }
 0x380   : > { %969 = vadd.xlane.f32.xlu1 %v968_v16 }
 0x386   : > { %v1639_v17 = vpop.eup %1638 }
 0x387   : > { %v1079_v18 = vsel %vm691_vm2, %v1639_v17, 0.0 }
 0x388   : > { %1080 = vadd.xlane.f32.xlu0 %v1079_v18 }
 0x391   : > { %1085 = vrot.lane.b32.xlu1 %v690_v43, %s1868_s15 }
 0x393   : > { %v746_v19 = vpop.xlane.xlu1 %745 }
 0x394   : > { %1640 = vrcp.f32 %v746_v19 }
 0x397   : > { %v864_v21 = vpop.permute.xlu1 %863 }
 0x398   : > { %v869_v24 = vsel %vm753_vm3, %v864_v21, 0 }
 0x39e   : > { %v1641_v20 = vpop.eup %1640  ;;  %974 = vrot.lane.b32.xlu0 %v690_v43, %s1866_s14  ;;  %s477_s14 = scalar_lea.vmem %s2264_s11, %s1393_s23 }
 0x39f   : > { %v748_v22 = vmul.f32 %v1641_v20, %v1633_v1 }
 0x3a1   : > { %v749_v23 = vpack.c.bf16 %v748_v22, %v748_v22 }
 0x3a3   : > { %1484 = vmatmul.mubr.msk.bf16.vlgmr.msra.gmra.mrb[8].mxu0 %vm691_vm2, %v749_v23  ;;  %v1419_v23 = vld [vmem:[#allocation9] ss:$0 sm:$0xff] }
 0x3a4   : > { %1494 = vmatpush3.bf16.msra.mxu0 %v869_v24  ;;  %1495 = vmatprep.mubr.msk.bf16.mxu0 %vm1865_vm0, %v1864_v0 }
 0x3a5   : > { %1505 = vmatprep.subr.bf16.mxu0 %v1864_v0 }
 0x405   : > { %v858_v25 = vpop.xlane.xlu0 %857 }
 0x406   : > { %1642 = vrcp.f32 %v858_v25  ;;  %v1420_v25 = vld [vmem:[#allocation10] ss:$0 sm:$0xff] }
 0x40d   : > { %v970_v26 = vpop.xlane.xlu1 %969 }
 0x40e   : > { %1644 = vrcp.f32 %v970_v26 }
 0x410   : > { %v1643_v27 = vpop.eup %1642 }
 0x411   : > { %v860_v28 = vmul.f32 %v1643_v27, %v1635_v10  ;;  %v1086_v35 = vpop.permute.xlu1 %1085 }
 0x412   : > { %v1091_v37 = vsel %vm753_vm3, %v1086_v35, 0 }
 0x413   : > { %v861_v29 = vpack.c.bf16 %v860_v28, %v860_v28 }
 0x415   : > { %v1081_v30 = vpop.xlane.xlu0 %1080  ;;  %1496 = vmatmul.mubr.msk.bf16.vlgmr.msra.gmra.mrb[12].mxu0 %vm691_vm2, %v861_v29 }
 0x416   : > { %1646 = vrcp.f32 %v1081_v30  ;;  %1507 = vmatprep.mubr.msk.bf16.mxu0 %vm1865_vm0, %v1864_v0 }
 0x418   : > { %v1645_v31 = vpop.eup %1644 }
 0x419   : > { %v972_v32 = vmul.f32 %v1645_v31, %v1637_v15  ;;  %v975_v33 = vpop.permute.xlu0 %974 }
 0x41a   : > { %v980_v34 = vsel %vm753_vm3, %v975_v33, 0 }
 0x41b   : > { %1506 = vmatpush3.bf16.msra.mxu0 %v980_v34  ;;  %v973_v36 = vpack.c.bf16 %v972_v32, %v972_v32 }
 0x41c   : > { %1517 = vmatprep.subr.bf16.mxu0 %v1864_v0 }
 0x41e   : > { %1508 = vmatmul.mubr.msk.bf16.vlgmr.msra.gmra.mrb[16].mxu0 %vm691_vm2, %v973_v36 }
 0x41f   : > { %1518 = vmatpush3.bf16.msra.mxu0 %v1091_v37  ;;  %1519 = vmatprep.mubr.msk.bf16.mxu0 %vm1865_vm0, %v1864_v0 }
 0x420   : > { %v1647_v38 = vpop.eup %1646 }
 0x421   : > { %v1083_v39 = vmul.f32 %v1647_v38, %v1639_v17 }
 0x423   : > { %v1084_v40 = vpack.c.bf16 %v1083_v39, %v1083_v39 }
 0x426   : > { %1520 = vmatmul.mubr.msk.bf16.vlgmr.msra.gmra.mrb[20].mxu0 %vm691_vm2, %v1084_v40 }
 0x476   : > { %v791_v41 = vpop.f32.mrb[8].mxu0 }
 0x477   : > { %v1485_v42 = vpop.f32.mrb[9].mxu0  ;;  %v797_v0 = vpack.c.bf16 %v791_v41, %v791_v41 }
 0x478   : > { %v794_v43 = vpop.f32.mrb[10].mxu0 }
 0x479   : > { %v1486_v44 = vpop.f32.mrb[11].mxu0 }
 0x4e8   : > { %v905_v46 = vpop.f32.mrb[12].mxu0 }
 0x4e9   : > { %v911_v47 = vpack.c.bf16 %v905_v46, %v905_v46  ;;  %v1497_v48 = vpop.f32.mrb[13].mxu0 }
 0x4ea   : > { %v908_v50 = vpop.f32.mrb[14].mxu0 }
 0x4eb   : > { %1135 = vrot.lane.b32.xlu1 %v911_v47, %s1869_s28  ;;  %v1498_v51 = vpop.f32.mrb[15].mxu0 }
 0x4f1   : > { %v1016_v52 = vpop.f32.mrb[16].mxu0 }
 0x4f2   : > { %v1022_v53 = vpack.c.bf16 %v1016_v52, %v1016_v52  ;;  %v1509_v54 = vpop.f32.mrb[17].mxu0 }
 0x4f3   : > { %v1019_v55 = vpop.f32.mrb[18].mxu0 }
 0x4f4   : > { %1138 = vrot.lane.b32.xlu0 %v1022_v53, %s1870_s26  ;;  %v1510_v56 = vpop.f32.mrb[19].mxu0 }
 0x4f9   : > { %v1127_v57 = vpop.f32.mrb[20].mxu0 }
 0x4fa   : > { %v1133_v58 = vpack.c.bf16 %v1127_v57, %v1127_v57  ;;  %v1521_v59 = vpop.f32.mrb[21].mxu0 }
 0x4fb   : > { %v1130_v60 = vpop.f32.mrb[22].mxu0 }
 0x4fc   : > { %1141 = vrot.lane.b32.xlu1 %v1133_v58, %s1871_s29  ;;  %v1522_v61 = vpop.f32.mrb[23].mxu0 }
 0x55d   : > { %v1136_v62 = vpop.permute.xlu1 %1135 }
 0x55e   : > { %v1145_v1 = vsel %vm691_vm2, %v797_v0, %v1136_v62 }
 0x566   : > { %v1139_v63 = vpop.permute.xlu0 %1138 }
 0x567   : > { %v1148_v2 = vsel %vm1146_vm4, %v1145_v1, %v1139_v63 }
 0x56e   : > { %v1142_v3 = vpop.permute.xlu1 %1141 }
 0x56f   : > { %v1151_v5 = vsel %vm1149_vm5, %v1148_v2, %v1142_v3 }
 0x570   : > { %1528 = vmatmul.mubr.msk.bf16.vlgmr.msra.gmra.mrb[20].mxu1 %vm525_vm1, %v1151_v5 }
 0x643   : > { %v1206_v7 = vpop.f32.mrb[20].mxu1 }
 0x644   : > { %v1207_v8 = vadd.f32 %v1415_v6, %v1206_v7  ;;  %v1529_v9 = vpop.f32.mrb[21].mxu1 }
 0x645   : > { %v1209_v10 = vpop.f32.mrb[22].mxu1 }
 0x646   : > { %v1530_v11 = vpop.f32.mrb[23].mxu1  ;;  %v1212_v12 = vadd.f32 %v1207_v8, %v2145_v4 }
 0x648   : > { %v1213_v13 = vsel %vm525_vm1, %v1212_v12, 0.0 }
 0x649   : > { %1214 = vadd.xlane.f32.xlu0 %v1213_v13 }
 0x6d6   : > { %v1215_v14 = vpop.xlane.xlu0 %1214 }
 0x6d7   : > { %v1217_v15 = vmul.f32 0.03125, %v1215_v14 }
 0x6d9   : > { %v1218_v16 = vsub.f32 %v1212_v12, %v1217_v15 }
 0x6db   : > { %v1219_v17 = vmul.f32 %v1218_v16, %v1218_v16 }
 0x6dd   : > { %v1220_v18 = vsel %vm525_vm1, %v1219_v17, 0.0 }
 0x6de   : > { %1221 = vadd.xlane.f32.xlu1 %v1220_v18 }
 0x76b   : > { %v1222_v19 = vpop.xlane.xlu1 %1221 }
 0x76c   : > { %v1223_v20 = vmul.f32 0.03125, %v1222_v19 }
 0x76e   : > { %v1224_v21 = vadd.f32 1e-05, %v1223_v20 }
 0x770   : > { %1648 = vrsqrt.f32 %v1224_v21 }
 0x77a   : > { %v1649_v22 = vpop.eup %1648 }
 0x77b   : > { %v1226_v24 = vmul.f32 %v1649_v22, %v1218_v16 }
 0x77d   : > { %v1233_v4 = vmul.f32 %v1419_v23, %v1226_v24 }
 0x77f   : > { %v1240_v26 = vadd.f32 %v1420_v25, %v1233_v4 }
 0x781   : > { %1241 = vst.msk [vmem:[%s477_s14] sm:$0xff] %vm525_vm1, %v1240_v26 }
 0x782 PF: > { %s2282_s25 = sld [smem:[#allocation16_spill]]  ;;  %s2283_s17 = smov %s1852_s18 }
 0x783   : > { %s2284_s18 = smov %s2286_s13 }
 0x788   : > { %s25_s19 = sadd.s32 1, %s2282_s25  }
 0x789   : > { %p22_p8 = scmp.ge.s32.totalorder %s25_s19, 4  }
 0x78b   :  { %24 = sbr.rel (!%p22_p8) target bundleno = 7 (0x7), region = 120 }
 0x792   :  { %1267 = vsyncpa [#allocation3], 1 }
 0x793   :  { %1269 = vsyncpa [#allocation3 + $0x1], 1 }
 0x794   :  { %1270 = vsyncpa [#allocation5], 1 }
 0x795   :  { %1271 = vsyncpa [#allocation8], 1 }
 0x796   :  { %1272 = vsyncpa [#allocation11], 1 }

// kernel: transformer_decoder_fwd.10
= control target key start
LH: loop header
LB: loop body
LE: loop exit
PB: predicated region body
PF: predicated region fallthrough
CT: control target
= control target key end

     0   :  { %s1532_s17 = smov 0   ;;  %s1534_s18 = smov 0   ;;  %s1700_s0 = inlined_call_operand.vmem [shape: f32[2,8,32], index: 0, kind: input, shape index: {}]   ;;  %s1701_s1 = inlined_call_operand.vmem [shape: bf16[32,32], index: 1, kind: input, shape index: {}]   ;;  %s1702_s2 = inlined_call_operand.vmem [shape: f32[1,32], index: 2, kind: input, shape index: {}]   ;;  %s1703_s3 = inlined_call_operand.vmem [shape: bf16[32,32], index: 3, kind: input, shape index: {}]   ;;  %s1704_s4 = inlined_call_operand.vmem [shape: f32[1,32], index: 4, kind: input, shape index: {}]   ;;  %s1705_s5 = inlined_call_operand.vmem [shape: bf16[32,32], index: 5, kind: input, shape index: {}]   ;;  %s1706_s6 = inlined_call_operand.vmem [shape: f32[1,32], index: 6, kind: input, shape index: {}]   ;;  %s1707_s7 = inlined_call_operand.vmem [shape: bf16[32,32], index: 7, kind: input, shape index: {}]   ;;  %s1708_s8 = inlined_call_operand.vmem [shape: f32[1,32], index: 8, kind: input, shape index: {}]   ;;  %s1709_s9 = inlined_call_operand.vmem [shape: f32[1,32], index: 9, kind: input, shape index: {}]   ;;  %s1710_s10 = inlined_call_operand.vmem [shape: f32[1,32], index: 10, kind: input, shape index: {}]   ;;  %s1711_s11 = inlined_call_operand.vmem [shape: f32[2,8,32], index: 11, kind: output, shape index: {}]  }
   0x1   :  { %s1536_s19 = smov 0  }
   0x2 LB: > { %s33_s20 = sadd.s32 1, %s1458_s18  ;;  %p1243_p0 = scmp.ge.s32.totalorder %s1462_s19, 1  ;;  %s1462_s19 = sphi %s1536_s19, %s21_s19   ;;  %s1458_s18 = sphi %s1534_s18, %s1713_s18   ;;  %s1454_s17 = sphi %s1532_s17, %s1712_s17  }
   0x3   : > { %p35_p1 = scmp.ge.s32.totalorder %s33_s20, 2  ;;  %p350_p2 = scmp.lt.s32.totalorder %s1462_s19, 3 }
   0x5   : > { %s1715_s20 = smov (%p35_p1, %s33_s20), 0  ;;  %p351_p3 = pnand %p1243_p0, %p350_p2 }
   0x6   : > { %v1414_v0 = vld [vmem:[%s1703_s3] sm:$0xff] (!%p351_p3)   ;;  %v1464_v1 = vmov (!%p351_p3), 0.0   ;;  %v1416_v3 = vld [vmem:[%s1703_s3 + $0x8] sm:$0xff] (!%p351_p3)   ;;  %vm1465_vm0 = vmmov (!%p351_p3), 0   ;;  %p391_p4 = scmp.lt.s32.totalorder (!%p351_p3), %s1454_s17, 1  ;;  %vm449_vm1 = vcmask (!%p351_p3), 261120  }
   0x7   : > { %354 = sbr.rel (%p351_p3) target bundleno = 1764 (0x6e4), region = 64  ;;  %1310 = vmatprep.subr.bf16.mxu1 (!%p351_p3), %v1464_v1  ;;  %1302 = vmatprep.subr.bf16.mxu0 (!%p351_p3), %v1464_v1  ;;  %v1415_v2 = vld [vmem:[%s1701_s1] sm:$0xff] (!%p351_p3)   ;;  %v1417_v4 = vld [vmem:[%s1701_s1 + $0x8] sm:$0xff] (!%p351_p3)   ;;  %vm615_vm2 = vcmask (!%p351_p3), 64512   ;;  %s1466_s22 = smov (!%p351_p3), 112   ;;  %vm677_vm3 = vcmask (!%p351_p3), 1043456  }
   0x8   : > { %1311 = vmatpush3.bf16.msra.mxu1 (!%p351_p3), %v1414_v0  ;;  %1314 = vmatprep.mubr.msk.bf16.mxu1 (!%p351_p3), %vm1465_vm0, %v1464_v1  ;;  %v1250_v7 = vld [vmem:[%s1704_s4] ss:$0 sm:$0xff] (!%p351_p3)  ;;  %s1467_s23 = smov (!%p351_p3), 120   ;;  %s1468_s24 = smov (!%p351_p3), 104   ;;  %v1419_v23 = vld [vmem:[%s1705_s5 + $0x8] sm:$0xff] (!%p351_p3)   ;;  %vm1070_vm4 = vcmask (!%p351_p3), 130048  }
   0x9   : > { %1312 = vmatprep.subr.bf16.mxu1 (!%p351_p3), %v1464_v1  ;;  %1303 = vmatpush3.bf16.msra.mxu0 (!%p351_p3), %v1415_v2  ;;  %v1246_v8 = vld [vmem:[%s1702_s2] ss:$0 sm:$0xff] (!%p351_p3)  ;;  %s1469_s21 = smov (!%p351_p3), 8   ;;  %vm1073_vm5 = vcmask (!%p351_p3), 195584  }
   0xa   : > { %1304 = vmatprep.subr.bf16.mxu0 (!%p351_p3), %v1464_v1  ;;  %1306 = vmatprep.mubr.msk.bf16.mxu0 (!%p351_p3), %vm1465_vm0, %v1464_v1  ;;  %v1418_v22 = vld [vmem:[%s1705_s5] sm:$0xff] (!%p351_p3)  }
   0xb   : > { %v1254_v38 = vld [vmem:[%s1706_s6] ss:$0 sm:$0xff] (!%p351_p3) }
   0xc   : > { %1313 = vmatpush3.bf16.msra.mxu1 (!%p351_p3), %v1416_v3 }
   0xd   : > { %1305 = vmatpush3.bf16.msra.mxu0 (!%p351_p3), %v1417_v4  ;;  %1326 = vmatprep.subr.bf16.mxu1 (!%p351_p3), %v1464_v1 }
   0xe   : > { %s1717_s17 = smov (!%p391_p4, %s1454_s17), 1  ;;  %1318 = vmatprep.subr.bf16.mxu0 %v1464_v1 }
   0xf   : > { %s1244_s29 = sshll.u32 %s1717_s17, 3 }
  0x10   : > { %s394_s13 = scalar_lea.vmem %s1700_s0, %s1244_s29  ;;  %s401_s14 = scalar_lea.vmem %s1711_s11, %s1244_s29 }
  0x11   : > { %v1579_v5 = vld [vmem:[%s394_s13] sm:$0xff] }
  0x12   : > { %v430_v6 = vpack.c.bf16 %v1579_v5, %v1579_v5 }
  0x14   : > { %1315 = vmatmul.mubr.msk.bf16.vlgmr.msra.gmra.mrb[0].mxu1 %vm449_vm1, %v430_v6  ;;  %1307 = vmatmul.mubr.msk.bf16.vlgmr.msra.gmra.mrb[0].mxu0 %vm449_vm1, %v430_v6 }
  0x15   : > { %1328 = vmatprep.mubr.msk.bf16.mxu1 %vm1465_vm0, %v1464_v1  ;;  %1322 = vmatprep.mubr.msk.bf16.mxu0 %vm1465_vm0, %v1464_v1 }
  0x16   : > { %1319 = vmatpush3.bf16.msra.mxu0 %v1418_v22 }
  0x17   : > { %1320 = vmatprep.subr.bf16.mxu0 %v1464_v1 }
  0x1a   : > { %1321 = vmatpush3.bf16.msra.mxu0 %v1419_v23 }
  0x1b   : > { %1332 = vmatprep.subr.bf16.mxu0 %v1464_v1 }
  0x1d   : > { %1323 = vmatmul.mubr.msk.bf16.vlgmr.msra.gmra.mrb[4].mxu0 %vm449_vm1, %v430_v6 }
  0x1e   : > { %1334 = vmatprep.mubr.msk.bf16.mxu0 %vm1465_vm0, %v1464_v1 }
  0xe7   : > { %v548_v9 = vpop.f32.mrb[0].mxu1  ;;  %v487_v10 = vpop.f32.mrb[0].mxu0 }
  0xe8   : > { %v549_v11 = vadd.f32 %v1250_v7, %v548_v9  ;;  %v1316_v12 = vpop.f32.mrb[1].mxu1  ;;  %v488_v13 = vadd.f32 %v1246_v8, %v487_v10  ;;  %v1308_v14 = vpop.f32.mrb[1].mxu0 }
  0xe9   : > { %v551_v15 = vpop.f32.mrb[2].mxu1  ;;  %v490_v16 = vpop.f32.mrb[2].mxu0 }
  0xea   : > { %v613_v17 = vpack.c.bf16 %v549_v11, %v549_v11  ;;  %v1317_v18 = vpop.f32.mrb[3].mxu1  ;;  %v1309_v19 = vpop.f32.mrb[3].mxu0  ;;  %v612_v20 = vpack.c.bf16 %v488_v13, %v488_v13 }
  0xec   : > { %838 = vrot.lane.b32.xlu1 %v613_v17, %s1466_s22  ;;  %726 = vrot.lane.b32.xlu0 %v613_v17, %s1467_s23  ;;  %v620_v21 = vsel %vm615_vm2, %v613_v17, 0 }
  0xed   : > { %1327 = vmatpush3.bf16.xpose.msra.mxu1 %v620_v21 }
  0xee   : > { %1338 = vmatprep.subr.bf16.mxu1 %v1464_v1 }
  0xf0   : > { %836 = vrot.lane.b32.xlu1 %v612_v20, %s1466_s22  ;;  %723 = vrot.lane.b32.xlu0 %v612_v20, %s1467_s23  ;;  %v606_v39 = vpop.f32.mrb[4].mxu0 }
  0xf1   : > { %v607_v40 = vadd.f32 %v1254_v38, %v606_v39  ;;  %v1324_v41 = vpop.f32.mrb[5].mxu0 }
  0xf2   : > { %v609_v42 = vpop.f32.mrb[6].mxu0 }
  0xf3   : > { %v614_v43 = vpack.c.bf16 %v607_v40, %v607_v40  ;;  %v1325_v44 = vpop.f32.mrb[7].mxu0 }
  0xf4   : > { %947 = vrot.lane.b32.xlu1 %v612_v20, %s1468_s24  ;;  %949 = vrot.lane.b32.xlu0 %v613_v17, %s1468_s24 }
  0xf5   : > { %1329 = vmatmul.mubr.msk.bf16.vlgmr.msra.gmra.mrb[4].mxu1 %vm615_vm2, %v612_v20  ;;  %v679_v45 = vsel %vm677_vm3, %v614_v43, 0 }
  0xf6   : > { %1340 = vmatprep.mubr.msk.bf16.mxu1 %vm1465_vm0, %v1464_v1  ;;  %1333 = vmatpush3.bf16.msra.mxu0 %v679_v45  ;;  %v1420_v45 = vld [vmem:[%s1707_s7] sm:$0xff]  }
  0xf7   : > { %1344 = vmatprep.subr.bf16.mxu0 %v1464_v1 }
 0x15e   : > { %v727_v24 = vpop.permute.xlu0 %726  ;;  %v839_v26 = vpop.permute.xlu1 %838 }
 0x15f   : > { %v732_v25 = vsel %vm615_vm2, %v727_v24, 0  ;;  %v844_v28 = vsel %vm615_vm2, %v839_v26, 0 }
 0x160   : > { %1339 = vmatpush3.bf16.xpose.msra.mxu1 %v732_v25 }
 0x161   : > { %1350 = vmatprep.subr.bf16.mxu1 %v1464_v1 }
 0x162   : > { %v724_v27 = vpop.permute.xlu0 %723  ;;  %v837_v30 = vpop.permute.xlu1 %836 }
 0x166   : > { %v950_v29 = vpop.permute.xlu0 %949  ;;  %v948_v32 = vpop.permute.xlu1 %947 }
 0x167   : > { %1341 = vmatmul.mubr.msk.bf16.vlgmr.msra.gmra.mrb[8].mxu1 %vm615_vm2, %v724_v27  ;;  %v955_v31 = vsel %vm615_vm2, %v950_v29, 0 }
 0x168   : > { %1351 = vmatpush3.bf16.xpose.msra.mxu1 %v844_v28  ;;  %1352 = vmatprep.mubr.msk.bf16.mxu1 %vm1465_vm0, %v1464_v1 }
 0x169   : > { %1362 = vmatprep.subr.bf16.mxu1 %v1464_v1 }
 0x16f   : > { %1353 = vmatmul.mubr.msk.bf16.vlgmr.msra.gmra.mrb[12].mxu1 %vm615_vm2, %v837_v30 }
 0x170   : > { %1363 = vmatpush3.bf16.xpose.msra.mxu1 %v955_v31  ;;  %1364 = vmatprep.mubr.msk.bf16.mxu1 %vm1465_vm0, %v1464_v1 }
 0x171   : > { %1374 = vmatprep.subr.bf16.mxu1 %v1464_v1 }
 0x177   : > { %1365 = vmatmul.mubr.msk.bf16.vlgmr.msra.gmra.mrb[16].mxu1 %vm615_vm2, %v948_v32 }
 0x178   : > { %1378 = vmatprep.mubr.msk.bf16.mxu1 %vm1465_vm0, %v1464_v1  ;;  %1375 = vmatpush3.bf16.msra.mxu1 %v1420_v45 }
 0x179   : > { %1376 = vmatprep.subr.bf16.mxu1 %v1464_v1 }
 0x1c8   : > { %v656_v33 = vpop.f32.mrb[4].mxu1 }
 0x1c9   : > { %v1330_v34 = vpop.f32.mrb[5].mxu1  ;;  %v662_v35 = vsel %vm615_vm2, %v656_v33, -inf }
 0x1ca   : > { %663 = vmax.xlane.f32.xlu0 %v662_v35  ;;  %v659_v36 = vpop.f32.mrb[6].mxu1 }
 0x1cb   : > { %v1331_v37 = vpop.f32.mrb[7].mxu1 }
 0x23a   : > { %v768_v46 = vpop.f32.mrb[8].mxu1 }
 0x23b   : > { %v1342_v47 = vpop.f32.mrb[9].mxu1  ;;  %v774_v48 = vsel %vm615_vm2, %v768_v46, -inf }
 0x23c   : > { %775 = vmax.xlane.f32.xlu1 %v774_v48  ;;  %v771_v49 = vpop.f32.mrb[10].mxu1 }
 0x23d   : > { %v1343_v50 = vpop.f32.mrb[11].mxu1  ;;  %v1421_v49 = vld [vmem:[%s1707_s7 + $0x8] sm:$0xff]  }
 0x23e   : > { %1377 = vmatpush3.bf16.msra.mxu1 %v1421_v49 }
 0x242   : > { %v880_v51 = vpop.f32.mrb[12].mxu1 }
 0x243   : > { %v1354_v52 = vpop.f32.mrb[13].mxu1  ;;  %v886_v53 = vsel %vm615_vm2, %v880_v51, -inf }
 0x244   : > { %887 = vmax.xlane.f32.xlu0 %v886_v53  ;;  %v883_v54 = vpop.f32.mrb[14].mxu1 }
 0x245   : > { %v1355_v55 = vpop.f32.mrb[15].mxu1 }
 0x24a   : > { %v991_v56 = vpop.f32.mrb[16].mxu1 }
 0x24b   : > { %v1366_v57 = vpop.f32.mrb[17].mxu1  ;;  %v997_v58 = vsel %vm615_vm2, %v991_v56, -inf }
 0x24c   : > { %998 = vmax.xlane.f32.xlu0 %v997_v58  ;;  %v994_v59 = vpop.f32.mrb[18].mxu1 }
 0x24d   : > { %v1367_v60 = vpop.f32.mrb[19].mxu1 }
 0x257   : > { %v664_v61 = vpop.xlane.xlu0 %663 }
 0x258   : > { %v665_v62 = vsub.f32 %v656_v33, %v664_v61 }
 0x25a   : > { %v666_v63 = vmul.f32 1.442695, %v665_v62 }
 0x25c   : > { %1422 = vpow2.f32 %v666_v63 }
 0x266   : > { %v1423_v0 = vpop.eup %1422 }
 0x267   : > { %v668_v2 = vsel %vm615_vm2, %v1423_v0, 0.0 }
 0x268   : > { %669 = vadd.xlane.f32.xlu1 %v668_v2 }
 0x279   : > { %787 = vrot.lane.b32.xlu1 %v614_v43, %s1467_s23  ;;  %s1471_s23 = smov 24  }
 0x2c9   : > { %v776_v3 = vpop.xlane.xlu1 %775 }
 0x2ca   : > { %v777_v4 = vsub.f32 %v768_v46, %v776_v3 }
 0x2cc   : > { %v778_v6 = vmul.f32 1.442695, %v777_v4 }
 0x2ce   : > { %1424 = vpow2.f32 %v778_v6  ;;  %v1266_v6 = vld [vmem:[%s1708_s8] ss:$0 sm:$0xff] }
 0x2d1   : > { %v888_v7 = vpop.xlane.xlu0 %887 }
 0x2d2   : > { %v889_v8 = vsub.f32 %v880_v51, %v888_v7 }
 0x2d4   : > { %v890_v9 = vmul.f32 1.442695, %v889_v8 }
 0x2d6   : > { %1426 = vpow2.f32 %v890_v9 }
 0x2d8   : > { %v1425_v10 = vpop.eup %1424 }
 0x2d9   : > { %v999_v11 = vpop.xlane.xlu0 %998  ;;  %v780_v12 = vsel %vm615_vm2, %v1425_v10, 0.0 }
 0x2da   : > { %v1000_v13 = vsub.f32 %v991_v56, %v999_v11  ;;  %781 = vadd.xlane.f32.xlu0 %v780_v12 }
 0x2dc   : > { %v1001_v14 = vmul.f32 1.442695, %v1000_v13 }
 0x2de   : > { %1428 = vpow2.f32 %v1001_v14 }
 0x2e0   : > { %v1427_v15 = vpop.eup %1426 }
 0x2e1   : > { %v892_v16 = vsel %vm615_vm2, %v1427_v15, 0.0 }
 0x2e2   : > { %893 = vadd.xlane.f32.xlu1 %v892_v16 }
 0x2e8   : > { %v1429_v17 = vpop.eup %1428 }
 0x2e9   : > { %v1003_v18 = vsel %vm615_vm2, %v1429_v17, 0.0 }
 0x2ea   : > { %1004 = vadd.xlane.f32.xlu0 %v1003_v18 }
 0x2f3   : > { %1009 = vrot.lane.b32.xlu1 %v614_v43, %s1468_s24 }
 0x2f5   : > { %v670_v19 = vpop.xlane.xlu1 %669 }
 0x2f6   : > { %1430 = vrcp.f32 %v670_v19 }
 0x2f9   : > { %v788_v21 = vpop.permute.xlu1 %787 }
 0x2fa   : > { %v793_v24 = vsel %vm677_vm3, %v788_v21, 0 }
 0x300   : > { %v1431_v20 = vpop.eup %1430  ;;  %898 = vrot.lane.b32.xlu0 %v614_v43, %s1466_s22  ;;  %s1470_s22 = smov 16  }
 0x301   : > { %v672_v22 = vmul.f32 %v1431_v20, %v1423_v0 }
 0x303   : > { %v673_v23 = vpack.c.bf16 %v672_v22, %v672_v22 }
 0x305   : > { %1335 = vmatmul.mubr.msk.bf16.vlgmr.msra.gmra.mrb[8].mxu0 %vm615_vm2, %v673_v23 }
 0x306   : > { %1345 = vmatpush3.bf16.msra.mxu0 %v793_v24  ;;  %1346 = vmatprep.mubr.msk.bf16.mxu0 %vm1465_vm0, %v1464_v1  ;;  %v1271_v24 = vld [vmem:[%s1710_s10] ss:$0 sm:$0xff] }
 0x307   : > { %1356 = vmatprep.subr.bf16.mxu0 %v1464_v1 }
 0x367   : > { %v782_v25 = vpop.xlane.xlu0 %781 }
 0x368   : > { %1432 = vrcp.f32 %v782_v25 }
 0x36f   : > { %v894_v26 = vpop.xlane.xlu1 %893 }
 0x370   : > { %1434 = vrcp.f32 %v894_v26 }
 0x372   : > { %v1433_v27 = vpop.eup %1432 }
 0x373   : > { %v784_v28 = vmul.f32 %v1433_v27, %v1425_v10  ;;  %v1010_v35 = vpop.permute.xlu1 %1009 }
 0x374   : > { %v1015_v37 = vsel %vm677_vm3, %v1010_v35, 0 }
 0x375   : > { %v785_v29 = vpack.c.bf16 %v784_v28, %v784_v28 }
 0x377   : > { %v1005_v30 = vpop.xlane.xlu0 %1004  ;;  %1347 = vmatmul.mubr.msk.bf16.vlgmr.msra.gmra.mrb[12].mxu0 %vm615_vm2, %v785_v29 }
 0x378   : > { %1436 = vrcp.f32 %v1005_v30  ;;  %1358 = vmatprep.mubr.msk.bf16.mxu0 %vm1465_vm0, %v1464_v1 }
 0x37a   : > { %v1435_v31 = vpop.eup %1434 }
 0x37b   : > { %v896_v32 = vmul.f32 %v1435_v31, %v1427_v15  ;;  %v899_v33 = vpop.permute.xlu0 %898 }
 0x37c   : > { %v904_v34 = vsel %vm677_vm3, %v899_v33, 0 }
 0x37d   : > { %1357 = vmatpush3.bf16.msra.mxu0 %v904_v34  ;;  %v897_v36 = vpack.c.bf16 %v896_v32, %v896_v32 }
 0x37e   : > { %1368 = vmatprep.subr.bf16.mxu0 %v1464_v1 }
 0x380   : > { %1359 = vmatmul.mubr.msk.bf16.vlgmr.msra.gmra.mrb[16].mxu0 %vm615_vm2, %v897_v36 }
 0x381   : > { %1369 = vmatpush3.bf16.msra.mxu0 %v1015_v37  ;;  %1370 = vmatprep.mubr.msk.bf16.mxu0 %vm1465_vm0, %v1464_v1 }
 0x382   : > { %v1437_v38 = vpop.eup %1436 }
 0x383   : > { %v1007_v39 = vmul.f32 %v1437_v38, %v1429_v17 }
 0x385   : > { %v1008_v40 = vpack.c.bf16 %v1007_v39, %v1007_v39 }
 0x388   : > { %1371 = vmatmul.mubr.msk.bf16.vlgmr.msra.gmra.mrb[20].mxu0 %vm615_vm2, %v1008_v40 }
 0x3d8   : > { %v715_v41 = vpop.f32.mrb[8].mxu0 }
 0x3d9   : > { %v1336_v42 = vpop.f32.mrb[9].mxu0  ;;  %v721_v1 = vpack.c.bf16 %v715_v41, %v715_v41 }
 0x3da   : > { %v718_v43 = vpop.f32.mrb[10].mxu0 }
 0x3db   : > { %v1337_v44 = vpop.f32.mrb[11].mxu0 }
 0x44a   : > { %v829_v46 = vpop.f32.mrb[12].mxu0 }
 0x44b   : > { %v835_v47 = vpack.c.bf16 %v829_v46, %v829_v46  ;;  %v1348_v48 = vpop.f32.mrb[13].mxu0 }
 0x44c   : > { %v832_v50 = vpop.f32.mrb[14].mxu0 }
 0x44d   : > { %1059 = vrot.lane.b32.xlu1 %v835_v47, %s1469_s21  ;;  %v1349_v51 = vpop.f32.mrb[15].mxu0 }
 0x453   : > { %v940_v52 = vpop.f32.mrb[16].mxu0 }
 0x454   : > { %v946_v53 = vpack.c.bf16 %v940_v52, %v940_v52  ;;  %v1360_v54 = vpop.f32.mrb[17].mxu0 }
 0x455   : > { %v943_v55 = vpop.f32.mrb[18].mxu0 }
 0x456   : > { %1062 = vrot.lane.b32.xlu0 %v946_v53, %s1470_s22  ;;  %v1361_v56 = vpop.f32.mrb[19].mxu0 }
 0x45b   : > { %v1051_v57 = vpop.f32.mrb[20].mxu0 }
 0x45c   : > { %v1057_v58 = vpack.c.bf16 %v1051_v57, %v1051_v57  ;;  %v1372_v59 = vpop.f32.mrb[21].mxu0 }
 0x45d   : > { %v1054_v60 = vpop.f32.mrb[22].mxu0 }
 0x45e   : > { %1065 = vrot.lane.b32.xlu1 %v1057_v58, %s1471_s23  ;;  %v1373_v61 = vpop.f32.mrb[23].mxu0 }
 0x4bf   : > { %v1060_v62 = vpop.permute.xlu1 %1059 }
 0x4c0   : > { %v1069_v0 = vsel %vm615_vm2, %v721_v1, %v1060_v62 }
 0x4c8   : > { %v1063_v63 = vpop.permute.xlu0 %1062 }
 0x4c9   : > { %v1072_v2 = vsel %vm1070_vm4, %v1069_v0, %v1063_v63 }
 0x4d0   : > { %v1066_v3 = vpop.permute.xlu1 %1065 }
 0x4d1   : > { %v1075_v4 = vsel %vm1073_vm5, %v1072_v2, %v1066_v3 }
 0x4d2   : > { %1379 = vmatmul.mubr.msk.bf16.vlgmr.msra.gmra.mrb[20].mxu1 %vm449_vm1, %v1075_v4 }
 0x5a5   : > { %v1130_v7 = vpop.f32.mrb[20].mxu1 }
 0x5a6   : > { %v1131_v8 = vadd.f32 %v1266_v6, %v1130_v7  ;;  %v1380_v9 = vpop.f32.mrb[21].mxu1 }
 0x5a7   : > { %v1133_v10 = vpop.f32.mrb[22].mxu1 }
 0x5a8   : > { %v1381_v11 = vpop.f32.mrb[23].mxu1  ;;  %v1136_v12 = vadd.f32 %v1131_v8, %v1579_v5  ;;  %v1270_v5 = vld [vmem:[%s1709_s9] ss:$0 sm:$0xff] }
 0x5aa   : > { %v1137_v13 = vsel %vm449_vm1, %v1136_v12, 0.0 }
 0x5ab   : > { %1138 = vadd.xlane.f32.xlu0 %v1137_v13 }
 0x638   : > { %v1139_v14 = vpop.xlane.xlu0 %1138 }
 0x639   : > { %v1141_v15 = vmul.f32 0.03125, %v1139_v14 }
 0x63b   : > { %v1142_v16 = vsub.f32 %v1136_v12, %v1141_v15 }
 0x63d   : > { %v1143_v17 = vmul.f32 %v1142_v16, %v1142_v16 }
 0x63f   : > { %v1144_v18 = vsel %vm449_vm1, %v1143_v17, 0.0 }
 0x640   : > { %1145 = vadd.xlane.f32.xlu1 %v1144_v18 }
 0x6cd   : > { %v1146_v19 = vpop.xlane.xlu1 %1145 }
 0x6ce   : > { %v1147_v20 = vmul.f32 0.03125, %v1146_v19 }
 0x6d0   : > { %v1148_v21 = vadd.f32 1e-05, %v1147_v20 }
 0x6d2   : > { %1438 = vrsqrt.f32 %v1148_v21 }
 0x6dc   : > { %v1439_v22 = vpop.eup %1438 }
 0x6dd   : > { %v1150_v23 = vmul.f32 %v1439_v22, %v1142_v16 }
 0x6df   : > { %v1157_v25 = vmul.f32 %v1270_v5, %v1150_v23 }
 0x6e1   : > { %v1164_v26 = vadd.f32 %v1271_v24, %v1157_v25 }
 0x6e3   : > { %1165 = vst.msk [vmem:[%s401_s14] sm:$0xff] %vm449_vm1, %v1164_v26 }
 0x6e4 PF: > { %s21_s19 = sadd.s32 1, %s1462_s19   ;;  %s1712_s17 = smov %s1458_s18 }
 0x6e5   : > { %p18_p5 = scmp.ge.s32.totalorder %s21_s19, 4   ;;  %s1713_s18 = smov %s1715_s20 }
 0x6e7   :  { %20 = sbr.rel (!%p18_p5) target bundleno = 2 (0x2), region = 95 }

// kernel: transformer_decoder_fwd.13
= control target key start
LH: loop header
LB: loop body
LE: loop exit
PB: predicated region body
PF: predicated region fallthrough
CT: control target
= control target key end

     0   :  { %v151_v1 = vmov 0.0   ;;  %vm152_vm0 = vmmov 0   ;;  %s203_s0 = inlined_call_operand.vmem [shape: f32[16,32], index: 0, kind: input, shape index: {}]   ;;  %s204_s1 = inlined_call_operand.vmem [shape: bf16[32,32], index: 1, kind: input, shape index: {}]   ;;  %s205_s2 = inlined_call_operand.vmem [shape: f32[1,32], index: 2, kind: input, shape index: {}]   ;;  %s206_s3 = inlined_call_operand.hbm [shape: f32[16,32], index: 3, kind: output, shape index: {}]  }
   0x1   :  { %v125_v0 = vld [vmem:[%s204_s1] sm:$0xff]   ;;  %112 = vmatprep.subr.bf16.mxu0 %v151_v1  ;;  %v126_v2 = vld [vmem:[%s204_s1 + $0x8] sm:$0xff]   ;;  %116 = vmatprep.mubr.msk.bf16.mxu0 %vm152_vm0, %v151_v1 }
   0x2   :  { %113 = vmatpush3.bf16.msra.mxu0 %v125_v0  ;;  %v16_v3 = vld [vmem:[%s203_s0] sm:$0xff]  ;;  %v17_v4 = vld [vmem:[%s203_s0 + $0x8] sm:$0xff] }
   0x3   :  { %114 = vmatprep.subr.bf16.mxu0 %v151_v1 }
   0x4   :  { %8 = vsyncpa [#allocation3], 0  ;;  %v18_v5 = vpack.c.bf16 %v17_v4, %v16_v3  ;;  %vm42_vm1 = vcmask 261120   ;;  %v105_v6 = vld [vmem:[%s205_s2] ss:$0 sm:$0xff]  ;;  %s153_s1 = smov [#allocation2]  }
   0x5   :  { %s94_s22 = sshll.u32 %s153_s1, 4  ;;  %s95_s22 = int_to_ptr.vmem [resolvable:$true] %s94_s22 }
   0x6   :  { %115 = vmatpush3.bf16.msra.mxu0 %v126_v2  ;;  %s127_s0 = scalar_lea.vmem %s95_s22, 256  ;;  %p132_p1 = scmp.lt.s32.totalorder %s95_s22, %s95_s22 }
   0x7   :  { %p128_p0 = scmp.ne.s32.totalorder %s95_s22, %s127_s0  ;;  %p133_p2 = scmp.lt.s32.totalorder %s127_s0, %s127_s0 }
   0x9   :  { %117 = vmatmul.mubr.msk.bf16.vlgmr.msra.gmra.mrb[0].mxu0 %vm42_vm1, %v18_v5  ;;  %p134_p3 = por %p133_p2, %p132_p1 }
   0xb   :  { %p135_p4 = pnand %p134_p3, %p128_p0 }
  0xdc   :  { %v80_v7 = vpop.f32.mrb[0].mxu0 }
  0xdd   :  { %v81_v8 = vadd.f32 %v105_v6, %v80_v7  ;;  %v118_v9 = vpop.f32.mrb[1].mxu0 }
  0xde   :  { %v83_v10 = vpop.f32.mrb[2].mxu0 }
  0xdf   :  { %87 = vst.msk [vmem:[#allocation2] sm:$0xff] %vm42_vm1, %v81_v8  ;;  %v84_v11 = vadd.f32 %v105_v6, %v83_v10  ;;  %v119_v12 = vpop.f32.mrb[3].mxu0 }
  0xe1   :  { %88 = vst.msk [vmem:[#allocation2 + $0x8] sm:$0xff] %vm42_vm1, %v84_v11 }
  0xe2   :  { %138 = shalt.err (!%p135_p4)
}
  0xe3   :  { %s139_s24 = scalar_lea.hbm %s206_s3, 256 }
  0xe4   :  { %p140_p5 = scmp.ne.s32.totalorder %s206_s3, %s139_s24  ;;  %p143_p6 = scmp.lt.u32.totalorder %s139_s24, %s206_s3 }
  0xe6   :  { %p145_p7 = pnand %p143_p6, %p140_p5 }
  0xe8   :  { %148 = shalt.err (!%p145_p7)
}
  0xe9   :  { %s154_s29 = smov 128   ;;  %s155_s30 = smov 8  }
  0xea   :  { %100 = dma.vmem_to_hbm [thread:$0]  %s95_s22, 256, %s206_s3, [#allocation3], %s154_s29, %s154_s29, %s155_s30  }
  0xeb   :  { %149 = dma.done.wait [#allocation3], 256  }
  0xec   :  { %150 = vsyncadd [#allocation3], 4294967040 }
  0xed   :  { %104 = vsyncpa [#allocation3], 1 }

</bundles_post_ra>
